<compile_context>
chip_gen: v7x
topology: tpu7x:2x2x1
jax: 0.10.0
libtpu: 0.0.40
codegen_flags: <defaults>
</compile_context>

<pallas_src>
import functools

import jax
import jax.numpy as jnp
from jax import lax
from jax.experimental import pallas as pl
from jax.experimental.pallas import tpu as pltpu

# ------------- SCD_Net constants (module defaults & in-forward literals) -----
T         = 0.07     # softmax temperature
M_MOM     = 0.999    # key-encoder momentum
MIX_R_POS = 0.2
MIX_R_NEG = 0.1
MEM_MOM   = 0.9      # memory-bank momentum
MEM_WD    = 1e-4
MEMORY_LR = 3.0
MEM_T     = 0.03
EPS       = 1e-12    # F.normalize eps

# ------------- small problem sizes consistent with the module ----------------
N_BATCH = 8          # batch size
F_IN    = 128        # raw input feature size fed to the (stand-in) encoder
DIM     = 128        # "dim"  (3072 in the default module)
K_BANK  = 512        # "K"    (65536 in the default module)


# ============================ tiling / VMEM policy ===========================
@functools.lru_cache(maxsize=None)
def _vmem_capacity_bytes():
    """Per-TensorCore VMEM capacity; conservative 64 MiB fallback (v7x)."""
    try:
        kind = jax.devices()[0].device_kind.lower()
        if any(t in kind for t in ("v5 lite", "v5e", "v5litepod",
                                   "v6e", "v6 lite", "trillium")):
            return 128 << 20
        if "v7" in kind:
            return 64 << 20
    except Exception:
        pass
    try:
        cap = int(getattr(pltpu.get_tpu_info(), "vmem_capacity_bytes", 0))
        if cap:
            return cap
    except Exception:
        pass
    return 64 << 20


def _update_vmem_bytes(c, tk, gn):
    # 2x-buffered W/v in + W/v out tiles (8x) plus in-kernel live (C,TK) tiles
    # (w0, running w/v, grad/g1 temporaries ~ 4x), q, l_neg, slack.
    return (12 * c * tk + 2 * c * gn + 4 * gn * tk) * 4 + (4 << 20)


def _logits_vmem_bytes(c, tk, gn):
    return (4 * c * tk + 2 * gn * c + 6 * gn * tk) * 4 + (4 << 20)


@functools.lru_cache(maxsize=None)
def _pick_k_tile(c, k, gn):
    """Largest multiple-of-128 divisor of k whose bank_update working set fits
    ~72% of per-core VMEM; whole-K (grid=(1,)) for small/odd K (toy sizes)."""
    cap = _vmem_capacity_bytes()
    budget = int(cap * 0.72)
    cands = [d for d in range(k, 127, -128) if d % 128 == 0 and k % d == 0]
    if not cands:
        return k
    for tk in cands:                      # descending -> largest fitting tile
        if _update_vmem_bytes(c, tk, gn) <= budget:
            return tk
    return cands[-1]


def _bank_params(vmem_est):
    cap = _vmem_capacity_bytes()
    limit = int(min(cap - (2 << 20), max(vmem_est + (8 << 20), 32 << 20)))
    return pltpu.CompilerParams(dimension_semantics=("parallel",),
                                vmem_limit_bytes=limit)


def _fs(shape):
    """BlockSpec covering the whole array as a single block (grid=(1,))."""
    return pl.BlockSpec(shape, lambda i, _n=len(shape): (0,) * _n)


# ================================ kernels ====================================
def _encoder_kernel(dim, x_ref, w_ref, t_ref, s_ref, i_ref):
    # TODO(synk): PretrainingEncoder is not defined in the provided source; a
    # deterministic linear stand-in producing the t / s / i heads is used so
    # the SCD_Net MoCo branch can be exercised end-to-end.  The matmul, the
    # 3-way split and the three row-normalizations are fused in one kernel.
    y = jnp.dot(x_ref[...], w_ref[...], preferred_element_type=jnp.float32)
    for j, o_ref in enumerate((t_ref, s_ref, i_ref)):
        h = y[:, j * dim:(j + 1) * dim]
        inv = lax.rsqrt(jnp.maximum(jnp.sum(h * h, axis=1, keepdims=True),
                                    EPS * EPS))
        o_ref[...] = h * inv                     # F.normalize(h, dim=1)


def encode_normalized(x, w_enc, dim):
    n, f = x.shape
    three_d = w_enc.shape[1]
    kern = functools.partial(_encoder_kernel, dim)
    return pl.pallas_call(
        kern,
        grid=(1,),
        in_specs=[_fs((n, f)), _fs((f, three_d))],
        out_specs=tuple(_fs((n, dim)) for _ in range(3)),
        out_shape=tuple(jax.ShapeDtypeStruct((n, dim), jnp.float32)
                        for _ in range(3)),
    )(x, w_enc)


def _bank_logits_kernel(n, q_ref, w_ref, lneg_ref, ssq_ref, ts_ref):
    w = w_ref[...]                                   # (C, TK) bank tile
    sumsq = jnp.sum(w * w, axis=0, keepdims=True)    # (1, TK) -> reused later
    ssq_ref[...] = sumsq
    inv = lax.rsqrt(jnp.maximum(sumsq, EPS * EPS))   # 1 / max(||col||, eps)
    q = q_ref[...]                                   # (GN, C) row-normalized q
    # l_neg = q @ F.normalize(W, dim=0): fold the column scale into the OUTPUT
    # (a (GN,TK) multiply) instead of building a (C,TK) d_norm temporary.
    ln = jnp.dot(q, w, preferred_element_type=jnp.float32) * inv
    lneg_ref[...] = ln
    # per-tile softmax partial: log-sum-exp of l_neg / mem_t over this tile
    z = ln * (1.0 / MEM_T)
    tmax = jnp.max(z, axis=1, keepdims=True)
    lse = tmax + jnp.log(jnp.sum(jnp.exp(z - tmax), axis=1, keepdims=True))
    # masked-"diagonal" partial sum: global column k counts iff k % N == row % N
    gn, tk = ln.shape
    col0 = pl.program_id(0) * tk
    rows = lax.broadcasted_iota(jnp.int32, ln.shape, 0) % n
    cols = (col0 + lax.broadcasted_iota(jnp.int32, ln.shape, 1)) % n
    diag = jnp.sum(jnp.where(rows == cols, ln, 0.0), axis=1, keepdims=True)
    # lane-dense (GN, 128) partial-stats slab: lane0 = LSE, lane1 = diag sum
    lane = lax.broadcasted_iota(jnp.int32, (gn, 128), 1)
    ts_ref[...] = jnp.where(lane == 0, lse, jnp.where(lane == 1, diag, 0.0))


def bank_logits(q_stk, w, n):
    gn, c = q_stk.shape
    k = w.shape[1]
    tk = _pick_k_tile(c, k, gn)
    num_t = k // tk
    kern = functools.partial(_bank_logits_kernel, n)
    return pl.pallas_call(
        kern,
        grid=(num_t,),
        in_specs=[pl.BlockSpec((gn, c), lambda kt: (0, 0)),
                  pl.BlockSpec((c, tk), lambda kt: (0, kt))],
        out_specs=(pl.BlockSpec((gn, tk), lambda kt: (0, kt)),
                   pl.BlockSpec((1, tk), lambda kt: (0, kt)),
                   pl.BlockSpec((gn, 128), lambda kt: (0, kt))),
        out_shape=(jax.ShapeDtypeStruct((gn, k), jnp.float32),
                   jax.ShapeDtypeStruct((1, k), jnp.float32),
                   jax.ShapeDtypeStruct((gn, num_t * 128), jnp.float32)),
        compiler_params=_bank_params(_logits_vmem_bytes(c, tk, gn)),
    )(q_stk, w)


def _bank_stats_kernel(q_ref, k_ref, ts_ref, out_ref):
    q = q_ref[...]                                   # (GN, C)
    kp = k_ref[...]                                  # (GN, C) paired key feats
    # l_pos = einsum('nc,nc->n', q, k).unsqueeze(1)
    lpos = jnp.sum(q * kp, axis=1, keepdims=True)
    ts = ts_ref[...]                                 # (GN, NT*128) partials
    lane = lax.broadcasted_iota(jnp.int32, ts.shape, 1) % 128
    lse_lanes = jnp.where(lane == 0, ts, -jnp.inf)
    diag = jnp.sum(jnp.where(lane == 1, ts, 0.0), axis=1, keepdims=True)
    # exact log-sum-exp merge of the per-tile partials + the l_pos column;
    # exact reciprocal (tiny) so the bank-update softmax is not approximated.
    lpos_s = lpos * (1.0 / MEM_T)
    zmax = jnp.maximum(jnp.max(lse_lanes, axis=1, keepdims=True), lpos_s)
    den = (jnp.sum(jnp.exp(lse_lanes - zmax), axis=1, keepdims=True)
           + jnp.exp(lpos_s - zmax))
    rinv = 1.0 / den
    # single lane-dense output slab: lane0=l_pos, 1=row max, 2=1/denom, 3=diag
    lo = lax.broadcasted_iota(jnp.int32, out_ref.shape, 1)
    out_ref[...] = jnp.where(lo == 0, lpos,
                   jnp.where(lo == 1, zmax,
                   jnp.where(lo == 2, rinv,
                   jnp.where(lo == 3, diag, 0.0))))


def bank_stats(q_stk, k_stk, tile_stats):
    gn, c = q_stk.shape
    nt128 = tile_stats.shape[1]
    return pl.pallas_call(
        _bank_stats_kernel,
        grid=(1,),
        in_specs=[_fs((gn, c)), _fs((gn, c)), _fs((gn, nt128))],
        out_specs=_fs((gn, 128)),
        out_shape=jax.ShapeDtypeStruct((gn, 128), jnp.float32),
    )(q_stk, k_stk, tile_stats)


def _bank_update_kernel(groups, n, qT_ref, lneg_ref, stats_ref, ssq_ref,
                        w_ref, v_ref, wout_ref, vout_ref):
    w0 = w_ref[...]                              # (C, TK) W tile at logits time
    v = v_ref[...]                               # (C, TK)
    qT = qT_ref[...]                             # (C, groups*N) pre-transposed q
    ln_all = lneg_ref[...]                       # (groups*N, TK)
    stats = stats_ref[...]                       # (groups*N, 128) packed stats
    rmax_all = stats[:, 1:2]
    rinv_all = stats[:, 2:3]
    # column norms of the original W come from bank_logits (not recomputed);
    # eps-guarded so an all-zero column cannot produce inf/NaN in W/v.
    coln_inv = lax.rsqrt(jnp.maximum(ssq_ref[...], EPS * EPS))   # (1, TK)
    neg_scale = coln_inv * (-1.0 / MEM_T)
    w = w0
    for g in range(groups):                      # sequential SGD updates, fused
        rs = slice(g * n, (g + 1) * n)
        ln = ln_all[rs, :]                                        # (N, TK)
        # p_qd = softmax(cat([l_pos, l_neg], 1) / mem_t, dim=1)[:, 1:]
        p = jnp.exp(ln * (1.0 / MEM_T) - rmax_all[rs, :]) * rinv_all[rs, :]
        # g = q.T @ p_qd / N - mean(p_qd*l_neg, 0) * d_norm ; d_norm = w0*coln_inv
        g1 = jnp.dot(qT[:, rs], p, preferred_element_type=jnp.float32)  # (C,TK)
        row = jnp.mean(p * ln, axis=0, keepdims=True)                   # (1,TK)
        grad = (g1 * (1.0 / n) - w0 * (row * coln_inv)) * neg_scale
        v = MEM_MOM * v + grad + MEM_WD * w
        w = w - MEMORY_LR * v
    wout_ref[...] = w
    vout_ref[...] = v


def bank_update(qT, lneg, stats, ssq, w, v, *, groups, n):
    c, gn = qT.shape
    k = w.shape[1]
    tk = _pick_k_tile(c, k, gn)
    kern = functools.partial(_bank_update_kernel, groups, n)
    return pl.pallas_call(
        kern,
        grid=(k // tk,),
        in_specs=[pl.BlockSpec((c, gn), lambda kt: (0, 0)),
                  pl.BlockSpec((gn, tk), lambda kt: (0, kt)),
                  pl.BlockSpec((gn, 128), lambda kt: (0, 0)),
                  pl.BlockSpec((1, tk), lambda kt: (0, kt)),
                  pl.BlockSpec((c, tk), lambda kt: (0, kt)),
                  pl.BlockSpec((c, tk), lambda kt: (0, kt))],
        out_specs=(pl.BlockSpec((c, tk), lambda kt: (0, kt)),
                   pl.BlockSpec((c, tk), lambda kt: (0, kt))),
        out_shape=(jax.ShapeDtypeStruct((c, k), jnp.float32),
                   jax.ShapeDtypeStruct((c, k), jnp.float32)),
        input_output_aliases={4: 0, 5: 1},       # in-place W / v update
        compiler_params=_bank_params(_update_vmem_bytes(c, tk, gn)),
    )(qT, lneg, stats, ssq, w, v)


def _bank_forward(q_stk, k_stk, w, v, *, groups, n):
    lneg, ssq, tile_stats = bank_logits(q_stk, w, n)
    stats = bank_stats(q_stk, k_stk, tile_stats)
    w_new, v_new = bank_update(q_stk.T, lneg, stats, ssq, w, v,
                               groups=groups, n=n)
    lpos = stats[:, 0:1]
    diag = stats[:, 3:4]
    return lpos, lneg, diag, w_new, v_new


# ============================== forward pass =================================
def scd_net_forward(qa_input, k_input, params):
    n = qa_input.shape[0]
    k_bank = params['iW'].shape[1]
    rep = k_bank // n
    assert rep * n == k_bank, "SCD_Net mix losses require K % batch == 0"

    # momentum update of the key encoder (parameter plumbing, stays in JAX)
    w_enc_k = M_MOM * params['w_enc_k'] + (1.0 - M_MOM) * params['w_enc_q']

    # fused encoder matmul + split + row-normalization (one kernel per input)
    qat, qas, qai = encode_normalized(qa_input, params['w_enc_q'], DIM)
    kt, ks, ki = encode_normalized(k_input, w_enc_k, DIM)

    # ---- i-bank: queries (qat, qas) stacked so iW is streamed once ----------
    q_i = jnp.concatenate([qat, qas], axis=0)             # (2N, C)
    k_i = jnp.concatenate([ki, ki], axis=0)               # (2N, C)
    lpos_i, lneg_i, diag_i, iW_new, iV_new = _bank_forward(
        q_i, k_i, params['iW'], params['iV'], groups=2, n=n)

    # ---- t-bank / s-bank: query qai ------------------------------------------
    lpos_t, lneg_t, diag_t, tW_new, tV_new = _bank_forward(
        qai, kt, params['tW'], params['tV'], groups=1, n=n)
    lpos_s, lneg_s, diag_s, sW_new, sV_new = _bank_forward(
        qai, ks, params['sW'], params['sV'], groups=1, n=n)

    # ---- contrastive logits ---------------------------------------------------
    l_pos_ati, l_pos_asi = lpos_i[:n], lpos_i[n:]
    l_neg_ati, l_neg_asi = lneg_i[:n], lneg_i[n:]
    logits_ati = jnp.concatenate([l_pos_ati, l_neg_ati], axis=1) * (1.0 / T)
    logits_asi = jnp.concatenate([l_pos_asi, l_neg_asi], axis=1) * (1.0 / T)
    logits_ait = jnp.concatenate([lpos_t, lneg_t], axis=1) * (1.0 / T)
    logits_ais = jnp.concatenate([lpos_s, lneg_s], axis=1) * (1.0 / T)

    labels = jnp.zeros((n,), dtype=jnp.int32)   # torch.long -> int32

    # ---- mix losses (algebraic form; scalar glue only in JAX) -----------------
    count = float(n * rep)                       # mask_pos_mat.sum()
    def mix_losses(diag_rows):
        ds = jnp.sum(diag_rows)                  # masked diagonal sum of l_neg
        lp = -(((1.0 - MIX_R_POS) * count + MIX_R_POS * ds) / T) / (count + 1e-8)
        ln_ = (((MIX_R_NEG) * count + (1.0 - MIX_R_NEG) * ds) / T) / (count + 1e-8)
        return lp, ln_

    lp_ati, ln_ati = mix_losses(diag_i[:n])
    lp_asi, ln_asi = mix_losses(diag_i[n:])
    lp_ait, ln_ait = mix_losses(diag_t)
    lp_ais, ln_ais = mix_losses(diag_s)
    loss_mix = ((lp_ati + lp_asi + lp_ait + lp_ais) / 4.0
                + (ln_ati + ln_asi + ln_ait + ln_ais) / 4.0)

    new_state = {'w_enc_k': w_enc_k,
                 'iW': iW_new, 'iV': iV_new,
                 'tW': tW_new, 'tV': tV_new,
                 'sW': sW_new, 'sV': sV_new}
    outputs = (logits_ati, logits_asi, logits_ait, logits_ais,
               labels, labels, labels, labels, loss_mix)
    return outputs, new_state


# ================================= driver ====================================
if __name__ == "__main__":
    key = jax.random.PRNGKey(0)
    k_enc, k_iw, k_tw, k_sw, k_qa, k_k = jax.random.split(key, 6)

    # weights_init: xavier_uniform_ for 2-D params
    limit = (6.0 / (F_IN + 3 * DIM)) ** 0.5
    w_enc_q = jax.random.uniform(k_enc, (F_IN, 3 * DIM), jnp.float32,
                                 -limit, limit)
    w_enc_k = w_enc_q                            # encoder_k copies encoder_q

    params = {
        'w_enc_q': w_enc_q,
        'w_enc_k': w_enc_k,
        'iW': jax.random.normal(k_iw, (DIM, K_BANK), jnp.float32),  # randn bank
        'iV': jnp.zeros((DIM, K_BANK), jnp.float32),
        'tW': jax.random.normal(k_tw, (DIM, K_BANK), jnp.float32),
        'tV': jnp.zeros((DIM, K_BANK), jnp.float32),
        'sW': jax.random.normal(k_sw, (DIM, K_BANK), jnp.float32),
        'sV': jnp.zeros((DIM, K_BANK), jnp.float32),
    }

    qa_input = jax.random.normal(k_qa, (N_BATCH, F_IN), jnp.float32)
    k_input = jax.random.normal(k_k, (N_BATCH, F_IN), jnp.float32)

    fwd = jax.jit(scd_net_forward)
    outputs, new_state = fwd(qa_input, k_input, params)
    jax.block_until_ready(outputs)
    jax.block_until_ready(new_state)

    # structural sanity checks
    assert outputs[0].shape == (N_BATCH, 1 + K_BANK)
    assert outputs[3].shape == (N_BATCH, 1 + K_BANK)
    assert outputs[4].shape == (N_BATCH,)
    assert outputs[8].shape == ()
    assert new_state['iW'].shape == (DIM, K_BANK)
    assert new_state['sV'].shape == (DIM, K_BANK)
    assert bool(jnp.all(jnp.isfinite(outputs[8])))
    assert bool(jnp.all(jnp.isfinite(new_state['iW'])))
    assert bool(jnp.all(jnp.isfinite(new_state['iV'])))

    print("KERNEL_OK")
</pallas_src>

<mosaic_0001>
module attributes {stable_mosaic.version = 11 : i64} {
  func.func @_encoder_kernel(%arg0: i32, %arg1: memref<8x128xf32, #tpu.memory_space<vmem>>, %arg2: memref<128x384xf32, #tpu.memory_space<vmem>>, %arg3: memref<8x128xf32, #tpu.memory_space<vmem>>, %arg4: memref<8x128xf32, #tpu.memory_space<vmem>>, %arg5: memref<8x128xf32, #tpu.memory_space<vmem>>) attributes {dimension_semantics = [#tpu.dimension_semantics<arbitrary>], iteration_bounds = array<i64: 1>, scalar_prefetch = 0 : i64, scratch_operands = 0 : i64, tpu.core_type = #tpu.core_type<tc>, window_params = [{pipeline_mode = #tpu.pipeline_mode<synchronous>, transform_indices = @transform_0, window_bounds = array<i64: 8, 128>}, {pipeline_mode = #tpu.pipeline_mode<synchronous>, transform_indices = @transform_1, window_bounds = array<i64: 128, 384>}, {pipeline_mode = #tpu.pipeline_mode<synchronous>, transform_indices = @transform_2, window_bounds = array<i64: 8, 128>}, {pipeline_mode = #tpu.pipeline_mode<synchronous>, transform_indices = @transform_3, window_bounds = array<i64: 8, 128>}, {pipeline_mode = #tpu.pipeline_mode<synchronous>, transform_indices = @transform_4, window_bounds = array<i64: 8, 128>}]} {
    %c0 = arith.constant 0 : index
    %c0_0 = arith.constant 0 : index
    %0 = vector.load %arg1[%c0, %c0_0] : memref<8x128xf32, #tpu.memory_space<vmem>>, vector<8x128xf32>
    %c0_1 = arith.constant 0 : index
    %c0_2 = arith.constant 0 : index
    %1 = vector.load %arg2[%c0_1, %c0_2] : memref<128x384xf32, #tpu.memory_space<vmem>>, vector<128x384xf32>
    %cst = arith.constant dense<0.000000e+00> : vector<8x384xf32>
    %2 = tpu.matmul %0, %1, %cst {dimension_numbers = #tpu.dot_dimension_numbers<[1], [0], [0], [1], [0, 0, 1, 1], [], []>} : vector<8x128xf32>, vector<128x384xf32>, vector<8x384xf32> -> vector<8x384xf32>
    %3 = vector.extract_strided_slice %2 {offsets = [0, 0], sizes = [8, 128], strides = [1, 1]} : vector<8x384xf32> to vector<8x128xf32>
    %4 = arith.mulf %3, %3 : vector<8x128xf32>
    %cst_3 = arith.constant dense<0.000000e+00> : vector<8xf32>
    %5 = vector.multi_reduction <add>, %4, %cst_3 [1] : vector<8x128xf32> to vector<8xf32>
    %6 = vector.shape_cast %5 : vector<8xf32> to vector<8x1xf32>
    %cst_4 = arith.constant 1.000000e-24 : f32
    %7 = vector.broadcast %cst_4 : f32 to vector<8x1xf32>
    %8 = arith.maximumf %6, %7 : vector<8x1xf32>
    %9 = math.rsqrt %8 : vector<8x1xf32>
    %10 = vector.broadcast %9 : vector<8x1xf32> to vector<8x128xf32>
    %11 = arith.mulf %3, %10 : vector<8x128xf32>
    %c0_5 = arith.constant 0 : index
    %c0_6 = arith.constant 0 : index
    %12 = vector.load %arg3[%c0_5, %c0_6] : memref<8x128xf32, #tpu.memory_space<vmem>>, vector<8x128xf32>
    tpu.vector_store %arg3[%c0_5, %c0_6], %11 {strides = array<i32>} : memref<8x128xf32, #tpu.memory_space<vmem>>, vector<8x128xf32>,
    %13 = vector.extract_strided_slice %2 {offsets = [0, 128], sizes = [8, 128], strides = [1, 1]} : vector<8x384xf32> to vector<8x128xf32>
    %14 = arith.mulf %13, %13 : vector<8x128xf32>
    %cst_7 = arith.constant dense<0.000000e+00> : vector<8xf32>
    %15 = vector.multi_reduction <add>, %14, %cst_7 [1] : vector<8x128xf32> to vector<8xf32>
    %16 = vector.shape_cast %15 : vector<8xf32> to vector<8x1xf32>
    %cst_8 = arith.constant 1.000000e-24 : f32
    %17 = vector.broadcast %cst_8 : f32 to vector<8x1xf32>
    %18 = arith.maximumf %16, %17 : vector<8x1xf32>
    %19 = math.rsqrt %18 : vector<8x1xf32>
    %20 = vector.broadcast %19 : vector<8x1xf32> to vector<8x128xf32>
    %21 = arith.mulf %13, %20 : vector<8x128xf32>
    %c0_9 = arith.constant 0 : index
    %c0_10 = arith.constant 0 : index
    %22 = vector.load %arg4[%c0_9, %c0_10] : memref<8x128xf32, #tpu.memory_space<vmem>>, vector<8x128xf32>
    tpu.vector_store %arg4[%c0_9, %c0_10], %21 {strides = array<i32>} : memref<8x128xf32, #tpu.memory_space<vmem>>, vector<8x128xf32>,
    %23 = vector.extract_strided_slice %2 {offsets = [0, 256], sizes = [8, 128], strides = [1, 1]} : vector<8x384xf32> to vector<8x128xf32>
    %24 = arith.mulf %23, %23 : vector<8x128xf32>
    %cst_11 = arith.constant dense<0.000000e+00> : vector<8xf32>
    %25 = vector.multi_reduction <add>, %24, %cst_11 [1] : vector<8x128xf32> to vector<8xf32>
    %26 = vector.shape_cast %25 : vector<8xf32> to vector<8x1xf32>
    %cst_12 = arith.constant 1.000000e-24 : f32
    %27 = vector.broadcast %cst_12 : f32 to vector<8x1xf32>
    %28 = arith.maximumf %26, %27 : vector<8x1xf32>
    %29 = math.rsqrt %28 : vector<8x1xf32>
    %30 = vector.broadcast %29 : vector<8x1xf32> to vector<8x128xf32>
    %31 = arith.mulf %23, %30 : vector<8x128xf32>
    %c0_13 = arith.constant 0 : index
    %c0_14 = arith.constant 0 : index
    %32 = vector.load %arg5[%c0_13, %c0_14] : memref<8x128xf32, #tpu.memory_space<vmem>>, vector<8x128xf32>
    tpu.vector_store %arg5[%c0_13, %c0_14], %31 {strides = array<i32>} : memref<8x128xf32, #tpu.memory_space<vmem>>, vector<8x128xf32>,
    return
  }
  func.func @transform_0(%arg0: i32) -> (i32, i32) {
    %c0_i32 = arith.constant 0 : i32
    %c0_i32_0 = arith.constant 0 : i32
    %c0_i32_1 = arith.constant 0 : i32
    return %c0_i32, %c0_i32_0 : i32, i32
  }
  func.func @transform_1(%arg0: i32) -> (i32, i32) {
    %c0_i32 = arith.constant 0 : i32
    %c0_i32_0 = arith.constant 0 : i32
    %c0_i32_1 = arith.constant 0 : i32
    return %c0_i32, %c0_i32_0 : i32, i32
  }
  func.func @transform_2(%arg0: i32) -> (i32, i32) {
    %c0_i32 = arith.constant 0 : i32
    %c0_i32_0 = arith.constant 0 : i32
    %c0_i32_1 = arith.constant 0 : i32
    return %c0_i32, %c0_i32_0 : i32, i32
  }
  func.func @transform_3(%arg0: i32) -> (i32, i32) {
    %c0_i32 = arith.constant 0 : i32
    %c0_i32_0 = arith.constant 0 : i32
    %c0_i32_1 = arith.constant 0 : i32
    return %c0_i32, %c0_i32_0 : i32, i32
  }
  func.func @transform_4(%arg0: i32) -> (i32, i32) {
    %c0_i32 = arith.constant 0 : i32
    %c0_i32_0 = arith.constant 0 : i32
    %c0_i32_1 = arith.constant 0 : i32
    return %c0_i32, %c0_i32_0 : i32, i32
  }
}

module attributes {stable_mosaic.version = 11 : i64} {
  func.func @_bank_logits_kernel(%arg0: i32, %arg1: memref<16x128xf32, #tpu.memory_space<vmem>>, %arg2: memref<128x512xf32, #tpu.memory_space<vmem>>, %arg3: memref<16x512xf32, #tpu.memory_space<vmem>>, %arg4: memref<1x512xf32, #tpu.memory_space<vmem>>, %arg5: memref<16x128xf32, #tpu.memory_space<vmem>>) attributes {dimension_semantics = [#tpu.dimension_semantics<parallel>], iteration_bounds = array<i64: 1>, scalar_prefetch = 0 : i64, scratch_operands = 0 : i64, tpu.core_type = #tpu.core_type<tc>, window_params = [{pipeline_mode = #tpu.pipeline_mode<synchronous>, transform_indices = @transform_0, window_bounds = array<i64: 16, 128>}, {transform_indices = @transform_1, window_bounds = array<i64: 128, 512>}, {transform_indices = @transform_2, window_bounds = array<i64: 16, 512>}, {transform_indices = @transform_3, window_bounds = array<i64: 1, 512>}, {transform_indices = @transform_4, window_bounds = array<i64: 16, 128>}]} {
    %c0 = arith.constant 0 : index
    %c0_0 = arith.constant 0 : index
    %0 = vector.load %arg2[%c0, %c0_0] : memref<128x512xf32, #tpu.memory_space<vmem>>, vector<128x512xf32>
    %1 = arith.mulf %0, %0 : vector<128x512xf32>
    %cst = arith.constant dense<0.000000e+00> : vector<512xf32>
    %2 = vector.multi_reduction <add>, %1, %cst [0] : vector<128x512xf32> to vector<512xf32>
    %3 = vector.shape_cast %2 : vector<512xf32> to vector<1x512xf32>
    %c0_1 = arith.constant 0 : index
    %c0_2 = arith.constant 0 : index
    %4 = vector.load %arg4[%c0_1, %c0_2] : memref<1x512xf32, #tpu.memory_space<vmem>>, vector<1x512xf32>
    tpu.vector_store %arg4[%c0_1, %c0_2], %3 {strides = array<i32>} : memref<1x512xf32, #tpu.memory_space<vmem>>, vector<1x512xf32>,
    %cst_3 = arith.constant 1.000000e-24 : f32
    %5 = vector.broadcast %cst_3 : f32 to vector<1x512xf32>
    %6 = arith.maximumf %3, %5 : vector<1x512xf32>
    %7 = math.rsqrt %6 : vector<1x512xf32>
    %c0_4 = arith.constant 0 : index
    %c0_5 = arith.constant 0 : index
    %8 = vector.load %arg1[%c0_4, %c0_5] : memref<16x128xf32, #tpu.memory_space<vmem>>, vector<16x128xf32>
    %cst_6 = arith.constant dense<0.000000e+00> : vector<16x512xf32>
    %9 = tpu.matmul %8, %0, %cst_6 {dimension_numbers = #tpu.dot_dimension_numbers<[1], [0], [0], [1], [0, 0, 1, 1], [], []>} : vector<16x128xf32>, vector<128x512xf32>, vector<16x512xf32> -> vector<16x512xf32>
    %10 = vector.broadcast %7 : vector<1x512xf32> to vector<16x512xf32>
    %11 = arith.mulf %9, %10 : vector<16x512xf32>
    %c0_7 = arith.constant 0 : index
    %c0_8 = arith.constant 0 : index
    %12 = vector.load %arg3[%c0_7, %c0_8] : memref<16x512xf32, #tpu.memory_space<vmem>>, vector<16x512xf32>
    tpu.vector_store %arg3[%c0_7, %c0_8], %11 {strides = array<i32>} : memref<16x512xf32, #tpu.memory_space<vmem>>, vector<16x512xf32>,
    %cst_9 = arith.constant 33.3333321 : f32
    %13 = vector.broadcast %cst_9 : f32 to vector<16x512xf32>
    %14 = arith.mulf %11, %13 : vector<16x512xf32>
    %cst_10 = arith.constant dense<0xFF800000> : vector<16xf32>
    %15 = vector.multi_reduction <maximumf>, %14, %cst_10 [1] : vector<16x512xf32> to vector<16xf32>
    %16 = vector.shape_cast %15 : vector<16xf32> to vector<16x1xf32>
    %17 = vector.broadcast %16 : vector<16x1xf32> to vector<16x512xf32>
    %18 = arith.subf %14, %17 : vector<16x512xf32>
    %19 = math.exp %18 : vector<16x512xf32>
    %cst_11 = arith.constant dense<0.000000e+00> : vector<16xf32>
    %20 = vector.multi_reduction <add>, %19, %cst_11 [1] : vector<16x512xf32> to vector<16xf32>
    %21 = vector.shape_cast %20 : vector<16xf32> to vector<16x1xf32>
    %22 = math.log %21 : vector<16x1xf32>
    %23 = arith.addf %16, %22 : vector<16x1xf32>
    %c512_i32 = arith.constant 512 : i32
    %24 = arith.muli %arg0, %c512_i32 : i32
    %25 = tpu.iota {dimensions = array<i32: 0>} : vector<16x512xi32>
    %c8_i32 = arith.constant 8 : i32
    %c0_i32 = arith.constant 0 : i32
    %26 = arith.cmpi eq, %c8_i32, %c0_i32 : i32
    %c1_i32 = arith.constant 1 : i32
    %27 = arith.select %26, %c1_i32, %c8_i32 : i32
    %28 = vector.broadcast %27 : i32 to vector<16x512xi32>
    %29 = arith.remsi %25, %28 : vector<16x512xi32>
    %c0_i32_12 = arith.constant 0 : i32
    %30 = vector.broadcast %c0_i32_12 : i32 to vector<16x512xi32>
    %31 = arith.cmpi ne, %29, %30 : vector<16x512xi32>
    %c0_i32_13 = arith.constant 0 : i32
    %32 = vector.broadcast %c0_i32_13 : i32 to vector<16x512xi32>
    %33 = arith.cmpi slt, %29, %32 : vector<16x512xi32>
    %c0_i32_14 = arith.constant 0 : i32
    %34 = arith.cmpi slt, %27, %c0_i32_14 : i32
    %35 = vector.broadcast %34 : i1 to vector<16x512xi1>
    %36 = vector.broadcast %35 : vector<16x512xi1> to vector<16x512xi1>
    %37 = arith.xori %33, %36 : vector<16x512xi1>
    %38 = arith.andi %37, %31 : vector<16x512xi1>
    %39 = vector.broadcast %27 : i32 to vector<16x512xi32>
    %40 = arith.addi %29, %39 : vector<16x512xi32>
    %41 = arith.select %38, %40, %29 : vector<16x512xi1>, vector<16x512xi32>
    %42 = tpu.iota {dimensions = array<i32: 1>} : vector<16x512xi32>
    %43 = vector.broadcast %24 : i32 to vector<16x512xi32>
    %44 = arith.addi %43, %42 : vector<16x512xi32>
    %c8_i32_15 = arith.constant 8 : i32
    %c0_i32_16 = arith.constant 0 : i32
    %45 = arith.cmpi eq, %c8_i32_15, %c0_i32_16 : i32
    %c1_i32_17 = arith.constant 1 : i32
    %46 = arith.select %45, %c1_i32_17, %c8_i32_15 : i32
    %47 = vector.broadcast %46 : i32 to vector<16x512xi32>
    %48 = arith.remsi %44, %47 : vector<16x512xi32>
    %c0_i32_18 = arith.constant 0 : i32
    %49 = vector.broadcast %c0_i32_18 : i32 to vector<16x512xi32>
    %50 = arith.cmpi ne, %48, %49 : vector<16x512xi32>
    %c0_i32_19 = arith.constant 0 : i32
    %51 = vector.broadcast %c0_i32_19 : i32 to vector<16x512xi32>
    %52 = arith.cmpi slt, %48, %51 : vector<16x512xi32>
    %c0_i32_20 = arith.constant 0 : i32
    %53 = arith.cmpi slt, %46, %c0_i32_20 : i32
    %54 = vector.broadcast %53 : i1 to vector<16x512xi1>
    %55 = vector.broadcast %54 : vector<16x512xi1> to vector<16x512xi1>
    %56 = arith.xori %52, %55 : vector<16x512xi1>
    %57 = arith.andi %56, %50 : vector<16x512xi1>
    %58 = vector.broadcast %46 : i32 to vector<16x512xi32>
    %59 = arith.addi %48, %58 : vector<16x512xi32>
    %60 = arith.select %57, %59, %48 : vector<16x512xi1>, vector<16x512xi32>
    %61 = arith.cmpi eq, %41, %60 : vector<16x512xi32>
    %cst_21 = arith.constant 0.000000e+00 : f32
    %62 = vector.broadcast %cst_21 : f32 to vector<16x512xf32>
    %63 = arith.select %61, %11, %62 : vector<16x512xi1>, vector<16x512xf32>
    %cst_22 = arith.constant dense<0.000000e+00> : vector<16xf32>
    %64 = vector.multi_reduction <add>, %63, %cst_22 [1] : vector<16x512xf32> to vector<16xf32>
    %65 = vector.shape_cast %64 : vector<16xf32> to vector<16x1xf32>
    %66 = tpu.iota {dimensions = array<i32: 1>} : vector<16x128xi32>
    %c0_i32_23 = arith.constant 0 : i32
    %67 = vector.broadcast %c0_i32_23 : i32 to vector<16x128xi32>
    %68 = arith.cmpi eq, %66, %67 : vector<16x128xi32>
    %c1_i32_24 = arith.constant 1 : i32
    %69 = vector.broadcast %c1_i32_24 : i32 to vector<16x128xi32>
    %70 = arith.cmpi eq, %66, %69 : vector<16x128xi32>
    %cst_25 = arith.constant 0.000000e+00 : f32
    %71 = vector.shape_cast %65 : vector<16x1xf32> to vector<16x1xf32>
    %72 = vector.broadcast %71 : vector<16x1xf32> to vector<16x128xf32>
    %73 = vector.broadcast %cst_25 : f32 to vector<16x128xf32>
    %74 = arith.select %70, %72, %73 : vector<16x128xi1>, vector<16x128xf32>
    %75 = vector.shape_cast %23 : vector<16x1xf32> to vector<16x1xf32>
    %76 = vector.broadcast %75 : vector<16x1xf32> to vector<16x128xf32>
    %77 = arith.select %68, %76, %74 : vector<16x128xi1>, vector<16x128xf32>
    %c0_26 = arith.constant 0 : index
    %c0_27 = arith.constant 0 : index
    %78 = vector.load %arg5[%c0_26, %c0_27] : memref<16x128xf32, #tpu.memory_space<vmem>>, vector<16x128xf32>
    tpu.vector_store %arg5[%c0_26, %c0_27], %77 {strides = array<i32>} : memref<16x128xf32, #tpu.memory_space<vmem>>, vector<16x128xf32>,
    return
  }
  func.func @transform_0(%arg0: i32) -> (i32, i32) {
    %c0_i32 = arith.constant 0 : i32
    %c0_i32_0 = arith.constant 0 : i32
    %c0_i32_1 = arith.constant 0 : i32
    return %c0_i32, %c0_i32_0 : i32, i32
  }
  func.func @transform_1(%arg0: i32) -> (i32, i32) {
    %c0_i32 = arith.constant 0 : i32
    %c0_i32_0 = arith.constant 0 : i32
    return %c0_i32, %arg0 : i32, i32
  }
  func.func @transform_2(%arg0: i32) -> (i32, i32) {
    %c0_i32 = arith.constant 0 : i32
    %c0_i32_0 = arith.constant 0 : i32
    return %c0_i32, %arg0 : i32, i32
  }
  func.func @transform_3(%arg0: i32) -> (i32, i32) {
    %c0_i32 = arith.constant 0 : i32
    %c0_i32_0 = arith.constant 0 : i32
    return %c0_i32, %arg0 : i32, i32
  }
  func.func @transform_4(%arg0: i32) -> (i32, i32) {
    %c0_i32 = arith.constant 0 : i32
    %c0_i32_0 = arith.constant 0 : i32
    return %c0_i32, %arg0 : i32, i32
  }
}

module attributes {stable_mosaic.version = 11 : i64} {
  func.func @_bank_stats_kernel(%arg0: i32, %arg1: memref<16x128xf32, #tpu.memory_space<vmem>>, %arg2: memref<16x128xf32, #tpu.memory_space<vmem>>, %arg3: memref<16x128xf32, #tpu.memory_space<vmem>>, %arg4: memref<16x128xf32, #tpu.memory_space<vmem>>) attributes {dimension_semantics = [#tpu.dimension_semantics<arbitrary>], iteration_bounds = array<i64: 1>, scalar_prefetch = 0 : i64, scratch_operands = 0 : i64, tpu.core_type = #tpu.core_type<tc>, window_params = [{pipeline_mode = #tpu.pipeline_mode<synchronous>, transform_indices = @transform_0, window_bounds = array<i64: 16, 128>}, {pipeline_mode = #tpu.pipeline_mode<synchronous>, transform_indices = @transform_1, window_bounds = array<i64: 16, 128>}, {pipeline_mode = #tpu.pipeline_mode<synchronous>, transform_indices = @transform_2, window_bounds = array<i64: 16, 128>}, {pipeline_mode = #tpu.pipeline_mode<synchronous>, transform_indices = @transform_3, window_bounds = array<i64: 16, 128>}]} {
    %c0 = arith.constant 0 : index
    %c0_0 = arith.constant 0 : index
    %0 = vector.load %arg1[%c0, %c0_0] : memref<16x128xf32, #tpu.memory_space<vmem>>, vector<16x128xf32>
    %c0_1 = arith.constant 0 : index
    %c0_2 = arith.constant 0 : index
    %1 = vector.load %arg2[%c0_1, %c0_2] : memref<16x128xf32, #tpu.memory_space<vmem>>, vector<16x128xf32>
    %2 = arith.mulf %0, %1 : vector<16x128xf32>
    %cst = arith.constant dense<0.000000e+00> : vector<16xf32>
    %3 = vector.multi_reduction <add>, %2, %cst [1] : vector<16x128xf32> to vector<16xf32>
    %4 = vector.shape_cast %3 : vector<16xf32> to vector<16x1xf32>
    %c0_3 = arith.constant 0 : index
    %c0_4 = arith.constant 0 : index
    %5 = vector.load %arg3[%c0_3, %c0_4] : memref<16x128xf32, #tpu.memory_space<vmem>>, vector<16x128xf32>
    %6 = tpu.iota {dimensions = array<i32: 1>} : vector<16x128xi32>
    %c128_i32 = arith.constant 128 : i32
    %c0_i32 = arith.constant 0 : i32
    %7 = arith.cmpi eq, %c128_i32, %c0_i32 : i32
    %c1_i32 = arith.constant 1 : i32
    %8 = arith.select %7, %c1_i32, %c128_i32 : i32
    %9 = vector.broadcast %8 : i32 to vector<16x128xi32>
    %10 = arith.remsi %6, %9 : vector<16x128xi32>
    %c0_i32_5 = arith.constant 0 : i32
    %11 = vector.broadcast %c0_i32_5 : i32 to vector<16x128xi32>
    %12 = arith.cmpi ne, %10, %11 : vector<16x128xi32>
    %c0_i32_6 = arith.constant 0 : i32
    %13 = vector.broadcast %c0_i32_6 : i32 to vector<16x128xi32>
    %14 = arith.cmpi slt, %10, %13 : vector<16x128xi32>
    %c0_i32_7 = arith.constant 0 : i32
    %15 = arith.cmpi slt, %8, %c0_i32_7 : i32
    %16 = vector.broadcast %15 : i1 to vector<16x128xi1>
    %17 = vector.broadcast %16 : vector<16x128xi1> to vector<16x128xi1>
    %18 = arith.xori %14, %17 : vector<16x128xi1>
    %19 = arith.andi %18, %12 : vector<16x128xi1>
    %20 = vector.broadcast %8 : i32 to vector<16x128xi32>
    %21 = arith.addi %10, %20 : vector<16x128xi32>
    %22 = arith.select %19, %21, %10 : vector<16x128xi1>, vector<16x128xi32>
    %c0_i32_8 = arith.constant 0 : i32
    %23 = vector.broadcast %c0_i32_8 : i32 to vector<16x128xi32>
    %24 = arith.cmpi eq, %22, %23 : vector<16x128xi32>
    %cst_9 = arith.constant 0xFF800000 : f32
    %25 = vector.broadcast %cst_9 : f32 to vector<16x128xf32>
    %26 = arith.select %24, %5, %25 : vector<16x128xi1>, vector<16x128xf32>
    %c1_i32_10 = arith.constant 1 : i32
    %27 = vector.broadcast %c1_i32_10 : i32 to vector<16x128xi32>
    %28 = arith.cmpi eq, %22, %27 : vector<16x128xi32>
    %cst_11 = arith.constant 0.000000e+00 : f32
    %29 = vector.broadcast %cst_11 : f32 to vector<16x128xf32>
    %30 = arith.select %28, %5, %29 : vector<16x128xi1>, vector<16x128xf32>
    %cst_12 = arith.constant dense<0.000000e+00> : vector<16xf32>
    %31 = vector.multi_reduction <add>, %30, %cst_12 [1] : vector<16x128xf32> to vector<16xf32>
    %32 = vector.shape_cast %31 : vector<16xf32> to vector<16x1xf32>
    %cst_13 = arith.constant 33.3333321 : f32
    %33 = vector.broadcast %cst_13 : f32 to vector<16x1xf32>
    %34 = arith.mulf %4, %33 : vector<16x1xf32>
    %cst_14 = arith.constant dense<0xFF800000> : vector<16xf32>
    %35 = vector.multi_reduction <maximumf>, %26, %cst_14 [1] : vector<16x128xf32> to vector<16xf32>
    %36 = vector.shape_cast %35 : vector<16xf32> to vector<16x1xf32>
    %37 = arith.maximumf %36, %34 : vector<16x1xf32>
    %38 = vector.broadcast %37 : vector<16x1xf32> to vector<16x128xf32>
    %39 = arith.subf %26, %38 : vector<16x128xf32>
    %40 = math.exp %39 : vector<16x128xf32>
    %cst_15 = arith.constant dense<0.000000e+00> : vector<16xf32>
    %41 = vector.multi_reduction <add>, %40, %cst_15 [1] : vector<16x128xf32> to vector<16xf32>
    %42 = vector.shape_cast %41 : vector<16xf32> to vector<16x1xf32>
    %43 = arith.subf %34, %37 : vector<16x1xf32>
    %44 = math.exp %43 : vector<16x1xf32>
    %45 = arith.addf %42, %44 : vector<16x1xf32>
    %cst_16 = arith.constant 1.000000e+00 : f32
    %46 = vector.broadcast %cst_16 : f32 to vector<16x1xf32>
    %47 = arith.divf %46, %45 : vector<16x1xf32>
    %48 = tpu.iota {dimensions = array<i32: 1>} : vector<16x128xi32>
    %c0_i32_17 = arith.constant 0 : i32
    %49 = vector.broadcast %c0_i32_17 : i32 to vector<16x128xi32>
    %50 = arith.cmpi eq, %48, %49 : vector<16x128xi32>
    %c1_i32_18 = arith.constant 1 : i32
    %51 = vector.broadcast %c1_i32_18 : i32 to vector<16x128xi32>
    %52 = arith.cmpi eq, %48, %51 : vector<16x128xi32>
    %c2_i32 = arith.constant 2 : i32
    %53 = vector.broadcast %c2_i32 : i32 to vector<16x128xi32>
    %54 = arith.cmpi eq, %48, %53 : vector<16x128xi32>
    %c3_i32 = arith.constant 3 : i32
    %55 = vector.broadcast %c3_i32 : i32 to vector<16x128xi32>
    %56 = arith.cmpi eq, %48, %55 : vector<16x128xi32>
    %cst_19 = arith.constant 0.000000e+00 : f32
    %57 = vector.shape_cast %32 : vector<16x1xf32> to vector<16x1xf32>
    %58 = vector.broadcast %57 : vector<16x1xf32> to vector<16x128xf32>
    %59 = vector.broadcast %cst_19 : f32 to vector<16x128xf32>
    %60 = arith.select %56, %58, %59 : vector<16x128xi1>, vector<16x128xf32>
    %61 = vector.shape_cast %47 : vector<16x1xf32> to vector<16x1xf32>
    %62 = vector.broadcast %61 : vector<16x1xf32> to vector<16x128xf32>
    %63 = arith.select %54, %62, %60 : vector<16x128xi1>, vector<16x128xf32>
    %64 = vector.shape_cast %37 : vector<16x1xf32> to vector<16x1xf32>
    %65 = vector.broadcast %64 : vector<16x1xf32> to vector<16x128xf32>
    %66 = arith.select %52, %65, %63 : vector<16x128xi1>, vector<16x128xf32>
    %67 = vector.shape_cast %4 : vector<16x1xf32> to vector<16x1xf32>
    %68 = vector.broadcast %67 : vector<16x1xf32> to vector<16x128xf32>
    %69 = arith.select %50, %68, %66 : vector<16x128xi1>, vector<16x128xf32>
    %c0_20 = arith.constant 0 : index
    %c0_21 = arith.constant 0 : index
    %70 = vector.load %arg4[%c0_20, %c0_21] : memref<16x128xf32, #tpu.memory_space<vmem>>, vector<16x128xf32>
    tpu.vector_store %arg4[%c0_20, %c0_21], %69 {strides = array<i32>} : memref<16x128xf32, #tpu.memory_space<vmem>>, vector<16x128xf32>,
    return
  }
  func.func @transform_0(%arg0: i32) -> (i32, i32) {
    %c0_i32 = arith.constant 0 : i32
    %c0_i32_0 = arith.constant 0 : i32
    %c0_i32_1 = arith.constant 0 : i32
    return %c0_i32, %c0_i32_0 : i32, i32
  }
  func.func @transform_1(%arg0: i32) -> (i32, i32) {
    %c0_i32 = arith.constant 0 : i32
    %c0_i32_0 = arith.constant 0 : i32
    %c0_i32_1 = arith.constant 0 : i32
    return %c0_i32, %c0_i32_0 : i32, i32
  }
  func.func @transform_2(%arg0: i32) -> (i32, i32) {
    %c0_i32 = arith.constant 0 : i32
    %c0_i32_0 = arith.constant 0 : i32
    %c0_i32_1 = arith.constant 0 : i32
    return %c0_i32, %c0_i32_0 : i32, i32
  }
  func.func @transform_3(%arg0: i32) -> (i32, i32) {
    %c0_i32 = arith.constant 0 : i32
    %c0_i32_0 = arith.constant 0 : i32
    %c0_i32_1 = arith.constant 0 : i32
    return %c0_i32, %c0_i32_0 : i32, i32
  }
}

module attributes {stable_mosaic.version = 11 : i64} {
  func.func @_bank_logits_kernel(%arg0: i32, %arg1: memref<8x128xf32, #tpu.memory_space<vmem>>, %arg2: memref<128x512xf32, #tpu.memory_space<vmem>>, %arg3: memref<8x512xf32, #tpu.memory_space<vmem>>, %arg4: memref<1x512xf32, #tpu.memory_space<vmem>>, %arg5: memref<8x128xf32, #tpu.memory_space<vmem>>) attributes {dimension_semantics = [#tpu.dimension_semantics<parallel>], iteration_bounds = array<i64: 1>, scalar_prefetch = 0 : i64, scratch_operands = 0 : i64, tpu.core_type = #tpu.core_type<tc>, window_params = [{pipeline_mode = #tpu.pipeline_mode<synchronous>, transform_indices = @transform_0, window_bounds = array<i64: 8, 128>}, {transform_indices = @transform_1, window_bounds = array<i64: 128, 512>}, {transform_indices = @transform_2, window_bounds = array<i64: 8, 512>}, {transform_indices = @transform_3, window_bounds = array<i64: 1, 512>}, {transform_indices = @transform_4, window_bounds = array<i64: 8, 128>}]} {
    %c0 = arith.constant 0 : index
    %c0_0 = arith.constant 0 : index
    %0 = vector.load %arg2[%c0, %c0_0] : memref<128x512xf32, #tpu.memory_space<vmem>>, vector<128x512xf32>
    %1 = arith.mulf %0, %0 : vector<128x512xf32>
    %cst = arith.constant dense<0.000000e+00> : vector<512xf32>
    %2 = vector.multi_reduction <add>, %1, %cst [0] : vector<128x512xf32> to vector<512xf32>
    %3 = vector.shape_cast %2 : vector<512xf32> to vector<1x512xf32>
    %c0_1 = arith.constant 0 : index
    %c0_2 = arith.constant 0 : index
    %4 = vector.load %arg4[%c0_1, %c0_2] : memref<1x512xf32, #tpu.memory_space<vmem>>, vector<1x512xf32>
    tpu.vector_store %arg4[%c0_1, %c0_2], %3 {strides = array<i32>} : memref<1x512xf32, #tpu.memory_space<vmem>>, vector<1x512xf32>,
    %cst_3 = arith.constant 1.000000e-24 : f32
    %5 = vector.broadcast %cst_3 : f32 to vector<1x512xf32>
    %6 = arith.maximumf %3, %5 : vector<1x512xf32>
    %7 = math.rsqrt %6 : vector<1x512xf32>
    %c0_4 = arith.constant 0 : index
    %c0_5 = arith.constant 0 : index
    %8 = vector.load %arg1[%c0_4, %c0_5] : memref<8x128xf32, #tpu.memory_space<vmem>>, vector<8x128xf32>
    %cst_6 = arith.constant dense<0.000000e+00> : vector<8x512xf32>
    %9 = tpu.matmul %8, %0, %cst_6 {dimension_numbers = #tpu.dot_dimension_numbers<[1], [0], [0], [1], [0, 0, 1, 1], [], []>} : vector<8x128xf32>, vector<128x512xf32>, vector<8x512xf32> -> vector<8x512xf32>
    %10 = vector.broadcast %7 : vector<1x512xf32> to vector<8x512xf32>
    %11 = arith.mulf %9, %10 : vector<8x512xf32>
    %c0_7 = arith.constant 0 : index
    %c0_8 = arith.constant 0 : index
    %12 = vector.load %arg3[%c0_7, %c0_8] : memref<8x512xf32, #tpu.memory_space<vmem>>, vector<8x512xf32>
    tpu.vector_store %arg3[%c0_7, %c0_8], %11 {strides = array<i32>} : memref<8x512xf32, #tpu.memory_space<vmem>>, vector<8x512xf32>,
    %cst_9 = arith.constant 33.3333321 : f32
    %13 = vector.broadcast %cst_9 : f32 to vector<8x512xf32>
    %14 = arith.mulf %11, %13 : vector<8x512xf32>
    %cst_10 = arith.constant dense<0xFF800000> : vector<8xf32>
    %15 = vector.multi_reduction <maximumf>, %14, %cst_10 [1] : vector<8x512xf32> to vector<8xf32>
    %16 = vector.shape_cast %15 : vector<8xf32> to vector<8x1xf32>
    %17 = vector.broadcast %16 : vector<8x1xf32> to vector<8x512xf32>
    %18 = arith.subf %14, %17 : vector<8x512xf32>
    %19 = math.exp %18 : vector<8x512xf32>
    %cst_11 = arith.constant dense<0.000000e+00> : vector<8xf32>
    %20 = vector.multi_reduction <add>, %19, %cst_11 [1] : vector<8x512xf32> to vector<8xf32>
    %21 = vector.shape_cast %20 : vector<8xf32> to vector<8x1xf32>
    %22 = math.log %21 : vector<8x1xf32>
    %23 = arith.addf %16, %22 : vector<8x1xf32>
    %c512_i32 = arith.constant 512 : i32
    %24 = arith.muli %arg0, %c512_i32 : i32
    %25 = tpu.iota {dimensions = array<i32: 0>} : vector<8x512xi32>
    %c8_i32 = arith.constant 8 : i32
    %c0_i32 = arith.constant 0 : i32
    %26 = arith.cmpi eq, %c8_i32, %c0_i32 : i32
    %c1_i32 = arith.constant 1 : i32
    %27 = arith.select %26, %c1_i32, %c8_i32 : i32
    %28 = vector.broadcast %27 : i32 to vector<8x512xi32>
    %29 = arith.remsi %25, %28 : vector<8x512xi32>
    %c0_i32_12 = arith.constant 0 : i32
    %30 = vector.broadcast %c0_i32_12 : i32 to vector<8x512xi32>
    %31 = arith.cmpi ne, %29, %30 : vector<8x512xi32>
    %c0_i32_13 = arith.constant 0 : i32
    %32 = vector.broadcast %c0_i32_13 : i32 to vector<8x512xi32>
    %33 = arith.cmpi slt, %29, %32 : vector<8x512xi32>
    %c0_i32_14 = arith.constant 0 : i32
    %34 = arith.cmpi slt, %27, %c0_i32_14 : i32
    %35 = vector.broadcast %34 : i1 to vector<8x512xi1>
    %36 = vector.broadcast %35 : vector<8x512xi1> to vector<8x512xi1>
    %37 = arith.xori %33, %36 : vector<8x512xi1>
    %38 = arith.andi %37, %31 : vector<8x512xi1>
    %39 = vector.broadcast %27 : i32 to vector<8x512xi32>
    %40 = arith.addi %29, %39 : vector<8x512xi32>
    %41 = arith.select %38, %40, %29 : vector<8x512xi1>, vector<8x512xi32>
    %42 = tpu.iota {dimensions = array<i32: 1>} : vector<8x512xi32>
    %43 = vector.broadcast %24 : i32 to vector<8x512xi32>
    %44 = arith.addi %43, %42 : vector<8x512xi32>
    %c8_i32_15 = arith.constant 8 : i32
    %c0_i32_16 = arith.constant 0 : i32
    %45 = arith.cmpi eq, %c8_i32_15, %c0_i32_16 : i32
    %c1_i32_17 = arith.constant 1 : i32
    %46 = arith.select %45, %c1_i32_17, %c8_i32_15 : i32
    %47 = vector.broadcast %46 : i32 to vector<8x512xi32>
    %48 = arith.remsi %44, %47 : vector<8x512xi32>
    %c0_i32_18 = arith.constant 0 : i32
    %49 = vector.broadcast %c0_i32_18 : i32 to vector<8x512xi32>
    %50 = arith.cmpi ne, %48, %49 : vector<8x512xi32>
    %c0_i32_19 = arith.constant 0 : i32
    %51 = vector.broadcast %c0_i32_19 : i32 to vector<8x512xi32>
    %52 = arith.cmpi slt, %48, %51 : vector<8x512xi32>
    %c0_i32_20 = arith.constant 0 : i32
    %53 = arith.cmpi slt, %46, %c0_i32_20 : i32
    %54 = vector.broadcast %53 : i1 to vector<8x512xi1>
    %55 = vector.broadcast %54 : vector<8x512xi1> to vector<8x512xi1>
    %56 = arith.xori %52, %55 : vector<8x512xi1>
    %57 = arith.andi %56, %50 : vector<8x512xi1>
    %58 = vector.broadcast %46 : i32 to vector<8x512xi32>
    %59 = arith.addi %48, %58 : vector<8x512xi32>
    %60 = arith.select %57, %59, %48 : vector<8x512xi1>, vector<8x512xi32>
    %61 = arith.cmpi eq, %41, %60 : vector<8x512xi32>
    %cst_21 = arith.constant 0.000000e+00 : f32
    %62 = vector.broadcast %cst_21 : f32 to vector<8x512xf32>
    %63 = arith.select %61, %11, %62 : vector<8x512xi1>, vector<8x512xf32>
    %cst_22 = arith.constant dense<0.000000e+00> : vector<8xf32>
    %64 = vector.multi_reduction <add>, %63, %cst_22 [1] : vector<8x512xf32> to vector<8xf32>
    %65 = vector.shape_cast %64 : vector<8xf32> to vector<8x1xf32>
    %66 = tpu.iota {dimensions = array<i32: 1>} : vector<8x128xi32>
    %c0_i32_23 = arith.constant 0 : i32
    %67 = vector.broadcast %c0_i32_23 : i32 to vector<8x128xi32>
    %68 = arith.cmpi eq, %66, %67 : vector<8x128xi32>
    %c1_i32_24 = arith.constant 1 : i32
    %69 = vector.broadcast %c1_i32_24 : i32 to vector<8x128xi32>
    %70 = arith.cmpi eq, %66, %69 : vector<8x128xi32>
    %cst_25 = arith.constant 0.000000e+00 : f32
    %71 = vector.shape_cast %65 : vector<8x1xf32> to vector<8x1xf32>
    %72 = vector.broadcast %71 : vector<8x1xf32> to vector<8x128xf32>
    %73 = vector.broadcast %cst_25 : f32 to vector<8x128xf32>
    %74 = arith.select %70, %72, %73 : vector<8x128xi1>, vector<8x128xf32>
    %75 = vector.shape_cast %23 : vector<8x1xf32> to vector<8x1xf32>
    %76 = vector.broadcast %75 : vector<8x1xf32> to vector<8x128xf32>
    %77 = arith.select %68, %76, %74 : vector<8x128xi1>, vector<8x128xf32>
    %c0_26 = arith.constant 0 : index
    %c0_27 = arith.constant 0 : index
    %78 = vector.load %arg5[%c0_26, %c0_27] : memref<8x128xf32, #tpu.memory_space<vmem>>, vector<8x128xf32>
    tpu.vector_store %arg5[%c0_26, %c0_27], %77 {strides = array<i32>} : memref<8x128xf32, #tpu.memory_space<vmem>>, vector<8x128xf32>,
    return
  }
  func.func @transform_0(%arg0: i32) -> (i32, i32) {
    %c0_i32 = arith.constant 0 : i32
    %c0_i32_0 = arith.constant 0 : i32
    %c0_i32_1 = arith.constant 0 : i32
    return %c0_i32, %c0_i32_0 : i32, i32
  }
  func.func @transform_1(%arg0: i32) -> (i32, i32) {
    %c0_i32 = arith.constant 0 : i32
    %c0_i32_0 = arith.constant 0 : i32
    return %c0_i32, %arg0 : i32, i32
  }
  func.func @transform_2(%arg0: i32) -> (i32, i32) {
    %c0_i32 = arith.constant 0 : i32
    %c0_i32_0 = arith.constant 0 : i32
    return %c0_i32, %arg0 : i32, i32
  }
  func.func @transform_3(%arg0: i32) -> (i32, i32) {
    %c0_i32 = arith.constant 0 : i32
    %c0_i32_0 = arith.constant 0 : i32
    return %c0_i32, %arg0 : i32, i32
  }
  func.func @transform_4(%arg0: i32) -> (i32, i32) {
    %c0_i32 = arith.constant 0 : i32
    %c0_i32_0 = arith.constant 0 : i32
    return %c0_i32, %arg0 : i32, i32
  }
}

module attributes {stable_mosaic.version = 11 : i64} {
  func.func @_bank_stats_kernel(%arg0: i32, %arg1: memref<8x128xf32, #tpu.memory_space<vmem>>, %arg2: memref<8x128xf32, #tpu.memory_space<vmem>>, %arg3: memref<8x128xf32, #tpu.memory_space<vmem>>, %arg4: memref<8x128xf32, #tpu.memory_space<vmem>>) attributes {dimension_semantics = [#tpu.dimension_semantics<arbitrary>], iteration_bounds = array<i64: 1>, scalar_prefetch = 0 : i64, scratch_operands = 0 : i64, tpu.core_type = #tpu.core_type<tc>, window_params = [{pipeline_mode = #tpu.pipeline_mode<synchronous>, transform_indices = @transform_0, window_bounds = array<i64: 8, 128>}, {pipeline_mode = #tpu.pipeline_mode<synchronous>, transform_indices = @transform_1, window_bounds = array<i64: 8, 128>}, {pipeline_mode = #tpu.pipeline_mode<synchronous>, transform_indices = @transform_2, window_bounds = array<i64: 8, 128>}, {pipeline_mode = #tpu.pipeline_mode<synchronous>, transform_indices = @transform_3, window_bounds = array<i64: 8, 128>}]} {
    %c0 = arith.constant 0 : index
    %c0_0 = arith.constant 0 : index
    %0 = vector.load %arg1[%c0, %c0_0] : memref<8x128xf32, #tpu.memory_space<vmem>>, vector<8x128xf32>
    %c0_1 = arith.constant 0 : index
    %c0_2 = arith.constant 0 : index
    %1 = vector.load %arg2[%c0_1, %c0_2] : memref<8x128xf32, #tpu.memory_space<vmem>>, vector<8x128xf32>
    %2 = arith.mulf %0, %1 : vector<8x128xf32>
    %cst = arith.constant dense<0.000000e+00> : vector<8xf32>
    %3 = vector.multi_reduction <add>, %2, %cst [1] : vector<8x128xf32> to vector<8xf32>
    %4 = vector.shape_cast %3 : vector<8xf32> to vector<8x1xf32>
    %c0_3 = arith.constant 0 : index
    %c0_4 = arith.constant 0 : index
    %5 = vector.load %arg3[%c0_3, %c0_4] : memref<8x128xf32, #tpu.memory_space<vmem>>, vector<8x128xf32>
    %6 = tpu.iota {dimensions = array<i32: 1>} : vector<8x128xi32>
    %c128_i32 = arith.constant 128 : i32
    %c0_i32 = arith.constant 0 : i32
    %7 = arith.cmpi eq, %c128_i32, %c0_i32 : i32
    %c1_i32 = arith.constant 1 : i32
    %8 = arith.select %7, %c1_i32, %c128_i32 : i32
    %9 = vector.broadcast %8 : i32 to vector<8x128xi32>
    %10 = arith.remsi %6, %9 : vector<8x128xi32>
    %c0_i32_5 = arith.constant 0 : i32
    %11 = vector.broadcast %c0_i32_5 : i32 to vector<8x128xi32>
    %12 = arith.cmpi ne, %10, %11 : vector<8x128xi32>
    %c0_i32_6 = arith.constant 0 : i32
    %13 = vector.broadcast %c0_i32_6 : i32 to vector<8x128xi32>
    %14 = arith.cmpi slt, %10, %13 : vector<8x128xi32>
    %c0_i32_7 = arith.constant 0 : i32
    %15 = arith.cmpi slt, %8, %c0_i32_7 : i32
    %16 = vector.broadcast %15 : i1 to vector<8x128xi1>
    %17 = vector.broadcast %16 : vector<8x128xi1> to vector<8x128xi1>
    %18 = arith.xori %14, %17 : vector<8x128xi1>
    %19 = arith.andi %18, %12 : vector<8x128xi1>
    %20 = vector.broadcast %8 : i32 to vector<8x128xi32>
    %21 = arith.addi %10, %20 : vector<8x128xi32>
    %22 = arith.select %19, %21, %10 : vector<8x128xi1>, vector<8x128xi32>
    %c0_i32_8 = arith.constant 0 : i32
    %23 = vector.broadcast %c0_i32_8 : i32 to vector<8x128xi32>
    %24 = arith.cmpi eq, %22, %23 : vector<8x128xi32>
    %cst_9 = arith.constant 0xFF800000 : f32
    %25 = vector.broadcast %cst_9 : f32 to vector<8x128xf32>
    %26 = arith.select %24, %5, %25 : vector<8x128xi1>, vector<8x128xf32>
    %c1_i32_10 = arith.constant 1 : i32
    %27 = vector.broadcast %c1_i32_10 : i32 to vector<8x128xi32>
    %28 = arith.cmpi eq, %22, %27 : vector<8x128xi32>
    %cst_11 = arith.constant 0.000000e+00 : f32
    %29 = vector.broadcast %cst_11 : f32 to vector<8x128xf32>
    %30 = arith.select %28, %5, %29 : vector<8x128xi1>, vector<8x128xf32>
    %cst_12 = arith.constant dense<0.000000e+00> : vector<8xf32>
    %31 = vector.multi_reduction <add>, %30, %cst_12 [1] : vector<8x128xf32> to vector<8xf32>
    %32 = vector.shape_cast %31 : vector<8xf32> to vector<8x1xf32>
    %cst_13 = arith.constant 33.3333321 : f32
    %33 = vector.broadcast %cst_13 : f32 to vector<8x1xf32>
    %34 = arith.mulf %4, %33 : vector<8x1xf32>
    %cst_14 = arith.constant dense<0xFF800000> : vector<8xf32>
    %35 = vector.multi_reduction <maximumf>, %26, %cst_14 [1] : vector<8x128xf32> to vector<8xf32>
    %36 = vector.shape_cast %35 : vector<8xf32> to vector<8x1xf32>
    %37 = arith.maximumf %36, %34 : vector<8x1xf32>
    %38 = vector.broadcast %37 : vector<8x1xf32> to vector<8x128xf32>
    %39 = arith.subf %26, %38 : vector<8x128xf32>
    %40 = math.exp %39 : vector<8x128xf32>
    %cst_15 = arith.constant dense<0.000000e+00> : vector<8xf32>
    %41 = vector.multi_reduction <add>, %40, %cst_15 [1] : vector<8x128xf32> to vector<8xf32>
    %42 = vector.shape_cast %41 : vector<8xf32> to vector<8x1xf32>
    %43 = arith.subf %34, %37 : vector<8x1xf32>
    %44 = math.exp %43 : vector<8x1xf32>
    %45 = arith.addf %42, %44 : vector<8x1xf32>
    %cst_16 = arith.constant 1.000000e+00 : f32
    %46 = vector.broadcast %cst_16 : f32 to vector<8x1xf32>
    %47 = arith.divf %46, %45 : vector<8x1xf32>
    %48 = tpu.iota {dimensions = array<i32: 1>} : vector<8x128xi32>
    %c0_i32_17 = arith.constant 0 : i32
    %49 = vector.broadcast %c0_i32_17 : i32 to vector<8x128xi32>
    %50 = arith.cmpi eq, %48, %49 : vector<8x128xi32>
    %c1_i32_18 = arith.constant 1 : i32
    %51 = vector.broadcast %c1_i32_18 : i32 to vector<8x128xi32>
    %52 = arith.cmpi eq, %48, %51 : vector<8x128xi32>
    %c2_i32 = arith.constant 2 : i32
    %53 = vector.broadcast %c2_i32 : i32 to vector<8x128xi32>
    %54 = arith.cmpi eq, %48, %53 : vector<8x128xi32>
    %c3_i32 = arith.constant 3 : i32
    %55 = vector.broadcast %c3_i32 : i32 to vector<8x128xi32>
    %56 = arith.cmpi eq, %48, %55 : vector<8x128xi32>
    %cst_19 = arith.constant 0.000000e+00 : f32
    %57 = vector.shape_cast %32 : vector<8x1xf32> to vector<8x1xf32>
    %58 = vector.broadcast %57 : vector<8x1xf32> to vector<8x128xf32>
    %59 = vector.broadcast %cst_19 : f32 to vector<8x128xf32>
    %60 = arith.select %56, %58, %59 : vector<8x128xi1>, vector<8x128xf32>
    %61 = vector.shape_cast %47 : vector<8x1xf32> to vector<8x1xf32>
    %62 = vector.broadcast %61 : vector<8x1xf32> to vector<8x128xf32>
    %63 = arith.select %54, %62, %60 : vector<8x128xi1>, vector<8x128xf32>
    %64 = vector.shape_cast %37 : vector<8x1xf32> to vector<8x1xf32>
    %65 = vector.broadcast %64 : vector<8x1xf32> to vector<8x128xf32>
    %66 = arith.select %52, %65, %63 : vector<8x128xi1>, vector<8x128xf32>
    %67 = vector.shape_cast %4 : vector<8x1xf32> to vector<8x1xf32>
    %68 = vector.broadcast %67 : vector<8x1xf32> to vector<8x128xf32>
    %69 = arith.select %50, %68, %66 : vector<8x128xi1>, vector<8x128xf32>
    %c0_20 = arith.constant 0 : index
    %c0_21 = arith.constant 0 : index
    %70 = vector.load %arg4[%c0_20, %c0_21] : memref<8x128xf32, #tpu.memory_space<vmem>>, vector<8x128xf32>
    tpu.vector_store %arg4[%c0_20, %c0_21], %69 {strides = array<i32>} : memref<8x128xf32, #tpu.memory_space<vmem>>, vector<8x128xf32>,
    return
  }
  func.func @transform_0(%arg0: i32) -> (i32, i32) {
    %c0_i32 = arith.constant 0 : i32
    %c0_i32_0 = arith.constant 0 : i32
    %c0_i32_1 = arith.constant 0 : i32
    return %c0_i32, %c0_i32_0 : i32, i32
  }
  func.func @transform_1(%arg0: i32) -> (i32, i32) {
    %c0_i32 = arith.constant 0 : i32
    %c0_i32_0 = arith.constant 0 : i32
    %c0_i32_1 = arith.constant 0 : i32
    return %c0_i32, %c0_i32_0 : i32, i32
  }
  func.func @transform_2(%arg0: i32) -> (i32, i32) {
    %c0_i32 = arith.constant 0 : i32
    %c0_i32_0 = arith.constant 0 : i32
    %c0_i32_1 = arith.constant 0 : i32
    return %c0_i32, %c0_i32_0 : i32, i32
  }
  func.func @transform_3(%arg0: i32) -> (i32, i32) {
    %c0_i32 = arith.constant 0 : i32
    %c0_i32_0 = arith.constant 0 : i32
    %c0_i32_1 = arith.constant 0 : i32
    return %c0_i32, %c0_i32_0 : i32, i32
  }
}

module attributes {stable_mosaic.version = 11 : i64} {
  func.func @_bank_update_kernel(%arg0: i32, %arg1: memref<128x16xf32, #tpu.memory_space<vmem>>, %arg2: memref<16x512xf32, #tpu.memory_space<vmem>>, %arg3: memref<16x128xf32, #tpu.memory_space<vmem>>, %arg4: memref<1x512xf32, #tpu.memory_space<vmem>>, %arg5: memref<128x512xf32, #tpu.memory_space<vmem>>, %arg6: memref<128x512xf32, #tpu.memory_space<vmem>>, %arg7: memref<128x512xf32, #tpu.memory_space<vmem>>, %arg8: memref<128x512xf32, #tpu.memory_space<vmem>>) attributes {dimension_semantics = [#tpu.dimension_semantics<parallel>], iteration_bounds = array<i64: 1>, scalar_prefetch = 0 : i64, scratch_operands = 0 : i64, tpu.core_type = #tpu.core_type<tc>, window_params = [{pipeline_mode = #tpu.pipeline_mode<synchronous>, transform_indices = @transform_0, window_bounds = array<i64: 128, 16>}, {transform_indices = @transform_1, window_bounds = array<i64: 16, 512>}, {pipeline_mode = #tpu.pipeline_mode<synchronous>, transform_indices = @transform_2, window_bounds = array<i64: 16, 128>}, {transform_indices = @transform_3, window_bounds = array<i64: 1, 512>}, {transform_indices = @transform_4, window_bounds = array<i64: 128, 512>}, {transform_indices = @transform_5, window_bounds = array<i64: 128, 512>}, {transform_indices = @transform_6, window_bounds = array<i64: 128, 512>}, {transform_indices = @transform_7, window_bounds = array<i64: 128, 512>}]} {
    %c0 = arith.constant 0 : index
    %c0_0 = arith.constant 0 : index
    %0 = vector.load %arg5[%c0, %c0_0] : memref<128x512xf32, #tpu.memory_space<vmem>>, vector<128x512xf32>
    %c0_1 = arith.constant 0 : index
    %c0_2 = arith.constant 0 : index
    %1 = vector.load %arg6[%c0_1, %c0_2] : memref<128x512xf32, #tpu.memory_space<vmem>>, vector<128x512xf32>
    %c0_3 = arith.constant 0 : index
    %c0_4 = arith.constant 0 : index
    %2 = vector.load %arg1[%c0_3, %c0_4] : memref<128x16xf32, #tpu.memory_space<vmem>>, vector<128x16xf32>
    %c0_5 = arith.constant 0 : index
    %c0_6 = arith.constant 0 : index
    %3 = vector.load %arg2[%c0_5, %c0_6] : memref<16x512xf32, #tpu.memory_space<vmem>>, vector<16x512xf32>
    %c0_7 = arith.constant 0 : index
    %c0_8 = arith.constant 0 : index
    %4 = vector.load %arg3[%c0_7, %c0_8] : memref<16x128xf32, #tpu.memory_space<vmem>>, vector<16x128xf32>
    %5 = vector.extract_strided_slice %4 {offsets = [0, 1], sizes = [16, 1], strides = [1, 1]} : vector<16x128xf32> to vector<16x1xf32>
    %6 = vector.extract_strided_slice %4 {offsets = [0, 2], sizes = [16, 1], strides = [1, 1]} : vector<16x128xf32> to vector<16x1xf32>
    %c0_9 = arith.constant 0 : index
    %c0_10 = arith.constant 0 : index
    %7 = vector.load %arg4[%c0_9, %c0_10] : memref<1x512xf32, #tpu.memory_space<vmem>>, vector<1x512xf32>
    %cst = arith.constant 1.000000e-24 : f32
    %8 = vector.broadcast %cst : f32 to vector<1x512xf32>
    %9 = arith.maximumf %7, %8 : vector<1x512xf32>
    %10 = math.rsqrt %9 : vector<1x512xf32>
    %cst_11 = arith.constant -33.3333321 : f32
    %11 = vector.broadcast %cst_11 : f32 to vector<1x512xf32>
    %12 = arith.mulf %10, %11 : vector<1x512xf32>
    %13 = vector.extract_strided_slice %3 {offsets = [0, 0], sizes = [8, 512], strides = [1, 1]} : vector<16x512xf32> to vector<8x512xf32>
    %cst_12 = arith.constant 33.3333321 : f32
    %14 = vector.broadcast %cst_12 : f32 to vector<8x512xf32>
    %15 = arith.mulf %13, %14 : vector<8x512xf32>
    %16 = vector.extract_strided_slice %5 {offsets = [0, 0], sizes = [8, 1], strides = [1, 1]} : vector<16x1xf32> to vector<8x1xf32>
    %17 = vector.broadcast %16 : vector<8x1xf32> to vector<8x512xf32>
    %18 = arith.subf %15, %17 : vector<8x512xf32>
    %19 = math.exp %18 : vector<8x512xf32>
    %20 = vector.extract_strided_slice %6 {offsets = [0, 0], sizes = [8, 1], strides = [1, 1]} : vector<16x1xf32> to vector<8x1xf32>
    %21 = vector.broadcast %20 : vector<8x1xf32> to vector<8x512xf32>
    %22 = arith.mulf %19, %21 : vector<8x512xf32>
    %23 = vector.extract_strided_slice %2 {offsets = [0, 0], sizes = [128, 8], strides = [1, 1]} : vector<128x16xf32> to vector<128x8xf32>
    %cst_13 = arith.constant dense<0.000000e+00> : vector<128x512xf32>
    %24 = tpu.matmul %23, %22, %cst_13 {dimension_numbers = #tpu.dot_dimension_numbers<[1], [0], [0], [1], [0, 0, 1, 1], [], []>} : vector<128x8xf32>, vector<8x512xf32>, vector<128x512xf32> -> vector<128x512xf32>
    %25 = arith.mulf %22, %13 : vector<8x512xf32>
    %cst_14 = arith.constant dense<0.000000e+00> : vector<512xf32>
    %26 = vector.multi_reduction <add>, %25, %cst_14 [0] : vector<8x512xf32> to vector<512xf32>
    %27 = vector.shape_cast %26 : vector<512xf32> to vector<1x512xf32>
    %cst_15 = arith.constant 8.000000e+00 : f32
    %28 = vector.broadcast %cst_15 : f32 to vector<1x512xf32>
    %29 = arith.divf %27, %28 : vector<1x512xf32>
    %cst_16 = arith.constant 1.250000e-01 : f32
    %30 = vector.broadcast %cst_16 : f32 to vector<128x512xf32>
    %31 = arith.mulf %24, %30 : vector<128x512xf32>
    %32 = arith.mulf %29, %10 : vector<1x512xf32>
    %33 = vector.broadcast %32 : vector<1x512xf32> to vector<128x512xf32>
    %34 = arith.mulf %0, %33 : vector<128x512xf32>
    %35 = arith.subf %31, %34 : vector<128x512xf32>
    %36 = vector.broadcast %12 : vector<1x512xf32> to vector<128x512xf32>
    %37 = arith.mulf %35, %36 : vector<128x512xf32>
    %cst_17 = arith.constant 0.899999976 : f32
    %38 = vector.broadcast %cst_17 : f32 to vector<128x512xf32>
    %39 = arith.mulf %38, %1 : vector<128x512xf32>
    %40 = arith.addf %39, %37 : vector<128x512xf32>
    %cst_18 = arith.constant 9.99999974E-5 : f32
    %41 = vector.broadcast %cst_18 : f32 to vector<128x512xf32>
    %42 = arith.mulf %41, %0 : vector<128x512xf32>
    %43 = arith.addf %40, %42 : vector<128x512xf32>
    %cst_19 = arith.constant 3.000000e+00 : f32
    %44 = vector.broadcast %cst_19 : f32 to vector<128x512xf32>
    %45 = arith.mulf %44, %43 : vector<128x512xf32>
    %46 = arith.subf %0, %45 : vector<128x512xf32>
    %47 = vector.extract_strided_slice %3 {offsets = [8, 0], sizes = [8, 512], strides = [1, 1]} : vector<16x512xf32> to vector<8x512xf32>
    %cst_20 = arith.constant 33.3333321 : f32
    %48 = vector.broadcast %cst_20 : f32 to vector<8x512xf32>
    %49 = arith.mulf %47, %48 : vector<8x512xf32>
    %50 = vector.extract_strided_slice %5 {offsets = [8, 0], sizes = [8, 1], strides = [1, 1]} : vector<16x1xf32> to vector<8x1xf32>
    %51 = vector.broadcast %50 : vector<8x1xf32> to vector<8x512xf32>
    %52 = arith.subf %49, %51 : vector<8x512xf32>
    %53 = math.exp %52 : vector<8x512xf32>
    %54 = vector.extract_strided_slice %6 {offsets = [8, 0], sizes = [8, 1], strides = [1, 1]} : vector<16x1xf32> to vector<8x1xf32>
    %55 = vector.broadcast %54 : vector<8x1xf32> to vector<8x512xf32>
    %56 = arith.mulf %53, %55 : vector<8x512xf32>
    %57 = vector.extract_strided_slice %2 {offsets = [0, 8], sizes = [128, 8], strides = [1, 1]} : vector<128x16xf32> to vector<128x8xf32>
    %cst_21 = arith.constant dense<0.000000e+00> : vector<128x512xf32>
    %58 = tpu.matmul %57, %56, %cst_21 {dimension_numbers = #tpu.dot_dimension_numbers<[1], [0], [0], [1], [0, 0, 1, 1], [], []>} : vector<128x8xf32>, vector<8x512xf32>, vector<128x512xf32> -> vector<128x512xf32>
    %59 = arith.mulf %56, %47 : vector<8x512xf32>
    %cst_22 = arith.constant dense<0.000000e+00> : vector<512xf32>
    %60 = vector.multi_reduction <add>, %59, %cst_22 [0] : vector<8x512xf32> to vector<512xf32>
    %61 = vector.shape_cast %60 : vector<512xf32> to vector<1x512xf32>
    %cst_23 = arith.constant 8.000000e+00 : f32
    %62 = vector.broadcast %cst_23 : f32 to vector<1x512xf32>
    %63 = arith.divf %61, %62 : vector<1x512xf32>
    %cst_24 = arith.constant 1.250000e-01 : f32
    %64 = vector.broadcast %cst_24 : f32 to vector<128x512xf32>
    %65 = arith.mulf %58, %64 : vector<128x512xf32>
    %66 = arith.mulf %63, %10 : vector<1x512xf32>
    %67 = vector.broadcast %66 : vector<1x512xf32> to vector<128x512xf32>
    %68 = arith.mulf %0, %67 : vector<128x512xf32>
    %69 = arith.subf %65, %68 : vector<128x512xf32>
    %70 = vector.broadcast %12 : vector<1x512xf32> to vector<128x512xf32>
    %71 = arith.mulf %69, %70 : vector<128x512xf32>
    %cst_25 = arith.constant 0.899999976 : f32
    %72 = vector.broadcast %cst_25 : f32 to vector<128x512xf32>
    %73 = arith.mulf %72, %43 : vector<128x512xf32>
    %74 = arith.addf %73, %71 : vector<128x512xf32>
    %cst_26 = arith.constant 9.99999974E-5 : f32
    %75 = vector.broadcast %cst_26 : f32 to vector<128x512xf32>
    %76 = arith.mulf %75, %46 : vector<128x512xf32>
    %77 = arith.addf %74, %76 : vector<128x512xf32>
    %cst_27 = arith.constant 3.000000e+00 : f32
    %78 = vector.broadcast %cst_27 : f32 to vector<128x512xf32>
    %79 = arith.mulf %78, %77 : vector<128x512xf32>
    %80 = arith.subf %46, %79 : vector<128x512xf32>
    %c0_28 = arith.constant 0 : index
    %c0_29 = arith.constant 0 : index
    %81 = vector.load %arg7[%c0_28, %c0_29] : memref<128x512xf32, #tpu.memory_space<vmem>>, vector<128x512xf32>
    tpu.vector_store %arg7[%c0_28, %c0_29], %80 {strides = array<i32>} : memref<128x512xf32, #tpu.memory_space<vmem>>, vector<128x512xf32>,
    %c0_30 = arith.constant 0 : index
    %c0_31 = arith.constant 0 : index
    %82 = vector.load %arg8[%c0_30, %c0_31] : memref<128x512xf32, #tpu.memory_space<vmem>>, vector<128x512xf32>
    tpu.vector_store %arg8[%c0_30, %c0_31], %77 {strides = array<i32>} : memref<128x512xf32, #tpu.memory_space<vmem>>, vector<128x512xf32>,
    return
  }
  func.func @transform_0(%arg0: i32) -> (i32, i32) {
    %c0_i32 = arith.constant 0 : i32
    %c0_i32_0 = arith.constant 0 : i32
    %c0_i32_1 = arith.constant 0 : i32
    return %c0_i32, %c0_i32_0 : i32, i32
  }
  func.func @transform_1(%arg0: i32) -> (i32, i32) {
    %c0_i32 = arith.constant 0 : i32
    %c0_i32_0 = arith.constant 0 : i32
    return %c0_i32, %arg0 : i32, i32
  }
  func.func @transform_2(%arg0: i32) -> (i32, i32) {
    %c0_i32 = arith.constant 0 : i32
    %c0_i32_0 = arith.constant 0 : i32
    %c0_i32_1 = arith.constant 0 : i32
    return %c0_i32, %c0_i32_0 : i32, i32
  }
  func.func @transform_3(%arg0: i32) -> (i32, i32) {
    %c0_i32 = arith.constant 0 : i32
    %c0_i32_0 = arith.constant 0 : i32
    return %c0_i32, %arg0 : i32, i32
  }
  func.func @transform_4(%arg0: i32) -> (i32, i32) {
    %c0_i32 = arith.constant 0 : i32
    %c0_i32_0 = arith.constant 0 : i32
    return %c0_i32, %arg0 : i32, i32
  }
  func.func @transform_5(%arg0: i32) -> (i32, i32) {
    %c0_i32 = arith.constant 0 : i32
    %c0_i32_0 = arith.constant 0 : i32
    return %c0_i32, %arg0 : i32, i32
  }
  func.func @transform_6(%arg0: i32) -> (i32, i32) {
    %c0_i32 = arith.constant 0 : i32
    %c0_i32_0 = arith.constant 0 : i32
    return %c0_i32, %arg0 : i32, i32
  }
  func.func @transform_7(%arg0: i32) -> (i32, i32) {
    %c0_i32 = arith.constant 0 : i32
    %c0_i32_0 = arith.constant 0 : i32
    return %c0_i32, %arg0 : i32, i32
  }
}

module attributes {stable_mosaic.version = 11 : i64} {
  func.func @_bank_update_kernel(%arg0: i32, %arg1: memref<128x8xf32, #tpu.memory_space<vmem>>, %arg2: memref<8x512xf32, #tpu.memory_space<vmem>>, %arg3: memref<8x128xf32, #tpu.memory_space<vmem>>, %arg4: memref<1x512xf32, #tpu.memory_space<vmem>>, %arg5: memref<128x512xf32, #tpu.memory_space<vmem>>, %arg6: memref<128x512xf32, #tpu.memory_space<vmem>>, %arg7: memref<128x512xf32, #tpu.memory_space<vmem>>, %arg8: memref<128x512xf32, #tpu.memory_space<vmem>>) attributes {dimension_semantics = [#tpu.dimension_semantics<parallel>], iteration_bounds = array<i64: 1>, scalar_prefetch = 0 : i64, scratch_operands = 0 : i64, tpu.core_type = #tpu.core_type<tc>, window_params = [{pipeline_mode = #tpu.pipeline_mode<synchronous>, transform_indices = @transform_0, window_bounds = array<i64: 128, 8>}, {transform_indices = @transform_1, window_bounds = array<i64: 8, 512>}, {pipeline_mode = #tpu.pipeline_mode<synchronous>, transform_indices = @transform_2, window_bounds = array<i64: 8, 128>}, {transform_indices = @transform_3, window_bounds = array<i64: 1, 512>}, {transform_indices = @transform_4, window_bounds = array<i64: 128, 512>}, {transform_indices = @transform_5, window_bounds = array<i64: 128, 512>}, {transform_indices = @transform_6, window_bounds = array<i64: 128, 512>}, {transform_indices = @transform_7, window_bounds = array<i64: 128, 512>}]} {
    %c0 = arith.constant 0 : index
    %c0_0 = arith.constant 0 : index
    %0 = vector.load %arg5[%c0, %c0_0] : memref<128x512xf32, #tpu.memory_space<vmem>>, vector<128x512xf32>
    %c0_1 = arith.constant 0 : index
    %c0_2 = arith.constant 0 : index
    %1 = vector.load %arg6[%c0_1, %c0_2] : memref<128x512xf32, #tpu.memory_space<vmem>>, vector<128x512xf32>
    %c0_3 = arith.constant 0 : index
    %c0_4 = arith.constant 0 : index
    %2 = vector.load %arg1[%c0_3, %c0_4] : memref<128x8xf32, #tpu.memory_space<vmem>>, vector<128x8xf32>
    %c0_5 = arith.constant 0 : index
    %c0_6 = arith.constant 0 : index
    %3 = vector.load %arg2[%c0_5, %c0_6] : memref<8x512xf32, #tpu.memory_space<vmem>>, vector<8x512xf32>
    %c0_7 = arith.constant 0 : index
    %c0_8 = arith.constant 0 : index
    %4 = vector.load %arg3[%c0_7, %c0_8] : memref<8x128xf32, #tpu.memory_space<vmem>>, vector<8x128xf32>
    %5 = vector.extract_strided_slice %4 {offsets = [0, 1], sizes = [8, 1], strides = [1, 1]} : vector<8x128xf32> to vector<8x1xf32>
    %6 = vector.extract_strided_slice %4 {offsets = [0, 2], sizes = [8, 1], strides = [1, 1]} : vector<8x128xf32> to vector<8x1xf32>
    %c0_9 = arith.constant 0 : index
    %c0_10 = arith.constant 0 : index
    %7 = vector.load %arg4[%c0_9, %c0_10] : memref<1x512xf32, #tpu.memory_space<vmem>>, vector<1x512xf32>
    %cst = arith.constant 1.000000e-24 : f32
    %8 = vector.broadcast %cst : f32 to vector<1x512xf32>
    %9 = arith.maximumf %7, %8 : vector<1x512xf32>
    %10 = math.rsqrt %9 : vector<1x512xf32>
    %cst_11 = arith.constant -33.3333321 : f32
    %11 = vector.broadcast %cst_11 : f32 to vector<1x512xf32>
    %12 = arith.mulf %10, %11 : vector<1x512xf32>
    %cst_12 = arith.constant 33.3333321 : f32
    %13 = vector.broadcast %cst_12 : f32 to vector<8x512xf32>
    %14 = arith.mulf %3, %13 : vector<8x512xf32>
    %15 = vector.broadcast %5 : vector<8x1xf32> to vector<8x512xf32>
    %16 = arith.subf %14, %15 : vector<8x512xf32>
    %17 = math.exp %16 : vector<8x512xf32>
    %18 = vector.broadcast %6 : vector<8x1xf32> to vector<8x512xf32>
    %19 = arith.mulf %17, %18 : vector<8x512xf32>
    %cst_13 = arith.constant dense<0.000000e+00> : vector<128x512xf32>
    %20 = tpu.matmul %2, %19, %cst_13 {dimension_numbers = #tpu.dot_dimension_numbers<[1], [0], [0], [1], [0, 0, 1, 1], [], []>} : vector<128x8xf32>, vector<8x512xf32>, vector<128x512xf32> -> vector<128x512xf32>
    %21 = arith.mulf %19, %3 : vector<8x512xf32>
    %cst_14 = arith.constant dense<0.000000e+00> : vector<512xf32>
    %22 = vector.multi_reduction <add>, %21, %cst_14 [0] : vector<8x512xf32> to vector<512xf32>
    %23 = vector.shape_cast %22 : vector<512xf32> to vector<1x512xf32>
    %cst_15 = arith.constant 8.000000e+00 : f32
    %24 = vector.broadcast %cst_15 : f32 to vector<1x512xf32>
    %25 = arith.divf %23, %24 : vector<1x512xf32>
    %cst_16 = arith.constant 1.250000e-01 : f32
    %26 = vector.broadcast %cst_16 : f32 to vector<128x512xf32>
    %27 = arith.mulf %20, %26 : vector<128x512xf32>
    %28 = arith.mulf %25, %10 : vector<1x512xf32>
    %29 = vector.broadcast %28 : vector<1x512xf32> to vector<128x512xf32>
    %30 = arith.mulf %0, %29 : vector<128x512xf32>
    %31 = arith.subf %27, %30 : vector<128x512xf32>
    %32 = vector.broadcast %12 : vector<1x512xf32> to vector<128x512xf32>
    %33 = arith.mulf %31, %32 : vector<128x512xf32>
    %cst_17 = arith.constant 0.899999976 : f32
    %34 = vector.broadcast %cst_17 : f32 to vector<128x512xf32>
    %35 = arith.mulf %34, %1 : vector<128x512xf32>
    %36 = arith.addf %35, %33 : vector<128x512xf32>
    %cst_18 = arith.constant 9.99999974E-5 : f32
    %37 = vector.broadcast %cst_18 : f32 to vector<128x512xf32>
    %38 = arith.mulf %37, %0 : vector<128x512xf32>
    %39 = arith.addf %36, %38 : vector<128x512xf32>
    %cst_19 = arith.constant 3.000000e+00 : f32
    %40 = vector.broadcast %cst_19 : f32 to vector<128x512xf32>
    %41 = arith.mulf %40, %39 : vector<128x512xf32>
    %42 = arith.subf %0, %41 : vector<128x512xf32>
    %c0_20 = arith.constant 0 : index
    %c0_21 = arith.constant 0 : index
    %43 = vector.load %arg7[%c0_20, %c0_21] : memref<128x512xf32, #tpu.memory_space<vmem>>, vector<128x512xf32>
    tpu.vector_store %arg7[%c0_20, %c0_21], %42 {strides = array<i32>} : memref<128x512xf32, #tpu.memory_space<vmem>>, vector<128x512xf32>,
    %c0_22 = arith.constant 0 : index
    %c0_23 = arith.constant 0 : index
    %44 = vector.load %arg8[%c0_22, %c0_23] : memref<128x512xf32, #tpu.memory_space<vmem>>, vector<128x512xf32>
    tpu.vector_store %arg8[%c0_22, %c0_23], %39 {strides = array<i32>} : memref<128x512xf32, #tpu.memory_space<vmem>>, vector<128x512xf32>,
    return
  }
  func.func @transform_0(%arg0: i32) -> (i32, i32) {
    %c0_i32 = arith.constant 0 : i32
    %c0_i32_0 = arith.constant 0 : i32
    %c0_i32_1 = arith.constant 0 : i32
    return %c0_i32, %c0_i32_0 : i32, i32
  }
  func.func @transform_1(%arg0: i32) -> (i32, i32) {
    %c0_i32 = arith.constant 0 : i32
    %c0_i32_0 = arith.constant 0 : i32
    return %c0_i32, %arg0 : i32, i32
  }
  func.func @transform_2(%arg0: i32) -> (i32, i32) {
    %c0_i32 = arith.constant 0 : i32
    %c0_i32_0 = arith.constant 0 : i32
    %c0_i32_1 = arith.constant 0 : i32
    return %c0_i32, %c0_i32_0 : i32, i32
  }
  func.func @transform_3(%arg0: i32) -> (i32, i32) {
    %c0_i32 = arith.constant 0 : i32
    %c0_i32_0 = arith.constant 0 : i32
    return %c0_i32, %arg0 : i32, i32
  }
  func.func @transform_4(%arg0: i32) -> (i32, i32) {
    %c0_i32 = arith.constant 0 : i32
    %c0_i32_0 = arith.constant 0 : i32
    return %c0_i32, %arg0 : i32, i32
  }
  func.func @transform_5(%arg0: i32) -> (i32, i32) {
    %c0_i32 = arith.constant 0 : i32
    %c0_i32_0 = arith.constant 0 : i32
    return %c0_i32, %arg0 : i32, i32
  }
  func.func @transform_6(%arg0: i32) -> (i32, i32) {
    %c0_i32 = arith.constant 0 : i32
    %c0_i32_0 = arith.constant 0 : i32
    return %c0_i32, %arg0 : i32, i32
  }
  func.func @transform_7(%arg0: i32) -> (i32, i32) {
    %c0_i32 = arith.constant 0 : i32
    %c0_i32_0 = arith.constant 0 : i32
    return %c0_i32, %arg0 : i32, i32
  }
}

</mosaic_0001>

<bundles_post_ra>
// kernel: scd_net_forward.11
= control target key start
LH: loop header
LB: loop body
LE: loop exit
PB: predicated region body
PF: predicated region fallthrough
CT: control target
= control target key end

     0   :  { %v354_v0 = vmov 0.0|0.0   ;;  %vm355_vm0 = vmmov 0   ;;  %v356_v4 = vmov 0.0   ;;  %s546_s1 = inlined_call_operand.vmem [shape: f32[128,384], index: 1, kind: input, shape index: {}]   ;;  %s547_s0 = inlined_call_operand.vmem [shape: f32[8,128], index: 0, kind: input, shape index: {}]   ;;  %s548_s4 = inlined_call_operand.vmem [shape: f32[8,128], index: 4, kind: output, shape index: {2}]   ;;  %s549_s2 = inlined_call_operand.vmem [shape: f32[8,128], index: 2, kind: output, shape index: {0}]   ;;  %s550_s3 = inlined_call_operand.vmem [shape: f32[8,128], index: 3, kind: output, shape index: {1}]  }
   0x1   :  { %321 = vmatprep.subr.bf16.mxu1 %v354_v0  ;;  %v16_v1 = vld [vmem:[%s546_s1 + $0x8] sm:$0xff]  ;;  %v19_v2 = vld [vmem:[%s546_s1 + $0x20] sm:$0xff]  ;;  %v17_v3 = vld [vmem:[%s546_s1 + $0x10] sm:$0xff]  ;;  %286 = vmatprep.mubr.msk.f32.mxu1 %vm355_vm0, %v356_v4 }
   0x2   :  { %v289_v5 = vpack.c.bf16 %v19_v2, %v16_v1  ;;  %v20_v6 = vld [vmem:[%s546_s1 + $0x28] sm:$0xff]  ;;  %v15_v7 = vld [vmem:[%s546_s1] sm:$0xff]  ;;  %v18_v8 = vld [vmem:[%s546_s1 + $0x18] sm:$0xff]  ;;  %127 = vmatprep.mubr.f32.mxu0 %v356_v4 }
   0x3   :  { %v322_v9 = vpack.c.bf16 %v20_v6, %v17_v3  ;;  %v291_v10 = vpack.c.bf16 %v18_v8, %v15_v7  ;;  %v22_v11 = vld [vmem:[%s546_s1 + $0x38] sm:$0xff]  ;;  %v25_v12 = vld [vmem:[%s546_s1 + $0x50] sm:$0xff]  ;;  %v23_v13 = vld [vmem:[%s546_s1 + $0x40] sm:$0xff] }
   0x4   :  { %290 = vmatprep.subr.bf16.mxu0 %v289_v5  ;;  %v293_v14 = vpack.c.bf16 %v25_v12, %v22_v11  ;;  %v26_v15 = vld [vmem:[%s546_s1 + $0x58] sm:$0xff]  ;;  %v21_v16 = vld [vmem:[%s546_s1 + $0x30] sm:$0xff]  ;;  %v24_v17 = vld [vmem:[%s546_s1 + $0x48] sm:$0xff] }
   0x5   :  { %323 = vmatpush3.bf16.msra.mxu1 %v322_v9  ;;  %292 = vmatpush1.bf16.msra.mxu0 %v291_v10  ;;  %v325_v18 = vpack.c.bf16 %v26_v15, %v23_v13  ;;  %v295_v19 = vpack.c.bf16 %v24_v17, %v21_v16  ;;  %v28_v20 = vld [vmem:[%s546_s1 + $0x68] sm:$0xff]  ;;  %v31_v21 = vld [vmem:[%s546_s1 + $0x80] sm:$0xff]  ;;  %v29_v22 = vld [vmem:[%s546_s1 + $0x70] sm:$0xff] }
   0x6   :  { %324 = vmatprep.subr.bf16.mxu1 %v354_v0  ;;  %294 = vmatprep.subr.bf16.mxu0 %v293_v14  ;;  %v297_v23 = vpack.c.bf16 %v31_v21, %v28_v20  ;;  %v32_v24 = vld [vmem:[%s546_s1 + $0x88] sm:$0xff]  ;;  %v27_v25 = vld [vmem:[%s546_s1 + $0x60] sm:$0xff]  ;;  %v30_v26 = vld [vmem:[%s546_s1 + $0x78] sm:$0xff] }
   0x7   :  { %v34_v27 = vld [vmem:[%s546_s1 + $0x98] sm:$0xff]  ;;  %v37_v28 = vld [vmem:[%s546_s1 + $0xb0] sm:$0xff]  ;;  %v328_v29 = vpack.c.bf16 %v32_v24, %v29_v22  ;;  %v299_v30 = vpack.c.bf16 %v30_v26, %v27_v25  ;;  %v35_v31 = vld [vmem:[%s546_s1 + $0xa0] sm:$0xff] }
   0x8   :  { %v301_v32 = vpack.c.bf16 %v37_v28, %v34_v27  ;;  %v38_v33 = vld [vmem:[%s546_s1 + $0xb8] sm:$0xff]  ;;  %v33_v34 = vld [vmem:[%s546_s1 + $0x90] sm:$0xff]  ;;  %v36_v35 = vld [vmem:[%s546_s1 + $0xa8] sm:$0xff] }
   0x9   :  { %326 = vmatpush3.bf16.msra.mxu1 %v325_v18  ;;  %296 = vmatpush1.bf16.msra.mxu0 %v295_v19  ;;  %v40_v36 = vld [vmem:[%s546_s1 + $0xc8] sm:$0xff]  ;;  %v43_v37 = vld [vmem:[%s546_s1 + $0xe0] sm:$0xff]  ;;  %v331_v38 = vpack.c.bf16 %v38_v33, %v35_v31  ;;  %v303_v39 = vpack.c.bf16 %v36_v35, %v33_v34  ;;  %v41_v40 = vld [vmem:[%s546_s1 + $0xd0] sm:$0xff] }
   0xa   :  { %327 = vmatprep.subr.bf16.mxu1 %v354_v0  ;;  %298 = vmatprep.subr.bf16.mxu0 %v297_v23  ;;  %v305_v41 = vpack.c.bf16 %v43_v37, %v40_v36  ;;  %v44_v42 = vld [vmem:[%s546_s1 + $0xe8] sm:$0xff]  ;;  %v39_v43 = vld [vmem:[%s546_s1 + $0xc0] sm:$0xff]  ;;  %v42_v44 = vld [vmem:[%s546_s1 + $0xd8] sm:$0xff] }
   0xb   :  { %v46_v45 = vld [vmem:[%s546_s1 + $0xf8] sm:$0xff]  ;;  %v49_v46 = vld [vmem:[%s546_s1 + $0x110] sm:$0xff]  ;;  %v334_v47 = vpack.c.bf16 %v44_v42, %v41_v40  ;;  %v307_v48 = vpack.c.bf16 %v42_v44, %v39_v43  ;;  %v47_v49 = vld [vmem:[%s546_s1 + $0x100] sm:$0xff] }
   0xc   :  { %v309_v50 = vpack.c.bf16 %v49_v46, %v46_v45  ;;  %v50_v51 = vld [vmem:[%s546_s1 + $0x118] sm:$0xff]  ;;  %v45_v52 = vld [vmem:[%s546_s1 + $0xf0] sm:$0xff]  ;;  %v48_v53 = vld [vmem:[%s546_s1 + $0x108] sm:$0xff] }
   0xd   :  { %329 = vmatpush3.bf16.msra.mxu1 %v328_v29  ;;  %300 = vmatpush1.bf16.msra.mxu0 %v299_v30  ;;  %v52_v54 = vld [vmem:[%s546_s1 + $0x128] sm:$0xff]  ;;  %v55_v55 = vld [vmem:[%s546_s1 + $0x140] sm:$0xff]  ;;  %v337_v56 = vpack.c.bf16 %v50_v51, %v47_v49  ;;  %v311_v57 = vpack.c.bf16 %v48_v53, %v45_v52  ;;  %v53_v58 = vld [vmem:[%s546_s1 + $0x130] sm:$0xff] }
   0xe   :  { %330 = vmatprep.subr.bf16.mxu1 %v354_v0  ;;  %302 = vmatprep.subr.bf16.mxu0 %v301_v32  ;;  %v313_v59 = vpack.c.bf16 %v55_v55, %v52_v54  ;;  %v56_v60 = vld [vmem:[%s546_s1 + $0x148] sm:$0xff]  ;;  %v51_v61 = vld [vmem:[%s546_s1 + $0x120] sm:$0xff]  ;;  %v54_v62 = vld [vmem:[%s546_s1 + $0x138] sm:$0xff] }
   0xf   :  { %v58_v63 = vld [vmem:[%s546_s1 + $0x158] sm:$0xff]  ;;  %v61_v1 = vld [vmem:[%s546_s1 + $0x170] sm:$0xff]  ;;  %v340_v2 = vpack.c.bf16 %v56_v60, %v53_v58  ;;  %v315_v3 = vpack.c.bf16 %v54_v62, %v51_v61  ;;  %v59_v4 = vld [vmem:[%s546_s1 + $0x160] sm:$0xff] }
  0x10   :  { %v317_v5 = vpack.c.bf16 %v61_v1, %v58_v63  ;;  %v62_v6 = vld [vmem:[%s546_s1 + $0x178] sm:$0xff]  ;;  %v57_v7 = vld [vmem:[%s546_s1 + $0x150] sm:$0xff]  ;;  %v60_v8 = vld [vmem:[%s546_s1 + $0x168] sm:$0xff] }
  0x11   :  { %332 = vmatpush3.bf16.msra.mxu1 %v331_v38  ;;  %304 = vmatpush1.bf16.msra.mxu0 %v303_v39  ;;  %v343_v9 = vpack.c.bf16 %v62_v6, %v59_v4  ;;  %v319_v10 = vpack.c.bf16 %v60_v8, %v57_v7  ;;  %v14_v11 = vld [vmem:[%s547_s0] sm:$0xff] }
  0x12   :  { %333 = vmatprep.subr.bf16.mxu1 %v354_v0  ;;  %306 = vmatprep.subr.bf16.mxu0 %v305_v41 }
  0x15   :  { %335 = vmatpush3.bf16.msra.mxu1 %v334_v47  ;;  %308 = vmatpush1.bf16.msra.mxu0 %v307_v48 }
  0x16   :  { %336 = vmatprep.subr.bf16.mxu1 %v354_v0  ;;  %310 = vmatprep.subr.bf16.mxu0 %v309_v50 }
  0x19   :  { %338 = vmatpush3.bf16.msra.mxu1 %v337_v56  ;;  %312 = vmatpush1.bf16.msra.mxu0 %v311_v57 }
  0x1a   :  { %339 = vmatprep.subr.bf16.mxu1 %v354_v0  ;;  %314 = vmatprep.subr.bf16.mxu0 %v313_v59 }
  0x1d   :  { %341 = vmatpush3.bf16.msra.mxu1 %v340_v2  ;;  %316 = vmatpush1.bf16.msra.mxu0 %v315_v3 }
  0x1e   :  { %342 = vmatprep.subr.bf16.mxu1 %v354_v0  ;;  %318 = vmatprep.subr.bf16.mxu0 %v317_v5 }
  0x21   :  { %344 = vmatpush3.bf16.msra.mxu1 %v343_v9  ;;  %320 = vmatpush1.bf16.msra.mxu0 %v319_v10 }
  0x24   :  { %287 = vmatmul.mubr.f32.vlgmr.msra.gmra.mrb[0].mxu1 %v14_v11  ;;  %128 = vmatmul.mubr.f32.vlgmr.msra.gmra.mrb[0].mxu0 %v14_v11 }
  0xf7   :  { %v200_v12 = vpop.f32.mrb[0].mxu1  ;;  %v129_v13 = vpop.f32.mrb[0].mxu0 }
  0xf8   :  { %v131_v14 = vpop.f32.mrb[1].mxu0  ;;  %v218_v15 = vmul.f32 %v200_v12, %v200_v12  ;;  %v204_v16 = vmul.f32 %v129_v13, %v129_v13  ;;  %v288_v17 = vpop.f32.mrb[1].mxu1 }
  0xf9   :  { %v211_v18 = vmul.f32 %v131_v14, %v131_v14 }
  0xfa   :  { %219 = vadd.xlane.f32.xlu1 %v218_v15  ;;  %205 = vadd.xlane.f32.xlu0 %v204_v16 }
  0xfe   :  { %212 = vadd.xlane.f32.xlu0 %v211_v18 }
 0x187   :  { %v220_v0 = vpop.xlane.xlu1 %219  ;;  %v206_v19 = vpop.xlane.xlu0 %205 }
 0x188   :  { %v221_v20 = vmax.f32 %v220_v0, 1e-24  ;;  %v207_v21 = vmax.f32 %v206_v19, 1e-24 }
 0x18a   :  { %348 = vrsqrt.f32 %v221_v20 }
 0x18b   :  { %350 = vrsqrt.f32 %v207_v21  ;;  %v213_v22 = vpop.xlane.xlu0 %212 }
 0x18c   :  { %v214_v23 = vmax.f32 %v213_v22, 1e-24 }
 0x18e   :  { %352 = vrsqrt.f32 %v214_v23 }
 0x194   :  { %v349_v24 = vpop.eup %348 }
 0x195   :  { %v351_v25 = vpop.eup %350  ;;  %v223_v26 = vmul.f32 %v349_v24, %v200_v12 }
 0x196   :  { %v209_v27 = vmul.f32 %v351_v25, %v129_v13 }
 0x197   :  { %224 = vst [vmem:[%s548_s4] sm:$0xff] %v223_v26 }
 0x198   :  { %v353_v28 = vpop.eup %352  ;;  %210 = vst [vmem:[%s549_s2] sm:$0xff] %v209_v27 }
 0x199   :  { %v216_v29 = vmul.f32 %v353_v28, %v131_v14 }
 0x19b   :  { %217 = vst [vmem:[%s550_s3] sm:$0xff] %v216_v29 }

// kernel: scd_net_forward.14
= control target key start
LH: loop header
LB: loop body
LE: loop exit
PB: predicated region body
PF: predicated region fallthrough
CT: control target
= control target key end

     0   :  { %v26_v0 = vlaneseq  ;;  %s176_s0 = inlined_call_operand.vmem [shape: f32[16,128], index: 0, kind: input, shape index: {}]   ;;  %s177_s1 = inlined_call_operand.vmem [shape: f32[16,128], index: 1, kind: input, shape index: {}]   ;;  %s178_s2 = inlined_call_operand.vmem [shape: f32[16,128], index: 2, kind: input, shape index: {}]   ;;  %s179_s3 = inlined_call_operand.vmem [shape: f32[16,128], index: 3, kind: output, shape index: {}]  }
   0x1   :  { %v14_v1 = vld [vmem:[%s176_s0] sm:$0xff]  ;;  %v15_v6 = vld [vmem:[%s176_s0 + $0x8] sm:$0xff] }
   0x2   :  { %v16_v2 = vld [vmem:[%s177_s1] sm:$0xff]  ;;  %v139_v5 = vand.u32 127, %v26_v0  ;;  %v17_v7 = vld [vmem:[%s177_s1 + $0x8] sm:$0xff] }
   0x3   :  { %v18_v3 = vmul.f32 %v16_v2, %v14_v1  ;;  %v24_v4 = vld [vmem:[%s178_s2] sm:$0xff]  ;;  %v19_v8 = vmul.f32 %v17_v7, %v15_v6  ;;  %v25_v9 = vld [vmem:[%s178_s2 + $0x8] sm:$0xff] }
   0x4   :  { %vm40_vm0 = vcmp.eq.s32.totalorder %v139_v5, 0  ;;  %vm43_vm1 = vcmp.eq.s32.totalorder %v139_v5, 1  ;;  %vm83_vm2 = vcmp.eq.s32.totalorder %v139_v5, 3  ;;  %vm82_vm3 = vcmp.eq.s32.totalorder %v139_v5, 2 }
   0x5   :  { %20 = vadd.xlane.f32.xlu0 %v18_v3  ;;  %v41_v10 = vsel %vm40_vm0, %v24_v4, -inf  ;;  %v42_v11 = vsel %vm40_vm0, %v25_v9, -inf  ;;  %v44_v25 = vsel %vm43_vm1, %v24_v4, 0.0  ;;  %v45_v27 = vsel %vm43_vm1, %v25_v9, 0.0 }
   0x6   :  { %52 = vmax.xlane.f32.xlu1 %v41_v10 }
   0x9   :  { %22 = vadd.xlane.f32.xlu0 %v19_v8 }
   0xa   :  { %54 = vmax.xlane.f32.xlu1 %v42_v11 }
  0x92   :  { %v21_v12 = vpop.xlane.xlu0 %20 }
  0x93   :  { %v50_v13 = vmul.f32 33.333332, %v21_v12  ;;  %v53_v14 = vpop.xlane.xlu1 %52 }
  0x95   :  { %v56_v15 = vmax.f32 %v53_v14, %v50_v13 }
  0x96   :  { %v23_v16 = vpop.xlane.xlu0 %22 }
  0x97   :  { %v58_v17 = vsub.f32 %v41_v10, %v56_v15  ;;  %v51_v18 = vmul.f32 33.333332, %v23_v16  ;;  %v55_v19 = vpop.xlane.xlu1 %54  ;;  %v68_v28 = vsub.f32 %v50_v13, %v56_v15 }
  0x99   :  { %v60_v20 = vmul.f32 1.442695, %v58_v17  ;;  %v57_v21 = vmax.f32 %v55_v19, %v51_v18  ;;  %v70_v29 = vmul.f32 1.442695, %v68_v28 }
  0x9b   :  { %98 = vpow2.f32 %v60_v20  ;;  %v59_v22 = vsub.f32 %v42_v11, %v57_v21  ;;  %v69_v30 = vsub.f32 %v51_v18, %v57_v21 }
  0x9d   :  { %v62_v23 = vmul.f32 1.442695, %v59_v22  ;;  %v72_v31 = vmul.f32 1.442695, %v69_v30 }
  0x9f   :  { %100 = vpow2.f32 %v62_v23 }
  0xa0   :  { %102 = vpow2.f32 %v70_v29 }
  0xa1   :  { %104 = vpow2.f32 %v72_v31 }
  0xa5   :  { %v99_v24 = vpop.eup %98 }
  0xa6   :  { %64 = vadd.xlane.f32.xlu0 %v99_v24 }
  0xa9   :  { %v101_v26 = vpop.eup %100 }
  0xaa   :  { %66 = vadd.xlane.f32.xlu1 %v101_v26  ;;  %46 = vadd.xlane.f32.xlu0 %v44_v25  ;;  %v103_v32 = vpop.eup %102 }
  0xab   :  { %v105_v35 = vpop.eup %104 }
  0xae   :  { %48 = vadd.xlane.f32.xlu1 %v45_v27 }
 0x133   :  { %v65_v33 = vpop.xlane.xlu0 %64 }
 0x134   :  { %v74_v34 = vadd.f32 %v103_v32, %v65_v33 }
 0x136   :  { %106 = vrcp.f32 %v74_v34 }
 0x137   :  { %v67_v36 = vpop.xlane.xlu1 %66  ;;  %v47_v38 = vpop.xlane.xlu0 %46 }
 0x138   :  { %v75_v37 = vadd.f32 %v105_v35, %v67_v36  ;;  %v84_v39 = vsel %vm83_vm2, %v47_v38, 0.0 }
 0x13a   :  { %108 = vrcp.f32 %v75_v37 }
 0x13b   :  { %v49_v40 = vpop.xlane.xlu1 %48 }
 0x13c   :  { %v85_v44 = vsel %vm83_vm2, %v49_v40, 0.0 }
 0x140   :  { %v107_v41 = vpop.eup %106 }
 0x141   :  { %v86_v42 = vsel %vm82_vm3, %v107_v41, %v84_v39 }
 0x142   :  { %v88_v43 = vsel %vm43_vm1, %v56_v15, %v86_v42 }
 0x143   :  { %v90_v45 = vsel %vm40_vm0, %v21_v12, %v88_v43 }
 0x144   :  { %v109_v46 = vpop.eup %108  ;;  %92 = vst [vmem:[%s179_s3] sm:$0xff] %v90_v45 }
 0x145   :  { %v87_v47 = vsel %vm82_vm3, %v109_v46, %v85_v44 }
 0x146   :  { %v89_v48 = vsel %vm43_vm1, %v57_v21, %v87_v47 }
 0x147   :  { %v91_v49 = vsel %vm40_vm0, %v23_v16, %v89_v48 }
 0x148   :  { %93 = vst [vmem:[%s179_s3 + $0x8] sm:$0xff] %v91_v49 }

// kernel: scd_net_forward.13
= control target key start
LH: loop header
LB: loop body
LE: loop exit
PB: predicated region body
PF: predicated region fallthrough
CT: control target
= control target key end

     0   :  { %v724_v3 = vmov 0.0   ;;  %s1042_s1 = inlined_call_operand.vmem [shape: f32[128,512], index: 1, kind: input, shape index: {}]   ;;  %s1043_s0 = inlined_call_operand.vmem [shape: f32[16,128], index: 0, kind: input, shape index: {}]   ;;  %s1044_s3 = inlined_call_operand.vmem [shape: f32[1,512], index: 3, kind: output, shape index: {1}]   ;;  %s1045_s2 = inlined_call_operand.vmem [shape: f32[16,512], index: 2, kind: output, shape index: {0}]   ;;  %s1046_s4 = inlined_call_operand.vmem [shape: f32[16,128], index: 4, kind: output, shape index: {2}]  }
   0x1   :  { %v15_v0 = vld [vmem:[%s1042_s1 + $0x8] sm:$0xff]  ;;  %v17_v2 = vld [vmem:[%s1042_s1 + $0x18] sm:$0xff]  ;;  %334 = vmatprep.mubr.f32.mxu0 %v724_v3  ;;  %411 = vmatprep.mubr.f32.mxu1 %v724_v3  ;;  %v14_v9 = vld [vmem:[%s1042_s1] sm:$0xff] }
   0x2   :  { %v19_v1 = vld [vmem:[%s1042_s1 + $0x28] sm:$0xff]  ;;  %v79_v4 = vmul.f32 %v15_v0, %v15_v0  ;;  %v21_v7 = vld [vmem:[%s1042_s1 + $0x38] sm:$0xff]  ;;  %v81_v8 = vmul.f32 %v17_v2, %v17_v2  ;;  %v18_v10 = vld [vmem:[%s1042_s1 + $0x20] sm:$0xff]  ;;  %v78_v13 = vmul.f32 %v14_v9, %v14_v9 }
   0x3   :  { %v83_v5 = vmul.f32 %v19_v1, %v19_v1  ;;  %v630_v6 = vpack.c.bf16 %v19_v1, %v15_v0  ;;  %v85_v11 = vmul.f32 %v21_v7, %v21_v7  ;;  %v662_v12 = vpack.c.bf16 %v21_v7, %v17_v2  ;;  %v16_v15 = vld [vmem:[%s1042_s1 + $0x10] sm:$0xff]  ;;  %v23_v17 = vld [vmem:[%s1042_s1 + $0x48] sm:$0xff]  ;;  %v25_v23 = vld [vmem:[%s1042_s1 + $0x58] sm:$0xff] }
   0x4   :  { %v82_v14 = vmul.f32 %v18_v10, %v18_v10  ;;  %v20_v16 = vld [vmem:[%s1042_s1 + $0x30] sm:$0xff]  ;;  %v632_v19 = vpack.c.bf16 %v18_v10, %v14_v9  ;;  %v80_v20 = vmul.f32 %v16_v15, %v16_v15  ;;  %v27_v22 = vld [vmem:[%s1042_s1 + $0x68] sm:$0xff]  ;;  %v29_v24 = vld [vmem:[%s1042_s1 + $0x78] sm:$0xff]  ;;  %v87_v28 = vmul.f32 %v23_v17, %v23_v17 }
   0x5   :  { %v163_v18 = vadd.f32 %v83_v5, %v79_v4  ;;  %631 = vmatprep.subr.bf16.mxu0 %v630_v6  ;;  %v84_v21 = vmul.f32 %v20_v16, %v20_v16  ;;  %v205_v25 = vadd.f32 %v85_v11, %v81_v8  ;;  %663 = vmatprep.subr.bf16.mxu1 %v662_v12  ;;  %v22_v29 = vld [vmem:[%s1042_s1 + $0x40] sm:$0xff]  ;;  %v24_v35 = vld [vmem:[%s1042_s1 + $0x50] sm:$0xff]  ;;  %v31_v45 = vld [vmem:[%s1042_s1 + $0x88] sm:$0xff] }
   0x6   :  { %v142_v26 = vadd.f32 %v82_v14, %v78_v13  ;;  %v664_v27 = vpack.c.bf16 %v20_v16, %v16_v15  ;;  %v26_v30 = vld [vmem:[%s1042_s1 + $0x60] sm:$0xff]  ;;  %633 = vmatpush1.bf16.msra.mxu0 %v632_v19  ;;  %v91_v32 = vmul.f32 %v27_v22, %v27_v22  ;;  %v634_v33 = vpack.c.bf16 %v27_v22, %v23_v17  ;;  %v28_v36 = vld [vmem:[%s1042_s1 + $0x70] sm:$0xff]  ;;  %v35_v46 = vld [vmem:[%s1042_s1 + $0xa8] sm:$0xff] }
   0x7   :  { %v184_v31 = vadd.f32 %v84_v21, %v80_v20  ;;  %v89_v34 = vmul.f32 %v25_v23, %v25_v23  ;;  %v164_v37 = vadd.f32 %v163_v18, %v87_v28  ;;  %v93_v38 = vmul.f32 %v29_v24, %v29_v24  ;;  %v33_v51 = vld [vmem:[%s1042_s1 + $0x98] sm:$0xff]  ;;  %v30_v57 = vld [vmem:[%s1042_s1 + $0x80] sm:$0xff]  ;;  %v32_v63 = vld [vmem:[%s1042_s1 + $0x90] sm:$0xff] }
   0x8   :  { %665 = vmatpush1.bf16.msra.mxu1 %v664_v27  ;;  %v666_v39 = vpack.c.bf16 %v29_v24, %v25_v23  ;;  %v86_v40 = vmul.f32 %v22_v29, %v22_v29  ;;  %635 = vmatprep.subr.bf16.mxu0 %v634_v33  ;;  %v90_v42 = vmul.f32 %v26_v30, %v26_v30  ;;  %v37_v52 = vld [vmem:[%s1042_s1 + $0xb8] sm:$0xff]  ;;  %v34_v58 = vld [vmem:[%s1042_s1 + $0xa0] sm:$0xff]  ;;  %v36_v0 = vld [vmem:[%s1042_s1 + $0xb0] sm:$0xff] }
   0x9   :  { %v206_v41 = vadd.f32 %v205_v25, %v89_v34  ;;  %v636_v43 = vpack.c.bf16 %v26_v30, %v22_v29  ;;  %v88_v44 = vmul.f32 %v24_v35, %v24_v35  ;;  %v165_v47 = vadd.f32 %v164_v37, %v91_v32  ;;  %v39_v10 = vld [vmem:[%s1042_s1 + $0xc8] sm:$0xff]  ;;  %v41_v16 = vld [vmem:[%s1042_s1 + $0xd8] sm:$0xff]  ;;  %v38_v22 = vld [vmem:[%s1042_s1 + $0xc0] sm:$0xff] }
   0xa   :  { %667 = vmatprep.subr.bf16.mxu1 %v666_v39  ;;  %v143_v48 = vadd.f32 %v142_v26, %v86_v40  ;;  %v92_v49 = vmul.f32 %v28_v36, %v28_v36  ;;  %v668_v50 = vpack.c.bf16 %v28_v36, %v24_v35  ;;  %v95_v55 = vmul.f32 %v31_v45, %v31_v45  ;;  %v43_v11 = vld [vmem:[%s1042_s1 + $0xe8] sm:$0xff]  ;;  %v45_v17 = vld [vmem:[%s1042_s1 + $0xf8] sm:$0xff]  ;;  %v42_v23 = vld [vmem:[%s1042_s1 + $0xe0] sm:$0xff] }
   0xb   :  { %v207_v53 = vadd.f32 %v206_v41, %v93_v38  ;;  %637 = vmatpush1.bf16.msra.mxu0 %v636_v43  ;;  %v185_v54 = vadd.f32 %v184_v31, %v88_v44  ;;  %v99_v56 = vmul.f32 %v35_v46, %v35_v46  ;;  %v638_v60 = vpack.c.bf16 %v35_v46, %v31_v45  ;;  %v40_v28 = vld [vmem:[%s1042_s1 + $0xd0] sm:$0xff]  ;;  %v47_v38 = vld [vmem:[%s1042_s1 + $0x108] sm:$0xff]  ;;  %v49_v44 = vld [vmem:[%s1042_s1 + $0x118] sm:$0xff] }
   0xc   :  { %v144_v59 = vadd.f32 %v143_v48, %v90_v42  ;;  %669 = vmatpush1.bf16.msra.mxu1 %v668_v50  ;;  %v97_v61 = vmul.f32 %v33_v51, %v33_v51  ;;  %v101_v62 = vmul.f32 %v37_v52, %v37_v52  ;;  %v166_v2 = vadd.f32 %v165_v47, %v95_v55  ;;  %v44_v29 = vld [vmem:[%s1042_s1 + $0xf0] sm:$0xff]  ;;  %v51_v39 = vld [vmem:[%s1042_s1 + $0x128] sm:$0xff]  ;;  %v53_v45 = vld [vmem:[%s1042_s1 + $0x138] sm:$0xff] }
   0xd   :  { %v186_v1 = vadd.f32 %v185_v54, %v92_v49  ;;  %v670_v4 = vpack.c.bf16 %v37_v52, %v33_v51  ;;  %v94_v5 = vmul.f32 %v30_v57, %v30_v57  ;;  %639 = vmatprep.subr.bf16.mxu0 %v638_v60  ;;  %v98_v7 = vmul.f32 %v34_v58, %v34_v58  ;;  %v46_v50 = vld [vmem:[%s1042_s1 + $0x100] sm:$0xff] }
   0xe   :  { %v208_v6 = vadd.f32 %v207_v53, %v97_v61  ;;  %v640_v8 = vpack.c.bf16 %v34_v58, %v30_v57  ;;  %v96_v9 = vmul.f32 %v32_v63, %v32_v63  ;;  %v167_v12 = vadd.f32 %v166_v2, %v99_v56  ;;  %v50_v51 = vld [vmem:[%s1042_s1 + $0x120] sm:$0xff]  ;;  %v48_v56 = vld [vmem:[%s1042_s1 + $0x110] sm:$0xff]  ;;  %v55_v2 = vld [vmem:[%s1042_s1 + $0x148] sm:$0xff] }
   0xf   :  { %671 = vmatprep.subr.bf16.mxu1 %v670_v4  ;;  %v145_v13 = vadd.f32 %v144_v59, %v94_v5  ;;  %v100_v14 = vmul.f32 %v36_v0, %v36_v0  ;;  %v672_v15 = vpack.c.bf16 %v36_v0, %v32_v63  ;;  %v103_v20 = vmul.f32 %v39_v10, %v39_v10  ;;  %v52_v57 = vld [vmem:[%s1042_s1 + $0x130] sm:$0xff]  ;;  %v59_v4 = vld [vmem:[%s1042_s1 + $0x168] sm:$0xff] }
  0x10   :  { %v209_v18 = vadd.f32 %v208_v6, %v101_v62  ;;  %641 = vmatpush1.bf16.msra.mxu0 %v640_v8  ;;  %v187_v19 = vadd.f32 %v186_v1, %v96_v9  ;;  %v107_v21 = vmul.f32 %v43_v11, %v43_v11  ;;  %v642_v25 = vpack.c.bf16 %v43_v11, %v39_v10  ;;  %v57_v9 = vld [vmem:[%s1042_s1 + $0x158] sm:$0xff] }
  0x11   :  { %v146_v24 = vadd.f32 %v145_v13, %v98_v7  ;;  %673 = vmatpush1.bf16.msra.mxu1 %v672_v15  ;;  %v105_v26 = vmul.f32 %v41_v16, %v41_v16  ;;  %v109_v27 = vmul.f32 %v45_v17, %v45_v17  ;;  %v168_v31 = vadd.f32 %v167_v12, %v103_v20  ;;  %v61_v10 = vld [vmem:[%s1042_s1 + $0x178] sm:$0xff]  ;;  %v54_v15 = vld [vmem:[%s1042_s1 + $0x140] sm:$0xff] }
  0x12   :  { %v188_v30 = vadd.f32 %v187_v19, %v100_v14  ;;  %v674_v32 = vpack.c.bf16 %v45_v17, %v41_v16  ;;  %v102_v33 = vmul.f32 %v38_v22, %v38_v22  ;;  %643 = vmatprep.subr.bf16.mxu0 %v642_v25  ;;  %v106_v35 = vmul.f32 %v42_v23, %v42_v23  ;;  %v58_v16 = vld [vmem:[%s1042_s1 + $0x160] sm:$0xff] }
  0x13   :  { %v210_v34 = vadd.f32 %v209_v18, %v105_v26  ;;  %v644_v36 = vpack.c.bf16 %v42_v23, %v38_v22  ;;  %v104_v37 = vmul.f32 %v40_v28, %v40_v28  ;;  %v169_v40 = vadd.f32 %v168_v31, %v107_v21  ;;  %v56_v21 = vld [vmem:[%s1042_s1 + $0x150] sm:$0xff]  ;;  %v63_v31 = vld [vmem:[%s1042_s1 + $0x188] sm:$0xff] }
  0x14   :  { %675 = vmatprep.subr.bf16.mxu1 %v674_v32  ;;  %v147_v41 = vadd.f32 %v146_v24, %v102_v33  ;;  %v108_v42 = vmul.f32 %v44_v29, %v44_v29  ;;  %v676_v43 = vpack.c.bf16 %v44_v29, %v40_v28  ;;  %v111_v48 = vmul.f32 %v47_v38, %v47_v38  ;;  %v60_v22 = vld [vmem:[%s1042_s1 + $0x170] sm:$0xff]  ;;  %v67_v32 = vld [vmem:[%s1042_s1 + $0x1a8] sm:$0xff] }
  0x15   :  { %v211_v46 = vadd.f32 %v210_v34, %v109_v27  ;;  %645 = vmatpush1.bf16.msra.mxu0 %v644_v36  ;;  %v189_v47 = vadd.f32 %v188_v30, %v104_v37  ;;  %v115_v49 = vmul.f32 %v51_v39, %v51_v39  ;;  %v646_v53 = vpack.c.bf16 %v51_v39, %v47_v38  ;;  %v65_v37 = vld [vmem:[%s1042_s1 + $0x198] sm:$0xff] }
  0x16   :  { %v148_v52 = vadd.f32 %v147_v41, %v106_v35  ;;  %677 = vmatpush1.bf16.msra.mxu1 %v676_v43  ;;  %v113_v54 = vmul.f32 %v49_v44, %v49_v44  ;;  %v117_v55 = vmul.f32 %v53_v45, %v53_v45  ;;  %v170_v59 = vadd.f32 %v169_v40, %v111_v48  ;;  %v69_v38 = vld [vmem:[%s1042_s1 + $0x1b8] sm:$0xff]  ;;  %v62_v43 = vld [vmem:[%s1042_s1 + $0x180] sm:$0xff] }
  0x17   :  { %v190_v58 = vadd.f32 %v189_v47, %v108_v42  ;;  %v678_v60 = vpack.c.bf16 %v53_v45, %v49_v44  ;;  %v110_v61 = vmul.f32 %v46_v50, %v46_v50  ;;  %647 = vmatprep.subr.bf16.mxu0 %v646_v53  ;;  %v114_v63 = vmul.f32 %v50_v51, %v50_v51  ;;  %v66_v44 = vld [vmem:[%s1042_s1 + $0x1a0] sm:$0xff] }
  0x18   :  { %v212_v62 = vadd.f32 %v211_v46, %v113_v54  ;;  %v648_v0 = vpack.c.bf16 %v50_v51, %v46_v50  ;;  %v112_v1 = vmul.f32 %v48_v56, %v48_v56  ;;  %v171_v5 = vadd.f32 %v170_v59, %v115_v49  ;;  %v64_v49 = vld [vmem:[%s1042_s1 + $0x190] sm:$0xff]  ;;  %v71_v59 = vld [vmem:[%s1042_s1 + $0x1c8] sm:$0xff] }
  0x19   :  { %679 = vmatprep.subr.bf16.mxu1 %v678_v60  ;;  %v149_v6 = vadd.f32 %v148_v52, %v110_v61  ;;  %v116_v7 = vmul.f32 %v52_v57, %v52_v57  ;;  %v680_v8 = vpack.c.bf16 %v52_v57, %v48_v56  ;;  %v119_v13 = vmul.f32 %v55_v2, %v55_v2  ;;  %v68_v50 = vld [vmem:[%s1042_s1 + $0x1b0] sm:$0xff]  ;;  %v75_v60 = vld [vmem:[%s1042_s1 + $0x1e8] sm:$0xff] }
  0x1a   :  { %v213_v11 = vadd.f32 %v212_v62, %v117_v55  ;;  %649 = vmatpush1.bf16.msra.mxu0 %v648_v0  ;;  %v191_v12 = vadd.f32 %v190_v58, %v112_v1  ;;  %v123_v14 = vmul.f32 %v59_v4, %v59_v4  ;;  %v650_v18 = vpack.c.bf16 %v59_v4, %v55_v2  ;;  %v73_v1 = vld [vmem:[%s1042_s1 + $0x1d8] sm:$0xff] }
  0x1b   :  { %v150_v17 = vadd.f32 %v149_v6, %v114_v63  ;;  %681 = vmatpush1.bf16.msra.mxu1 %v680_v8  ;;  %v121_v19 = vmul.f32 %v57_v9, %v57_v9  ;;  %v125_v20 = vmul.f32 %v61_v10, %v61_v10  ;;  %v172_v24 = vadd.f32 %v171_v5, %v119_v13  ;;  %v77_v2 = vld [vmem:[%s1042_s1 + $0x1f8] sm:$0xff]  ;;  %v70_v8 = vld [vmem:[%s1042_s1 + $0x1c0] sm:$0xff] }
  0x1c   :  { %v192_v23 = vadd.f32 %v191_v12, %v116_v7  ;;  %v682_v25 = vpack.c.bf16 %v61_v10, %v57_v9  ;;  %v118_v26 = vmul.f32 %v54_v15, %v54_v15  ;;  %651 = vmatprep.subr.bf16.mxu0 %v650_v18  ;;  %v122_v28 = vmul.f32 %v58_v16, %v58_v16  ;;  %v74_v9 = vld [vmem:[%s1042_s1 + $0x1e0] sm:$0xff] }
  0x1d   :  { %v214_v27 = vadd.f32 %v213_v11, %v121_v19  ;;  %v652_v29 = vpack.c.bf16 %v58_v16, %v54_v15  ;;  %v120_v30 = vmul.f32 %v56_v21, %v56_v21  ;;  %v173_v33 = vadd.f32 %v172_v24, %v123_v14  ;;  %v72_v14 = vld [vmem:[%s1042_s1 + $0x1d0] sm:$0xff] }
  0x1e   :  { %683 = vmatprep.subr.bf16.mxu1 %v682_v25  ;;  %v151_v34 = vadd.f32 %v150_v17, %v118_v26  ;;  %v124_v35 = vmul.f32 %v60_v22, %v60_v22  ;;  %v684_v36 = vpack.c.bf16 %v60_v22, %v56_v21  ;;  %v127_v41 = vmul.f32 %v63_v31, %v63_v31  ;;  %v76_v15 = vld [vmem:[%s1042_s1 + $0x1f0] sm:$0xff] }
  0x1f   :  { %v215_v39 = vadd.f32 %v214_v27, %v125_v20  ;;  %653 = vmatpush1.bf16.msra.mxu0 %v652_v29  ;;  %v193_v40 = vadd.f32 %v192_v23, %v120_v30  ;;  %v131_v42 = vmul.f32 %v67_v32, %v67_v32  ;;  %v654_v46 = vpack.c.bf16 %v67_v32, %v63_v31  ;;  %v268_v30 = vld [vmem:[%s1043_s0] sm:$0xff] }
  0x20   :  { %v152_v45 = vadd.f32 %v151_v34, %v122_v28  ;;  %685 = vmatpush1.bf16.msra.mxu1 %v684_v36  ;;  %v129_v47 = vmul.f32 %v65_v37, %v65_v37  ;;  %v133_v48 = vmul.f32 %v69_v38, %v69_v38  ;;  %v174_v52 = vadd.f32 %v173_v33, %v127_v41  ;;  %v269_v33 = vld [vmem:[%s1043_s0 + $0x8] sm:$0xff] }
  0x21   :  { %v194_v51 = vadd.f32 %v193_v40, %v124_v35  ;;  %v686_v53 = vpack.c.bf16 %v69_v38, %v65_v37  ;;  %v126_v54 = vmul.f32 %v62_v43, %v62_v43  ;;  %655 = vmatprep.subr.bf16.mxu0 %v654_v46  ;;  %v130_v56 = vmul.f32 %v66_v44, %v66_v44 }
  0x22   :  { %v216_v55 = vadd.f32 %v215_v39, %v129_v47  ;;  %v656_v57 = vpack.c.bf16 %v66_v44, %v62_v43  ;;  %v128_v58 = vmul.f32 %v64_v49, %v64_v49  ;;  %v175_v61 = vadd.f32 %v174_v52, %v131_v42 }
  0x23   :  { %687 = vmatprep.subr.bf16.mxu1 %v686_v53  ;;  %v153_v62 = vadd.f32 %v152_v45, %v126_v54  ;;  %v132_v63 = vmul.f32 %v68_v50, %v68_v50  ;;  %v688_v0 = vpack.c.bf16 %v68_v50, %v64_v49  ;;  %v135_v6 = vmul.f32 %v71_v59, %v71_v59 }
  0x24   :  { %v217_v4 = vadd.f32 %v216_v55, %v133_v48  ;;  %657 = vmatpush1.bf16.msra.mxu0 %v656_v57  ;;  %v195_v5 = vadd.f32 %v194_v51, %v128_v58  ;;  %v139_v7 = vmul.f32 %v75_v60, %v75_v60  ;;  %v658_v11 = vpack.c.bf16 %v75_v60, %v71_v59 }
  0x25   :  { %v154_v10 = vadd.f32 %v153_v62, %v130_v56  ;;  %689 = vmatpush1.bf16.msra.mxu1 %v688_v0  ;;  %v137_v12 = vmul.f32 %v73_v1, %v73_v1  ;;  %v141_v13 = vmul.f32 %v77_v2, %v77_v2  ;;  %v176_v17 = vadd.f32 %v175_v61, %v135_v6 }
  0x26   :  { %v196_v16 = vadd.f32 %v195_v5, %v132_v63  ;;  %v690_v18 = vpack.c.bf16 %v77_v2, %v73_v1  ;;  %v134_v19 = vmul.f32 %v70_v8, %v70_v8  ;;  %659 = vmatprep.subr.bf16.mxu0 %v658_v11  ;;  %v138_v21 = vmul.f32 %v74_v9, %v74_v9 }
  0x27   :  { %v218_v20 = vadd.f32 %v217_v4, %v137_v12  ;;  %v660_v22 = vpack.c.bf16 %v74_v9, %v70_v8  ;;  %v136_v23 = vmul.f32 %v72_v14, %v72_v14  ;;  %v177_v24 = vadd.f32 %v176_v17, %v139_v7 }
  0x28   :  { %691 = vmatprep.subr.bf16.mxu1 %v690_v18  ;;  %v155_v25 = vadd.f32 %v154_v10, %v134_v19  ;;  %v140_v26 = vmul.f32 %v76_v15, %v76_v15  ;;  %v692_v27 = vpack.c.bf16 %v76_v15, %v72_v14  ;;  %v235_v48 = vlaneseq }
  0x29   :  { %v219_v28 = vadd.f32 %v218_v20, %v141_v13  ;;  %661 = vmatpush1.bf16.msra.mxu0 %v660_v22  ;;  %v197_v29 = vadd.f32 %v196_v16, %v136_v23  ;;  %v178_v37 = vrot.slane %v177_v24, 4  ;;  %v725_v1 = vmov 1966171168  }
  0x2a   :  { %v156_v31 = vadd.f32 %v155_v25, %v138_v21  ;;  %693 = vmatpush1.bf16.msra.mxu1 %v692_v27  ;;  %v953_v52 = vand.u32 127, %v235_v48  ;;  %v236_v55 = vshrl.u32 %v235_v48, 7  ;;  %v233_v2 = vunpack.c.l.s4 %v725_v1 }
  0x2b   :  { %v198_v32 = vadd.f32 %v197_v29, %v140_v26  ;;  %v220_v34 = vrot.slane %v219_v28, 4  ;;  %v179_v41 = vadd.f32 %v178_v37, %v177_v24  ;;  %vm257_vm4 = vcmp.lt.s32.totalorder %v235_v48, 512 }
  0x2c   :  { %335 = vmatmul.mubr.f32.vlgmr.msra.gmra.mrb[0].mxu0 %v268_v30  ;;  %v157_v36 = vrot.slane %v156_v31, 4  ;;  %v528_v57 = vadd.s32 128, %v953_v52  ;;  %v501_v60 = vadd.s32 8, %v236_v55  ;;  %v529_v63 = vadd.s32 256, %v953_v52 }
  0x2d   :  { %412 = vmatmul.mubr.f32.vlgmr.msra.gmra.mrb[0].mxu1 %v268_v30  ;;  %340 = vmatprep.mubr.f32.mxu0 %v724_v3  ;;  %v199_v35 = vrot.slane %v198_v32, 4  ;;  %v221_v38 = vadd.f32 %v220_v34, %v219_v28  ;;  %v180_v45 = vrot.slane %v179_v41, 2  ;;  %v540_v0 = vand.u32 7, %v953_v52 }
  0x2e   :  { %417 = vmatprep.mubr.f32.mxu1 %v724_v3  ;;  %v158_v40 = vadd.f32 %v157_v36, %v156_v31  ;;  %v513_v4 = vand.u32 7, %v501_v60  ;;  %v530_v5 = vadd.s32 384, %v953_v52  ;;  %v547_v6 = vand.u32 7, %v528_v57 }
  0x2f   :  { %v200_v39 = vadd.f32 %v199_v35, %v198_v32  ;;  %v222_v42 = vrot.slane %v221_v38, 2  ;;  %v181_v50 = vadd.f32 %v180_v45, %v179_v41  ;;  %v234_v8 = vunpack.c.0.s8 %v233_v2 }
  0x30   :  { %341 = vmatmul.mubr.f32.gmra.mrb[2].mxu0 %v269_v33  ;;  %v159_v44 = vrot.slane %v158_v40, 2  ;;  %vm959_vm0 = vcmp.eq.s32.totalorder %v513_v4, %v540_v0  ;;  %vm963_vm1 = vcmp.eq.s32.totalorder %v513_v4, %v547_v6  ;;  %v554_v11 = vand.u32 7, %v529_v63 }
  0x31   :  { %418 = vmatmul.mubr.f32.gmra.mrb[2].mxu1 %v269_v33  ;;  %v201_v43 = vrot.slane %v200_v39, 2  ;;  %v223_v46 = vadd.f32 %v222_v42, %v221_v38  ;;  %v182_v54 = vrot.slane %v181_v50, 1  ;;  %v237_v12 = vsub.s32 %v234_v8, %v236_v55 }
  0x32   :  { %v160_v49 = vadd.f32 %v159_v44, %v158_v40  ;;  %v561_v13 = vand.u32 7, %v530_v5  ;;  %vm967_vm2 = vcmp.eq.s32.totalorder %v513_v4, %v554_v11  ;;  %v506_v24 = vand.u32 7, %v236_v55 }
  0x33   :  { %v202_v47 = vadd.f32 %v201_v43, %v200_v39  ;;  %v224_v3 = vrot.slane %v223_v46, 1  ;;  %v183_v61 = vadd.f32 %v182_v54, %v181_v50  ;;  %vm611_vm9 = vcmp.eq.s32.totalorder %v953_v52, 1 }
  0x34   :  { %v161_v53 = vrot.slane %v160_v49, 1  ;;  %vm971_vm3 = vcmp.eq.s32.totalorder %v513_v4, %v561_v13  ;;  %vm978_vm5 = vcmp.eq.s32.totalorder %v506_v24, %v540_v0  ;;  %vm982_vm6 = vcmp.eq.s32.totalorder %v506_v24, %v547_v6 }
  0x35   :  { %v203_v51 = vrot.slane %v202_v47, 1  ;;  %v225_v58 = vadd.f32 %v224_v3, %v223_v46  ;;  %v261_v22 = vmax.f32 %v183_v61, 1e-24  ;;  %vm986_vm7 = vcmp.eq.s32.totalorder %v506_v24, %v554_v11 }
  0x36   :  { %v162_v59 = vadd.f32 %v161_v53, %v160_v49  ;;  %vm990_vm8 = vcmp.eq.s32.totalorder %v506_v24, %v561_v13  ;;  %vm610_vm10 = vcmp.eq.s32.totalorder %v953_v52, 0 }
  0x37   :  { %v204_v56 = vadd.f32 %v203_v51, %v202_v47  ;;  %v263_v23 = vmax.f32 %v225_v58, 1e-24 }
  0x38   :  { %v230_v7 = vcombine.low %v162_v59, %v183_v61  ;;  %v260_v20 = vmax.f32 %v162_v59, 1e-24 }
  0x39   :  { %v231_v62 = vcombine.low %v204_v56, %v225_v58  ;;  %v262_v21 = vmax.f32 %v204_v56, 1e-24 }
  0x3a   :  { %v238_v15 = vrot.slane %v230_v7, %v237_v12  ;;  %696 = vrsqrt.f32 %v260_v20 }
  0x3b   :  { %v245_v16 = vrot.slane %v231_v62, %v237_v12  ;;  %698 = vrsqrt.f32 %v262_v21 }
  0x3c   :  { %700 = vrsqrt.f32 %v261_v22 }
  0x3d   :  { %v246_v18 = vcombine.low %v238_v15, %v245_v16  ;;  %702 = vrsqrt.f32 %v263_v23 }
  0x3f   :  { %v253_v19 = vrot.slane %v246_v18, %v237_v12 }
  0x41   :  { %259 = vst.msk [vmem:[%s1044_s3] sm:$0xf] %vm257_vm4, %v253_v19 }
  0x44   :  { %v697_v25 = vpop.eup %696 }
  0x45   :  { %v699_v26 = vpop.eup %698 }
  0x46   :  { %v701_v27 = vpop.eup %700 }
  0x47   :  { %v703_v28 = vpop.eup %702 }
  0xff   :  { %v336_v29 = vpop.f32.mrb[0].mxu0 }
 0x100   :  { %v424_v31 = vmul.f32 %v697_v25, %v336_v29  ;;  %v413_v32 = vpop.f32.mrb[0].mxu1  ;;  %v338_v33 = vpop.f32.mrb[1].mxu0 }
 0x101   :  { %v426_v35 = vmul.f32 %v699_v26, %v413_v32  ;;  %v425_v36 = vmul.f32 %v701_v27, %v338_v33  ;;  %v415_v37 = vpop.f32.mrb[1].mxu1 }
 0x102   :  { %432 = vst [vmem:[%s1045_s2] sm:$0xff] %v424_v31  ;;  %v592_v40 = vsel %vm978_vm5, %v424_v31, 0.0  ;;  %v427_v41 = vmul.f32 %v703_v28, %v415_v37  ;;  %v440_v42 = vmul.f32 33.333332, %v424_v31 }
 0x103   :  { %434 = vst [vmem:[%s1045_s2 + $0x10] sm:$0xff] %v426_v35  ;;  %433 = vst [vmem:[%s1045_s2 + $0x8] sm:$0xff] %v425_v36  ;;  %v593_v43 = vsel %vm982_vm6, %v425_v36, 0.0  ;;  %v342_v44 = vpop.f32.mrb[2].mxu0  ;;  %v441_v45 = vmul.f32 33.333332, %v425_v36 }
 0x104   :  { %v442_v46 = vmul.f32 33.333332, %v426_v35  ;;  %435 = vst [vmem:[%s1045_s2 + $0x18] sm:$0xff] %v427_v41  ;;  %v428_v47 = vmul.f32 %v697_v25, %v342_v44  ;;  %v419_v48 = vpop.f32.mrb[2].mxu1  ;;  %v344_v49 = vpop.f32.mrb[3].mxu0  ;;  %v594_v3 = vsel %vm986_vm7, %v426_v35, 0.0  ;;  %v600_v57 = vadd.f32 %v593_v43, %v592_v40 }
 0x105   :  { %v443_v50 = vmul.f32 33.333332, %v427_v41  ;;  %v595_v51 = vsel %vm990_vm8, %v427_v41, 0.0  ;;  %v430_v53 = vmul.f32 %v699_v26, %v419_v48  ;;  %v429_v54 = vmul.f32 %v701_v27, %v344_v49  ;;  %v421_v55 = vpop.f32.mrb[3].mxu1 }
 0x106   :  { %v448_v56 = vmax.f32 %v440_v42, %v442_v46  ;;  %436 = vst [vmem:[%s1045_s2 + $0x20] sm:$0xff] %v428_v47  ;;  %v444_v58 = vmul.f32 33.333332, %v428_v47  ;;  %v596_v59 = vsel %vm959_vm0, %v428_v47, 0.0  ;;  %v431_v60 = vmul.f32 %v703_v28, %v421_v55 }
 0x107   :  { %v449_v61 = vmax.f32 %v441_v45, %v443_v50  ;;  %438 = vst [vmem:[%s1045_s2 + $0x30] sm:$0xff] %v430_v53  ;;  %v446_v62 = vmul.f32 33.333332, %v430_v53  ;;  %437 = vst [vmem:[%s1045_s2 + $0x28] sm:$0xff] %v429_v54  ;;  %v445_v63 = vmul.f32 33.333332, %v429_v54  ;;  %v601_v1 = vadd.f32 %v600_v57, %v594_v3 }
 0x108   :  { %v597_v0 = vsel %vm963_vm1, %v429_v54, 0.0  ;;  %439 = vst [vmem:[%s1045_s2 + $0x38] sm:$0xff] %v431_v60  ;;  %v447_v2 = vmul.f32 33.333332, %v431_v60  ;;  %v598_v5 = vsel %vm967_vm2, %v430_v53, 0.0  ;;  %v599_v6 = vsel %vm971_vm3, %v431_v60, 0.0 }
 0x109   :  { %v450_v4 = vmax.f32 %v448_v56, %v449_v61  ;;  %v453_v7 = vmax.f32 %v444_v58, %v446_v62  ;;  %v602_v8 = vadd.f32 %v601_v1, %v595_v51  ;;  %v605_v9 = vadd.f32 %v597_v0, %v596_v59 }
 0x10a   :  { %v454_v11 = vmax.f32 %v445_v63, %v447_v2 }
 0x10b   :  { %451 = vmax.xlane.f32.xlu0 %v450_v4  ;;  %v606_v10 = vadd.f32 %v605_v9, %v598_v5 }
 0x10c   :  { %v455_v12 = vmax.f32 %v453_v7, %v454_v11 }
 0x10d   :  { %v607_v13 = vadd.f32 %v606_v10, %v599_v6 }
 0x10f   :  { %456 = vmax.xlane.f32.xlu0 %v455_v12 }
 0x113   :  { %603 = vadd.xlane.f32.xlu0 %v602_v8 }
 0x198   :  { %v452_v15 = vpop.xlane.xlu0 %451 }
 0x199   :  { %v458_v16 = vsub.f32 %v440_v42, %v452_v15  ;;  %v459_v18 = vsub.f32 %v441_v45, %v452_v15  ;;  %v460_v19 = vsub.f32 %v442_v46, %v452_v15  ;;  %v461_v20 = vsub.f32 %v443_v50, %v452_v15 }
 0x19b   :  { %v466_v14 = vmul.f32 1.442695, %v458_v16  ;;  %v468_v21 = vmul.f32 1.442695, %v459_v18  ;;  %v470_v22 = vmul.f32 1.442695, %v460_v19 }
 0x19c   :  { %v472_v17 = vmul.f32 1.442695, %v461_v20  ;;  %v457_v23 = vpop.xlane.xlu0 %456 }
 0x19d   :  { %704 = vpow2.f32 %v466_v14  ;;  %v462_v24 = vsub.f32 %v444_v58, %v457_v23  ;;  %v463_v25 = vsub.f32 %v445_v63, %v457_v23  ;;  %v464_v26 = vsub.f32 %v446_v62, %v457_v23 }
 0x19e   :  { %706 = vpow2.f32 %v468_v21  ;;  %v465_v27 = vsub.f32 %v447_v2, %v457_v23 }
 0x19f   :  { %708 = vpow2.f32 %v470_v22  ;;  %v474_v28 = vmul.f32 1.442695, %v462_v24  ;;  %v476_v29 = vmul.f32 1.442695, %v463_v25  ;;  %v478_v30 = vmul.f32 1.442695, %v464_v26 }
 0x1a0   :  { %710 = vpow2.f32 %v472_v17  ;;  %v480_v31 = vmul.f32 1.442695, %v465_v27  ;;  %v604_v49 = vpop.xlane.xlu0 %603 }
 0x1a1   :  { %712 = vpow2.f32 %v474_v28  ;;  %v612_v53 = vsel %vm611_vm9, %v604_v49, 0.0 }
 0x1a2   :  { %714 = vpow2.f32 %v476_v29 }
 0x1a3   :  { %716 = vpow2.f32 %v478_v30 }
 0x1a4   :  { %718 = vpow2.f32 %v480_v31 }
 0x1a7   :  { %v705_v32 = vpop.eup %704 }
 0x1a8   :  { %v707_v33 = vpop.eup %706 }
 0x1a9   :  { %v709_v34 = vpop.eup %708  ;;  %v482_v35 = vadd.f32 %v707_v33, %v705_v32 }
 0x1aa   :  { %v711_v36 = vpop.eup %710 }
 0x1ab   :  { %v713_v37 = vpop.eup %712  ;;  %v483_v38 = vadd.f32 %v709_v34, %v482_v35 }
 0x1ac   :  { %v715_v39 = vpop.eup %714 }
 0x1ad   :  { %v484_v40 = vadd.f32 %v711_v36, %v483_v38  ;;  %v487_v41 = vadd.f32 %v715_v39, %v713_v37  ;;  %v717_v42 = vpop.eup %716 }
 0x1ae   :  { %v719_v44 = vpop.eup %718 }
 0x1af   :  { %485 = vadd.xlane.f32.xlu1 %v484_v40  ;;  %v488_v43 = vadd.f32 %v717_v42, %v487_v41 }
 0x1b1   :  { %v489_v45 = vadd.f32 %v719_v44, %v488_v43 }
 0x1b3   :  { %490 = vadd.xlane.f32.xlu1 %v489_v45 }
 0x1b7   :  { %608 = vadd.xlane.f32.xlu1 %v607_v13 }
 0x23c   :  { %v486_v46 = vpop.xlane.xlu1 %485 }
 0x23d   :  { %720 = vlog2.f32 %v486_v46 }
 0x240   :  { %v491_v47 = vpop.xlane.xlu1 %490 }
 0x241   :  { %722 = vlog2.f32 %v491_v47 }
 0x244   :  { %v609_v55 = vpop.xlane.xlu1 %608 }
 0x245   :  { %v613_v58 = vsel %vm611_vm9, %v609_v55, 0.0 }
 0x247   :  { %v721_v48 = vpop.eup %720 }
 0x248   :  { %v493_v50 = vmul.f32 0.6931472, %v721_v48 }
 0x24a   :  { %v496_v3 = vadd.f32 %v493_v50, %v452_v15 }
 0x24b   :  { %v723_v51 = vpop.eup %722 }
 0x24c   :  { %v495_v54 = vmul.f32 0.6931472, %v723_v51  ;;  %v614_v56 = vsel %vm610_vm10, %v496_v3, %v612_v53 }
 0x24d   :  { %616 = vst [vmem:[%s1046_s4] sm:$0xff] %v614_v56 }
 0x24e   :  { %v497_v57 = vadd.f32 %v495_v54, %v457_v23 }
 0x250   :  { %v615_v59 = vsel %vm610_vm10, %v497_v57, %v613_v58 }
 0x251   :  { %617 = vst [vmem:[%s1046_s4 + $0x8] sm:$0xff] %v615_v59 }

// kernel: scd_net_forward.19
= control target key start
LH: loop header
LB: loop body
LE: loop exit
PB: predicated region body
PF: predicated region fallthrough
CT: control target
= control target key end

     0   :  { %v635_v3 = vmov 0.0   ;;  %s907_s1 = inlined_call_operand.vmem [shape: f32[128,512], index: 1, kind: input, shape index: {}]   ;;  %s908_s0 = inlined_call_operand.vmem [shape: f32[8,128], index: 0, kind: input, shape index: {}]   ;;  %s909_s3 = inlined_call_operand.vmem [shape: f32[1,512], index: 3, kind: output, shape index: {1}]   ;;  %s910_s2 = inlined_call_operand.vmem [shape: f32[8,512], index: 2, kind: output, shape index: {0}]   ;;  %s911_s4 = inlined_call_operand.vmem [shape: f32[8,128], index: 4, kind: output, shape index: {2}]  }
   0x1   :  { %v15_v0 = vld [vmem:[%s907_s1 + $0x8] sm:$0xff]  ;;  %v17_v2 = vld [vmem:[%s907_s1 + $0x18] sm:$0xff]  ;;  %333 = vmatprep.mubr.f32.mxu0 %v635_v3  ;;  %404 = vmatprep.mubr.f32.mxu1 %v635_v3  ;;  %v14_v9 = vld [vmem:[%s907_s1] sm:$0xff] }
   0x2   :  { %v19_v1 = vld [vmem:[%s907_s1 + $0x28] sm:$0xff]  ;;  %v79_v4 = vmul.f32 %v15_v0, %v15_v0  ;;  %v21_v7 = vld [vmem:[%s907_s1 + $0x38] sm:$0xff]  ;;  %v81_v8 = vmul.f32 %v17_v2, %v17_v2  ;;  %v18_v10 = vld [vmem:[%s907_s1 + $0x20] sm:$0xff]  ;;  %v78_v13 = vmul.f32 %v14_v9, %v14_v9 }
   0x3   :  { %v83_v5 = vmul.f32 %v19_v1, %v19_v1  ;;  %v551_v6 = vpack.c.bf16 %v19_v1, %v15_v0  ;;  %v85_v11 = vmul.f32 %v21_v7, %v21_v7  ;;  %v583_v12 = vpack.c.bf16 %v21_v7, %v17_v2  ;;  %v16_v15 = vld [vmem:[%s907_s1 + $0x10] sm:$0xff]  ;;  %v23_v17 = vld [vmem:[%s907_s1 + $0x48] sm:$0xff]  ;;  %v25_v23 = vld [vmem:[%s907_s1 + $0x58] sm:$0xff] }
   0x4   :  { %v82_v14 = vmul.f32 %v18_v10, %v18_v10  ;;  %v20_v16 = vld [vmem:[%s907_s1 + $0x30] sm:$0xff]  ;;  %v553_v19 = vpack.c.bf16 %v18_v10, %v14_v9  ;;  %v80_v20 = vmul.f32 %v16_v15, %v16_v15  ;;  %v27_v22 = vld [vmem:[%s907_s1 + $0x68] sm:$0xff]  ;;  %v29_v24 = vld [vmem:[%s907_s1 + $0x78] sm:$0xff]  ;;  %v87_v28 = vmul.f32 %v23_v17, %v23_v17 }
   0x5   :  { %v163_v18 = vadd.f32 %v83_v5, %v79_v4  ;;  %552 = vmatprep.subr.bf16.mxu0 %v551_v6  ;;  %v84_v21 = vmul.f32 %v20_v16, %v20_v16  ;;  %v205_v25 = vadd.f32 %v85_v11, %v81_v8  ;;  %584 = vmatprep.subr.bf16.mxu1 %v583_v12  ;;  %v22_v29 = vld [vmem:[%s907_s1 + $0x40] sm:$0xff]  ;;  %v24_v35 = vld [vmem:[%s907_s1 + $0x50] sm:$0xff]  ;;  %v31_v45 = vld [vmem:[%s907_s1 + $0x88] sm:$0xff] }
   0x6   :  { %v142_v26 = vadd.f32 %v82_v14, %v78_v13  ;;  %v585_v27 = vpack.c.bf16 %v20_v16, %v16_v15  ;;  %v26_v30 = vld [vmem:[%s907_s1 + $0x60] sm:$0xff]  ;;  %554 = vmatpush1.bf16.msra.mxu0 %v553_v19  ;;  %v91_v32 = vmul.f32 %v27_v22, %v27_v22  ;;  %v555_v33 = vpack.c.bf16 %v27_v22, %v23_v17  ;;  %v28_v36 = vld [vmem:[%s907_s1 + $0x70] sm:$0xff]  ;;  %v35_v46 = vld [vmem:[%s907_s1 + $0xa8] sm:$0xff] }
   0x7   :  { %v184_v31 = vadd.f32 %v84_v21, %v80_v20  ;;  %v89_v34 = vmul.f32 %v25_v23, %v25_v23  ;;  %v164_v37 = vadd.f32 %v163_v18, %v87_v28  ;;  %v93_v38 = vmul.f32 %v29_v24, %v29_v24  ;;  %v33_v51 = vld [vmem:[%s907_s1 + $0x98] sm:$0xff]  ;;  %v30_v57 = vld [vmem:[%s907_s1 + $0x80] sm:$0xff]  ;;  %v32_v63 = vld [vmem:[%s907_s1 + $0x90] sm:$0xff] }
   0x8   :  { %586 = vmatpush1.bf16.msra.mxu1 %v585_v27  ;;  %v587_v39 = vpack.c.bf16 %v29_v24, %v25_v23  ;;  %v86_v40 = vmul.f32 %v22_v29, %v22_v29  ;;  %556 = vmatprep.subr.bf16.mxu0 %v555_v33  ;;  %v90_v42 = vmul.f32 %v26_v30, %v26_v30  ;;  %v37_v52 = vld [vmem:[%s907_s1 + $0xb8] sm:$0xff]  ;;  %v34_v58 = vld [vmem:[%s907_s1 + $0xa0] sm:$0xff]  ;;  %v36_v0 = vld [vmem:[%s907_s1 + $0xb0] sm:$0xff] }
   0x9   :  { %v206_v41 = vadd.f32 %v205_v25, %v89_v34  ;;  %v557_v43 = vpack.c.bf16 %v26_v30, %v22_v29  ;;  %v88_v44 = vmul.f32 %v24_v35, %v24_v35  ;;  %v165_v47 = vadd.f32 %v164_v37, %v91_v32  ;;  %v39_v9 = vld [vmem:[%s907_s1 + $0xc8] sm:$0xff]  ;;  %v41_v15 = vld [vmem:[%s907_s1 + $0xd8] sm:$0xff]  ;;  %v38_v21 = vld [vmem:[%s907_s1 + $0xc0] sm:$0xff] }
   0xa   :  { %588 = vmatprep.subr.bf16.mxu1 %v587_v39  ;;  %v143_v48 = vadd.f32 %v142_v26, %v86_v40  ;;  %v92_v49 = vmul.f32 %v28_v36, %v28_v36  ;;  %v589_v50 = vpack.c.bf16 %v28_v36, %v24_v35  ;;  %v95_v55 = vmul.f32 %v31_v45, %v31_v45  ;;  %v43_v10 = vld [vmem:[%s907_s1 + $0xe8] sm:$0xff]  ;;  %v45_v16 = vld [vmem:[%s907_s1 + $0xf8] sm:$0xff]  ;;  %v42_v22 = vld [vmem:[%s907_s1 + $0xe0] sm:$0xff] }
   0xb   :  { %v207_v53 = vadd.f32 %v206_v41, %v93_v38  ;;  %558 = vmatpush1.bf16.msra.mxu0 %v557_v43  ;;  %v185_v54 = vadd.f32 %v184_v31, %v88_v44  ;;  %v99_v56 = vmul.f32 %v35_v46, %v35_v46  ;;  %v559_v60 = vpack.c.bf16 %v35_v46, %v31_v45  ;;  %v40_v27 = vld [vmem:[%s907_s1 + $0xd0] sm:$0xff]  ;;  %v47_v37 = vld [vmem:[%s907_s1 + $0x108] sm:$0xff]  ;;  %v49_v43 = vld [vmem:[%s907_s1 + $0x118] sm:$0xff] }
   0xc   :  { %v144_v59 = vadd.f32 %v143_v48, %v90_v42  ;;  %590 = vmatpush1.bf16.msra.mxu1 %v589_v50  ;;  %v97_v61 = vmul.f32 %v33_v51, %v33_v51  ;;  %v101_v62 = vmul.f32 %v37_v52, %v37_v52  ;;  %v166_v2 = vadd.f32 %v165_v47, %v95_v55  ;;  %v44_v28 = vld [vmem:[%s907_s1 + $0xf0] sm:$0xff]  ;;  %v51_v38 = vld [vmem:[%s907_s1 + $0x128] sm:$0xff]  ;;  %v53_v44 = vld [vmem:[%s907_s1 + $0x138] sm:$0xff] }
   0xd   :  { %v186_v1 = vadd.f32 %v185_v54, %v92_v49  ;;  %v591_v3 = vpack.c.bf16 %v37_v52, %v33_v51  ;;  %v94_v4 = vmul.f32 %v30_v57, %v30_v57  ;;  %560 = vmatprep.subr.bf16.mxu0 %v559_v60  ;;  %v98_v6 = vmul.f32 %v34_v58, %v34_v58  ;;  %v46_v49 = vld [vmem:[%s907_s1 + $0x100] sm:$0xff]  ;;  %v48_v55 = vld [vmem:[%s907_s1 + $0x110] sm:$0xff] }
   0xe   :  { %v208_v5 = vadd.f32 %v207_v53, %v97_v61  ;;  %v561_v7 = vpack.c.bf16 %v34_v58, %v30_v57  ;;  %v96_v8 = vmul.f32 %v32_v63, %v32_v63  ;;  %v167_v11 = vadd.f32 %v166_v2, %v99_v56  ;;  %v50_v50 = vld [vmem:[%s907_s1 + $0x120] sm:$0xff]  ;;  %v52_v56 = vld [vmem:[%s907_s1 + $0x130] sm:$0xff]  ;;  %v59_v2 = vld [vmem:[%s907_s1 + $0x168] sm:$0xff] }
   0xf   :  { %592 = vmatprep.subr.bf16.mxu1 %v591_v3  ;;  %v145_v12 = vadd.f32 %v144_v59, %v94_v4  ;;  %v100_v13 = vmul.f32 %v36_v0, %v36_v0  ;;  %v593_v14 = vpack.c.bf16 %v36_v0, %v32_v63  ;;  %v103_v19 = vmul.f32 %v39_v9, %v39_v9 }
  0x10   :  { %v209_v17 = vadd.f32 %v208_v5, %v101_v62  ;;  %562 = vmatpush1.bf16.msra.mxu0 %v561_v7  ;;  %v187_v18 = vadd.f32 %v186_v1, %v96_v8  ;;  %v107_v20 = vmul.f32 %v43_v10, %v43_v10  ;;  %v563_v24 = vpack.c.bf16 %v43_v10, %v39_v9  ;;  %v55_v1 = vld [vmem:[%s907_s1 + $0x148] sm:$0xff]  ;;  %v57_v7 = vld [vmem:[%s907_s1 + $0x158] sm:$0xff] }
  0x11   :  { %v146_v23 = vadd.f32 %v145_v12, %v98_v6  ;;  %594 = vmatpush1.bf16.msra.mxu1 %v593_v14  ;;  %v105_v25 = vmul.f32 %v41_v15, %v41_v15  ;;  %v109_v26 = vmul.f32 %v45_v16, %v45_v16  ;;  %v168_v30 = vadd.f32 %v167_v11, %v103_v19  ;;  %v61_v8 = vld [vmem:[%s907_s1 + $0x178] sm:$0xff]  ;;  %v58_v14 = vld [vmem:[%s907_s1 + $0x160] sm:$0xff]  ;;  %v56_v19 = vld [vmem:[%s907_s1 + $0x150] sm:$0xff] }
  0x12   :  { %v188_v29 = vadd.f32 %v187_v18, %v100_v13  ;;  %v595_v31 = vpack.c.bf16 %v45_v16, %v41_v15  ;;  %v102_v32 = vmul.f32 %v38_v21, %v38_v21  ;;  %564 = vmatprep.subr.bf16.mxu0 %v563_v24  ;;  %v106_v34 = vmul.f32 %v42_v22, %v42_v22  ;;  %v54_v13 = vld [vmem:[%s907_s1 + $0x140] sm:$0xff] }
  0x13   :  { %v210_v33 = vadd.f32 %v209_v17, %v105_v25  ;;  %v565_v35 = vpack.c.bf16 %v42_v22, %v38_v21  ;;  %v104_v36 = vmul.f32 %v40_v27, %v40_v27  ;;  %v169_v39 = vadd.f32 %v168_v30, %v107_v20  ;;  %v60_v20 = vld [vmem:[%s907_s1 + $0x170] sm:$0xff]  ;;  %v67_v30 = vld [vmem:[%s907_s1 + $0x1a8] sm:$0xff] }
  0x14   :  { %596 = vmatprep.subr.bf16.mxu1 %v595_v31  ;;  %v147_v40 = vadd.f32 %v146_v23, %v102_v32  ;;  %v108_v41 = vmul.f32 %v44_v28, %v44_v28  ;;  %v597_v42 = vpack.c.bf16 %v44_v28, %v40_v27  ;;  %v111_v47 = vmul.f32 %v47_v37, %v47_v37 }
  0x15   :  { %v211_v45 = vadd.f32 %v210_v33, %v109_v26  ;;  %566 = vmatpush1.bf16.msra.mxu0 %v565_v35  ;;  %v189_v46 = vadd.f32 %v188_v29, %v104_v36  ;;  %v115_v48 = vmul.f32 %v51_v38, %v51_v38  ;;  %v567_v52 = vpack.c.bf16 %v51_v38, %v47_v37  ;;  %v63_v29 = vld [vmem:[%s907_s1 + $0x188] sm:$0xff]  ;;  %v65_v35 = vld [vmem:[%s907_s1 + $0x198] sm:$0xff] }
  0x16   :  { %v148_v51 = vadd.f32 %v147_v40, %v106_v34  ;;  %598 = vmatpush1.bf16.msra.mxu1 %v597_v42  ;;  %v113_v53 = vmul.f32 %v49_v43, %v49_v43  ;;  %v117_v54 = vmul.f32 %v53_v44, %v53_v44  ;;  %v170_v58 = vadd.f32 %v169_v39, %v111_v47  ;;  %v69_v36 = vld [vmem:[%s907_s1 + $0x1b8] sm:$0xff]  ;;  %v66_v42 = vld [vmem:[%s907_s1 + $0x1a0] sm:$0xff]  ;;  %v64_v47 = vld [vmem:[%s907_s1 + $0x190] sm:$0xff] }
  0x17   :  { %v190_v57 = vadd.f32 %v189_v46, %v108_v41  ;;  %v599_v59 = vpack.c.bf16 %v53_v44, %v49_v43  ;;  %v110_v60 = vmul.f32 %v46_v49, %v46_v49  ;;  %568 = vmatprep.subr.bf16.mxu0 %v567_v52  ;;  %v114_v62 = vmul.f32 %v50_v50, %v50_v50  ;;  %v62_v41 = vld [vmem:[%s907_s1 + $0x180] sm:$0xff] }
  0x18   :  { %v212_v61 = vadd.f32 %v211_v45, %v113_v53  ;;  %v569_v63 = vpack.c.bf16 %v50_v50, %v46_v49  ;;  %v112_v0 = vmul.f32 %v48_v55, %v48_v55  ;;  %v171_v3 = vadd.f32 %v170_v58, %v115_v48  ;;  %v68_v48 = vld [vmem:[%s907_s1 + $0x1b0] sm:$0xff]  ;;  %v75_v58 = vld [vmem:[%s907_s1 + $0x1e8] sm:$0xff] }
  0x19   :  { %600 = vmatprep.subr.bf16.mxu1 %v599_v59  ;;  %v149_v4 = vadd.f32 %v148_v51, %v110_v60  ;;  %v116_v5 = vmul.f32 %v52_v56, %v52_v56  ;;  %v601_v6 = vpack.c.bf16 %v52_v56, %v48_v55  ;;  %v119_v11 = vmul.f32 %v55_v1, %v55_v1 }
  0x1a   :  { %v213_v9 = vadd.f32 %v212_v61, %v117_v54  ;;  %570 = vmatpush1.bf16.msra.mxu0 %v569_v63  ;;  %v191_v10 = vadd.f32 %v190_v57, %v112_v0  ;;  %v123_v12 = vmul.f32 %v59_v2, %v59_v2  ;;  %v571_v16 = vpack.c.bf16 %v59_v2, %v55_v1  ;;  %v71_v57 = vld [vmem:[%s907_s1 + $0x1c8] sm:$0xff]  ;;  %v73_v63 = vld [vmem:[%s907_s1 + $0x1d8] sm:$0xff] }
  0x1b   :  { %v150_v15 = vadd.f32 %v149_v4, %v114_v62  ;;  %602 = vmatpush1.bf16.msra.mxu1 %v601_v6  ;;  %v121_v17 = vmul.f32 %v57_v7, %v57_v7  ;;  %v125_v18 = vmul.f32 %v61_v8, %v61_v8  ;;  %v172_v22 = vadd.f32 %v171_v3, %v119_v11  ;;  %v77_v0 = vld [vmem:[%s907_s1 + $0x1f8] sm:$0xff]  ;;  %v74_v6 = vld [vmem:[%s907_s1 + $0x1e0] sm:$0xff]  ;;  %v72_v11 = vld [vmem:[%s907_s1 + $0x1d0] sm:$0xff] }
  0x1c   :  { %v192_v21 = vadd.f32 %v191_v10, %v116_v5  ;;  %v603_v23 = vpack.c.bf16 %v61_v8, %v57_v7  ;;  %v118_v24 = vmul.f32 %v54_v13, %v54_v13  ;;  %572 = vmatprep.subr.bf16.mxu0 %v571_v16  ;;  %v122_v26 = vmul.f32 %v58_v14, %v58_v14  ;;  %v70_v5 = vld [vmem:[%s907_s1 + $0x1c0] sm:$0xff] }
  0x1d   :  { %v214_v25 = vadd.f32 %v213_v9, %v121_v17  ;;  %v573_v27 = vpack.c.bf16 %v58_v14, %v54_v13  ;;  %v120_v28 = vmul.f32 %v56_v19, %v56_v19  ;;  %v173_v31 = vadd.f32 %v172_v22, %v123_v12  ;;  %v76_v12 = vld [vmem:[%s907_s1 + $0x1f0] sm:$0xff] }
  0x1e   :  { %604 = vmatprep.subr.bf16.mxu1 %v603_v23  ;;  %v151_v32 = vadd.f32 %v150_v15, %v118_v24  ;;  %v124_v33 = vmul.f32 %v60_v20, %v60_v20  ;;  %v605_v34 = vpack.c.bf16 %v60_v20, %v56_v19  ;;  %v127_v39 = vmul.f32 %v63_v29, %v63_v29 }
  0x1f   :  { %v215_v37 = vadd.f32 %v214_v25, %v125_v18  ;;  %574 = vmatpush1.bf16.msra.mxu0 %v573_v27  ;;  %v193_v38 = vadd.f32 %v192_v21, %v120_v28  ;;  %v131_v40 = vmul.f32 %v67_v30, %v67_v30  ;;  %v575_v44 = vpack.c.bf16 %v67_v30, %v63_v29  ;;  %v268_v27 = vld [vmem:[%s908_s0] sm:$0xff] }
  0x20   :  { %v152_v43 = vadd.f32 %v151_v32, %v122_v26  ;;  %606 = vmatpush1.bf16.msra.mxu1 %v605_v34  ;;  %v129_v45 = vmul.f32 %v65_v35, %v65_v35  ;;  %v133_v46 = vmul.f32 %v69_v36, %v69_v36  ;;  %v174_v50 = vadd.f32 %v173_v31, %v127_v39 }
  0x21   :  { %v194_v49 = vadd.f32 %v193_v38, %v124_v33  ;;  %v607_v51 = vpack.c.bf16 %v69_v36, %v65_v35  ;;  %v126_v52 = vmul.f32 %v62_v41, %v62_v41  ;;  %576 = vmatprep.subr.bf16.mxu0 %v575_v44  ;;  %v130_v54 = vmul.f32 %v66_v42, %v66_v42 }
  0x22   :  { %v216_v53 = vadd.f32 %v215_v37, %v129_v45  ;;  %v577_v55 = vpack.c.bf16 %v66_v42, %v62_v41  ;;  %v128_v56 = vmul.f32 %v64_v47, %v64_v47  ;;  %v175_v59 = vadd.f32 %v174_v50, %v131_v40 }
  0x23   :  { %608 = vmatprep.subr.bf16.mxu1 %v607_v51  ;;  %v153_v60 = vadd.f32 %v152_v43, %v126_v52  ;;  %v132_v61 = vmul.f32 %v68_v48, %v68_v48  ;;  %v609_v62 = vpack.c.bf16 %v68_v48, %v64_v47  ;;  %v135_v3 = vmul.f32 %v71_v57, %v71_v57 }
  0x24   :  { %v217_v1 = vadd.f32 %v216_v53, %v133_v46  ;;  %578 = vmatpush1.bf16.msra.mxu0 %v577_v55  ;;  %v195_v2 = vadd.f32 %v194_v49, %v128_v56  ;;  %v139_v4 = vmul.f32 %v75_v58, %v75_v58  ;;  %v579_v8 = vpack.c.bf16 %v75_v58, %v71_v57 }
  0x25   :  { %v154_v7 = vadd.f32 %v153_v60, %v130_v54  ;;  %610 = vmatpush1.bf16.msra.mxu1 %v609_v62  ;;  %v137_v9 = vmul.f32 %v73_v63, %v73_v63  ;;  %v141_v10 = vmul.f32 %v77_v0, %v77_v0  ;;  %v176_v14 = vadd.f32 %v175_v59, %v135_v3 }
  0x26   :  { %v196_v13 = vadd.f32 %v195_v2, %v132_v61  ;;  %v611_v15 = vpack.c.bf16 %v77_v0, %v73_v63  ;;  %v134_v16 = vmul.f32 %v70_v5, %v70_v5  ;;  %580 = vmatprep.subr.bf16.mxu0 %v579_v8  ;;  %v138_v18 = vmul.f32 %v74_v6, %v74_v6 }
  0x27   :  { %v218_v17 = vadd.f32 %v217_v1, %v137_v9  ;;  %v581_v19 = vpack.c.bf16 %v74_v6, %v70_v5  ;;  %v136_v20 = vmul.f32 %v72_v11, %v72_v11  ;;  %v177_v21 = vadd.f32 %v176_v14, %v139_v4 }
  0x28   :  { %612 = vmatprep.subr.bf16.mxu1 %v611_v15  ;;  %v155_v22 = vadd.f32 %v154_v7, %v134_v16  ;;  %v140_v23 = vmul.f32 %v76_v12, %v76_v12  ;;  %v613_v24 = vpack.c.bf16 %v76_v12, %v72_v11  ;;  %v636_v55 = vmov 1966171168  }
  0x29   :  { %v219_v25 = vadd.f32 %v218_v17, %v141_v10  ;;  %582 = vmatpush1.bf16.msra.mxu0 %v581_v19  ;;  %v197_v26 = vadd.f32 %v196_v13, %v136_v20  ;;  %v178_v36 = vrot.slane %v177_v21, 4  ;;  %v233_v56 = vunpack.c.l.s4 %v636_v55 }
  0x2a   :  { %v156_v28 = vadd.f32 %v155_v22, %v138_v18  ;;  %614 = vmatpush1.bf16.msra.mxu1 %v613_v24  ;;  %v235_v57 = vlaneseq }
  0x2b   :  { %v198_v29 = vadd.f32 %v197_v26, %v140_v23  ;;  %v220_v30 = vrot.slane %v219_v25, 4  ;;  %v179_v40 = vadd.f32 %v178_v36, %v177_v21  ;;  %v234_v59 = vunpack.c.0.s8 %v233_v56 }
  0x2c   :  { %334 = vmatmul.mubr.f32.vlgmr.msra.gmra.mrb[0].mxu0 %v268_v27  ;;  %v157_v37 = vrot.slane %v156_v28, 4  ;;  %v236_v60 = vshrl.u32 %v235_v57, 7  ;;  %vm257_vm0 = vcmp.lt.s32.totalorder %v235_v57, 512  ;;  %v860_v6 = vand.u32 127, %v235_v57 }
  0x2d   :  { %405 = vmatmul.mubr.f32.vlgmr.msra.gmra.mrb[0].mxu1 %v268_v27  ;;  %v199_v31 = vrot.slane %v198_v29, 4  ;;  %v221_v32 = vadd.f32 %v220_v30, %v219_v25  ;;  %v180_v44 = vrot.slane %v179_v40, 2 }
  0x2e   :  { %v158_v41 = vadd.f32 %v157_v37, %v156_v28  ;;  %v237_v61 = vsub.s32 %v234_v59, %v236_v60  ;;  %v465_v7 = vadd.s32 128, %v860_v6  ;;  %v466_v8 = vadd.s32 256, %v860_v6 }
  0x2f   :  { %v200_v33 = vadd.f32 %v199_v31, %v198_v29  ;;  %v222_v34 = vrot.slane %v221_v32, 2  ;;  %v181_v48 = vadd.f32 %v180_v44, %v179_v40  ;;  %v467_v9 = vadd.s32 384, %v860_v6 }
  0x30   :  { %v159_v45 = vrot.slane %v158_v41, 2  ;;  %v455_v10 = vand.u32 7, %v236_v60  ;;  %v477_v11 = vand.u32 7, %v860_v6  ;;  %v484_v13 = vand.u32 7, %v465_v7 }
  0x31   :  { %v201_v35 = vrot.slane %v200_v33, 2  ;;  %v223_v38 = vadd.f32 %v222_v34, %v221_v32  ;;  %v182_v51 = vrot.slane %v181_v48, 1  ;;  %v491_v14 = vand.u32 7, %v466_v8 }
  0x32   :  { %v160_v49 = vadd.f32 %v159_v45, %v158_v41  ;;  %v498_v16 = vand.u32 7, %v467_v9  ;;  %vm866_vm1 = vcmp.eq.s32.totalorder %v455_v10, %v477_v11  ;;  %vm870_vm2 = vcmp.eq.s32.totalorder %v455_v10, %v484_v13 }
  0x33   :  { %v202_v39 = vadd.f32 %v201_v35, %v200_v33  ;;  %v224_v42 = vrot.slane %v223_v38, 1  ;;  %v183_v54 = vadd.f32 %v182_v51, %v181_v48  ;;  %vm874_vm3 = vcmp.eq.s32.totalorder %v455_v10, %v491_v14 }
  0x34   :  { %v161_v52 = vrot.slane %v160_v49, 1  ;;  %vm878_vm4 = vcmp.eq.s32.totalorder %v455_v10, %v498_v16  ;;  %vm535_vm5 = vcmp.eq.s32.totalorder %v860_v6, 1  ;;  %vm534_vm6 = vcmp.eq.s32.totalorder %v860_v6, 0 }
  0x35   :  { %v203_v43 = vrot.slane %v202_v39, 1  ;;  %v225_v47 = vadd.f32 %v224_v42, %v223_v38  ;;  %v261_v4 = vmax.f32 %v183_v54, 1e-24 }
  0x36   :  { %v162_v53 = vadd.f32 %v161_v52, %v160_v49 }
  0x37   :  { %v204_v46 = vadd.f32 %v203_v43, %v202_v39  ;;  %v263_v5 = vmax.f32 %v225_v47, 1e-24 }
  0x38   :  { %v230_v58 = vcombine.low %v162_v53, %v183_v54  ;;  %v260_v2 = vmax.f32 %v162_v53, 1e-24 }
  0x39   :  { %v231_v50 = vcombine.low %v204_v46, %v225_v47  ;;  %v262_v3 = vmax.f32 %v204_v46, 1e-24 }
  0x3a   :  { %v238_v62 = vrot.slane %v230_v58, %v237_v61  ;;  %617 = vrsqrt.f32 %v260_v2 }
  0x3b   :  { %v245_v63 = vrot.slane %v231_v50, %v237_v61  ;;  %619 = vrsqrt.f32 %v262_v3 }
  0x3c   :  { %621 = vrsqrt.f32 %v261_v4 }
  0x3d   :  { %v246_v0 = vcombine.low %v238_v62, %v245_v63  ;;  %623 = vrsqrt.f32 %v263_v5 }
  0x3f   :  { %v253_v1 = vrot.slane %v246_v0, %v237_v61 }
  0x41   :  { %259 = vst.msk [vmem:[%s909_s3] sm:$0xf] %vm257_vm0, %v253_v1 }
  0x44   :  { %v618_v12 = vpop.eup %617 }
  0x45   :  { %v620_v15 = vpop.eup %619 }
  0x46   :  { %v622_v17 = vpop.eup %621 }
  0x47   :  { %v624_v18 = vpop.eup %623 }
  0xff   :  { %v335_v19 = vpop.f32.mrb[0].mxu0 }
 0x100   :  { %v411_v21 = vmul.f32 %v618_v12, %v335_v19  ;;  %v406_v22 = vpop.f32.mrb[0].mxu1  ;;  %v337_v23 = vpop.f32.mrb[1].mxu0 }
 0x101   :  { %v413_v26 = vmul.f32 %v620_v15, %v406_v22  ;;  %v412_v27 = vmul.f32 %v622_v17, %v337_v23  ;;  %v408_v28 = vpop.f32.mrb[1].mxu1 }
 0x102   :  { %415 = vst [vmem:[%s910_s2] sm:$0xff] %v411_v21  ;;  %v414_v30 = vmul.f32 %v624_v18, %v408_v28  ;;  %v419_v31 = vmul.f32 33.333332, %v411_v21  ;;  %v525_v32 = vsel %vm866_vm1, %v411_v21, 0.0 }
 0x103   :  { %417 = vst [vmem:[%s910_s2 + $0x10] sm:$0xff] %v413_v26  ;;  %416 = vst [vmem:[%s910_s2 + $0x8] sm:$0xff] %v412_v27  ;;  %v420_v33 = vmul.f32 33.333332, %v412_v27  ;;  %v421_v34 = vmul.f32 33.333332, %v413_v26 }
 0x104   :  { %v526_v35 = vsel %vm870_vm2, %v412_v27, 0.0  ;;  %v527_v36 = vsel %vm874_vm3, %v413_v26, 0.0  ;;  %418 = vst [vmem:[%s910_s2 + $0x18] sm:$0xff] %v414_v30  ;;  %v422_v37 = vmul.f32 33.333332, %v414_v30  ;;  %v528_v38 = vsel %vm878_vm4, %v414_v30, 0.0 }
 0x105   :  { %v529_v39 = vadd.f32 %v526_v35, %v525_v32  ;;  %v423_v40 = vmax.f32 %v419_v31, %v420_v33 }
 0x106   :  { %v424_v41 = vmax.f32 %v421_v34, %v422_v37 }
 0x107   :  { %v530_v42 = vadd.f32 %v529_v39, %v527_v36 }
 0x108   :  { %v425_v43 = vmax.f32 %v423_v40, %v424_v41 }
 0x109   :  { %v531_v44 = vadd.f32 %v530_v42, %v528_v38 }
 0x10a   :  { %426 = vmax.xlane.f32.xlu0 %v425_v43 }
 0x10b   :  { %532 = vadd.xlane.f32.xlu1 %v531_v44 }
 0x197   :  { %v427_v45 = vpop.xlane.xlu0 %426 }
 0x198   :  { %v428_v46 = vsub.f32 %v419_v31, %v427_v45  ;;  %v429_v47 = vsub.f32 %v420_v33, %v427_v45  ;;  %v430_v48 = vsub.f32 %v421_v34, %v427_v45  ;;  %v431_v49 = vsub.f32 %v422_v37, %v427_v45  ;;  %v533_v63 = vpop.xlane.xlu1 %532 }
 0x199   :  { %v536_v2 = vsel %vm535_vm5, %v533_v63, 0.0 }
 0x19a   :  { %v432_v50 = vmul.f32 1.442695, %v428_v46  ;;  %v434_v51 = vmul.f32 1.442695, %v429_v47  ;;  %v436_v52 = vmul.f32 1.442695, %v430_v48 }
 0x19b   :  { %v438_v53 = vmul.f32 1.442695, %v431_v49 }
 0x19c   :  { %625 = vpow2.f32 %v432_v50 }
 0x19d   :  { %627 = vpow2.f32 %v434_v51 }
 0x19e   :  { %629 = vpow2.f32 %v436_v52 }
 0x19f   :  { %631 = vpow2.f32 %v438_v53 }
 0x1a6   :  { %v626_v54 = vpop.eup %625 }
 0x1a7   :  { %v628_v55 = vpop.eup %627 }
 0x1a8   :  { %v440_v56 = vadd.f32 %v628_v55, %v626_v54  ;;  %v630_v57 = vpop.eup %629 }
 0x1a9   :  { %v632_v59 = vpop.eup %631 }
 0x1aa   :  { %v441_v58 = vadd.f32 %v630_v57, %v440_v56 }
 0x1ac   :  { %v442_v60 = vadd.f32 %v632_v59, %v441_v58 }
 0x1ae   :  { %443 = vadd.xlane.f32.xlu0 %v442_v60 }
 0x23b   :  { %v444_v61 = vpop.xlane.xlu0 %443 }
 0x23c   :  { %633 = vlog2.f32 %v444_v61 }
 0x246   :  { %v634_v62 = vpop.eup %633 }
 0x247   :  { %v446_v0 = vmul.f32 0.6931472, %v634_v62 }
 0x249   :  { %v447_v1 = vadd.f32 %v446_v0, %v427_v45 }
 0x24b   :  { %v537_v3 = vsel %vm534_vm6, %v447_v1, %v536_v2 }
 0x24c   :  { %538 = vst [vmem:[%s911_s4] sm:$0xff] %v537_v3 }

// kernel: scd_net_forward.20
= control target key start
LH: loop header
LB: loop body
LE: loop exit
PB: predicated region body
PF: predicated region fallthrough
CT: control target
= control target key end

     0   :  { %v20_v0 = vlaneseq  ;;  %s110_s0 = inlined_call_operand.vmem [shape: f32[8,128], index: 0, kind: input, shape index: {}]   ;;  %s111_s1 = inlined_call_operand.vmem [shape: f32[8,128], index: 1, kind: input, shape index: {}]   ;;  %s112_s2 = inlined_call_operand.vmem [shape: f32[8,128], index: 2, kind: input, shape index: {}]   ;;  %s113_s3 = inlined_call_operand.vmem [shape: f32[8,128], index: 3, kind: output, shape index: {}]  }
   0x1   :  { %v14_v1 = vld [vmem:[%s110_s0] sm:$0xff] }
   0x2   :  { %v15_v2 = vld [vmem:[%s111_s1] sm:$0xff]  ;;  %v21_v5 = vand.u32 127, %v20_v0 }
   0x3   :  { %v16_v3 = vmul.f32 %v15_v2, %v14_v1  ;;  %v19_v4 = vld [vmem:[%s112_s2] sm:$0xff] }
   0x4   :  { %vm34_vm0 = vcmp.eq.s32.totalorder %v21_v5, 0  ;;  %vm36_vm1 = vcmp.eq.s32.totalorder %v21_v5, 1  ;;  %vm58_vm2 = vcmp.eq.s32.totalorder %v21_v5, 3  ;;  %vm57_vm3 = vcmp.eq.s32.totalorder %v21_v5, 2 }
   0x5   :  { %17 = vadd.xlane.f32.xlu0 %v16_v3  ;;  %v35_v6 = vsel %vm34_vm0, %v19_v4, -inf  ;;  %v37_v14 = vsel %vm36_vm1, %v19_v4, 0.0 }
   0x9   :  { %41 = vmax.xlane.f32.xlu0 %v35_v6 }
  0x92   :  { %v18_v7 = vpop.xlane.xlu0 %17 }
  0x93   :  { %v40_v8 = vmul.f32 33.333332, %v18_v7 }
  0x96   :  { %v42_v9 = vpop.xlane.xlu0 %41 }
  0x97   :  { %v43_v10 = vmax.f32 %v42_v9, %v40_v8 }
  0x99   :  { %v44_v11 = vsub.f32 %v35_v6, %v43_v10  ;;  %v49_v15 = vsub.f32 %v40_v8, %v43_v10 }
  0x9b   :  { %v45_v12 = vmul.f32 1.442695, %v44_v11  ;;  %v50_v16 = vmul.f32 1.442695, %v49_v15 }
  0x9d   :  { %68 = vpow2.f32 %v45_v12 }
  0x9e   :  { %70 = vpow2.f32 %v50_v16 }
  0xa7   :  { %v69_v13 = vpop.eup %68 }
  0xa8   :  { %47 = vadd.xlane.f32.xlu1 %v69_v13  ;;  %v71_v17 = vpop.eup %70 }
  0xac   :  { %38 = vadd.xlane.f32.xlu1 %v37_v14 }
 0x135   :  { %v48_v18 = vpop.xlane.xlu1 %47 }
 0x136   :  { %v52_v19 = vadd.f32 %v71_v17, %v48_v18 }
 0x138   :  { %72 = vrcp.f32 %v52_v19 }
 0x139   :  { %v39_v20 = vpop.xlane.xlu1 %38 }
 0x13a   :  { %v59_v21 = vsel %vm58_vm2, %v39_v20, 0.0 }
 0x142   :  { %v73_v22 = vpop.eup %72 }
 0x143   :  { %v60_v23 = vsel %vm57_vm3, %v73_v22, %v59_v21 }
 0x144   :  { %v61_v24 = vsel %vm36_vm1, %v43_v10, %v60_v23 }
 0x145   :  { %v62_v25 = vsel %vm34_vm0, %v18_v7, %v61_v24 }
 0x146   :  { %63 = vst [vmem:[%s113_s3] sm:$0xff] %v62_v25 }

// kernel: scd_net_forward.15
= control target key start
LH: loop header
LB: loop body
LE: loop exit
PB: predicated region body
PF: predicated region fallthrough
CT: control target
= control target key end

     0   :  { %v2718_v0 = vmov 1   ;;  %v2719_v3 = vmov 2   ;;  %s2720_s9 = smov 120   ;;  %v6507_v14 = vmov 0.0   ;;  %vm212_vm0 = vcmask 64512   ;;  %s6496_s2 = inlined_call_operand.vmem [shape: f32[16,128], index: 2, kind: input, shape index: {}]   ;;  %s6497_s0 = inlined_call_operand.vmem [shape: f32[128,16], index: 0, kind: input, shape index: {}]   ;;  %s6498_s1 = inlined_call_operand.vmem [shape: f32[16,512], index: 1, kind: input, shape index: {}]   ;;  %s6499_s3 = inlined_call_operand.vmem [shape: f32[1,512], index: 3, kind: input, shape index: {}]   ;;  %s6500_s4 = inlined_call_operand.vmem [shape: f32[128,512], index: 4, kind: input, shape index: {}, may-alias: {4,6}]   ;;  %s6501_s5 = inlined_call_operand.vmem [shape: f32[128,512], index: 5, kind: input, shape index: {}, may-alias: {5,7}]   ;;  %s6502_s7 = inlined_call_operand.vmem [shape: f32[128,512], index: 7, kind: output, shape index: {1}, may-alias: {5,7}]   ;;  %s6503_s6 = inlined_call_operand.vmem [shape: f32[128,512], index: 6, kind: output, shape index: {0}, may-alias: {4,6}]  }
   0x1   :  { %2631 = vset.pattern.permute.xlu1 %v2718_v0  ;;  %2629 = vset.pattern.permute.xlu0 %v2718_v0  ;;  %v178_v1 = vld [vmem:[%s6496_s2 + $0x8] sm:$0xff]  ;;  %v177_v2 = vld [vmem:[%s6496_s2] sm:$0xff]  ;;  %v2785_v6 = vld [vmem:[%s6497_s0 + $0x10] sm:$0xff] }
   0x2   :  { %1324 = vperm.xlu1 %2631, %v178_v1   ;;  %189 = vperm.xlu0 %2629, %v177_v2   ;;  %v2771_v4 = vld [vmem:[%s6497_s0] sm:$0xff]  ;;  %v2776_v5 = vld [vmem:[%s6497_s0 + $0x8] sm:$0xff]  ;;  %v2790_v7 = vld [vmem:[%s6497_s0 + $0x18] sm:$0xff] }
   0x3   :  { %v2799_v8 = vld [vmem:[%s6497_s0 + $0x20] sm:$0xff]  ;;  %v2804_v9 = vld [vmem:[%s6497_s0 + $0x28] sm:$0xff]  ;;  %v2813_v10 = vld [vmem:[%s6497_s0 + $0x30] sm:$0xff]  ;;  %325 = vmatprep.mubr.f32.mxu0 %v6507_v14  ;;  %486 = vmatprep.mubr.f32.mxu1 %v6507_v14 }
   0x4   :  { %v2818_v11 = vld [vmem:[%s6497_s0 + $0x38] sm:$0xff]  ;;  %v2827_v12 = vld [vmem:[%s6497_s0 + $0x40] sm:$0xff]  ;;  %v2832_v13 = vld [vmem:[%s6497_s0 + $0x48] sm:$0xff] }
   0x5   :  { %v2843_v15 = vld [vmem:[%s6497_s0 + $0x50] sm:$0xff]  ;;  %v2848_v16 = vld [vmem:[%s6497_s0 + $0x58] sm:$0xff]  ;;  %v2857_v17 = vld [vmem:[%s6497_s0 + $0x60] sm:$0xff] }
   0x6   :  { %2632 = vset.pattern.permute.xlu1 %v2719_v3  ;;  %2630 = vset.pattern.permute.xlu0 %v2719_v3  ;;  %v2862_v18 = vld [vmem:[%s6497_s0 + $0x68] sm:$0xff]  ;;  %v2871_v19 = vld [vmem:[%s6497_s0 + $0x70] sm:$0xff]  ;;  %v2876_v20 = vld [vmem:[%s6497_s0 + $0x78] sm:$0xff] }
   0x7   :  { %1340 = vperm.xlu1 %2632, %v178_v1   ;;  %205 = vperm.xlu0 %2630, %v177_v2   ;;  %v2885_v21 = vld [vmem:[%s6498_s1 + $0x20] sm:$0xff]  ;;  %v2890_v22 = vld [vmem:[%s6498_s1 + $0x28] sm:$0xff]  ;;  %v2895_v23 = vld [vmem:[%s6498_s1 + $0x38] sm:$0xff] }
   0x8   :  { %v170_v24 = vld [vmem:[%s6498_s1 + $0x8] sm:$0xff]  ;;  %v172_v25 = vld [vmem:[%s6498_s1 + $0x18] sm:$0xff]  ;;  %v1318_v26 = vmul.f32 33.333332, %v2885_v21  ;;  %v2907_v27 = vld [vmem:[%s6498_s1] sm:$0xff] }
   0x9   :  { %v1319_v28 = vmul.f32 33.333332, %v2890_v22  ;;  %v1321_v29 = vmul.f32 33.333332, %v2895_v23  ;;  %v2914_v30 = vld [vmem:[%s6498_s1 + $0x10] sm:$0xff] }
   0xa   :  { %v2919_v31 = vld [vmem:[%s6498_s1 + $0x30] sm:$0xff]  ;;  %v184_v32 = vmul.f32 33.333332, %v170_v24  ;;  %v186_v33 = vmul.f32 33.333332, %v172_v25 }
   0xb   :  { %1347 = vrot.lane.b32.xlu1 %v2771_v4, %s2720_s9  ;;  %1349 = vrot.lane.b32.xlu0 %v2776_v5, %s2720_s9  ;;  %v183_v34 = vmul.f32 33.333332, %v2907_v27  ;;  %v185_v37 = vmul.f32 33.333332, %v2914_v30  ;;  %v1320_v38 = vmul.f32 33.333332, %v2919_v31 }
   0xc   :  { %v179_v57 = vld [vmem:[%s6499_s3] sm:$0xf] }
   0xd   :  { %v180_v62 = vmax.f32 %v179_v57, 1e-24 }
   0xf   :  { %1351 = vrot.lane.b32.xlu1 %v2785_v6, %s2720_s9  ;;  %1353 = vrot.lane.b32.xlu0 %v2790_v7, %s2720_s9 }
  0x13   :  { %1355 = vrot.lane.b32.xlu1 %v2799_v8, %s2720_s9  ;;  %1357 = vrot.lane.b32.xlu0 %v2804_v9, %s2720_s9 }
  0x17   :  { %1359 = vrot.lane.b32.xlu1 %v2813_v10, %s2720_s9  ;;  %1361 = vrot.lane.b32.xlu0 %v2818_v11, %s2720_s9 }
  0x1b   :  { %1363 = vrot.lane.b32.xlu1 %v2827_v12, %s2720_s9  ;;  %1365 = vrot.lane.b32.xlu0 %v2832_v13, %s2720_s9 }
  0x1f   :  { %1367 = vrot.lane.b32.xlu1 %v2843_v15, %s2720_s9  ;;  %1369 = vrot.lane.b32.xlu0 %v2848_v16, %s2720_s9 }
  0x23   :  { %1371 = vrot.lane.b32.xlu1 %v2857_v17, %s2720_s9  ;;  %1373 = vrot.lane.b32.xlu0 %v2862_v18, %s2720_s9 }
  0x27   :  { %1375 = vrot.lane.b32.xlu1 %v2871_v19, %s2720_s9  ;;  %1377 = vrot.lane.b32.xlu0 %v2876_v20, %s2720_s9 }
  0x81   :  { %v1325_v35 = vpop.permute.xlu1 %1324  ;;  %v190_v36 = vpop.permute.xlu0 %189 }
  0x82   :  { %v1327_v39 = vsub.f32 %v1318_v26, %v1325_v35  ;;  %v1328_v40 = vsub.f32 %v1319_v28, %v1325_v35  ;;  %v1330_v41 = vsub.f32 %v1321_v29, %v1325_v35  ;;  %v193_v42 = vsub.f32 %v184_v32, %v190_v36 }
  0x83   :  { %v195_v43 = vsub.f32 %v186_v33, %v190_v36  ;;  %v192_v46 = vsub.f32 %v183_v34, %v190_v36  ;;  %v194_v48 = vsub.f32 %v185_v37, %v190_v36  ;;  %v1329_v49 = vsub.f32 %v1320_v38, %v1325_v35 }
  0x84   :  { %v1331_v44 = vmul.f32 1.442695, %v1327_v39  ;;  %v1333_v45 = vmul.f32 1.442695, %v1328_v40  ;;  %v1337_v47 = vmul.f32 1.442695, %v1330_v41  ;;  %v681_v32 = vlaneseq }
  0x85   :  { %v198_v50 = vmul.f32 1.442695, %v193_v42  ;;  %v202_v51 = vmul.f32 1.442695, %v195_v43  ;;  %v196_v52 = vmul.f32 1.442695, %v192_v46 }
  0x86   :  { %2633 = vpow2.f32 %v1331_v44  ;;  %v200_v53 = vmul.f32 1.442695, %v194_v48  ;;  %v1335_v54 = vmul.f32 1.442695, %v1329_v49  ;;  %v206_v58 = vpop.permute.xlu0 %205  ;;  %v1341_v1 = vpop.permute.xlu1 %1340 }
  0x87   :  { %2635 = vpow2.f32 %v1333_v45  ;;  %v2946_v45 = vshrl.u32 %v681_v32, 7 }
  0x88   :  { %2637 = vpow2.f32 %v1337_v47 }
  0x89   :  { %2639 = vpow2.f32 %v198_v50 }
  0x8a   :  { %2641 = vpow2.f32 %v202_v51 }
  0x8b   :  { %2643 = vpow2.f32 %v196_v52 }
  0x8c   :  { %2645 = vpow2.f32 %v200_v53  ;;  %v2956_v53 = vsub.s32 0, %v2946_v45 }
  0x8d   :  { %2647 = vpow2.f32 %v1335_v54  ;;  %v6504_v54 = vsub.s32 3, %v2946_v45 }
  0x8e   :  { %2649 = vrsqrt.f32 %v180_v62 }
  0x90   :  { %v2634_v55 = vpop.eup %2633 }
  0x91   :  { %v2636_v56 = vpop.eup %2635  ;;  %v2930_v38 = vmul.f32 %v2634_v55, %v1341_v1 }
  0x92   :  { %v2638_v59 = vpop.eup %2637  ;;  %v2927_v35 = vmul.f32 %v2636_v56, %v1341_v1 }
  0x93   :  { %v2640_v60 = vpop.eup %2639  ;;  %v2932_v39 = vmul.f32 %v2638_v59, %v1341_v1 }
  0x94   :  { %v2642_v61 = vpop.eup %2641  ;;  %v209_v63 = vmul.f32 %v2640_v60, %v206_v58 }
  0x95   :  { %v2644_v0 = vpop.eup %2643  ;;  %v211_v2 = vmul.f32 %v2642_v61, %v206_v58 }
  0x96   :  { %v2646_v3 = vpop.eup %2645  ;;  %261 = vmatprep.subr.mxu0 %v209_v63  ;;  %v584_v26 = vmul.f32 %v209_v63, %v170_v24  ;;  %v208_v28 = vmul.f32 %v2644_v0, %v206_v58 }
  0x97   :  { %v2648_v29 = vpop.eup %2647  ;;  %422 = vmatprep.subr.mxu1 %v211_v2  ;;  %v586_v33 = vmul.f32 %v211_v2, %v172_v25  ;;  %v210_v34 = vmul.f32 %v2646_v3, %v206_v58  ;;  %v6506_v58 = vsub.s32 2, %v2946_v45 }
  0x98   :  { %v593_v36 = vrot.slane %v584_v26, 4  ;;  %262 = vmatpush1.msra.mxu0 %v208_v28  ;;  %v583_v37 = vmul.f32 %v208_v28, %v2907_v27  ;;  %v2937_v25 = vmul.f32 %v2648_v29, %v1341_v1  ;;  %v2961_v57 = vpop.eup %2649 }
  0x99   :  { %v605_v40 = vrot.slane %v586_v33, 4  ;;  %423 = vmatpush1.msra.mxu1 %v210_v34  ;;  %v585_v24 = vmul.f32 %v210_v34, %v2914_v30  ;;  %2561 = vmatmul.mubr.msk.f32.vlgmr.msra.gmra.mrb[0].mxu0 %vm212_vm0, %v2771_v4  ;;  %v2971_v0 = vrot.slane %v2961_v57, %v2956_v53  ;;  %v2976_v1 = vrot.slane %v2961_v57, %v6504_v54 }
  0x9a   :  { %v594_v41 = vadd.f32 %v593_v36, %v584_v26  ;;  %v587_v42 = vrot.slane %v583_v37, 4  ;;  %2577 = vmatmul.mubr.msk.f32.vlgmr.msra.gmra.mrb[0].mxu1 %vm212_vm0, %v2771_v4  ;;  %1411 = vmatprep.subr.mxu0 %v2927_v35  ;;  %v2988_v26 = vrot.slane %v2961_v57, %v6506_v58  ;;  %v3189_v58 = vld [vmem:[%s6500_s4 + $0x190] sm:$0xff] }
  0x9b   :  { %v606_v27 = vadd.f32 %v605_v40, %v586_v33  ;;  %v599_v43 = vrot.slane %v585_v24, 4  ;;  %1572 = vmatprep.subr.mxu1 %v2932_v39  ;;  %1412 = vmatpush1.msra.mxu0 %v2930_v38  ;;  %6630 = vst [vmem:[#allocation21_spill] sm:$0xff] %v3189_v58 }
  0x9c   :  { %v595_v44 = vrot.slane %v594_v41, 2  ;;  %v588_v30 = vadd.f32 %v587_v42, %v583_v37  ;;  %1573 = vmatpush1.msra.mxu1 %v2937_v25  ;;  %331 = vmatprep.mubr.f32.mxu0 %v6507_v14 }
  0x9d   :  { %v607_v46 = vrot.slane %v606_v27, 2  ;;  %v600_v47 = vadd.f32 %v599_v43, %v585_v24  ;;  %492 = vmatprep.mubr.f32.mxu1 %v6507_v14  ;;  %2562 = vmatmul.mubr.msk.f32.gmra.mrb[2].mxu0 %vm212_vm0, %v2776_v5  ;;  %v3017_v24 = vld [vmem:[%s6500_s4 + $0xe0] sm:$0xff] }
  0x9e   :  { %v596_v4 = vadd.f32 %v595_v44, %v594_v41  ;;  %v589_v48 = vrot.slane %v588_v30, 2  ;;  %2578 = vmatmul.mubr.msk.f32.gmra.mrb[2].mxu1 %vm212_vm0, %v2776_v5  ;;  %337 = vmatprep.mubr.f32.mxu0 %v6507_v14  ;;  %v6505_v5 = vsub.s32 1, %v2946_v45  ;;  %v3027_v41 = vld [vmem:[%s6500_s4 + $0xe8] sm:$0xff]  ;;  %v3044_v44 = vld [vmem:[%s6500_s4 + $0xf8] sm:$0xff] }
  0x9f   :  { %v608_v49 = vadd.f32 %v607_v46, %v606_v27  ;;  %v601_v50 = vrot.slane %v600_v47, 2  ;;  %498 = vmatprep.mubr.f32.mxu1 %v6507_v14  ;;  %v3054_v46 = vld [vmem:[%s6500_s4 + $0x110] sm:$0xff] }
  0xa0   :  { %v597_v51 = vrot.slane %v596_v4, 1  ;;  %v590_v52 = vadd.f32 %v589_v48, %v588_v30  ;;  %v3049_v30 = vld [vmem:[%s6500_s4 + $0x100] sm:$0xff]  ;;  %v3075_v48 = vld [vmem:[%s6500_s4 + $0x130] sm:$0xff] }
  0xa1   :  { %v609_v55 = vrot.slane %v608_v49, 1  ;;  %v602_v56 = vadd.f32 %v601_v50, %v600_v47  ;;  %2563 = vmatmul.mubr.msk.f32.gmra.mrb[4].mxu0 %vm212_vm0, %v2785_v6  ;;  %v3065_v47 = vld [vmem:[%s6500_s4 + $0x118] sm:$0xff] }
  0xa2   :  { %v598_v59 = vadd.f32 %v597_v51, %v596_v4  ;;  %v591_v60 = vrot.slane %v590_v52, 1  ;;  %2579 = vmatmul.mubr.msk.f32.gmra.mrb[4].mxu1 %vm212_vm0, %v2785_v6  ;;  %343 = vmatprep.mubr.f32.mxu0 %v6507_v14  ;;  %v2983_v6 = vrot.slane %v2961_v57, %v6505_v5  ;;  %v3070_v4 = vld [vmem:[%s6500_s4 + $0x120] sm:$0xff]  ;;  %v3085_v50 = vld [vmem:[%s6500_s4 + $0x138] sm:$0xff] }
  0xa3   :  { %v610_v61 = vadd.f32 %v609_v55, %v608_v49  ;;  %v603_v62 = vrot.slane %v602_v56, 1  ;;  %504 = vmatprep.mubr.f32.mxu1 %v6507_v14  ;;  %v3080_v49 = vld [vmem:[%s6500_s4 + $0x128] sm:$0xff]  ;;  %v3101_v55 = vld [vmem:[%s6500_s4 + $0x150] sm:$0xff] }
  0xa4   :  { %v592_v63 = vadd.f32 %v591_v60, %v590_v52  ;;  %v613_v28 = vmul.f32 0.125, %v598_v59  ;;  %v3096_v52 = vld [vmem:[%s6500_s4 + $0x140] sm:$0xff] }
  0xa5   :  { %v615_v2 = vmul.f32 0.125, %v610_v61  ;;  %v604_v3 = vadd.f32 %v603_v62, %v602_v56  ;;  %2564 = vmatmul.mubr.msk.f32.gmra.mrb[6].mxu0 %vm212_vm0, %v2790_v7  ;;  %v3106_v56 = vld [vmem:[%s6500_s4 + $0x148] sm:$0xff]  ;;  %v3126_v62 = vld [vmem:[%s6500_s4 + $0x158] sm:$0xff] }
  0xa6   :  { %v612_v29 = vmul.f32 0.125, %v592_v63  ;;  %2580 = vmatmul.mubr.msk.f32.gmra.mrb[6].mxu1 %vm212_vm0, %v2790_v7  ;;  %349 = vmatprep.mubr.f32.mxu0 %v6507_v14  ;;  %v702_v34 = vmul.f32 %v2983_v6, %v613_v28  ;;  %v3007_v7 = vld [vmem:[%s6500_s4 + $0xd8] sm:$0xff]  ;;  %6612 = vst [vmem:[#allocation3_spill] sm:$0xff] %v3106_v56  ;;  %6616 = vst [vmem:[#allocation7_spill] sm:$0xff] %v3126_v62  ;;  %v3136_v63 = vld [vmem:[%s6500_s4 + $0x170] sm:$0xff] }
  0xa7   :  { %v614_v32 = vmul.f32 0.125, %v604_v3  ;;  %510 = vmatprep.mubr.f32.mxu1 %v6507_v14  ;;  %v704_v33 = vmul.f32 %v2976_v1, %v615_v2  ;;  %6618 = vst [vmem:[#allocation9_spill] sm:$0xff] %v3136_v63 }
  0xa8   :  { %v701_v36 = vmul.f32 %v2971_v0, %v612_v29  ;;  %v3030_v42 = vrot.slane %v702_v34, %v2956_v53  ;;  %v3168_v34 = vld [vmem:[%s6500_s4 + $0x180] sm:$0xff] }
  0xa9   :  { %2565 = vmatmul.mubr.msk.f32.gmra.mrb[8].mxu0 %vm212_vm0, %v2799_v8  ;;  %v703_v37 = vmul.f32 %v2988_v26, %v614_v32  ;;  %v3010_v40 = vrot.slane %v704_v33, %v2956_v53  ;;  %v3158_v32 = vld [vmem:[%s6500_s4 + $0x168] sm:$0xff]  ;;  %v3163_v33 = vld [vmem:[%s6500_s4 + $0x178] sm:$0xff]  ;;  %6625 = vst [vmem:[#allocation16_spill] sm:$0xff] %v3168_v34 }
  0xaa   :  { %2581 = vmatmul.mubr.msk.f32.gmra.mrb[8].mxu1 %vm212_vm0, %v2799_v8  ;;  %355 = vmatprep.mubr.f32.mxu0 %v6507_v14  ;;  %v3022_v8 = vld [vmem:[%s6500_s4 + $0xf0] sm:$0xff]  ;;  %v3033_v27 = vrot.slane %v701_v36, %v2956_v53  ;;  %v3121_v61 = vmul.f32 %v3030_v42, %v3027_v41  ;;  %6623 = vst [vmem:[#allocation14_spill] sm:$0xff] %v3158_v32  ;;  %6624 = vst [vmem:[#allocation15_spill] sm:$0xff] %v3163_v33 }
  0xab   :  { %516 = vmatprep.mubr.f32.mxu1 %v6507_v14  ;;  %v3036_v43 = vrot.slane %v703_v37, %v2956_v53  ;;  %v3091_v51 = vmul.f32 %v3010_v40, %v3007_v7  ;;  %v3141_v2 = vmul.f32 %v3010_v40, %v3044_v44  ;;  %v3172_v36 = vmul.f32 %v3010_v40, %v3065_v47 }
  0xac   :  { %v3113_v59 = vmul.f32 %v3033_v27, %v3017_v24  ;;  %6615 = vst [vmem:[#allocation6_spill] sm:$0xff] %v3121_v61  ;;  %v3145_v3 = vmul.f32 %v3033_v27, %v3049_v30  ;;  %v3176_v37 = vmul.f32 %v3033_v27, %v3070_v4  ;;  %v3184_v5 = vmul.f32 %v3030_v42, %v3080_v49  ;;  %v3252_v61 = vld [vmem:[%s6500_s4 + $0x1b8] sm:$0xff] }
  0xad   :  { %2566 = vmatmul.mubr.msk.f32.gmra.mrb[10].mxu0 %vm212_vm0, %v2804_v9  ;;  %6611 = vst [vmem:[#allocation2_spill] sm:$0xff] %v3091_v51  ;;  %v3117_v60 = vmul.f32 %v3036_v43, %v3022_v8  ;;  %6619 = vst [vmem:[#allocation10_spill] sm:$0xff] %v3141_v2  ;;  %v3149_v28 = vmul.f32 %v3036_v43, %v3054_v46  ;;  %v3180_v54 = vmul.f32 %v3036_v43, %v3075_v48  ;;  %v3284_v51 = vld [vmem:[%s6500_s4 + $0x1c8] sm:$0xff] }
  0xae   :  { %2582 = vmatmul.mubr.msk.f32.gmra.mrb[10].mxu1 %vm212_vm0, %v2804_v9  ;;  %361 = vmatprep.mubr.f32.mxu0 %v6507_v14  ;;  %v3060_v9 = vld [vmem:[%s6500_s4 + $0x108] sm:$0xff]  ;;  %6613 = vst [vmem:[#allocation4_spill] sm:$0xff] %v3113_v59  ;;  %6620 = vst [vmem:[#allocation11_spill] sm:$0xff] %v3145_v3  ;;  %v3247_v2 = vmul.f32 %v3036_v43, %v3136_v63  ;;  %v3279_v59 = vmul.f32 %v3036_v43, %v3189_v58 }
  0xaf   :  { %522 = vmatprep.mubr.f32.mxu1 %v6507_v14  ;;  %6614 = vst [vmem:[#allocation5_spill] sm:$0xff] %v3117_v60  ;;  %6621 = vst [vmem:[#allocation12_spill] sm:$0xff] %v3149_v28  ;;  %v3153_v29 = vmul.f32 %v3030_v42, %v3060_v9  ;;  %v3222_v28 = vld [vmem:[%s6500_s4 + $0x1a0] sm:$0xff]  ;;  %v3275_v60 = vmul.f32 %v3033_v27, %v3168_v34 }
  0xb0   :  { %6626 = vst [vmem:[#allocation17_spill] sm:$0xff] %v3172_v36  ;;  %6627 = vst [vmem:[#allocation18_spill] sm:$0xff] %v3176_v37  ;;  %v3199_v37 = vld [vmem:[%s6500_s4 + $0x198] sm:$0xff]  ;;  %v3213_v36 = vmul.f32 %v3036_v43, %v3101_v55  ;;  %v3306_v58 = vmul.f32 %v3033_v27, %v3222_v28 }
  0xb1   :  { %2567 = vmatmul.mubr.msk.f32.gmra.mrb[12].mxu0 %vm212_vm0, %v2813_v10  ;;  %6622 = vst [vmem:[#allocation13_spill] sm:$0xff] %v3153_v29  ;;  %6628 = vst [vmem:[#allocation19_spill] sm:$0xff] %v3180_v54  ;;  %v3209_v54 = vmul.f32 %v3033_v27, %v3096_v52  ;;  %v3217_v29 = vmul.f32 %v3030_v42, %v3106_v56 }
  0xb2   :  { %2583 = vmatmul.mubr.msk.f32.gmra.mrb[12].mxu1 %vm212_vm0, %v2813_v10  ;;  %367 = vmatprep.mubr.f32.mxu0 %v6507_v14  ;;  %v3131_v10 = vld [vmem:[%s6500_s4 + $0x160] sm:$0xff]  ;;  %6629 = vst [vmem:[#allocation20_spill] sm:$0xff] %v3184_v5  ;;  %6632 = vst [vmem:[#allocation23_spill] sm:$0xff] %v3199_v37  ;;  %v3205_v5 = vmul.f32 %v3010_v40, %v3085_v50 }
  0xb3   :  { %6617 = vst [vmem:[#allocation8_spill] sm:$0xff] %v3131_v10  ;;  %528 = vmatprep.mubr.f32.mxu1 %v6507_v14  ;;  %v3194_v14 = vld [vmem:[%s6500_s4 + $0x188] sm:$0xff]  ;;  %6634 = vst [vmem:[#allocation25_spill] sm:$0xff] %v3209_v54  ;;  %v3243_v3 = vmul.f32 %v3033_v27, %v3131_v10 }
  0xb4   :  { %6631 = vst [vmem:[#allocation22_spill] sm:$0xff] %v3194_v14  ;;  %6633 = vst [vmem:[#allocation24_spill] sm:$0xff] %v3205_v5  ;;  %v3227_v5 = vld [vmem:[%s6500_s4 + $0x1b0] sm:$0xff]  ;;  %v3232_v54 = vld [vmem:[%s6500_s4 + $0x1a8] sm:$0xff] }
  0xb5   :  { %2568 = vmatmul.mubr.msk.f32.gmra.mrb[14].mxu0 %vm212_vm0, %v2818_v11  ;;  %6635 = vst [vmem:[#allocation26_spill] sm:$0xff] %v3213_v36  ;;  %6636 = vst [vmem:[#allocation27_spill] sm:$0xff] %v3217_v29  ;;  %v6640_v36 = vmov 0.0   ;;  %v3239_v29 = vmul.f32 %v3010_v40, %v3126_v62  ;;  %v3310_v34 = vmul.f32 %v3036_v43, %v3227_v5  ;;  %v3818_v10 = vld [vmem:[%s6500_s4 + $0xc8] sm:$0xff] }
  0xb6   :  { %6637 = vst [vmem:[#allocation28_spill] sm:$0xff] %v3222_v28  ;;  %6638 = vst [vmem:[#allocation29_spill] sm:$0xff] %v3227_v5  ;;  %2584 = vmatmul.mubr.msk.f32.gmra.mrb[14].mxu1 %vm212_vm0, %v2818_v11  ;;  %373 = vmatprep.mubr.f32.mxu0 %v6640_v36  ;;  %v3257_v11 = vld [vmem:[%s6500_s4 + $0x1c0] sm:$0xff] }
  0xb7   :  { %6639 = vst [vmem:[#allocation30_spill] sm:$0xff] %v3232_v54  ;;  %6641 = vst [vmem:[#allocation31_spill] sm:$0xff] %v3239_v29  ;;  %v3262_v29 = vld [vmem:[%s6500_s4 + $0x1d0] sm:$0xff]  ;;  %534 = vmatprep.mubr.f32.mxu1 %v6640_v36  ;;  %v3339_v5 = vmul.f32 %v3033_v27, %v3257_v11 }
  0xb8   :  { %6642 = vst [vmem:[#allocation32_spill] sm:$0xff] %v3243_v3  ;;  %6643 = vst [vmem:[#allocation33_spill] sm:$0xff] %v3247_v2  ;;  %v3267_v2 = vmul.f32 %v3030_v42, %v3158_v32  ;;  %v3271_v3 = vmul.f32 %v3010_v40, %v3163_v33  ;;  %v3315_v33 = vld [vmem:[%s6500_s4 + $0x1f0] sm:$0xff]  ;;  %v3343_v28 = vmul.f32 %v3036_v43, %v3262_v29 }
  0xb9   :  { %6644 = vst [vmem:[#allocation34_spill] sm:$0xff] %v3252_v61  ;;  %6645 = vst [vmem:[#allocation35_spill] sm:$0xff] %v3257_v11  ;;  %2569 = vmatmul.mubr.msk.f32.gmra.mrb[16].mxu0 %vm212_vm0, %v2827_v12  ;;  %v3739_v11 = vld [vmem:[%s6500_s4 + $0xa0] sm:$0xff] }
  0xba   :  { %6646 = vst [vmem:[#allocation36_spill] sm:$0xff] %v3262_v29  ;;  %6647 = vst [vmem:[#allocation37_spill] sm:$0xff] %v3267_v2  ;;  %v3289_v2 = vld [vmem:[%s6500_s4 + $0x1d8] sm:$0xff]  ;;  %2585 = vmatmul.mubr.msk.f32.gmra.mrb[16].mxu1 %vm212_vm0, %v2827_v12  ;;  %379 = vmatprep.mubr.f32.mxu0 %v6640_v36 }
  0xbb   :  { %6648 = vst [vmem:[#allocation38_spill] sm:$0xff] %v3271_v3  ;;  %6649 = vst [vmem:[#allocation39_spill] sm:$0xff] %v3275_v60  ;;  %v3294_v3 = vld [vmem:[%s6500_s4 + $0x1e0] sm:$0xff]  ;;  %v3298_v60 = vmul.f32 %v3030_v42, %v3194_v14  ;;  %540 = vmatprep.mubr.f32.mxu1 %v6640_v36 }
  0xbc   :  { %6650 = vst [vmem:[#allocation40_spill] sm:$0xff] %v3279_v59  ;;  %6651 = vst [vmem:[#allocation41_spill] sm:$0xff] %v3284_v51  ;;  %v3302_v59 = vmul.f32 %v3010_v40, %v3199_v37 }
  0xbd   :  { %6652 = vst [vmem:[#allocation42_spill] sm:$0xff] %v3289_v2  ;;  %6653 = vst [vmem:[#allocation43_spill] sm:$0xff] %v3294_v3  ;;  %2570 = vmatmul.mubr.msk.f32.gmra.mrb[18].mxu0 %vm212_vm0, %v2832_v13 }
  0xbe   :  { %6654 = vst [vmem:[#allocation44_spill] sm:$0xff] %v3298_v60  ;;  %6655 = vst [vmem:[#allocation45_spill] sm:$0xff] %v3302_v59  ;;  %v3320_v60 = vld [vmem:[%s6500_s4 + $0x1e8] sm:$0xff]  ;;  %v3325_v59 = vld [vmem:[%s6500_s4 + $0x1f8] sm:$0xff]  ;;  %2586 = vmatmul.mubr.msk.f32.gmra.mrb[18].mxu1 %vm212_vm0, %v2832_v13  ;;  %385 = vmatprep.mubr.f32.mxu0 %v6640_v36  ;;  %v1348_v13 = vpop.permute.xlu1 %1347 }
  0xbf   :  { %6656 = vst [vmem:[#allocation46_spill] sm:$0xff] %v3306_v58  ;;  %6657 = vst [vmem:[#allocation47_spill] sm:$0xff] %v3310_v34  ;;  %v3331_v34 = vmul.f32 %v3030_v42, %v3232_v54  ;;  %v3335_v58 = vmul.f32 %v3010_v40, %v3252_v61  ;;  %v3367_v12 = vmul.f32 %v3030_v42, %v3320_v60  ;;  %546 = vmatprep.mubr.f32.mxu1 %v6640_v36 }
  0xc0   :  { %6658 = vst [vmem:[#allocation48_spill] sm:$0xff] %v3315_v33  ;;  %6659 = vst [vmem:[#allocation49_spill] sm:$0xff] %v3320_v60 }
  0xc1   :  { %6660 = vst [vmem:[#allocation50_spill] sm:$0xff] %v3325_v59  ;;  %6661 = vst [vmem:[#allocation51_spill] sm:$0xff] %v3331_v34  ;;  %v3350_v34 = vmul.f32 %v3030_v42, %v3284_v51  ;;  %2571 = vmatmul.mubr.msk.f32.gmra.mrb[20].mxu0 %vm212_vm0, %v2843_v15 }
  0xc2   :  { %6662 = vst [vmem:[#allocation52_spill] sm:$0xff] %v3335_v58  ;;  %6663 = vst [vmem:[#allocation53_spill] sm:$0xff] %v3339_v5  ;;  %v3354_v58 = vmul.f32 %v3010_v40, %v3289_v2  ;;  %v3358_v5 = vmul.f32 %v3033_v27, %v3294_v3  ;;  %2587 = vmatmul.mubr.msk.f32.gmra.mrb[20].mxu1 %vm212_vm0, %v2843_v15  ;;  %391 = vmatprep.mubr.f32.mxu0 %v6640_v36  ;;  %v1350_v15 = vpop.permute.xlu0 %1349 }
  0xc3   :  { %6664 = vst [vmem:[#allocation54_spill] sm:$0xff] %v3343_v28  ;;  %6665 = vst [vmem:[#allocation55_spill] sm:$0xff] %v3350_v34  ;;  %v3363_v28 = vmul.f32 %v3036_v43, %v3315_v33  ;;  %v3371_v34 = vmul.f32 %v3010_v40, %v3325_v59  ;;  %552 = vmatprep.mubr.f32.mxu1 %v6640_v36 }
  0xc4   :  { %6666 = vst [vmem:[#allocation56_spill] sm:$0xff] %v3354_v58  ;;  %6667 = vst [vmem:[#allocation57_spill] sm:$0xff] %v3358_v5 }
  0xc5   :  { %6668 = vst [vmem:[#allocation58_spill] sm:$0xff] %v3363_v28  ;;  %6669 = vst [vmem:[#allocation59_spill] sm:$0xff] %v3367_v12  ;;  %2572 = vmatmul.mubr.msk.f32.gmra.mrb[22].mxu0 %vm212_vm0, %v2848_v16 }
  0xc6   :  { %6670 = vst [vmem:[#allocation60_spill] sm:$0xff] %v3371_v34  ;;  %2588 = vmatmul.mubr.msk.f32.gmra.mrb[22].mxu1 %vm212_vm0, %v2848_v16  ;;  %397 = vmatprep.mubr.f32.mxu0 %v6640_v36  ;;  %v1352_v16 = vpop.permute.xlu1 %1351 }
  0xc7   :  { %558 = vmatprep.mubr.f32.mxu1 %v6640_v36 }
  0xc9   :  { %2573 = vmatmul.mubr.msk.f32.gmra.mrb[24].mxu0 %vm212_vm0, %v2857_v17 }
  0xca   :  { %2589 = vmatmul.mubr.msk.f32.gmra.mrb[24].mxu1 %vm212_vm0, %v2857_v17  ;;  %403 = vmatprep.mubr.f32.mxu0 %v6640_v36  ;;  %v1354_v17 = vpop.permute.xlu0 %1353 }
  0xcb   :  { %564 = vmatprep.mubr.f32.mxu1 %v6640_v36 }
  0xcd   :  { %2574 = vmatmul.mubr.msk.f32.gmra.mrb[26].mxu0 %vm212_vm0, %v2862_v18 }
  0xce   :  { %2590 = vmatmul.mubr.msk.f32.gmra.mrb[26].mxu1 %vm212_vm0, %v2862_v18  ;;  %409 = vmatprep.mubr.f32.mxu0 %v6640_v36  ;;  %v1356_v18 = vpop.permute.xlu1 %1355 }
  0xcf   :  { %570 = vmatprep.mubr.f32.mxu1 %v6640_v36 }
  0xd1   :  { %2575 = vmatmul.mubr.msk.f32.gmra.mrb[28].mxu0 %vm212_vm0, %v2871_v19 }
  0xd2   :  { %2591 = vmatmul.mubr.msk.f32.gmra.mrb[28].mxu1 %vm212_vm0, %v2871_v19  ;;  %415 = vmatprep.mubr.f32.mxu0 %v6640_v36  ;;  %v1358_v19 = vpop.permute.xlu0 %1357 }
  0xd3   :  { %576 = vmatprep.mubr.f32.mxu1 %v6640_v36 }
  0xd5   :  { %2576 = vmatmul.mubr.msk.f32.gmra.mrb[30].mxu0 %vm212_vm0, %v2876_v20 }
  0xd6   :  { %2592 = vmatmul.mubr.msk.f32.gmra.mrb[30].mxu1 %vm212_vm0, %v2876_v20  ;;  %1475 = vmatprep.mubr.f32.mxu0 %v6640_v36  ;;  %v1360_v20 = vpop.permute.xlu1 %1359 }
  0xd7   :  { %1636 = vmatprep.mubr.f32.mxu1 %v6640_v36 }
  0xd9   :  { %2593 = vmatmul.mubr.msk.f32.vlgmr.msra.gmra.mrb[32].mxu0 %vm212_vm0, %v1348_v13 }
  0xda   :  { %2609 = vmatmul.mubr.msk.f32.vlgmr.msra.gmra.mrb[32].mxu1 %vm212_vm0, %v1348_v13  ;;  %1481 = vmatprep.mubr.f32.mxu0 %v6640_v36  ;;  %v1362_v13 = vpop.permute.xlu0 %1361 }
  0xdb   :  { %1642 = vmatprep.mubr.f32.mxu1 %v6640_v36 }
  0xdd   :  { %2594 = vmatmul.mubr.msk.f32.gmra.mrb[34].mxu0 %vm212_vm0, %v1350_v15 }
  0xde   :  { %2610 = vmatmul.mubr.msk.f32.gmra.mrb[34].mxu1 %vm212_vm0, %v1350_v15  ;;  %1487 = vmatprep.mubr.f32.mxu0 %v6640_v36  ;;  %v1364_v15 = vpop.permute.xlu1 %1363 }
  0xdf   :  { %1648 = vmatprep.mubr.f32.mxu1 %v6640_v36 }
  0xe1   :  { %2595 = vmatmul.mubr.msk.f32.gmra.mrb[36].mxu0 %vm212_vm0, %v1352_v16 }
  0xe2   :  { %2611 = vmatmul.mubr.msk.f32.gmra.mrb[36].mxu1 %vm212_vm0, %v1352_v16  ;;  %1493 = vmatprep.mubr.f32.mxu0 %v6640_v36  ;;  %v1366_v16 = vpop.permute.xlu0 %1365 }
  0xe3   :  { %1654 = vmatprep.mubr.f32.mxu1 %v6640_v36 }
  0xe5   :  { %2596 = vmatmul.mubr.msk.f32.gmra.mrb[38].mxu0 %vm212_vm0, %v1354_v17 }
  0xe6   :  { %2612 = vmatmul.mubr.msk.f32.gmra.mrb[38].mxu1 %vm212_vm0, %v1354_v17  ;;  %1499 = vmatprep.mubr.f32.mxu0 %v6640_v36  ;;  %v1368_v17 = vpop.permute.xlu1 %1367 }
  0xe7   :  { %1660 = vmatprep.mubr.f32.mxu1 %v6640_v36 }
  0xe9   :  { %2597 = vmatmul.mubr.msk.f32.gmra.mrb[40].mxu0 %vm212_vm0, %v1356_v18 }
  0xea   :  { %2613 = vmatmul.mubr.msk.f32.gmra.mrb[40].mxu1 %vm212_vm0, %v1356_v18  ;;  %1505 = vmatprep.mubr.f32.mxu0 %v6640_v36  ;;  %v1370_v18 = vpop.permute.xlu0 %1369 }
  0xeb   :  { %1666 = vmatprep.mubr.f32.mxu1 %v6640_v36 }
  0xed   :  { %2598 = vmatmul.mubr.msk.f32.gmra.mrb[42].mxu0 %vm212_vm0, %v1358_v19 }
  0xee   :  { %2614 = vmatmul.mubr.msk.f32.gmra.mrb[42].mxu1 %vm212_vm0, %v1358_v19  ;;  %1511 = vmatprep.mubr.f32.mxu0 %v6640_v36  ;;  %v1372_v19 = vpop.permute.xlu1 %1371 }
  0xef   :  { %1672 = vmatprep.mubr.f32.mxu1 %v6640_v36 }
  0xf1   :  { %2599 = vmatmul.mubr.msk.f32.gmra.mrb[44].mxu0 %vm212_vm0, %v1360_v20 }
  0xf2   :  { %2615 = vmatmul.mubr.msk.f32.gmra.mrb[44].mxu1 %vm212_vm0, %v1360_v20  ;;  %1517 = vmatprep.mubr.f32.mxu0 %v6640_v36  ;;  %v1374_v20 = vpop.permute.xlu0 %1373 }
  0xf3   :  { %1678 = vmatprep.mubr.f32.mxu1 %v6640_v36 }
  0xf5   :  { %2600 = vmatmul.mubr.msk.f32.gmra.mrb[46].mxu0 %vm212_vm0, %v1362_v13 }
  0xf6   :  { %2616 = vmatmul.mubr.msk.f32.gmra.mrb[46].mxu1 %vm212_vm0, %v1362_v13  ;;  %1523 = vmatprep.mubr.f32.mxu0 %v6640_v36  ;;  %v1376_v13 = vpop.permute.xlu1 %1375 }
  0xf7   :  { %1684 = vmatprep.mubr.f32.mxu1 %v6640_v36 }
  0xf9   :  { %2601 = vmatmul.mubr.msk.f32.gmra.mrb[48].mxu0 %vm212_vm0, %v1364_v15 }
  0xfa   :  { %2617 = vmatmul.mubr.msk.f32.gmra.mrb[48].mxu1 %vm212_vm0, %v1364_v15  ;;  %1529 = vmatprep.mubr.f32.mxu0 %v6640_v36  ;;  %v1378_v15 = vpop.permute.xlu0 %1377 }
  0xfb   :  { %1690 = vmatprep.mubr.f32.mxu1 %v6640_v36 }
  0xfd   :  { %2602 = vmatmul.mubr.msk.f32.gmra.mrb[50].mxu0 %vm212_vm0, %v1366_v16 }
  0xfe   :  { %2618 = vmatmul.mubr.msk.f32.gmra.mrb[50].mxu1 %vm212_vm0, %v1366_v16  ;;  %1535 = vmatprep.mubr.f32.mxu0 %v6640_v36  ;;  %v1733_v16 = vmul.f32 %v2930_v38, %v2885_v21 }
  0xff   :  { %1696 = vmatprep.mubr.f32.mxu1 %v6640_v36 }
 0x101   :  { %2603 = vmatmul.mubr.msk.f32.gmra.mrb[52].mxu0 %vm212_vm0, %v1368_v17 }
 0x102   :  { %2619 = vmatmul.mubr.msk.f32.gmra.mrb[52].mxu1 %vm212_vm0, %v1368_v17  ;;  %1541 = vmatprep.mubr.f32.mxu0 %v6640_v36  ;;  %v1734_v17 = vmul.f32 %v2927_v35, %v2890_v22 }
 0x103   :  { %1702 = vmatprep.mubr.f32.mxu1 %v6640_v36 }
 0x105   :  { %2604 = vmatmul.mubr.msk.f32.gmra.mrb[54].mxu0 %vm212_vm0, %v1370_v18 }
 0x106   :  { %2620 = vmatmul.mubr.msk.f32.gmra.mrb[54].mxu1 %vm212_vm0, %v1370_v18  ;;  %1547 = vmatprep.mubr.f32.mxu0 %v6640_v36  ;;  %v1735_v18 = vmul.f32 %v2937_v25, %v2919_v31 }
 0x107   :  { %1708 = vmatprep.mubr.f32.mxu1 %v6640_v36 }
 0x108   :  { %v1749_v34 = vrot.slane %v1735_v18, 4 }
 0x109   :  { %2605 = vmatmul.mubr.msk.f32.gmra.mrb[56].mxu0 %vm212_vm0, %v1372_v19 }
 0x10a   :  { %2621 = vmatmul.mubr.msk.f32.gmra.mrb[56].mxu1 %vm212_vm0, %v1372_v19  ;;  %1553 = vmatprep.mubr.f32.mxu0 %v6640_v36  ;;  %v1736_v19 = vmul.f32 %v2932_v39, %v2895_v23  ;;  %v1750_v28 = vadd.f32 %v1749_v34, %v1735_v18 }
 0x10b   :  { %1714 = vmatprep.mubr.f32.mxu1 %v6640_v36 }
 0x10c   :  { %v1755_v12 = vrot.slane %v1736_v19, 4  ;;  %v1751_v31 = vrot.slane %v1750_v28, 2 }
 0x10d   :  { %2606 = vmatmul.mubr.msk.f32.gmra.mrb[58].mxu0 %vm212_vm0, %v1374_v20 }
 0x10e   :  { %2622 = vmatmul.mubr.msk.f32.gmra.mrb[58].mxu1 %vm212_vm0, %v1374_v20  ;;  %1559 = vmatprep.mubr.f32.mxu0 %v6640_v36  ;;  %v1737_v20 = vrot.slane %v1733_v16, 4  ;;  %v1756_v22 = vadd.f32 %v1755_v12, %v1736_v19  ;;  %v1752_v59 = vadd.f32 %v1751_v31, %v1750_v28 }
 0x10f   :  { %1720 = vmatprep.mubr.f32.mxu1 %v6640_v36 }
 0x110   :  { %v1738_v21 = vadd.f32 %v1737_v20, %v1733_v16  ;;  %v1757_v25 = vrot.slane %v1756_v22, 2  ;;  %v1753_v33 = vrot.slane %v1752_v59, 1  ;;  %v3492_v20 = vld [vmem:[%s6500_s4] sm:$0xff] }
 0x111   :  { %2607 = vmatmul.mubr.msk.f32.gmra.mrb[60].mxu0 %vm212_vm0, %v1376_v13 }
 0x112   :  { %2623 = vmatmul.mubr.msk.f32.gmra.mrb[60].mxu1 %vm212_vm0, %v1376_v13  ;;  %1565 = vmatprep.mubr.f32.mxu0 %v6640_v36  ;;  %v1743_v13 = vrot.slane %v1734_v17, 4  ;;  %v1739_v35 = vrot.slane %v1738_v21, 2  ;;  %v1758_v23 = vadd.f32 %v1757_v25, %v1756_v22  ;;  %v1754_v51 = vadd.f32 %v1753_v33, %v1752_v59  ;;  %v3540_v33 = vld [vmem:[%s6500_s4 + $0x48] sm:$0xff]  ;;  %v3572_v25 = vld [vmem:[%s6500_s4 + $0x58] sm:$0xff] }
 0x113   :  { %1726 = vmatprep.mubr.f32.mxu1 %v6640_v36  ;;  %v3807_v63 = vmul.f32 0.0001, %v3540_v33  ;;  %v3821_v62 = vmul.f32 0.0001, %v3572_v25 }
 0x114   :  { %v1744_v38 = vadd.f32 %v1743_v13, %v1734_v17  ;;  %v1740_v36 = vadd.f32 %v1739_v35, %v1738_v21  ;;  %v1763_v34 = vmul.f32 0.125, %v1754_v51  ;;  %v3520_v51 = vld [vmem:[%s6500_s4 + $0x38] sm:$0xff]  ;;  %v3546_v21 = vmul.f32 -33.333332, %v2961_v57  ;;  %v3567_v57 = vld [vmem:[%s6500_s4 + $0x40] sm:$0xff] }
 0x115   :  { %2608 = vmatmul.mubr.msk.f32.gmra.mrb[62].mxu0 %vm212_vm0, %v1378_v15  ;;  %v92_v35 = vld [vmem:[%s6501_s5 + $0x18] sm:$0xff]  ;;  %6710 = vst [vmem:[#allocation100_spill] sm:$0xff] %v3807_v63  ;;  %6713 = vst [vmem:[#allocation103_spill] sm:$0xff] %v3821_v62  ;;  %v107_v62 = vld [vmem:[%s6501_s5 + $0x90] sm:$0xff] }
 0x116   :  { %2624 = vmatmul.mubr.msk.f32.gmra.mrb[62].mxu1 %vm212_vm0, %v1378_v15  ;;  %v1745_v5 = vrot.slane %v1744_v38, 2  ;;  %v1741_v39 = vrot.slane %v1740_v36, 1  ;;  %v1759_v15 = vrot.slane %v1758_v23, 1 }
 0x118   :  { %v1746_v58 = vadd.f32 %v1745_v5, %v1744_v38  ;;  %v1742_v3 = vadd.f32 %v1741_v39, %v1740_v36  ;;  %v1760_v29 = vadd.f32 %v1759_v15, %v1758_v23  ;;  %v1831_v5 = vmul.f32 %v1763_v34, %v2988_v26  ;;  %v3515_v26 = vld [vmem:[%s6500_s4 + $0x20] sm:$0xff]  ;;  %v3551_v38 = vld [vmem:[%s6500_s4 + $0x10] sm:$0xff] }
 0x119   :  { %v3577_v23 = vmul.f32 0.0001, %v3492_v20  ;;  %v93_v15 = vld [vmem:[%s6501_s5 + $0x20] sm:$0xff]  ;;  %v3596_v34 = vmul.f32 %v3010_v40, %v3520_v51 }
 0x11a   :  { %v1747_v60 = vrot.slane %v1746_v58, 1  ;;  %v1761_v16 = vmul.f32 0.125, %v1742_v3  ;;  %v1764_v12 = vmul.f32 0.125, %v1760_v29  ;;  %v91_v3 = vld [vmem:[%s6501_s5 + $0x10] sm:$0xff]  ;;  %v90_v29 = vld [vmem:[%s6501_s5 + $0x8] sm:$0xff] }
 0x11b   :  { %6674 = vst [vmem:[#allocation64_spill] sm:$0xff] %v3577_v23  ;;  %6676 = vst [vmem:[#allocation66_spill] sm:$0xff] %v3596_v34  ;;  %v3619_v34 = vmul.f32 %v3030_v42, %v3540_v33  ;;  %v3624_v23 = vld [vmem:[%s6500_s4 + $0x60] sm:$0xff] }
 0x11c   :  { %v1748_v2 = vadd.f32 %v1747_v60, %v1746_v58  ;;  %v1829_v18 = vmul.f32 %v1761_v16, %v2971_v0  ;;  %v1832_v28 = vmul.f32 %v1764_v12, %v2976_v1  ;;  %v3497_v58 = vld [vmem:[%s6500_s4 + $0x8] sm:$0xff]  ;;  %v3502_v0 = vld [vmem:[%s6500_s4 + $0x18] sm:$0xff]  ;;  %v89_v1 = vld [vmem:[%s6501_s5] sm:$0xff] }
 0x11d   :  { %v3555_v22 = vmul.f32 %v3030_v42, %v3497_v58  ;;  %v3574_v36 = vmul.f32 0.9, %v89_v1  ;;  %v3581_v39 = vmul.f32 %v3010_v40, %v3502_v0  ;;  %v3589_v16 = vld [vmem:[%s6500_s4 + $0x30] sm:$0xff]  ;;  %v96_v1 = vld [vmem:[%s6501_s5 + $0x38] sm:$0xff]  ;;  %6680 = vst [vmem:[#allocation70_spill] sm:$0xff] %v3619_v34  ;;  %v3641_v34 = vmul.f32 %v3033_v27, %v3515_v26 }
 0x11e   :  { %v1762_v17 = vmul.f32 0.125, %v1748_v2  ;;  %v3523_v59 = vrot.slane %v1829_v18, %v2956_v53  ;;  %v3529_v2 = vrot.slane %v1831_v5, %v2956_v53  ;;  %v3543_v13 = vrot.slane %v1832_v28, %v2956_v53  ;;  %v3601_v12 = vld [vmem:[%s6500_s4 + $0x50] sm:$0xff]  ;;  %v94_v28 = vld [vmem:[%s6501_s5 + $0x28] sm:$0xff] }
 0x11f   :  { %6671 = vst [vmem:[#allocation61_spill] sm:$0xff] %v3555_v22  ;;  %6673 = vst [vmem:[#allocation63_spill] sm:$0xff] %v3574_v36  ;;  %v3605_v18 = vmul.f32 %v3033_v27, %v3492_v20  ;;  %v3609_v5 = vmul.f32 0.9, %v90_v29  ;;  %v3632_v29 = vmul.f32 0.0001, %v3551_v38 }
 0x120   :  { %v1830_v19 = vmul.f32 %v1762_v17, %v2983_v6  ;;  %v3507_v6 = vld [vmem:[%s6500_s4 + $0x28] sm:$0xff]  ;;  %6675 = vst [vmem:[#allocation65_spill] sm:$0xff] %v3581_v39  ;;  %v95_v17 = vld [vmem:[%s6501_s5 + $0x30] sm:$0xff]  ;;  %6684 = vst [vmem:[#allocation74_spill] sm:$0xff] %v3641_v34 }
 0x121   :  { %v3562_v31 = vmul.f32 %v3030_v42, %v3507_v6  ;;  %6677 = vst [vmem:[#allocation67_spill] sm:$0xff] %v3605_v18  ;;  %6679 = vst [vmem:[#allocation69_spill] sm:$0xff] %v3609_v5  ;;  %v3637_v5 = vmul.f32 0.9, %v92_v35  ;;  %v3651_v36 = vld [vmem:[%s6500_s4 + $0x78] sm:$0xff]  ;;  %v3667_v34 = vld [vmem:[%s6500_s4 + $0x80] sm:$0xff] }
 0x122   :  { %v3526_v60 = vrot.slane %v1830_v19, %v2956_v53  ;;  %v3607_v19 = vmul.f32 0.9, %v91_v3  ;;  %v3629_v3 = vld [vmem:[%s6500_s4 + $0x70] sm:$0xff]  ;;  %6681 = vst [vmem:[#allocation71_spill] sm:$0xff] %v3632_v29  ;;  %v3654_v29 = vmul.f32 0.0001, %v3502_v0  ;;  %v3762_v37 = vmul.f32 %v3010_v40, %v3651_v36 }
 0x123   :  { %6672 = vst [vmem:[#allocation62_spill] sm:$0xff] %v3562_v31  ;;  %v3635_v31 = vmul.f32 0.0001, %v3497_v58  ;;  %6683 = vst [vmem:[#allocation73_spill] sm:$0xff] %v3637_v5  ;;  %v3658_v35 = vmul.f32 0.9, %v95_v17  ;;  %v3662_v5 = vmul.f32 %v3033_v27, %v3567_v57  ;;  %v3734_v18 = vmul.f32 %v3036_v43, %v3629_v3 }
 0x124   :  { %6678 = vst [vmem:[#allocation68_spill] sm:$0xff] %v3607_v19  ;;  %v3646_v19 = vld [vmem:[%s6500_s4 + $0x68] sm:$0xff]  ;;  %6685 = vst [vmem:[#allocation75_spill] sm:$0xff] %v3654_v29  ;;  %v3672_v39 = vld [vmem:[%s6500_s4 + $0x90] sm:$0xff]  ;;  %v3678_v17 = vmul.f32 0.9, %v94_v28  ;;  %v3690_v29 = vmul.f32 %v3010_v40, %v3572_v25  ;;  %v3787_v14 = vmul.f32 %v3033_v27, %v3667_v34 }
 0x125   :  { %6682 = vst [vmem:[#allocation72_spill] sm:$0xff] %v3635_v31  ;;  %v3656_v31 = vmul.f32 0.9, %v93_v15  ;;  %6687 = vst [vmem:[#allocation77_spill] sm:$0xff] %v3658_v35  ;;  %v3676_v15 = vmul.f32 %v3036_v43, %v3551_v38  ;;  %v3680_v35 = vmul.f32 0.9, %v96_v1  ;;  %v3702_v1 = vmul.f32 %v3036_v43, %v3589_v16 }
 0x126   :  { %6688 = vst [vmem:[#allocation78_spill] sm:$0xff] %v3662_v5  ;;  %6690 = vst [vmem:[#allocation80_spill] sm:$0xff] %v3678_v17  ;;  %v97_v5 = vld [vmem:[%s6501_s5 + $0x40] sm:$0xff]  ;;  %v3695_v22 = vld [vmem:[%s6500_s4 + $0x88] sm:$0xff]  ;;  %v3698_v28 = vmul.f32 0.0001, %v3515_v26  ;;  %v3709_v17 = vmul.f32 %v3036_v43, %v3601_v12  ;;  %v3758_v54 = vmul.f32 %v3030_v42, %v3646_v19  ;;  %v3791_v32 = vmul.f32 %v3036_v43, %v3672_v39 }
 0x127   :  { %6686 = vst [vmem:[#allocation76_spill] sm:$0xff] %v3656_v31  ;;  %6689 = vst [vmem:[#allocation79_spill] sm:$0xff] %v3676_v15  ;;  %v99_v31 = vld [vmem:[%s6501_s5 + $0x50] sm:$0xff]  ;;  %v3717_v15 = vld [vmem:[%s6500_s4 + $0x98] sm:$0xff] }
 0x128   :  { %6691 = vst [vmem:[#allocation81_spill] sm:$0xff] %v3680_v35  ;;  %6692 = vst [vmem:[#allocation82_spill] sm:$0xff] %v3690_v29  ;;  %v3705_v35 = vmul.f32 0.0001, %v3589_v16  ;;  %v98_v29 = vld [vmem:[%s6501_s5 + $0x48] sm:$0xff] }
 0x129   :  { %6693 = vst [vmem:[#allocation83_spill] sm:$0xff] %v3698_v28  ;;  %6694 = vst [vmem:[#allocation84_spill] sm:$0xff] %v3702_v1  ;;  %v3720_v28 = vmul.f32 0.0001, %v3507_v6  ;;  %v3723_v1 = vmul.f32 0.0001, %v3520_v51 }
 0x12a   :  { %6695 = vst [vmem:[#allocation85_spill] sm:$0xff] %v3705_v35  ;;  %6696 = vst [vmem:[#allocation86_spill] sm:$0xff] %v3709_v17  ;;  %v100_v35 = vld [vmem:[%s6501_s5 + $0x58] sm:$0xff]  ;;  %v3730_v17 = vmul.f32 %v3033_v27, %v3624_v23  ;;  %v3748_v61 = vmul.f32 0.9, %v99_v31  ;;  %v3767_v31 = vld [vmem:[%s6500_s4 + $0xa8] sm:$0xff] }
 0x12b   :  { %6697 = vst [vmem:[#allocation87_spill] sm:$0xff] %v3720_v28  ;;  %6698 = vst [vmem:[#allocation88_spill] sm:$0xff] %v3723_v1  ;;  %v3744_v1 = vld [vmem:[%s6500_s4 + $0xb0] sm:$0xff]  ;;  %v3746_v28 = vmul.f32 0.9, %v97_v5  ;;  %v3772_v5 = vld [vmem:[%s6500_s4 + $0xb8] sm:$0xff] }
 0x12c   :  { %6699 = vst [vmem:[#allocation89_spill] sm:$0xff] %v3730_v17  ;;  %6700 = vst [vmem:[#allocation90_spill] sm:$0xff] %v3734_v18  ;;  %v101_v17 = vld [vmem:[%s6501_s5 + $0x60] sm:$0xff]  ;;  %v103_v18 = vld [vmem:[%s6501_s5 + $0x70] sm:$0xff] }
 0x12d   :  { %6701 = vst [vmem:[#allocation91_spill] sm:$0xff] %v3746_v28  ;;  %6702 = vst [vmem:[#allocation92_spill] sm:$0xff] %v3748_v61  ;;  %v3775_v61 = vmul.f32 0.0001, %v3567_v57  ;;  %v3777_v28 = vmul.f32 0.9, %v98_v29 }
 0x12e   :  { %6703 = vst [vmem:[#allocation93_spill] sm:$0xff] %v3758_v54  ;;  %6704 = vst [vmem:[#allocation94_spill] sm:$0xff] %v3762_v37  ;;  %v102_v54 = vld [vmem:[%s6501_s5 + $0x68] sm:$0xff]  ;;  %v104_v37 = vld [vmem:[%s6501_s5 + $0x78] sm:$0xff]  ;;  %v3823_v56 = vmul.f32 0.9, %v101_v17  ;;  %v3847_v17 = vmul.f32 %v3036_v43, %v3744_v1 }
 0x12f   :  { %6705 = vst [vmem:[#allocation95_spill] sm:$0xff] %v3775_v61  ;;  %6706 = vst [vmem:[#allocation96_spill] sm:$0xff] %v3777_v28  ;;  %v3796_v29 = vld [vmem:[%s6500_s4 + $0xc0] sm:$0xff]  ;;  %v3801_v61 = vld [vmem:[%s6500_s4 + $0xd0] sm:$0xff]  ;;  %v3804_v28 = vmul.f32 0.0001, %v3601_v12 }
 0x130   :  { %6707 = vst [vmem:[#allocation97_spill] sm:$0xff] %v3787_v14  ;;  %6708 = vst [vmem:[#allocation98_spill] sm:$0xff] %v3791_v32  ;;  %v3809_v14 = vmul.f32 0.9, %v100_v35  ;;  %v3813_v32 = vmul.f32 %v3030_v42, %v3695_v22  ;;  %v3829_v35 = vmul.f32 %v3010_v40, %v3717_v15  ;;  %v3831_v63 = vmul.f32 0.9, %v102_v54 }
 0x131   :  { %6709 = vst [vmem:[#allocation99_spill] sm:$0xff] %v3804_v28  ;;  %v3825_v28 = vmul.f32 0.9, %v103_v18  ;;  %v3843_v18 = vmul.f32 %v3033_v27, %v3739_v11  ;;  %6718 = vst [vmem:[#allocation108_spill] sm:$0xff] %v3847_v17  ;;  %v3850_v54 = vmul.f32 0.0001, %v3624_v23 }
 0x132   :  { %6711 = vst [vmem:[#allocation101_spill] sm:$0xff] %v3809_v14  ;;  %6712 = vst [vmem:[#allocation102_spill] sm:$0xff] %v3813_v32  ;;  %v3833_v14 = vmul.f32 0.9, %v104_v37  ;;  %v105_v32 = vld [vmem:[%s6501_s5 + $0x80] sm:$0xff] }
 0x133   :  { %6714 = vst [vmem:[#allocation104_spill] sm:$0xff] %v3829_v35  ;;  %6715 = vst [vmem:[#allocation105_spill] sm:$0xff] %v3831_v63  ;;  %v3853_v37 = vmul.f32 0.0001, %v3629_v3  ;;  %v106_v35 = vld [vmem:[%s6501_s5 + $0x88] sm:$0xff]  ;;  %v3877_v63 = vmul.f32 %v3033_v27, %v3796_v29  ;;  %v3895_v27 = vmul.f32 %v3030_v42, %v3818_v10 }
 0x134   :  { %6716 = vst [vmem:[#allocation106_spill] sm:$0xff] %v3833_v14  ;;  %6717 = vst [vmem:[#allocation107_spill] sm:$0xff] %v3843_v18  ;;  %v3860_v14 = vmul.f32 %v3030_v42, %v3767_v31  ;;  %v3864_v18 = vmul.f32 %v3010_v40, %v3772_v5  ;;  %v3867_v17 = vmul.f32 0.0001, %v3646_v19  ;;  %v3883_v40 = vmul.f32 0.9, %v105_v32 }
 0x135   :  { %6719 = vst [vmem:[#allocation109_spill] sm:$0xff] %v3850_v54  ;;  %6720 = vst [vmem:[#allocation110_spill] sm:$0xff] %v3853_v37  ;;  %v3870_v54 = vmul.f32 0.0001, %v3651_v36  ;;  %v108_v37 = vld [vmem:[%s6501_s5 + $0x98] sm:$0xff]  ;;  %v3914_v42 = vmul.f32 %v3529_v2, %v3551_v38 }
 0x136   :  { %6721 = vst [vmem:[#allocation111_spill] sm:$0xff] %v3860_v14  ;;  %6722 = vst [vmem:[#allocation112_spill] sm:$0xff] %v3864_v18  ;;  %v3881_v14 = vmul.f32 %v3036_v43, %v3801_v61  ;;  %v3885_v18 = vmul.f32 0.9, %v107_v62  ;;  %v3899_v43 = vmul.f32 %v3523_v59, %v3492_v20  ;;  %v3902_v32 = vmul.f32 0.0001, %v3667_v34 }
 0x137   :  { %6723 = vst [vmem:[#allocation113_spill] sm:$0xff] %v3867_v17  ;;  %6724 = vst [vmem:[#allocation114_spill] sm:$0xff] %v3870_v54  ;;  %v109_v54 = vld [vmem:[%s6501_s5 + $0xa0] sm:$0xff]  ;;  %v111_v17 = vld [vmem:[%s6501_s5 + $0xb0] sm:$0xff]  ;;  %v3904_v62 = vmul.f32 0.9, %v106_v35  ;;  %v3918_v20 = vmul.f32 %v3526_v60, %v3497_v58  ;;  %v3941_v58 = vmul.f32 %v3523_v59, %v3515_v26  ;;  %v3959_v26 = vmul.f32 %v3526_v60, %v3507_v6 }
 0x138   :  { %6725 = vst [vmem:[#allocation115_spill] sm:$0xff] %v3877_v63  ;;  %6726 = vst [vmem:[#allocation116_spill] sm:$0xff] %v3881_v14  ;;  %v110_v14 = vld [vmem:[%s6501_s5 + $0xa8] sm:$0xff]  ;;  %v112_v63 = vld [vmem:[%s6501_s5 + $0xb8] sm:$0xff]  ;;  %v3924_v35 = vmul.f32 0.0001, %v3695_v22 }
 0x139   :  { %6727 = vst [vmem:[#allocation117_spill] sm:$0xff] %v3895_v27  ;;  %6728 = vst [vmem:[#allocation118_spill] sm:$0xff] %v3899_v43  ;;  %v3921_v43 = vmul.f32 0.0001, %v3672_v39  ;;  %v3926_v27 = vmul.f32 0.9, %v108_v37 }
 0x13a   :  { %6729 = vst [vmem:[#allocation119_spill] sm:$0xff] %v3902_v32  ;;  %6730 = vst [vmem:[#allocation120_spill] sm:$0xff] %v3904_v62  ;;  %v3930_v32 = vmul.f32 %v3543_v13, %v3502_v0  ;;  %v3933_v62 = vmul.f32 0.0001, %v3717_v15  ;;  %v3935_v38 = vmul.f32 0.9, %v109_v54 }
 0x13b   :  { %6731 = vst [vmem:[#allocation121_spill] sm:$0xff] %v3914_v42  ;;  %6732 = vst [vmem:[#allocation122_spill] sm:$0xff] %v3918_v20  ;;  %v3937_v42 = vmul.f32 0.9, %v111_v17  ;;  %v3943_v20 = vmul.f32 0.9, %v110_v14  ;;  %v3955_v17 = vmul.f32 %v3529_v2, %v3589_v16  ;;  %v3976_v16 = vmul.f32 %v3523_v59, %v3567_v57 }
 0x13c   :  { %6733 = vst [vmem:[#allocation123_spill] sm:$0xff] %v3924_v35  ;;  %6734 = vst [vmem:[#allocation124_spill] sm:$0xff] %v3930_v32  ;;  %v3945_v35 = vmul.f32 0.9, %v112_v63  ;;  %v113_v0 = vld [vmem:[%s6501_s5 + $0xc0] sm:$0xff]  ;;  %v115_v37 = vld [vmem:[%s6501_s5 + $0xd0] sm:$0xff]  ;;  %v3989_v32 = vmul.f32 %v3529_v2, %v3601_v12  ;;  %v4007_v12 = vmul.f32 %v3543_v13, %v3572_v25  ;;  %v4026_v25 = vmul.f32 %v3529_v2, %v3629_v3 }
 0x13d   :  { %6735 = vst [vmem:[#allocation125_spill] sm:$0xff] %v3941_v58  ;;  %6736 = vst [vmem:[#allocation126_spill] sm:$0xff] %v3955_v17  ;;  %v3962_v14 = vmul.f32 0.0001, %v3739_v11  ;;  %v3965_v63 = vmul.f32 0.0001, %v3744_v1  ;;  %v3972_v58 = vmul.f32 %v3543_v13, %v3520_v51  ;;  %v3993_v51 = vmul.f32 %v3526_v60, %v3540_v33 }
 0x13e   :  { %6737 = vst [vmem:[#allocation127_spill] sm:$0xff] %v3959_v26  ;;  %v114_v54 = vld [vmem:[%s6501_s5 + $0xc8] sm:$0xff]  ;;  %6739 = vst [vmem:[#allocation129_spill] sm:$0xff] %v3976_v16  ;;  %v3979_v6 = vmul.f32 0.0001, %v3767_v31  ;;  %v116_v17 = vld [vmem:[%s6501_s5 + $0xd8] sm:$0xff]  ;;  %v4011_v33 = vmul.f32 %v3523_v59, %v3624_v23  ;;  %v4030_v23 = vmul.f32 %v3526_v60, %v3646_v19  ;;  %v4053_v19 = vmul.f32 %v3523_v59, %v3667_v34 }
 0x13f   :  { %6738 = vst [vmem:[#allocation128_spill] sm:$0xff] %v3972_v58  ;;  %v3982_v26 = vmul.f32 0.0001, %v3772_v5  ;;  %6741 = vst [vmem:[#allocation131_spill] sm:$0xff] %v3989_v32  ;;  %v3995_v57 = vmul.f32 0.9, %v113_v0  ;;  %v4071_v34 = vmul.f32 %v3526_v60, %v3695_v22 }
 0x140   :  { %6742 = vst [vmem:[#allocation132_spill] sm:$0xff] %v3993_v51  ;;  %v3997_v16 = vmul.f32 0.9, %v115_v37  ;;  %v117_v58 = vld [vmem:[%s6501_s5 + $0xe0] sm:$0xff]  ;;  %6743 = vst [vmem:[#allocation133_spill] sm:$0xff] %v4007_v12  ;;  %v118_v51 = vld [vmem:[%s6501_s5 + $0xe8] sm:$0xff] }
 0x141   :  { %6740 = vst [vmem:[#allocation130_spill] sm:$0xff] %v3982_v26  ;;  %v119_v26 = vld [vmem:[%s6501_s5 + $0xf0] sm:$0xff]  ;;  %6744 = vst [vmem:[#allocation134_spill] sm:$0xff] %v4011_v33  ;;  %v4014_v0 = vmul.f32 0.0001, %v3796_v29  ;;  %v120_v32 = vld [vmem:[%s6501_s5 + $0xf8] sm:$0xff] }
 0x142   :  { %v4016_v37 = vmul.f32 0.9, %v114_v54  ;;  %6747 = vst [vmem:[#allocation137_spill] sm:$0xff] %v4026_v25  ;;  %6748 = vst [vmem:[#allocation138_spill] sm:$0xff] %v4030_v23  ;;  %v4033_v33 = vmul.f32 0.0001, %v3801_v61 }
 0x143   :  { %6745 = vst [vmem:[#allocation135_spill] sm:$0xff] %v4014_v0  ;;  %v4036_v54 = vmul.f32 0.0001, %v3818_v10  ;;  %v4038_v12 = vmul.f32 0.9, %v116_v17  ;;  %v4042_v0 = vmul.f32 %v3543_v13, %v3651_v36  ;;  %6751 = vst [vmem:[#allocation141_spill] sm:$0xff] %v4053_v19  ;;  %v4084_v19 = vmul.f32 %v3543_v13, %v3717_v15 }
 0x144   :  { %6746 = vst [vmem:[#allocation136_spill] sm:$0xff] %v4016_v37  ;;  %v4045_v37 = vmul.f32 0.0001, %v3007_v7  ;;  %v4047_v3 = vmul.f32 0.9, %v117_v58  ;;  %v121_v36 = vld [vmem:[%s6501_s5 + $0x100] sm:$0xff]  ;;  %v4067_v58 = vmul.f32 %v3529_v2, %v3672_v39  ;;  %v4088_v39 = vmul.f32 %v3523_v59, %v3739_v11 }
 0x145   :  { %6749 = vst [vmem:[#allocation139_spill] sm:$0xff] %v4036_v54  ;;  %6750 = vst [vmem:[#allocation140_spill] sm:$0xff] %v4042_v0  ;;  %v4049_v25 = vmul.f32 0.9, %v119_v26  ;;  %v4055_v23 = vmul.f32 0.9, %v118_v51  ;;  %v4101_v0 = vmul.f32 %v3529_v2, %v3744_v1  ;;  %v4105_v15 = vmul.f32 %v3526_v60, %v3767_v31 }
 0x146   :  { %v4057_v54 = vmul.f32 0.9, %v120_v32  ;;  %v123_v17 = vld [vmem:[%s6501_s5 + $0x110] sm:$0xff]  ;;  %6752 = vst [vmem:[#allocation142_spill] sm:$0xff] %v4067_v58  ;;  %6753 = vst [vmem:[#allocation143_spill] sm:$0xff] %v4071_v34  ;;  %v122_v51 = vld [vmem:[%s6501_s5 + $0x108] sm:$0xff]  ;;  %v4119_v1 = vmul.f32 %v3543_v13, %v3772_v5  ;;  %v4123_v31 = vmul.f32 %v3523_v59, %v3796_v29  ;;  %v4138_v5 = vmul.f32 %v3529_v2, %v3801_v61 }
 0x147   :  { %v4074_v26 = vmul.f32 0.0001, %v3017_v24  ;;  %v4077_v32 = vmul.f32 0.0001, %v3022_v8  ;;  %6754 = vst [vmem:[#allocation144_spill] sm:$0xff] %v4084_v19  ;;  %6755 = vst [vmem:[#allocation145_spill] sm:$0xff] %v4088_v39  ;;  %v4142_v29 = vmul.f32 %v3526_v60, %v3818_v10  ;;  %v4165_v10 = vmul.f32 %v3523_v59, %v3017_v24 }
 0x148   :  { %v4091_v22 = vmul.f32 0.0001, %v3027_v41  ;;  %v4094_v34 = vmul.f32 0.0001, %v3044_v44  ;;  %v124_v58 = vld [vmem:[%s6501_s5 + $0x118] sm:$0xff]  ;;  %6757 = vst [vmem:[#allocation147_spill] sm:$0xff] %v4101_v0  ;;  %v4183_v24 = vmul.f32 %v3526_v60, %v3027_v41 }
 0x149   :  { %6758 = vst [vmem:[#allocation148_spill] sm:$0xff] %v4105_v15  ;;  %v4107_v11 = vmul.f32 0.9, %v121_v36  ;;  %v4109_v39 = vmul.f32 0.9, %v123_v17  ;;  %v125_v19 = vld [vmem:[%s6501_s5 + $0x120] sm:$0xff] }
 0x14a   :  { %6756 = vst [vmem:[#allocation146_spill] sm:$0xff] %v4094_v34  ;;  %v127_v34 = vld [vmem:[%s6501_s5 + $0x130] sm:$0xff]  ;;  %6761 = vst [vmem:[#allocation151_spill] sm:$0xff] %v4119_v1  ;;  %v4126_v36 = vmul.f32 0.0001, %v3049_v30  ;;  %v126_v15 = vld [vmem:[%s6501_s5 + $0x128] sm:$0xff] }
 0x14b   :  { %6759 = vst [vmem:[#allocation149_spill] sm:$0xff] %v4107_v11  ;;  %6760 = vst [vmem:[#allocation150_spill] sm:$0xff] %v4109_v39  ;;  %v4128_v17 = vmul.f32 0.9, %v122_v51  ;;  %v128_v0 = vld [vmem:[%s6501_s5 + $0x138] sm:$0xff] }
 0x14c   :  { %6762 = vst [vmem:[#allocation152_spill] sm:$0xff] %v4123_v31  ;;  %6763 = vst [vmem:[#allocation153_spill] sm:$0xff] %v4126_v36  ;;  %v4145_v31 = vmul.f32 0.0001, %v3054_v46  ;;  %v4148_v51 = vmul.f32 0.0001, %v3060_v9  ;;  %v4154_v36 = vmul.f32 %v3543_v13, %v3007_v7 }
 0x14d   :  { %6764 = vst [vmem:[#allocation154_spill] sm:$0xff] %v4128_v17  ;;  %6765 = vst [vmem:[#allocation155_spill] sm:$0xff] %v4138_v5  ;;  %v4150_v1 = vmul.f32 0.9, %v124_v58  ;;  %v4157_v17 = vmul.f32 0.0001, %v3065_v47 }
 0x14e   :  { %6766 = vst [vmem:[#allocation156_spill] sm:$0xff] %v4142_v29  ;;  %6767 = vst [vmem:[#allocation157_spill] sm:$0xff] %v4145_v31  ;;  %v4159_v61 = vmul.f32 0.9, %v125_v19  ;;  %v4161_v5 = vmul.f32 0.9, %v127_v34  ;;  %v4179_v19 = vmul.f32 %v3529_v2, %v3022_v8  ;;  %v4200_v8 = vmul.f32 %v3523_v59, %v3049_v30 }
 0x14f   :  { %6768 = vst [vmem:[#allocation158_spill] sm:$0xff] %v4148_v51  ;;  %6769 = vst [vmem:[#allocation159_spill] sm:$0xff] %v4150_v1  ;;  %v4167_v29 = vmul.f32 0.9, %v126_v15  ;;  %v4169_v51 = vmul.f32 0.9, %v128_v0  ;;  %v4221_v30 = vrot.slane %v3546_v21, %v2956_v53 }
 0x150   :  { %6770 = vst [vmem:[#allocation160_spill] sm:$0xff] %v4154_v36  ;;  %6771 = vst [vmem:[#allocation161_spill] sm:$0xff] %v4157_v17  ;;  %v129_v7 = vld [vmem:[%s6501_s5 + $0x140] sm:$0xff]  ;;  %v131_v58 = vld [vmem:[%s6501_s5 + $0x150] sm:$0xff]  ;;  %v4186_v34 = vmul.f32 0.0001, %v3070_v4  ;;  %v4213_v36 = vmul.f32 %v3529_v2, %v3054_v46 }
 0x151   :  { %6772 = vst [vmem:[#allocation162_spill] sm:$0xff] %v4159_v61  ;;  %6773 = vst [vmem:[#allocation163_spill] sm:$0xff] %v4161_v5  ;;  %v4189_v0 = vmul.f32 0.0001, %v3075_v48  ;;  %v130_v15 = vld [vmem:[%s6501_s5 + $0x148] sm:$0xff]  ;;  %v135_v46 = vld [vmem:[%s6501_s5 + $0x170] sm:$0xff] }
 0x152   :  { %6774 = vst [vmem:[#allocation164_spill] sm:$0xff] %v4165_v10  ;;  %6775 = vst [vmem:[#allocation165_spill] sm:$0xff] %v4167_v29  ;;  %v4196_v10 = vmul.f32 %v3543_v13, %v3044_v44  ;;  %v4203_v41 = vmul.f32 0.0001, %v3080_v49  ;;  %v4217_v44 = vmul.f32 %v3526_v60, %v3060_v9  ;;  %v4235_v9 = vmul.f32 %v3543_v13, %v3065_v47  ;;  %v6926_v5 = vld [vmem:[#allocation88_spill] sm:$0xff]  ;;  %v6934_v1 = vld [vmem:[#allocation93_spill] sm:$0xff] }
 0x153   :  { %6776 = vst [vmem:[#allocation166_spill] sm:$0xff] %v4169_v51  ;;  %6777 = vst [vmem:[#allocation167_spill] sm:$0xff] %v4179_v19  ;;  %v132_v19 = vld [vmem:[%s6501_s5 + $0x158] sm:$0xff]  ;;  %v4255_v47 = vmul.f32 %v3523_v59, %v3070_v4 }
 0x154   :  { %6778 = vst [vmem:[#allocation168_spill] sm:$0xff] %v4183_v24  ;;  %6779 = vst [vmem:[#allocation169_spill] sm:$0xff] %v4186_v34  ;;  %v4206_v24 = vmul.f32 0.0001, %v3085_v50 }
 0x155   :  { %6780 = vst [vmem:[#allocation170_spill] sm:$0xff] %v4189_v0  ;;  %6781 = vst [vmem:[#allocation171_spill] sm:$0xff] %v4196_v10  ;;  %v4225_v10 = vmul.f32 0.9, %v131_v58  ;;  %v4245_v58 = vmul.f32 0.9, %v130_v15 }
 0x156   :  { %6782 = vst [vmem:[#allocation172_spill] sm:$0xff] %v4200_v8  ;;  %6783 = vst [vmem:[#allocation173_spill] sm:$0xff] %v4203_v41  ;;  %v4223_v8 = vmul.f32 0.9, %v129_v7  ;;  %v4243_v7 = vmul.f32 0.0001, %v3096_v52 }
 0x157   :  { %6784 = vst [vmem:[#allocation174_spill] sm:$0xff] %v4206_v24  ;;  %6785 = vst [vmem:[#allocation175_spill] sm:$0xff] %v4213_v36  ;;  %v133_v24 = vld [vmem:[%s6501_s5 + $0x160] sm:$0xff]  ;;  %v134_v36 = vld [vmem:[%s6501_s5 + $0x168] sm:$0xff]  ;;  %v4263_v15 = vmul.f32 0.9, %v132_v19 }
 0x158   :  { %6786 = vst [vmem:[#allocation176_spill] sm:$0xff] %v4217_v44  ;;  %6787 = vst [vmem:[#allocation177_spill] sm:$0xff] %v4223_v8  ;;  %v6790_v44 = vsub.s32 2, %v2946_v45  ;;  %v6800_v0 = vld [vmem:[#allocation7_spill] sm:$0xff] }
 0x159   :  { %6788 = vst [vmem:[#allocation178_spill] sm:$0xff] %v4225_v10  ;;  %6789 = vst [vmem:[#allocation179_spill] sm:$0xff] %v4235_v9  ;;  %v136_v10 = vld [vmem:[%s6501_s5 + $0x178] sm:$0xff]  ;;  %v6795_v9 = vld [vmem:[#allocation3_spill] sm:$0xff]  ;;  %v4275_v4 = vmul.f32 0.0001, %v6800_v0 }
 0x15a   :  { %v4240_v53 = vrot.slane %v3546_v21, %v6790_v44  ;;  %6791 = vst [vmem:[#allocation180_spill] sm:$0xff] %v4243_v7  ;;  %6792 = vst [vmem:[#allocation181_spill] sm:$0xff] %v4245_v58  ;;  %v4258_v44 = vmul.f32 0.0001, %v3101_v55  ;;  %v4261_v8 = vmul.f32 0.0001, %v6795_v9  ;;  %v4267_v7 = vmul.f32 %v3529_v2, %v3075_v48 }
 0x15b   :  { %6793 = vst [vmem:[#allocation182_spill] sm:$0xff] %v4255_v47  ;;  %6797 = vst [vmem:[#allocation184_spill] sm:$0xff] %v4263_v15  ;;  %v6799_v58 = vsub.s32 1, %v2946_v45  ;;  %v4277_v47 = vmul.f32 0.9, %v133_v24  ;;  %v139_v24 = vld [vmem:[%s6501_s5 + $0x190] sm:$0xff] }
 0x15c   :  { %6794 = vst [vmem:[#allocation183_spill] sm:$0xff] %v4258_v44  ;;  %6796 = vst [vmem:[#allocation3_spill] sm:$0xff] %v4261_v8  ;;  %v4279_v44 = vmul.f32 0.9, %v135_v46  ;;  %v6804_v8 = vsub.s32 3, %v2946_v45  ;;  %v4298_v46 = vmul.f32 %v3526_v60, %v3080_v49  ;;  %v6808_v45 = vld [vmem:[#allocation8_spill] sm:$0xff] }
 0x15d   :  { %6798 = vst [vmem:[#allocation185_spill] sm:$0xff] %v4267_v7  ;;  %v4272_v41 = vrot.slane %v3546_v21, %v6799_v58  ;;  %6801 = vst [vmem:[#allocation7_spill] sm:$0xff] %v4275_v4  ;;  %v4286_v15 = vmul.f32 0.9, %v134_v36  ;;  %v4288_v48 = vmul.f32 0.9, %v136_v10 }
 0x15e   :  { %6802 = vst [vmem:[#allocation186_spill] sm:$0xff] %v4277_v47  ;;  %6803 = vst [vmem:[#allocation187_spill] sm:$0xff] %v4279_v44  ;;  %v4284_v19 = vrot.slane %v3546_v21, %v6804_v8  ;;  %v137_v58 = vld [vmem:[%s6501_s5 + $0x180] sm:$0xff]  ;;  %v4301_v7 = vmul.f32 0.0001, %v6808_v45  ;;  %v6810_v21 = vld [vmem:[#allocation9_spill] sm:$0xff]  ;;  %v4311_v8 = vmul.f32 %v3543_v13, %v3085_v50  ;;  %v4328_v44 = vmul.f32 %v3529_v2, %v3101_v55 }
 0x15f   :  { %6805 = vst [vmem:[#allocation188_spill] sm:$0xff] %v4286_v15  ;;  %6806 = vst [vmem:[#allocation189_spill] sm:$0xff] %v4288_v48  ;;  %v4304_v36 = vmul.f32 0.0001, %v6810_v21  ;;  %v138_v10 = vld [vmem:[%s6501_s5 + $0x188] sm:$0xff]  ;;  %v4315_v48 = vmul.f32 %v3523_v59, %v3096_v52  ;;  %v6814_v49 = vld [vmem:[#allocation14_spill] sm:$0xff]  ;;  %v4332_v50 = vmul.f32 %v3526_v60, %v6795_v9  ;;  %v4347_v55 = vmul.f32 %v3523_v59, %v6808_v45 }
 0x160   :  { %6807 = vst [vmem:[#allocation190_spill] sm:$0xff] %v4298_v46  ;;  %6809 = vst [vmem:[#allocation8_spill] sm:$0xff] %v4301_v7  ;;  %v4318_v46 = vmul.f32 0.0001, %v6814_v49  ;;  %v6816_v15 = vld [vmem:[#allocation15_spill] sm:$0xff]  ;;  %v4366_v45 = vmul.f32 %v3526_v60, %v6814_v49  ;;  %v6879_v47 = vld [vmem:[#allocation50_spill] sm:$0xff] }
 0x161   :  { %6811 = vst [vmem:[#allocation9_spill] sm:$0xff] %v4304_v36  ;;  %6812 = vst [vmem:[#allocation191_spill] sm:$0xff] %v4311_v8  ;;  %v4321_v7 = vmul.f32 0.0001, %v6816_v15  ;;  %v140_v36 = vld [vmem:[%s6501_s5 + $0x198] sm:$0xff]  ;;  %v141_v8 = vld [vmem:[%s6501_s5 + $0x1a0] sm:$0xff]  ;;  %v4512_v4 = vmul.f32 %v3543_v13, %v6879_v47 }
 0x162   :  { %6813 = vst [vmem:[#allocation192_spill] sm:$0xff] %v4315_v48  ;;  %6815 = vst [vmem:[#allocation14_spill] sm:$0xff] %v4318_v46  ;;  %v4334_v52 = vmul.f32 0.9, %v137_v58  ;;  %v4336_v48 = vmul.f32 0.9, %v139_v24 }
 0x163   :  { %6817 = vst [vmem:[#allocation15_spill] sm:$0xff] %v4321_v7  ;;  %6818 = vst [vmem:[#allocation193_spill] sm:$0xff] %v4328_v44  ;;  %v4343_v7 = vmul.f32 %v3543_v13, %v6800_v0  ;;  %v6824_v44 = vld [vmem:[#allocation16_spill] sm:$0xff]  ;;  %v4352_v9 = vmul.f32 0.9, %v138_v10  ;;  %v142_v24 = vld [vmem:[%s6501_s5 + $0x1a8] sm:$0xff]  ;;  %v4362_v0 = vmul.f32 %v3529_v2, %v6810_v21 }
 0x164   :  { %6819 = vst [vmem:[#allocation194_spill] sm:$0xff] %v4332_v50  ;;  %6820 = vst [vmem:[#allocation195_spill] sm:$0xff] %v4334_v52  ;;  %v4350_v46 = vmul.f32 0.0001, %v6824_v44  ;;  %v143_v58 = vld [vmem:[%s6501_s5 + $0x1b0] sm:$0xff]  ;;  %v144_v50 = vld [vmem:[%s6501_s5 + $0x1b8] sm:$0xff]  ;;  %v4382_v21 = vmul.f32 %v3523_v59, %v6824_v44 }
 0x165   :  { %6821 = vst [vmem:[#allocation196_spill] sm:$0xff] %v4336_v48  ;;  %6822 = vst [vmem:[#allocation197_spill] sm:$0xff] %v4343_v7  ;;  %v4371_v10 = vmul.f32 0.9, %v140_v36  ;;  %v4390_v36 = vmul.f32 0.9, %v141_v8 }
 0x166   :  { %6823 = vst [vmem:[#allocation198_spill] sm:$0xff] %v4347_v55  ;;  %6825 = vst [vmem:[#allocation16_spill] sm:$0xff] %v4350_v46  ;;  %v6829_v55 = vld [vmem:[#allocation21_spill] sm:$0xff]  ;;  %v4378_v46 = vmul.f32 %v3543_v13, %v6816_v15  ;;  %v4398_v15 = vmul.f32 0.9, %v142_v24  ;;  %v145_v44 = vld [vmem:[%s6501_s5 + $0x1c0] sm:$0xff] }
 0x167   :  { %6826 = vst [vmem:[#allocation199_spill] sm:$0xff] %v4352_v9  ;;  %6827 = vst [vmem:[#allocation200_spill] sm:$0xff] %v4362_v0  ;;  %v4369_v7 = vmul.f32 0.0001, %v6829_v55  ;;  %v6834_v0 = vld [vmem:[#allocation22_spill] sm:$0xff] }
 0x168   :  { %6828 = vst [vmem:[#allocation201_spill] sm:$0xff] %v4366_v45  ;;  %6831 = vst [vmem:[#allocation202_spill] sm:$0xff] %v4371_v10  ;;  %v4385_v49 = vmul.f32 0.0001, %v6834_v0  ;;  %v6836_v45 = vld [vmem:[#allocation23_spill] sm:$0xff]  ;;  %v4408_v8 = vmul.f32 %v3526_v60, %v6834_v0 }
 0x169   :  { %6830 = vst [vmem:[#allocation21_spill] sm:$0xff] %v4369_v7  ;;  %6832 = vst [vmem:[#allocation203_spill] sm:$0xff] %v4378_v46  ;;  %v4388_v9 = vmul.f32 0.0001, %v6836_v45  ;;  %v4394_v7 = vmul.f32 %v3529_v2, %v6829_v55  ;;  %v4396_v10 = vmul.f32 0.9, %v143_v58  ;;  %v4412_v55 = vmul.f32 %v3543_v13, %v6836_v45 }
 0x16a   :  { %6833 = vst [vmem:[#allocation204_spill] sm:$0xff] %v4382_v21  ;;  %6835 = vst [vmem:[#allocation22_spill] sm:$0xff] %v4385_v49  ;;  %v147_v21 = vld [vmem:[%s6501_s5 + $0x1d0] sm:$0xff]  ;;  %v4417_v24 = vmul.f32 0.9, %v144_v50  ;;  %v146_v46 = vld [vmem:[%s6501_s5 + $0x1c8] sm:$0xff] }
 0x16b   :  { %6837 = vst [vmem:[#allocation23_spill] sm:$0xff] %v4388_v9  ;;  %6838 = vst [vmem:[#allocation205_spill] sm:$0xff] %v4390_v36  ;;  %v6844_v58 = vld [vmem:[#allocation28_spill] sm:$0xff]  ;;  %v6851_v50 = vld [vmem:[#allocation30_spill] sm:$0xff]  ;;  %v4446_v9 = vmul.f32 0.9, %v145_v44 }
 0x16c   :  { %6839 = vst [vmem:[#allocation206_spill] sm:$0xff] %v4394_v7  ;;  %6840 = vst [vmem:[#allocation207_spill] sm:$0xff] %v4396_v10  ;;  %v4415_v7 = vmul.f32 0.0001, %v6844_v58  ;;  %v4427_v0 = vmul.f32 %v3523_v59, %v6844_v58  ;;  %v4444_v36 = vmul.f32 %v3526_v60, %v6851_v50  ;;  %v6857_v58 = vld [vmem:[#allocation35_spill] sm:$0xff] }
 0x16d   :  { %6841 = vst [vmem:[#allocation208_spill] sm:$0xff] %v4398_v15  ;;  %6842 = vst [vmem:[#allocation209_spill] sm:$0xff] %v4408_v8  ;;  %v148_v15 = vld [vmem:[%s6501_s5 + $0x1d8] sm:$0xff]  ;;  %v4451_v49 = vmul.f32 0.9, %v147_v21  ;;  %v4466_v44 = vmul.f32 %v3523_v59, %v6857_v58  ;;  %v151_v21 = vld [vmem:[%s6501_s5 + $0x1f0] sm:$0xff] }
 0x16e   :  { %6843 = vst [vmem:[#allocation210_spill] sm:$0xff] %v4412_v55  ;;  %6845 = vst [vmem:[#allocation28_spill] sm:$0xff] %v4415_v7  ;;  %v6848_v8 = vld [vmem:[#allocation29_spill] sm:$0xff]  ;;  %v6853_v7 = vld [vmem:[#allocation34_spill] sm:$0xff] }
 0x16f   :  { %6846 = vst [vmem:[#allocation211_spill] sm:$0xff] %v4417_v24  ;;  %6847 = vst [vmem:[#allocation212_spill] sm:$0xff] %v4427_v0  ;;  %v4431_v45 = vmul.f32 %v3529_v2, %v6848_v8  ;;  %v4434_v55 = vmul.f32 0.0001, %v6848_v8  ;;  %v4437_v24 = vmul.f32 0.0001, %v6851_v50  ;;  %v4455_v8 = vmul.f32 %v3543_v13, %v6853_v7 }
 0x170   :  { %v4440_v10 = vmul.f32 0.0001, %v6853_v7  ;;  %6855 = vst [vmem:[#allocation214_spill] sm:$0xff] %v4444_v36  ;;  %6856 = vst [vmem:[#allocation215_spill] sm:$0xff] %v4446_v9  ;;  %v4449_v0 = vmul.f32 0.0001, %v6857_v58 }
 0x171   :  { %6849 = vst [vmem:[#allocation29_spill] sm:$0xff] %v4431_v45  ;;  %6850 = vst [vmem:[#allocation213_spill] sm:$0xff] %v4434_v55  ;;  %v6861_v45 = vld [vmem:[#allocation36_spill] sm:$0xff]  ;;  %v4460_v55 = vmul.f32 0.9, %v146_v46  ;;  %v327_v50 = vpop.f32.mrb[0].mxu0 }
 0x172   :  { %6852 = vst [vmem:[#allocation30_spill] sm:$0xff] %v4437_v24  ;;  %6854 = vst [vmem:[#allocation34_spill] sm:$0xff] %v4440_v10  ;;  %v4458_v24 = vmul.f32 0.0001, %v6861_v45  ;;  %v4462_v10 = vmul.f32 0.9, %v148_v15  ;;  %v4479_v46 = vmul.f32 %v3529_v2, %v6861_v45 }
 0x173   :  { %6858 = vst [vmem:[#allocation35_spill] sm:$0xff] %v4449_v0  ;;  %6859 = vst [vmem:[#allocation216_spill] sm:$0xff] %v4451_v49  ;;  %v6866_v36 = vld [vmem:[#allocation41_spill] sm:$0xff]  ;;  %v149_v7 = vld [vmem:[%s6501_s5 + $0x1e0] sm:$0xff] }
 0x174   :  { %6860 = vst [vmem:[#allocation217_spill] sm:$0xff] %v4455_v8  ;;  %6862 = vst [vmem:[#allocation36_spill] sm:$0xff] %v4458_v24  ;;  %v4469_v0 = vmul.f32 0.0001, %v6866_v36  ;;  %v4483_v15 = vmul.f32 %v3526_v60, %v6866_v36  ;;  %v6870_v58 = vld [vmem:[#allocation42_spill] sm:$0xff]  ;;  %v616_v8 = vmul.f32 0.125, %v327_v50 }
 0x175   :  { %6863 = vst [vmem:[#allocation218_spill] sm:$0xff] %v4460_v55  ;;  %6864 = vst [vmem:[#allocation219_spill] sm:$0xff] %v4462_v10  ;;  %v329_v24 = vpop.f32.mrb[1].mxu0  ;;  %v150_v10 = vld [vmem:[%s6501_s5 + $0x1e8] sm:$0xff]  ;;  %v152_v45 = vld [vmem:[%s6501_s5 + $0x1f8] sm:$0xff] }
 0x176   :  { %6865 = vst [vmem:[#allocation220_spill] sm:$0xff] %v4466_v44  ;;  %6867 = vst [vmem:[#allocation41_spill] sm:$0xff] %v4469_v0  ;;  %v4487_v44 = vmul.f32 %v3543_v13, %v6870_v58  ;;  %v488_v0 = vpop.f32.mrb[0].mxu1  ;;  %v6874_v36 = vld [vmem:[#allocation48_spill] sm:$0xff]  ;;  %v617_v9 = vmul.f32 0.125, %v329_v24  ;;  %v333_v24 = vpop.f32.mrb[2].mxu0 }
 0x177   :  { %6868 = vst [vmem:[#allocation221_spill] sm:$0xff] %v4479_v46  ;;  %6869 = vst [vmem:[#allocation222_spill] sm:$0xff] %v4483_v15  ;;  %v6872_v46 = vld [vmem:[#allocation43_spill] sm:$0xff]  ;;  %v4501_v15 = vmul.f32 %v3529_v2, %v6874_v36  ;;  %v618_v49 = vmul.f32 0.125, %v488_v0  ;;  %v490_v48 = vpop.f32.mrb[1].mxu1  ;;  %v6888_v13 = vld [vmem:[#allocation65_spill] sm:$0xff] }
 0x178   :  { %6871 = vst [vmem:[#allocation42_spill] sm:$0xff] %v4487_v44  ;;  %v4497_v55 = vmul.f32 %v3523_v59, %v6872_v46  ;;  %v6876_v44 = vld [vmem:[#allocation49_spill] sm:$0xff]  ;;  %v4508_v52 = vmul.f32 0.0001, %v6870_v58  ;;  %6880 = vst [vmem:[#allocation50_spill] sm:$0xff] %v4512_v4  ;;  %v6881_v59 = vld [vmem:[#allocation67_spill] sm:$0xff] }
 0x179   :  { %6875 = vst [vmem:[#allocation48_spill] sm:$0xff] %v4501_v15  ;;  %v4505_v50 = vmul.f32 %v3526_v60, %v6876_v44  ;;  %v619_v51 = vmul.f32 0.125, %v490_v48  ;;  %v4515_v34 = vmul.f32 0.9, %v149_v7  ;;  %v4517_v2 = vmul.f32 0.9, %v151_v21 }
 0x17a   :  { %6873 = vst [vmem:[#allocation43_spill] sm:$0xff] %v4497_v55  ;;  %6878 = vst [vmem:[#allocation223_spill] sm:$0xff] %v4508_v52  ;;  %v785_v55 = vsub.f32 %v616_v8, %v6881_v59  ;;  %v6884_v36 = vld [vmem:[#allocation79_spill] sm:$0xff]  ;;  %v6885_v44 = vld [vmem:[#allocation61_spill] sm:$0xff]  ;;  %v4523_v58 = vmul.f32 0.9, %v152_v45 }
 0x17b   :  { %6877 = vst [vmem:[#allocation49_spill] sm:$0xff] %v4505_v50  ;;  %6882 = vst [vmem:[#allocation67_spill] sm:$0xff] %v4515_v34  ;;  %v787_v60 = vsub.f32 %v618_v49, %v6884_v36  ;;  %v786_v0 = vsub.f32 %v617_v9, %v6885_v44  ;;  %v4521_v50 = vmul.f32 0.9, %v150_v10  ;;  %v788_v47 = vsub.f32 %v619_v51, %v6888_v13  ;;  %v494_v8 = vpop.f32.mrb[2].mxu1  ;;  %v335_v48 = vpop.f32.mrb[3].mxu0 }
 0x17c   :  { %6883 = vst [vmem:[#allocation224_spill] sm:$0xff] %v4517_v2  ;;  %6887 = vst [vmem:[#allocation61_spill] sm:$0xff] %v4523_v58  ;;  %v870_v15 = vmul.f32 %v4221_v30, %v785_v55  ;;  %v620_v4 = vmul.f32 0.125, %v333_v24  ;;  %v4528_v7 = vmul.f32 0.0001, %v6872_v46  ;;  %v622_v9 = vmul.f32 0.125, %v494_v8 }
 0x17d   :  { %6886 = vst [vmem:[#allocation79_spill] sm:$0xff] %v4521_v50  ;;  %v872_v21 = vmul.f32 %v4240_v53, %v787_v60  ;;  %v871_v49 = vmul.f32 %v4272_v41, %v786_v0  ;;  %v621_v59 = vmul.f32 0.125, %v335_v48  ;;  %v496_v10 = vpop.f32.mrb[3].mxu1  ;;  %v6890_v36 = vld [vmem:[#allocation63_spill] sm:$0xff]  ;;  %v873_v44 = vmul.f32 %v4284_v19, %v788_v47  ;;  %v6891_v55 = vld [vmem:[#allocation74_spill] sm:$0xff]  ;;  %v6892_v24 = vld [vmem:[#allocation68_spill] sm:$0xff] }
 0x17e   :  { %6889 = vst [vmem:[#allocation65_spill] sm:$0xff] %v4528_v7  ;;  %v998_v45 = vadd.f32 %v6890_v36, %v870_v15  ;;  %v789_v58 = vsub.f32 %v620_v4, %v6891_v55  ;;  %v623_v51 = vmul.f32 0.125, %v496_v10  ;;  %v6893_v50 = vld [vmem:[#allocation69_spill] sm:$0xff]  ;;  %v6894_v46 = vld [vmem:[#allocation84_spill] sm:$0xff]  ;;  %v6895_v34 = vld [vmem:[#allocation62_spill] sm:$0xff]  ;;  %v339_v52 = vpop.f32.mrb[4].mxu0 }
 0x17f   :  { %v1000_v13 = vadd.f32 %v6892_v24, %v872_v21  ;;  %v999_v2 = vadd.f32 %v6893_v50, %v871_v49  ;;  %v791_v7 = vsub.f32 %v622_v9, %v6894_v46  ;;  %v790_v60 = vsub.f32 %v621_v59, %v6895_v34  ;;  %v6896_v0 = vld [vmem:[#allocation64_spill] sm:$0xff]  ;;  %v6898_v48 = vld [vmem:[#allocation73_spill] sm:$0xff]  ;;  %v6899_v47 = vld [vmem:[#allocation66_spill] sm:$0xff]  ;;  %v500_v4 = vpop.f32.mrb[4].mxu1  ;;  %v341_v10 = vpop.f32.mrb[5].mxu0 }
 0x180   :  { %v4540_v8 = vadd.f32 %v6896_v0, %v998_v45  ;;  %v1001_v29 = vadd.f32 %v6898_v48, %v873_v44  ;;  %v874_v15 = vmul.f32 %v4221_v30, %v789_v58  ;;  %v792_v36 = vsub.f32 %v623_v51, %v6899_v47  ;;  %v6900_v55 = vld [vmem:[#allocation71_spill] sm:$0xff]  ;;  %v6902_v50 = vld [vmem:[#allocation72_spill] sm:$0xff]  ;;  %v502_v59 = vpop.f32.mrb[5].mxu1  ;;  %v345_v47 = vpop.f32.mrb[6].mxu0 }
 0x181   :  { %v4546_v21 = vadd.f32 %v6900_v55, %v1000_v13  ;;  %v4549_v49 = vadd.f32 %v6902_v50, %v999_v2  ;;  %v876_v34 = vmul.f32 %v4240_v53, %v791_v7  ;;  %v875_v9 = vmul.f32 %v4272_v41, %v790_v60  ;;  %v6904_v45 = vld [vmem:[#allocation75_spill] sm:$0xff]  ;;  %v6906_v44 = vld [vmem:[#allocation76_spill] sm:$0xff]  ;;  %v6908_v2 = vld [vmem:[#allocation77_spill] sm:$0xff] }
 0x182   :  { %6897 = vst [vmem:[#allocation63_spill] sm:$0xff] %v4540_v8  ;;  %v4554_v24 = vadd.f32 %v6904_v45, %v1001_v29  ;;  %v1002_v58 = vadd.f32 %v6906_v44, %v874_v15  ;;  %v877_v51 = vmul.f32 %v4284_v19, %v792_v36  ;;  %v2651_v13 = vld [vmem:[%s6500_s4 + $0x1f0] sm:$0xff]  ;;  %v2652_v29 = vld [vmem:[%s6500_s4 + $0x1e8] sm:$0xff]  ;;  %v2653_v15 = vld [vmem:[%s6500_s4 + $0x1f8] sm:$0xff]  ;;  %v4576_v55 = vmul.f32 3.0, %v4540_v8 }
 0x183   :  { %6901 = vst [vmem:[#allocation74_spill] sm:$0xff] %v4546_v21  ;;  %6903 = vst [vmem:[#allocation68_spill] sm:$0xff] %v4549_v49  ;;  %v4561_v46 = vmul.f32 0.0001, %v2651_v13  ;;  %v1004_v0 = vadd.f32 %v6908_v2, %v876_v34  ;;  %v6909_v48 = vld [vmem:[#allocation80_spill] sm:$0xff]  ;;  %v6913_v50 = vld [vmem:[#allocation83_spill] sm:$0xff] }
 0x184   :  { %6905 = vst [vmem:[#allocation69_spill] sm:$0xff] %v4554_v24  ;;  %v1003_v7 = vadd.f32 %v6909_v48, %v875_v9  ;;  %v4568_v60 = vmul.f32 0.0001, %v2652_v29  ;;  %v4573_v36 = vmul.f32 0.0001, %v2653_v15  ;;  %6912 = vst [vmem:[#allocation73_spill] sm:$0xff] %v4576_v55  ;;  %v4579_v34 = vadd.f32 %v6913_v50, %v1002_v58 }
 0x185   :  { %6907 = vst [vmem:[#allocation84_spill] sm:$0xff] %v4561_v46  ;;  %v6915_v9 = vld [vmem:[#allocation81_spill] sm:$0xff]  ;;  %v624_v44 = vmul.f32 0.125, %v339_v52  ;;  %v506_v13 = vpop.f32.mrb[6].mxu1  ;;  %v347_v2 = vpop.f32.mrb[7].mxu0  ;;  %v4583_v48 = vmul.f32 3.0, %v4546_v21 }
 0x186   :  { %6910 = vst [vmem:[#allocation62_spill] sm:$0xff] %v4568_v60  ;;  %6911 = vst [vmem:[#allocation64_spill] sm:$0xff] %v4573_v36  ;;  %v1005_v45 = vadd.f32 %v6915_v9, %v877_v51  ;;  %v4586_v29 = vmul.f32 3.0, %v4549_v49  ;;  %v626_v60 = vmul.f32 0.125, %v500_v4  ;;  %v625_v15 = vmul.f32 0.125, %v341_v10  ;;  %v508_v36 = vpop.f32.mrb[7].mxu1 }
 0x187   :  { %6914 = vst [vmem:[#allocation66_spill] sm:$0xff] %v4579_v34  ;;  %6916 = vst [vmem:[#allocation71_spill] sm:$0xff] %v4583_v48  ;;  %v4589_v8 = vmul.f32 3.0, %v4554_v24  ;;  %v6919_v46 = vld [vmem:[#allocation85_spill] sm:$0xff]  ;;  %v6920_v50 = vld [vmem:[#allocation78_spill] sm:$0xff]  ;;  %v627_v52 = vmul.f32 0.125, %v502_v59 }
 0x188   :  { %6917 = vst [vmem:[#allocation72_spill] sm:$0xff] %v4586_v29  ;;  %v4592_v58 = vadd.f32 %v6919_v46, %v1004_v0  ;;  %v793_v51 = vsub.f32 %v624_v44, %v6920_v50  ;;  %v4596_v9 = vmul.f32 3.0, %v4579_v34  ;;  %v6922_v21 = vld [vmem:[#allocation87_spill] sm:$0xff]  ;;  %v6924_v49 = vld [vmem:[#allocation86_spill] sm:$0xff]  ;;  %v351_v55 = vpop.f32.mrb[8].mxu0  ;;  %v4604_v24 = vadd.f32 %v6926_v5, %v1005_v45  ;;  %v512_v59 = vpop.f32.mrb[8].mxu1 }
 0x189   :  { %6918 = vst [vmem:[#allocation75_spill] sm:$0xff] %v4589_v8  ;;  %v4599_v48 = vadd.f32 %v6922_v21, %v1003_v7  ;;  %v795_v29 = vsub.f32 %v626_v60, %v6924_v49  ;;  %v6925_v4 = vld [vmem:[#allocation70_spill] sm:$0xff]  ;;  %v628_v44 = vmul.f32 0.125, %v345_v47  ;;  %v353_v50 = vpop.f32.mrb[9].mxu0  ;;  %v630_v7 = vmul.f32 0.125, %v506_v13  ;;  %v514_v49 = vpop.f32.mrb[9].mxu1 }
 0x18a   :  { %6921 = vst [vmem:[#allocation76_spill] sm:$0xff] %v4596_v9  ;;  %v794_v10 = vsub.f32 %v625_v15, %v6925_v4  ;;  %6927 = vst [vmem:[#allocation80_spill] sm:$0xff] %v4604_v24  ;;  %v878_v46 = vmul.f32 %v4221_v30, %v793_v51  ;;  %v6928_v0 = vld [vmem:[#allocation82_spill] sm:$0xff]  ;;  %v629_v9 = vmul.f32 0.125, %v347_v2  ;;  %v6929_v60 = vld [vmem:[#allocation91_spill] sm:$0xff]  ;;  %v631_v61 = vmul.f32 0.125, %v508_v36 }
 0x18b   :  { %6923 = vst [vmem:[#allocation77_spill] sm:$0xff] %v4599_v48  ;;  %v796_v8 = vsub.f32 %v627_v52, %v6928_v0  ;;  %v880_v34 = vmul.f32 %v4240_v53, %v795_v29  ;;  %v6930_v5 = vld [vmem:[#allocation89_spill] sm:$0xff]  ;;  %v6931_v51 = vld [vmem:[#allocation92_spill] sm:$0xff]  ;;  %v6933_v0 = vld [vmem:[#allocation90_spill] sm:$0xff]  ;;  %v357_v39 = vpop.f32.mrb[10].mxu0 }
 0x18c   :  { %v879_v21 = vmul.f32 %v4272_v41, %v794_v10  ;;  %v1006_v15 = vadd.f32 %v6929_v60, %v878_v46  ;;  %v797_v45 = vsub.f32 %v628_v44, %v6930_v5  ;;  %v6932_v52 = vld [vmem:[#allocation96_spill] sm:$0xff]  ;;  %v799_v31 = vsub.f32 %v630_v7, %v6933_v0  ;;  %v6935_v10 = vld [vmem:[#allocation95_spill] sm:$0xff]  ;;  %v6937_v2 = vld [vmem:[#allocation101_spill] sm:$0xff]  ;;  %v518_v44 = vpop.f32.mrb[10].mxu1  ;;  %v359_v36 = vpop.f32.mrb[11].mxu0 }
 0x18d   :  { %v881_v4 = vmul.f32 %v4284_v19, %v796_v8  ;;  %v1008_v17 = vadd.f32 %v6931_v51, %v880_v34  ;;  %v798_v29 = vsub.f32 %v629_v9, %v6934_v1  ;;  %v6938_v8 = vld [vmem:[#allocation94_spill] sm:$0xff]  ;;  %v6939_v5 = vld [vmem:[#allocation99_spill] sm:$0xff]  ;;  %v520_v7 = vpop.f32.mrb[11].mxu1  ;;  %v6947_v0 = vld [vmem:[#allocation105_spill] sm:$0xff] }
 0x18e   :  { %v1007_v47 = vadd.f32 %v6932_v52, %v879_v21  ;;  %v4618_v13 = vadd.f32 %v6935_v10, %v1006_v15  ;;  %v882_v46 = vmul.f32 %v4221_v30, %v797_v45  ;;  %v800_v60 = vsub.f32 %v631_v61, %v6938_v8  ;;  %v6941_v21 = vld [vmem:[#allocation100_spill] sm:$0xff]  ;;  %v4647_v10 = vpop.f32.mrb[12].mxu0 }
 0x18f   :  { %v1009_v11 = vadd.f32 %v6937_v2, %v881_v4  ;;  %v4624_v34 = vadd.f32 %v6939_v5, %v1008_v17  ;;  %v884_v1 = vmul.f32 %v4240_v53, %v799_v31  ;;  %v883_v9 = vmul.f32 %v4272_v41, %v798_v29  ;;  %v6943_v4 = vld [vmem:[#allocation103_spill] sm:$0xff]  ;;  %v4656_v5 = vpop.f32.mrb[12].mxu1 }
 0x190   :  { %6936 = vst [vmem:[#allocation83_spill] sm:$0xff] %v4618_v13  ;;  %v4627_v51 = vadd.f32 %v6941_v21, %v1007_v47  ;;  %v4632_v15 = vmul.f32 3.0, %v4592_v58  ;;  %v1010_v61 = vadd.f32 %v3823_v56, %v882_v46  ;;  %v885_v52 = vmul.f32 %v4284_v19, %v800_v60  ;;  %v6951_v56 = vld [vmem:[#allocation106_spill] sm:$0xff]  ;;  %v4658_v21 = vpop.f32.mrb[13].mxu0 }
 0x191   :  { %6940 = vst [vmem:[#allocation81_spill] sm:$0xff] %v4624_v34  ;;  %v4635_v45 = vadd.f32 %v6943_v4, %v1009_v11  ;;  %v4640_v17 = vmul.f32 3.0, %v4599_v48  ;;  %v4643_v47 = vmul.f32 3.0, %v4604_v24  ;;  %v1012_v31 = vadd.f32 %v3825_v28, %v884_v1  ;;  %v6949_v11 = vld [vmem:[#allocation109_spill] sm:$0xff] }
 0x192   :  { %6942 = vst [vmem:[#allocation85_spill] sm:$0xff] %v4627_v51  ;;  %v1011_v29 = vadd.f32 %v6947_v0, %v883_v9  ;;  %v4650_v2 = vmul.f32 3.0, %v4618_v13  ;;  %v4653_v8 = vadd.f32 %v6949_v11, %v1010_v61  ;;  %v1013_v46 = vadd.f32 %v6951_v56, %v885_v52  ;;  %v4666_v0 = vpop.f32.mrb[13].mxu1  ;;  %v6955_v11 = vld [vmem:[#allocation110_spill] sm:$0xff] }
 0x193   :  { %6944 = vst [vmem:[#allocation78_spill] sm:$0xff] %v4635_v45  ;;  %6945 = vst [vmem:[#allocation87_spill] sm:$0xff] %v4640_v17  ;;  %v632_v60 = vmul.f32 0.125, %v351_v55  ;;  %v4661_v4 = vmul.f32 3.0, %v4624_v34  ;;  %v4664_v28 = vmul.f32 3.0, %v4627_v51  ;;  %v634_v1 = vmul.f32 0.125, %v512_v59 }
 0x194   :  { %6946 = vst [vmem:[#allocation86_spill] sm:$0xff] %v4643_v47  ;;  %6948 = vst [vmem:[#allocation70_spill] sm:$0xff] %v4650_v2  ;;  %v633_v9 = vmul.f32 0.125, %v353_v50  ;;  %v4669_v61 = vmul.f32 3.0, %v4635_v45  ;;  %v4672_v52 = vadd.f32 %v6955_v11, %v1012_v31  ;;  %v6956_v55 = vld [vmem:[#allocation97_spill] sm:$0xff]  ;;  %v635_v13 = vmul.f32 0.125, %v514_v49 }
 0x195   :  { %6950 = vst [vmem:[#allocation88_spill] sm:$0xff] %v4653_v8  ;;  %6952 = vst [vmem:[#allocation82_spill] sm:$0xff] %v4661_v4  ;;  %v801_v56 = vsub.f32 %v632_v60, %v6956_v55  ;;  %v4676_v24 = vmul.f32 3.0, %v4653_v8  ;;  %v6958_v34 = vld [vmem:[#allocation113_spill] sm:$0xff]  ;;  %v6959_v51 = vld [vmem:[#allocation98_spill] sm:$0xff]  ;;  %v4683_v2 = vpop.f32.mrb[14].mxu0 }
 0x196   :  { %6953 = vst [vmem:[#allocation91_spill] sm:$0xff] %v4664_v28  ;;  %6954 = vst [vmem:[#allocation89_spill] sm:$0xff] %v4669_v61  ;;  %v4679_v4 = vadd.f32 %v6958_v34, %v1011_v29  ;;  %v803_v59 = vsub.f32 %v634_v1, %v6959_v51  ;;  %v6960_v50 = vld [vmem:[#allocation102_spill] sm:$0xff]  ;;  %v6963_v11 = vld [vmem:[#allocation104_spill] sm:$0xff]  ;;  %v636_v49 = vmul.f32 0.125, %v357_v39  ;;  %v4690_v55 = vpop.f32.mrb[14].mxu1 }
 0x197   :  { %6957 = vst [vmem:[#allocation92_spill] sm:$0xff] %v4676_v24  ;;  %v802_v28 = vsub.f32 %v633_v9, %v6960_v50  ;;  %v6961_v45 = vld [vmem:[#allocation114_spill] sm:$0xff]  ;;  %v886_v31 = vmul.f32 %v4221_v30, %v801_v56  ;;  %v804_v60 = vsub.f32 %v635_v13, %v6963_v11  ;;  %v4692_v8 = vpop.f32.mrb[15].mxu0  ;;  %v638_v29 = vmul.f32 0.125, %v518_v44  ;;  %v4696_v9 = vpop.f32.mrb[15].mxu1  ;;  %v6964_v56 = vld [vmem:[#allocation107_spill] sm:$0xff] }
 0x198   :  { %v4686_v61 = vadd.f32 %v6961_v45, %v1013_v46  ;;  %v888_v34 = vmul.f32 %v4240_v53, %v803_v59  ;;  %v637_v1 = vmul.f32 0.125, %v359_v36  ;;  %v805_v50 = vsub.f32 %v636_v49, %v6964_v56  ;;  %v6965_v11 = vld [vmem:[#allocation120_spill] sm:$0xff]  ;;  %v6967_v59 = vld [vmem:[#allocation111_spill] sm:$0xff] }
 0x199   :  { %v887_v51 = vmul.f32 %v4272_v41, %v802_v28  ;;  %v1014_v45 = vadd.f32 %v3883_v40, %v886_v31  ;;  %v889_v46 = vmul.f32 %v4284_v19, %v804_v60  ;;  %v639_v13 = vmul.f32 0.125, %v520_v7  ;;  %v6966_v47 = vld [vmem:[#allocation108_spill] sm:$0xff]  ;;  %v4705_v28 = vpop.f32.mrb[16].mxu0  ;;  %v6968_v44 = vld [vmem:[#allocation119_spill] sm:$0xff]  ;;  %v4713_v7 = vpop.f32.mrb[16].mxu1 }
 0x19a   :  { %6962 = vst [vmem:[#allocation96_spill] sm:$0xff] %v4686_v61  ;;  %v1016_v39 = vadd.f32 %v3885_v18, %v888_v34  ;;  %v807_v48 = vsub.f32 %v638_v29, %v6966_v47  ;;  %v806_v17 = vsub.f32 %v637_v1, %v6967_v59  ;;  %v890_v31 = vmul.f32 %v4221_v30, %v805_v50  ;;  %v6970_v60 = vld [vmem:[#allocation112_spill] sm:$0xff]  ;;  %v4715_v18 = vpop.f32.mrb[17].mxu0  ;;  %v6972_v47 = vld [vmem:[#allocation123_spill] sm:$0xff] }
 0x19b   :  { %v1015_v24 = vadd.f32 %v6965_v11, %v887_v51  ;;  %v4708_v36 = vadd.f32 %v6968_v44, %v1014_v45  ;;  %v1017_v40 = vadd.f32 %v3926_v27, %v889_v46  ;;  %v808_v49 = vsub.f32 %v639_v13, %v6970_v60  ;;  %v4725_v45 = vpop.f32.mrb[17].mxu1  ;;  %v4743_v13 = vpop.f32.mrb[18].mxu0  ;;  %v6980_v60 = vld [vmem:[#allocation115_spill] sm:$0xff] }
 0x19c   :  { %v4718_v34 = vadd.f32 %v3921_v43, %v1016_v39  ;;  %v892_v29 = vmul.f32 %v4240_v53, %v807_v48  ;;  %v891_v1 = vmul.f32 %v4272_v41, %v806_v17  ;;  %v4728_v27 = vmul.f32 3.0, %v4672_v52  ;;  %v4753_v59 = vpop.f32.mrb[18].mxu1  ;;  %v4755_v44 = vpop.f32.mrb[19].mxu0 }
 0x19d   :  { %6969 = vst [vmem:[#allocation90_spill] sm:$0xff] %v4708_v36  ;;  %v4721_v51 = vadd.f32 %v6972_v47, %v1015_v24  ;;  %v4731_v46 = vadd.f32 %v3933_v62, %v1017_v40  ;;  %v1018_v56 = vadd.f32 %v3935_v38, %v890_v31  ;;  %v893_v43 = vmul.f32 %v4284_v19, %v808_v49 }
 0x19e   :  { %6971 = vst [vmem:[#allocation93_spill] sm:$0xff] %v4718_v34  ;;  %v4736_v50 = vmul.f32 3.0, %v4679_v4  ;;  %v4739_v24 = vmul.f32 3.0, %v4686_v61  ;;  %v1020_v48 = vadd.f32 %v3937_v42, %v892_v29  ;;  %v1019_v17 = vadd.f32 %v3943_v20, %v891_v1 }
 0x19f   :  { %6973 = vst [vmem:[#allocation95_spill] sm:$0xff] %v4721_v51  ;;  %6974 = vst [vmem:[#allocation101_spill] sm:$0xff] %v4731_v46  ;;  %v4746_v39 = vmul.f32 3.0, %v4708_v36  ;;  %v4749_v62 = vadd.f32 %v3962_v14, %v1018_v56  ;;  %v1021_v38 = vadd.f32 %v3945_v35, %v893_v43  ;;  %v640_v11 = vmul.f32 0.125, %v4647_v10  ;;  %v4765_v14 = vpop.f32.mrb[19].mxu1  ;;  %v6984_v56 = vld [vmem:[#allocation117_spill] sm:$0xff] }
 0x1a0   :  { %v4758_v42 = vmul.f32 3.0, %v4718_v34  ;;  %v4761_v20 = vmul.f32 3.0, %v4721_v51  ;;  %v642_v40 = vmul.f32 0.125, %v4656_v5  ;;  %v641_v31 = vmul.f32 0.125, %v4658_v21  ;;  %v6983_v5 = vld [vmem:[#allocation116_spill] sm:$0xff]  ;;  %v4783_v51 = vpop.f32.mrb[20].mxu0 }
 0x1a1   :  { %6975 = vst [vmem:[#allocation94_spill] sm:$0xff] %v4749_v62  ;;  %v4768_v35 = vmul.f32 3.0, %v4731_v46  ;;  %v4771_v10 = vadd.f32 %v3965_v63, %v1020_v48  ;;  %v809_v49 = vsub.f32 %v640_v11, %v6980_v60  ;;  %v643_v47 = vmul.f32 0.125, %v4666_v0  ;;  %v6985_v46 = vld [vmem:[#allocation130_spill] sm:$0xff]  ;;  %v4791_v60 = vpop.f32.mrb[20].mxu1 }
 0x1a2   :  { %6976 = vst [vmem:[#allocation99_spill] sm:$0xff] %v4758_v42  ;;  %6977 = vst [vmem:[#allocation100_spill] sm:$0xff] %v4761_v20  ;;  %v4776_v29 = vmul.f32 3.0, %v4749_v62  ;;  %v4779_v1 = vadd.f32 %v3979_v6, %v1019_v17  ;;  %v811_v21 = vsub.f32 %v642_v40, %v6983_v5  ;;  %v810_v43 = vsub.f32 %v641_v31, %v6984_v56  ;;  %v6987_v48 = vld [vmem:[#allocation2_spill] sm:$0xff]  ;;  %v4793_v62 = vpop.f32.mrb[21].mxu0 }
 0x1a3   :  { %6978 = vst [vmem:[#allocation103_spill] sm:$0xff] %v4768_v35  ;;  %6979 = vst [vmem:[#allocation105_spill] sm:$0xff] %v4771_v10  ;;  %v4786_v35 = vadd.f32 %v6985_v46, %v1021_v38  ;;  %v894_v63 = vmul.f32 %v4221_v30, %v809_v49  ;;  %v812_v11 = vsub.f32 %v643_v47, %v6987_v48  ;;  %v644_v0 = vmul.f32 0.125, %v4683_v2  ;;  %v4799_v46 = vpop.f32.mrb[21].mxu1  ;;  %v6988_v47 = vld [vmem:[#allocation4_spill] sm:$0xff]  ;;  %v6991_v34 = vld [vmem:[#allocation6_spill] sm:$0xff] }
 0x1a4   :  { %6981 = vst [vmem:[#allocation109_spill] sm:$0xff] %v4776_v29  ;;  %6982 = vst [vmem:[#allocation106_spill] sm:$0xff] %v4779_v1  ;;  %v896_v6 = vmul.f32 %v4240_v53, %v811_v21  ;;  %v895_v17 = vmul.f32 %v4272_v41, %v810_v43  ;;  %v646_v40 = vmul.f32 0.125, %v4690_v55  ;;  %v645_v31 = vmul.f32 0.125, %v4692_v8  ;;  %v6989_v48 = vld [vmem:[#allocation136_spill] sm:$0xff]  ;;  %v6990_v29 = vld [vmem:[#allocation5_spill] sm:$0xff] }
 0x1a5   :  { %6986 = vst [vmem:[#allocation110_spill] sm:$0xff] %v4786_v35  ;;  %v1022_v38 = vadd.f32 %v3995_v57, %v894_v63  ;;  %v897_v49 = vmul.f32 %v4284_v19, %v812_v11  ;;  %v813_v2 = vsub.f32 %v644_v0, %v6988_v47  ;;  %v647_v5 = vmul.f32 0.125, %v4696_v9  ;;  %v4809_v20 = vpop.f32.mrb[22].mxu0  ;;  %v6992_v8 = vld [vmem:[#allocation135_spill] sm:$0xff]  ;;  %v6994_v11 = vld [vmem:[#allocation10_spill] sm:$0xff]  ;;  %v4817_v9 = vpop.f32.mrb[22].mxu1 }
 0x1a6   :  { %v1024_v56 = vadd.f32 %v3997_v16, %v896_v6  ;;  %v1023_v21 = vadd.f32 %v6989_v48, %v895_v17  ;;  %v815_v43 = vsub.f32 %v646_v40, %v6990_v29  ;;  %v814_v55 = vsub.f32 %v645_v31, %v6991_v34  ;;  %v4819_v16 = vpop.f32.mrb[23].mxu0  ;;  %v4829_v40 = vpop.f32.mrb[23].mxu1 }
 0x1a7   :  { %v4812_v36 = vadd.f32 %v6992_v8, %v1022_v38  ;;  %v1025_v57 = vadd.f32 %v4038_v12, %v897_v49  ;;  %v898_v63 = vmul.f32 %v4221_v30, %v813_v2  ;;  %v816_v0 = vsub.f32 %v647_v5, %v6994_v11  ;;  %v7000_v2 = vld [vmem:[#allocation139_spill] sm:$0xff]  ;;  %v4857_v8 = vpop.f32.mrb[24].mxu1 }
 0x1a8   :  { %v4822_v6 = vmul.f32 3.0, %v4771_v10  ;;  %v4825_v34 = vmul.f32 3.0, %v4779_v1  ;;  %v900_v29 = vmul.f32 %v4240_v53, %v815_v43  ;;  %v899_v17 = vmul.f32 %v4272_v41, %v814_v55  ;;  %v4847_v55 = vpop.f32.mrb[24].mxu0  ;;  %v7061_v1 = vld [vmem:[#allocation37_spill] sm:$0xff]  ;;  %v7100_v10 = vld [vmem:[#allocation47_spill] sm:$0xff] }
 0x1a9   :  { %6993 = vst [vmem:[#allocation97_spill] sm:$0xff] %v4812_v36  ;;  %v4832_v12 = vadd.f32 %v4033_v33, %v1024_v56  ;;  %v4835_v31 = vadd.f32 %v4045_v37, %v1025_v57  ;;  %v1026_v38 = vadd.f32 %v4047_v3, %v898_v63  ;;  %v901_v49 = vmul.f32 %v4284_v19, %v816_v0  ;;  %v7009_v0 = vld [vmem:[#allocation11_spill] sm:$0xff] }
 0x1aa   :  { %6995 = vst [vmem:[#allocation113_spill] sm:$0xff] %v4822_v6  ;;  %6996 = vst [vmem:[#allocation98_spill] sm:$0xff] %v4825_v34  ;;  %v4840_v47 = vmul.f32 3.0, %v4786_v35  ;;  %v4843_v5 = vadd.f32 %v7000_v2, %v1023_v21  ;;  %v1028_v48 = vadd.f32 %v4049_v25, %v900_v29  ;;  %v1027_v43 = vadd.f32 %v4055_v23, %v899_v17  ;;  %v4859_v21 = vpop.f32.mrb[25].mxu0  ;;  %v7101_v6 = vld [vmem:[#allocation51_spill] sm:$0xff] }
 0x1ab   :  { %6997 = vst [vmem:[#allocation102_spill] sm:$0xff] %v4832_v12  ;;  %6998 = vst [vmem:[#allocation114_spill] sm:$0xff] %v4835_v31  ;;  %v4850_v33 = vmul.f32 3.0, %v4812_v36  ;;  %v4853_v37 = vadd.f32 %v4074_v26, %v1026_v38  ;;  %v1029_v3 = vadd.f32 %v4057_v54, %v901_v49  ;;  %v648_v56 = vmul.f32 0.125, %v4705_v28  ;;  %v4869_v26 = vpop.f32.mrb[25].mxu1  ;;  %v7007_v28 = vld [vmem:[#allocation146_spill] sm:$0xff] }
 0x1ac   :  { %6999 = vst [vmem:[#allocation104_spill] sm:$0xff] %v4840_v47  ;;  %7001 = vst [vmem:[#allocation107_spill] sm:$0xff] %v4843_v5  ;;  %v4862_v25 = vadd.f32 %v4077_v32, %v1028_v48  ;;  %v4865_v23 = vadd.f32 %v4091_v22, %v1027_v43  ;;  %v650_v57 = vmul.f32 0.125, %v4713_v7  ;;  %v649_v63 = vmul.f32 0.125, %v4715_v18  ;;  %v7012_v7 = vld [vmem:[#allocation12_spill] sm:$0xff]  ;;  %v7013_v38 = vld [vmem:[#allocation13_spill] sm:$0xff] }
 0x1ad   :  { %7002 = vst [vmem:[#allocation120_spill] sm:$0xff] %v4850_v33  ;;  %7003 = vst [vmem:[#allocation108_spill] sm:$0xff] %v4853_v37  ;;  %v4872_v54 = vmul.f32 3.0, %v4832_v12  ;;  %v4875_v11 = vadd.f32 %v7007_v28, %v1029_v3  ;;  %v817_v29 = vsub.f32 %v648_v56, %v7009_v0  ;;  %v651_v32 = vmul.f32 0.125, %v4725_v45  ;;  %v4887_v2 = vpop.f32.mrb[26].mxu0  ;;  %v7015_v3 = vld [vmem:[#allocation17_spill] sm:$0xff] }
 0x1ae   :  { %7004 = vst [vmem:[#allocation111_spill] sm:$0xff] %v4862_v25  ;;  %7005 = vst [vmem:[#allocation119_spill] sm:$0xff] %v4865_v23  ;;  %v4880_v17 = vmul.f32 3.0, %v4843_v5  ;;  %v4883_v22 = vmul.f32 3.0, %v4835_v31  ;;  %v819_v18 = vsub.f32 %v650_v57, %v7012_v7  ;;  %v818_v49 = vsub.f32 %v649_v63, %v7013_v38  ;;  %v4895_v28 = vpop.f32.mrb[26].mxu1  ;;  %v4897_v0 = vpop.f32.mrb[27].mxu0 }
 0x1af   :  { %7006 = vst [vmem:[#allocation112_spill] sm:$0xff] %v4872_v54  ;;  %7008 = vst [vmem:[#allocation123_spill] sm:$0xff] %v4875_v11  ;;  %v4890_v48 = vmul.f32 3.0, %v4853_v37  ;;  %v902_v43 = vmul.f32 %v4221_v30, %v817_v29  ;;  %v820_v56 = vsub.f32 %v651_v32, %v7015_v3  ;;  %v652_v45 = vmul.f32 0.125, %v4743_v13  ;;  %v4903_v38 = vpop.f32.mrb[27].mxu1  ;;  %v7016_v37 = vld [vmem:[#allocation149_spill] sm:$0xff] }
 0x1b0   :  { %7010 = vst [vmem:[#allocation115_spill] sm:$0xff] %v4880_v17  ;;  %7011 = vst [vmem:[#allocation116_spill] sm:$0xff] %v4883_v22  ;;  %v904_v31 = vmul.f32 %v4240_v53, %v819_v18  ;;  %v903_v57 = vmul.f32 %v4272_v41, %v818_v49  ;;  %v654_v63 = vmul.f32 0.125, %v4753_v59  ;;  %v653_v7 = vmul.f32 0.125, %v4755_v44  ;;  %v7017_v3 = vld [vmem:[#allocation18_spill] sm:$0xff]  ;;  %v7020_v12 = vld [vmem:[#allocation19_spill] sm:$0xff] }
 0x1b1   :  { %7014 = vst [vmem:[#allocation117_spill] sm:$0xff] %v4890_v48  ;;  %v1030_v29 = vadd.f32 %v7016_v37, %v902_v43  ;;  %v905_v32 = vmul.f32 %v4284_v19, %v820_v56  ;;  %v821_v13 = vsub.f32 %v652_v45, %v7017_v3  ;;  %v655_v48 = vmul.f32 0.125, %v4765_v14  ;;  %v7018_v5 = vld [vmem:[#allocation150_spill] sm:$0xff]  ;;  %v7021_v54 = vld [vmem:[#allocation20_spill] sm:$0xff]  ;;  %v4913_v36 = vpop.f32.mrb[28].mxu0  ;;  %v7022_v44 = vld [vmem:[#allocation153_spill] sm:$0xff] }
 0x1b2   :  { %v1032_v22 = vadd.f32 %v7018_v5, %v904_v31  ;;  %v7019_v17 = vld [vmem:[#allocation154_spill] sm:$0xff]  ;;  %v823_v49 = vsub.f32 %v654_v63, %v7020_v12  ;;  %v822_v59 = vsub.f32 %v653_v7, %v7021_v54  ;;  %v7024_v37 = vld [vmem:[#allocation159_spill] sm:$0xff]  ;;  %v7025_v45 = vld [vmem:[#allocation24_spill] sm:$0xff]  ;;  %v4921_v14 = vpop.f32.mrb[28].mxu1  ;;  %v4923_v31 = vpop.f32.mrb[29].mxu0 }
 0x1b3   :  { %v1031_v18 = vadd.f32 %v7019_v17, %v903_v57  ;;  %v4916_v35 = vadd.f32 %v7022_v44, %v1030_v29  ;;  %v1033_v43 = vadd.f32 %v7024_v37, %v905_v32  ;;  %v906_v56 = vmul.f32 %v4221_v30, %v821_v13  ;;  %v7026_v5 = vld [vmem:[#allocation157_spill] sm:$0xff]  ;;  %v7028_v12 = vld [vmem:[#allocation158_spill] sm:$0xff]  ;;  %v4933_v7 = vpop.f32.mrb[29].mxu1 }
 0x1b4   :  { %v824_v3 = vsub.f32 %v655_v48, %v7025_v45  ;;  %v4926_v17 = vadd.f32 %v7026_v5, %v1032_v22  ;;  %v908_v57 = vmul.f32 %v4240_v53, %v823_v49  ;;  %v907_v63 = vmul.f32 %v4272_v41, %v822_v59  ;;  %v7031_v48 = vld [vmem:[#allocation161_spill] sm:$0xff]  ;;  %v7033_v13 = vld [vmem:[#allocation162_spill] sm:$0xff]  ;;  %v7036_v49 = vld [vmem:[#allocation163_spill] sm:$0xff] }
 0x1b5   :  { %7023 = vst [vmem:[#allocation130_spill] sm:$0xff] %v4916_v35  ;;  %v4929_v54 = vadd.f32 %v7028_v12, %v1031_v18  ;;  %v4936_v29 = vmul.f32 3.0, %v4862_v25  ;;  %v4939_v32 = vadd.f32 %v7031_v48, %v1033_v43  ;;  %v1034_v44 = vadd.f32 %v7033_v13, %v906_v56  ;;  %v7037_v45 = vld [vmem:[#allocation165_spill] sm:$0xff]  ;;  %v4951_v12 = vpop.f32.mrb[30].mxu0  ;;  %v7041_v56 = vld [vmem:[#allocation166_spill] sm:$0xff] }
 0x1b6   :  { %7027 = vst [vmem:[#allocation2_spill] sm:$0xff] %v4926_v17  ;;  %v909_v22 = vmul.f32 %v4284_v19, %v824_v3  ;;  %v4944_v37 = vmul.f32 3.0, %v4865_v23  ;;  %v4947_v18 = vmul.f32 3.0, %v4875_v11  ;;  %v1036_v59 = vadd.f32 %v7036_v49, %v908_v57  ;;  %v7039_v43 = vld [vmem:[#allocation169_spill] sm:$0xff]  ;;  %v4961_v23 = vpop.f32.mrb[30].mxu1  ;;  %v4963_v11 = vpop.f32.mrb[31].mxu0 }
 0x1b7   :  { %7029 = vst [vmem:[#allocation4_spill] sm:$0xff] %v4929_v54  ;;  %7030 = vst [vmem:[#allocation136_spill] sm:$0xff] %v4936_v29  ;;  %v1035_v5 = vadd.f32 %v7037_v45, %v907_v63  ;;  %v4954_v25 = vmul.f32 3.0, %v4916_v35  ;;  %v4957_v48 = vadd.f32 %v7039_v43, %v1034_v44  ;;  %v656_v13 = vmul.f32 0.125, %v4783_v51  ;;  %v7044_v63 = vld [vmem:[#allocation173_spill] sm:$0xff]  ;;  %v4973_v44 = vpop.f32.mrb[31].mxu1 }
 0x1b8   :  { %7032 = vst [vmem:[#allocation5_spill] sm:$0xff] %v4939_v32  ;;  %7034 = vst [vmem:[#allocation6_spill] sm:$0xff] %v4944_v37  ;;  %v1037_v3 = vadd.f32 %v7041_v56, %v909_v22  ;;  %v658_v45 = vmul.f32 0.125, %v4791_v60  ;;  %v657_v35 = vmul.f32 0.125, %v4793_v62  ;;  %v4976_v22 = vmul.f32 3.0, %v4926_v17  ;;  %v7047_v51 = vld [vmem:[#allocation174_spill] sm:$0xff] }
 0x1b9   :  { %7035 = vst [vmem:[#allocation135_spill] sm:$0xff] %v4947_v18  ;;  %7038 = vst [vmem:[#allocation10_spill] sm:$0xff] %v4954_v25  ;;  %v7042_v18 = vld [vmem:[#allocation170_spill] sm:$0xff]  ;;  %v4969_v49 = vadd.f32 %v7044_v63, %v1035_v5  ;;  %v7049_v56 = vld [vmem:[#allocation25_spill] sm:$0xff]  ;;  %v4987_v5 = vmul.f32 3.0, %v4939_v32  ;;  %v4991_v29 = vpop.f32.mrb[32].mxu0 }
 0x1ba   :  { %7040 = vst [vmem:[#allocation139_spill] sm:$0xff] %v4957_v48  ;;  %v4966_v57 = vadd.f32 %v7042_v18, %v1036_v59  ;;  %7046 = vst [vmem:[#allocation12_spill] sm:$0xff] %v4976_v22  ;;  %v4979_v43 = vadd.f32 %v7047_v51, %v1037_v3  ;;  %v825_v25 = vsub.f32 %v656_v13, %v7049_v56  ;;  %v659_v18 = vmul.f32 0.125, %v4799_v46  ;;  %v7052_v60 = vld [vmem:[#allocation26_spill] sm:$0xff]  ;;  %v7053_v63 = vld [vmem:[#allocation27_spill] sm:$0xff]  ;;  %v4999_v56 = vpop.f32.mrb[32].mxu1 }
 0x1bb   :  { %7045 = vst [vmem:[#allocation11_spill] sm:$0xff] %v4969_v49  ;;  %v4984_v59 = vmul.f32 3.0, %v4929_v54  ;;  %7051 = vst [vmem:[#allocation149_spill] sm:$0xff] %v4987_v5  ;;  %v827_v62 = vsub.f32 %v658_v45, %v7052_v60  ;;  %v826_v37 = vsub.f32 %v657_v35, %v7053_v63  ;;  %v4994_v17 = vmul.f32 3.0, %v4957_v48  ;;  %v7055_v13 = vld [vmem:[#allocation31_spill] sm:$0xff]  ;;  %v5001_v54 = vpop.f32.mrb[33].mxu0 }
 0x1bc   :  { %7043 = vst [vmem:[#allocation146_spill] sm:$0xff] %v4966_v57  ;;  %7048 = vst [vmem:[#allocation13_spill] sm:$0xff] %v4979_v43  ;;  %v910_v3 = vmul.f32 %v4221_v30, %v825_v25  ;;  %v828_v51 = vsub.f32 %v659_v18, %v7055_v13  ;;  %v660_v46 = vmul.f32 0.125, %v4809_v20  ;;  %v662_v35 = vmul.f32 0.125, %v4817_v9  ;;  %v5007_v63 = vpop.f32.mrb[33].mxu1  ;;  %v7056_v48 = vld [vmem:[#allocation177_spill] sm:$0xff] }
 0x1bd   :  { %7050 = vst [vmem:[#allocation17_spill] sm:$0xff] %v4984_v59  ;;  %7054 = vst [vmem:[#allocation18_spill] sm:$0xff] %v4994_v17  ;;  %v912_v32 = vmul.f32 %v4240_v53, %v827_v62  ;;  %v911_v45 = vmul.f32 %v4272_v41, %v826_v37  ;;  %v661_v60 = vmul.f32 0.125, %v4819_v16  ;;  %v7057_v13 = vld [vmem:[#allocation32_spill] sm:$0xff]  ;;  %v663_v17 = vmul.f32 0.125, %v4829_v40  ;;  %v7058_v5 = vld [vmem:[#allocation178_spill] sm:$0xff] }
 0x1be   :  { %v1038_v25 = vadd.f32 %v7056_v48, %v910_v3  ;;  %v913_v18 = vmul.f32 %v4284_v19, %v828_v51  ;;  %v829_v20 = vsub.f32 %v660_v46, %v7057_v13  ;;  %v7059_v22 = vld [vmem:[#allocation181_spill] sm:$0xff]  ;;  %v5017_v47 = vpop.f32.mrb[34].mxu0  ;;  %v7062_v16 = vld [vmem:[#allocation180_spill] sm:$0xff]  ;;  %v7065_v46 = vld [vmem:[#allocation38_spill] sm:$0xff]  ;;  %v5025_v40 = vpop.f32.mrb[34].mxu1 }
 0x1bf   :  { %v1040_v59 = vadd.f32 %v7058_v5, %v912_v32  ;;  %v1039_v62 = vadd.f32 %v7059_v22, %v911_v45  ;;  %v7060_v33 = vld [vmem:[#allocation33_spill] sm:$0xff]  ;;  %v830_v9 = vsub.f32 %v661_v60, %v7061_v1  ;;  %v7064_v48 = vld [vmem:[#allocation184_spill] sm:$0xff]  ;;  %v832_v13 = vsub.f32 %v663_v17, %v7065_v46  ;;  %v5027_v32 = vpop.f32.mrb[35].mxu0  ;;  %v7066_v22 = vld [vmem:[#allocation183_spill] sm:$0xff]  ;;  %v5037_v60 = vpop.f32.mrb[35].mxu1 }
 0x1c0   :  { %v831_v37 = vsub.f32 %v662_v35, %v7060_v33  ;;  %v5020_v34 = vadd.f32 %v7062_v16, %v1038_v25  ;;  %v1041_v3 = vadd.f32 %v7064_v48, %v913_v18  ;;  %v914_v51 = vmul.f32 %v4221_v30, %v829_v20  ;;  %v7068_v33 = vld [vmem:[#allocation3_spill] sm:$0xff]  ;;  %v7073_v20 = vld [vmem:[#allocation186_spill] sm:$0xff]  ;;  %v7077_v46 = vld [vmem:[#allocation188_spill] sm:$0xff] }
 0x1c1   :  { %v5030_v5 = vadd.f32 %v7066_v22, %v1040_v59  ;;  %v5033_v1 = vadd.f32 %v7068_v33, %v1039_v62  ;;  %v915_v35 = vmul.f32 %v4272_v41, %v830_v9  ;;  %v5040_v25 = vmul.f32 3.0, %v4966_v57  ;;  %v7071_v17 = vld [vmem:[#allocation7_spill] sm:$0xff]  ;;  %v5055_v33 = vpop.f32.mrb[36].mxu0 }
 0x1c2   :  { %7063 = vst [vmem:[#allocation150_spill] sm:$0xff] %v5020_v34  ;;  %v916_v45 = vmul.f32 %v4240_v53, %v831_v37  ;;  %v5043_v18 = vadd.f32 %v7071_v17, %v1041_v3  ;;  %v1042_v16 = vadd.f32 %v7073_v20, %v914_v51  ;;  %v917_v59 = vmul.f32 %v4284_v19, %v832_v13  ;;  %v7076_v37 = vld [vmem:[#allocation187_spill] sm:$0xff]  ;;  %v7079_v3 = vld [vmem:[#allocation8_spill] sm:$0xff]  ;;  %v7081_v51 = vld [vmem:[#allocation189_spill] sm:$0xff] }
 0x1c3   :  { %7067 = vst [vmem:[#allocation154_spill] sm:$0xff] %v5030_v5  ;;  %7069 = vst [vmem:[#allocation19_spill] sm:$0xff] %v5033_v1  ;;  %v5048_v48 = vmul.f32 3.0, %v4969_v49  ;;  %v5051_v62 = vmul.f32 3.0, %v4979_v43  ;;  %v1043_v22 = vadd.f32 %v7077_v46, %v915_v35  ;;  %v5058_v57 = vmul.f32 3.0, %v5020_v34  ;;  %v5065_v49 = vpop.f32.mrb[36].mxu1 }
 0x1c4   :  { %7070 = vst [vmem:[#allocation20_spill] sm:$0xff] %v5040_v25  ;;  %7072 = vst [vmem:[#allocation153_spill] sm:$0xff] %v5043_v18  ;;  %v1044_v9 = vadd.f32 %v7076_v37, %v916_v45  ;;  %v5061_v17 = vadd.f32 %v7079_v3, %v1042_v16  ;;  %v1045_v13 = vadd.f32 %v7081_v51, %v917_v59  ;;  %v664_v20 = vmul.f32 0.125, %v4847_v55  ;;  %v5067_v43 = vpop.f32.mrb[37].mxu0  ;;  %v7084_v35 = vld [vmem:[#allocation14_spill] sm:$0xff]  ;;  %v5077_v16 = vpop.f32.mrb[37].mxu1 }
 0x1c5   :  { %7074 = vst [vmem:[#allocation159_spill] sm:$0xff] %v5048_v48  ;;  %7075 = vst [vmem:[#allocation24_spill] sm:$0xff] %v5051_v62  ;;  %v7082_v62 = vld [vmem:[#allocation9_spill] sm:$0xff]  ;;  %v5073_v37 = vadd.f32 %v7084_v35, %v1043_v22  ;;  %v666_v46 = vmul.f32 0.125, %v4857_v8  ;;  %v665_v34 = vmul.f32 0.125, %v4859_v21  ;;  %v5080_v59 = vmul.f32 3.0, %v5030_v5 }
 0x1c6   :  { %7078 = vst [vmem:[#allocation157_spill] sm:$0xff] %v5058_v57  ;;  %7080 = vst [vmem:[#allocation158_spill] sm:$0xff] %v5061_v17  ;;  %v5070_v45 = vadd.f32 %v7082_v62, %v1044_v9  ;;  %v7087_v55 = vld [vmem:[#allocation15_spill] sm:$0xff]  ;;  %v667_v62 = vmul.f32 0.125, %v4869_v26  ;;  %v5088_v9 = vmul.f32 3.0, %v5033_v1  ;;  %v5091_v22 = vmul.f32 3.0, %v5043_v18 }
 0x1c7   :  { %7085 = vst [vmem:[#allocation162_spill] sm:$0xff] %v5073_v37  ;;  %7086 = vst [vmem:[#allocation163_spill] sm:$0xff] %v5080_v59  ;;  %v5083_v3 = vadd.f32 %v7087_v55, %v1045_v13  ;;  %v7089_v51 = vld [vmem:[#allocation39_spill] sm:$0xff]  ;;  %v7092_v8 = vld [vmem:[#allocation40_spill] sm:$0xff]  ;;  %v5095_v25 = vpop.f32.mrb[38].mxu0  ;;  %v5098_v5 = vmul.f32 3.0, %v5061_v17 }
 0x1c8   :  { %7083 = vst [vmem:[#allocation161_spill] sm:$0xff] %v5070_v45  ;;  %v833_v57 = vsub.f32 %v664_v20, %v7089_v51  ;;  %7090 = vst [vmem:[#allocation169_spill] sm:$0xff] %v5088_v9  ;;  %v835_v21 = vsub.f32 %v666_v46, %v7092_v8  ;;  %v7093_v35 = vld [vmem:[#allocation44_spill] sm:$0xff]  ;;  %v7095_v20 = vld [vmem:[#allocation45_spill] sm:$0xff]  ;;  %v668_v26 = vmul.f32 0.125, %v4887_v2  ;;  %v5103_v51 = vpop.f32.mrb[38].mxu1 }
 0x1c9   :  { %7088 = vst [vmem:[#allocation165_spill] sm:$0xff] %v5083_v3  ;;  %7091 = vst [vmem:[#allocation166_spill] sm:$0xff] %v5091_v22  ;;  %v834_v48 = vsub.f32 %v665_v34, %v7093_v35  ;;  %v836_v55 = vsub.f32 %v667_v62, %v7095_v20  ;;  %v5105_v1 = vpop.f32.mrb[39].mxu0  ;;  %v670_v34 = vmul.f32 0.125, %v4895_v28  ;;  %v669_v8 = vmul.f32 0.125, %v4897_v0  ;;  %v5111_v35 = vpop.f32.mrb[39].mxu1 }
 0x1ca   :  { %7094 = vst [vmem:[#allocation170_spill] sm:$0xff] %v5098_v5  ;;  %v918_v13 = vmul.f32 %v4221_v30, %v833_v57  ;;  %v920_v18 = vmul.f32 %v4240_v53, %v835_v21  ;;  %v7096_v17 = vld [vmem:[#allocation195_spill] sm:$0xff]  ;;  %v7097_v20 = vld [vmem:[#allocation46_spill] sm:$0xff]  ;;  %v671_v5 = vmul.f32 0.125, %v4903_v38  ;;  %v7098_v22 = vld [vmem:[#allocation196_spill] sm:$0xff]  ;;  %v5121_v42 = vpop.f32.mrb[40].mxu0 }
 0x1cb   :  { %v919_v46 = vmul.f32 %v4272_v41, %v834_v48  ;;  %v921_v62 = vmul.f32 %v4284_v19, %v836_v55  ;;  %v837_v2 = vsub.f32 %v668_v26, %v7097_v20  ;;  %v7099_v59 = vld [vmem:[#allocation199_spill] sm:$0xff]  ;;  %v839_v48 = vsub.f32 %v670_v34, %v7100_v10  ;;  %v7102_v0 = vld [vmem:[#allocation16_spill] sm:$0xff]  ;;  %v5129_v38 = vpop.f32.mrb[40].mxu1  ;;  %v7108_v10 = vld [vmem:[#allocation22_spill] sm:$0xff] }
 0x1cc   :  { %v1046_v57 = vadd.f32 %v7096_v17, %v918_v13  ;;  %v1048_v9 = vadd.f32 %v7098_v22, %v920_v18  ;;  %v838_v28 = vsub.f32 %v669_v8, %v7101_v6  ;;  %v7104_v17 = vld [vmem:[#allocation202_spill] sm:$0xff]  ;;  %v7105_v26 = vld [vmem:[#allocation52_spill] sm:$0xff]  ;;  %v5131_v18 = vpop.f32.mrb[41].mxu0  ;;  %v5141_v8 = vpop.f32.mrb[41].mxu1 }
 0x1cd   :  { %v1047_v21 = vadd.f32 %v7099_v59, %v919_v46  ;;  %v1049_v13 = vadd.f32 %v7104_v17, %v921_v62  ;;  %v922_v55 = vmul.f32 %v4221_v30, %v837_v2  ;;  %v840_v20 = vsub.f32 %v671_v5, %v7105_v26  ;;  %v7106_v59 = vld [vmem:[#allocation21_spill] sm:$0xff]  ;;  %v7111_v5 = vld [vmem:[#allocation23_spill] sm:$0xff]  ;;  %v7117_v26 = vld [vmem:[#allocation208_spill] sm:$0xff] }
 0x1ce   :  { %v5124_v61 = vadd.f32 %v7102_v0, %v1046_v57  ;;  %v5134_v22 = vadd.f32 %v7106_v59, %v1048_v9  ;;  %v924_v46 = vmul.f32 %v4240_v53, %v839_v48  ;;  %v923_v34 = vmul.f32 %v4272_v41, %v838_v28  ;;  %v7113_v2 = vld [vmem:[#allocation205_spill] sm:$0xff]  ;;  %v7116_v48 = vld [vmem:[#allocation207_spill] sm:$0xff] }
 0x1cf   :  { %v5137_v6 = vadd.f32 %v7108_v10, %v1047_v21  ;;  %v5144_v57 = vmul.f32 3.0, %v5070_v45  ;;  %v5147_v62 = vadd.f32 %v7111_v5, %v1049_v13  ;;  %v1050_v0 = vadd.f32 %v7113_v2, %v922_v55  ;;  %v5159_v10 = vpop.f32.mrb[42].mxu0  ;;  %v7119_v13 = vld [vmem:[#allocation28_spill] sm:$0xff]  ;;  %v7121_v55 = vld [vmem:[#allocation211_spill] sm:$0xff] }
 0x1d0   :  { %7103 = vst [vmem:[#allocation173_spill] sm:$0xff] %v5124_v61  ;;  %7107 = vst [vmem:[#allocation174_spill] sm:$0xff] %v5134_v22  ;;  %v925_v9 = vmul.f32 %v4284_v19, %v840_v20  ;;  %v5152_v17 = vmul.f32 3.0, %v5073_v37  ;;  %v5155_v21 = vmul.f32 3.0, %v5083_v3  ;;  %v1052_v28 = vadd.f32 %v7116_v48, %v924_v46  ;;  %v5169_v37 = vpop.f32.mrb[42].mxu1  ;;  %v5171_v3 = vpop.f32.mrb[43].mxu0 }
 0x1d1   :  { %7109 = vst [vmem:[#allocation25_spill] sm:$0xff] %v5137_v6  ;;  %7110 = vst [vmem:[#allocation26_spill] sm:$0xff] %v5144_v57  ;;  %v1051_v59 = vadd.f32 %v7117_v26, %v923_v34  ;;  %v5162_v45 = vmul.f32 3.0, %v5124_v61  ;;  %v5165_v5 = vadd.f32 %v7119_v13, %v1050_v0  ;;  %v672_v2 = vmul.f32 0.125, %v4913_v36  ;;  %v7124_v34 = vld [vmem:[#allocation30_spill] sm:$0xff]  ;;  %v5181_v0 = vpop.f32.mrb[43].mxu1 }
 0x1d2   :  { %7112 = vst [vmem:[#allocation27_spill] sm:$0xff] %v5147_v62  ;;  %7114 = vst [vmem:[#allocation31_spill] sm:$0xff] %v5152_v17  ;;  %v1053_v20 = vadd.f32 %v7121_v55, %v925_v9  ;;  %v674_v26 = vmul.f32 0.125, %v4921_v14  ;;  %v673_v61 = vmul.f32 0.125, %v4923_v31  ;;  %v5184_v9 = vmul.f32 3.0, %v5134_v22  ;;  %v7127_v36 = vld [vmem:[#allocation34_spill] sm:$0xff] }
 0x1d3   :  { %7115 = vst [vmem:[#allocation177_spill] sm:$0xff] %v5155_v21  ;;  %7118 = vst [vmem:[#allocation32_spill] sm:$0xff] %v5162_v45  ;;  %v7122_v21 = vld [vmem:[#allocation213_spill] sm:$0xff]  ;;  %v5177_v48 = vadd.f32 %v7124_v34, %v1051_v59  ;;  %v5195_v59 = vmul.f32 3.0, %v5147_v62  ;;  %v7132_v14 = vld [vmem:[#allocation54_spill] sm:$0xff]  ;;  %v5199_v57 = vpop.f32.mrb[44].mxu0 }
 0x1d4   :  { %7120 = vst [vmem:[#allocation178_spill] sm:$0xff] %v5165_v5  ;;  %v5174_v46 = vadd.f32 %v7122_v21, %v1052_v28  ;;  %7126 = vst [vmem:[#allocation37_spill] sm:$0xff] %v5184_v9  ;;  %v5187_v13 = vadd.f32 %v7127_v36, %v1053_v20  ;;  %v7129_v55 = vld [vmem:[#allocation53_spill] sm:$0xff]  ;;  %v675_v21 = vmul.f32 0.125, %v4933_v7  ;;  %v5192_v28 = vmul.f32 3.0, %v5137_v6  ;;  %v7133_v34 = vld [vmem:[#allocation55_spill] sm:$0xff] }
 0x1d5   :  { %7125 = vst [vmem:[#allocation33_spill] sm:$0xff] %v5177_v48  ;;  %v841_v45 = vsub.f32 %v672_v2, %v7129_v55  ;;  %7131 = vst [vmem:[#allocation38_spill] sm:$0xff] %v5195_v59  ;;  %v843_v31 = vsub.f32 %v674_v26, %v7132_v14  ;;  %v842_v17 = vsub.f32 %v673_v61, %v7133_v34  ;;  %v5202_v22 = vmul.f32 3.0, %v5165_v5  ;;  %v7136_v2 = vld [vmem:[#allocation56_spill] sm:$0xff]  ;;  %v5207_v55 = vpop.f32.mrb[44].mxu1  ;;  %v5209_v6 = vpop.f32.mrb[45].mxu0 }
 0x1d6   :  { %7123 = vst [vmem:[#allocation181_spill] sm:$0xff] %v5174_v46  ;;  %7128 = vst [vmem:[#allocation180_spill] sm:$0xff] %v5187_v13  ;;  %v844_v36 = vsub.f32 %v675_v21, %v7136_v2  ;;  %v676_v7 = vmul.f32 0.125, %v4951_v12  ;;  %v678_v61 = vmul.f32 0.125, %v4961_v23  ;;  %v677_v14 = vmul.f32 0.125, %v4963_v11  ;;  %v5215_v34 = vpop.f32.mrb[45].mxu1 }
 0x1d7   :  { %7130 = vst [vmem:[#allocation184_spill] sm:$0xff] %v5192_v28  ;;  %7134 = vst [vmem:[#allocation183_spill] sm:$0xff] %v5199_v57  ;;  %v926_v20 = vmul.f32 %v4221_v30, %v841_v45  ;;  %v928_v62 = vmul.f32 %v4240_v53, %v843_v31  ;;  %v927_v26 = vmul.f32 %v4272_v41, %v842_v17  ;;  %v7140_v5 = vld [vmem:[#allocation215_spill] sm:$0xff]  ;;  %v7141_v2 = vld [vmem:[#allocation57_spill] sm:$0xff]  ;;  %v5225_v57 = vpop.f32.mrb[46].mxu0 }
 0x1d8   :  { %7135 = vst [vmem:[#allocation3_spill] sm:$0xff] %v5202_v22  ;;  %7137 = vst [vmem:[#allocation7_spill] sm:$0xff] %v5207_v55  ;;  %v929_v21 = vmul.f32 %v4284_v19, %v844_v36  ;;  %v845_v12 = vsub.f32 %v676_v7, %v7141_v2  ;;  %v679_v22 = vmul.f32 0.125, %v4973_v44  ;;  %v7142_v59 = vld [vmem:[#allocation216_spill] sm:$0xff]  ;;  %v7143_v9 = vld [vmem:[#allocation218_spill] sm:$0xff]  ;;  %v5233_v44 = vpop.f32.mrb[46].mxu1 }
 0x1d9   :  { %7138 = vst [vmem:[#allocation186_spill] sm:$0xff] %v5209_v6  ;;  %7139 = vst [vmem:[#allocation187_spill] sm:$0xff] %v5215_v34  ;;  %v1054_v45 = vadd.f32 %v7140_v5, %v926_v20  ;;  %v1056_v28 = vadd.f32 %v7142_v59, %v928_v62  ;;  %v1055_v31 = vadd.f32 %v7143_v9, %v927_v26  ;;  %v7144_v6 = vld [vmem:[#allocation58_spill] sm:$0xff]  ;;  %v7145_v55 = vld [vmem:[#allocation59_spill] sm:$0xff]  ;;  %v5235_v62 = vpop.f32.mrb[47].mxu0 }
 0x1da   :  { %v847_v17 = vsub.f32 %v678_v61, %v7144_v6  ;;  %v846_v23 = vsub.f32 %v677_v14, %v7145_v55  ;;  %v7146_v11 = vld [vmem:[#allocation35_spill] sm:$0xff]  ;;  %v930_v36 = vmul.f32 %v4221_v30, %v845_v12  ;;  %v7149_v7 = vld [vmem:[#allocation60_spill] sm:$0xff]  ;;  %7150 = vst [vmem:[#allocation8_spill] sm:$0xff] %v5235_v62  ;;  %v7153_v6 = vld [vmem:[#allocation41_spill] sm:$0xff]  ;;  %v5245_v14 = vpop.f32.mrb[47].mxu1 }
 0x1db   :  { %v5228_v34 = vadd.f32 %v7146_v11, %v1054_v45  ;;  %v7148_v5 = vld [vmem:[#allocation219_spill] sm:$0xff]  ;;  %v848_v2 = vsub.f32 %v679_v22, %v7149_v7  ;;  %v7151_v9 = vld [vmem:[#allocation36_spill] sm:$0xff]  ;;  %v5241_v55 = vadd.f32 %v7153_v6, %v1055_v31  ;;  %7155 = vst [vmem:[#allocation14_spill] sm:$0xff] %v5245_v14  ;;  %v5248_v45 = vmul.f32 3.0, %v5174_v46  ;;  %v5263_v6 = vpop.f32.mrb[48].mxu0 }
 0x1dc   :  { %v1057_v20 = vadd.f32 %v7148_v5, %v929_v21  ;;  %v5238_v59 = vadd.f32 %v7151_v9, %v1056_v28  ;;  %v932_v26 = vmul.f32 %v4240_v53, %v847_v17  ;;  %v931_v61 = vmul.f32 %v4272_v41, %v846_v23  ;;  %v7157_v22 = vld [vmem:[#allocation223_spill] sm:$0xff]  ;;  %v7162_v17 = vld [vmem:[#allocation224_spill] sm:$0xff]  ;;  %7164 = vst [vmem:[#allocation45_spill] sm:$0xff] %v5263_v6 }
 0x1dd   :  { %7147 = vst [vmem:[#allocation188_spill] sm:$0xff] %v5228_v34  ;;  %7154 = vst [vmem:[#allocation9_spill] sm:$0xff] %v5241_v55  ;;  %v7159_v12 = vld [vmem:[#allocation67_spill] sm:$0xff]  ;;  %v933_v28 = vmul.f32 %v4284_v19, %v848_v2  ;;  %v5256_v5 = vmul.f32 3.0, %v5177_v48  ;;  %v5259_v31 = vmul.f32 3.0, %v5187_v13  ;;  %v5266_v46 = vmul.f32 3.0, %v5228_v34 }
 0x1de   :  { %7152 = vst [vmem:[#allocation189_spill] sm:$0xff] %v5238_v59  ;;  %7156 = vst [vmem:[#allocation15_spill] sm:$0xff] %v5248_v45  ;;  %v5251_v21 = vadd.f32 %v7157_v22, %v1057_v20  ;;  %v1058_v11 = vadd.f32 %v7159_v12, %v930_v36  ;;  %v1060_v23 = vadd.f32 %v7162_v17, %v932_v26  ;;  %v7163_v7 = vld [vmem:[#allocation79_spill] sm:$0xff]  ;;  %v7166_v20 = vld [vmem:[#allocation65_spill] sm:$0xff]  ;;  %v5278_v26 = vpop.f32.mrb[48].mxu1  ;;  %v5283_v17 = vmul.f32 3.0, %v5238_v59 }
 0x1df   :  { %7160 = vst [vmem:[#allocation40_spill] sm:$0xff] %v5256_v5  ;;  %7161 = vst [vmem:[#allocation44_spill] sm:$0xff] %v5259_v31  ;;  %v1059_v9 = vadd.f32 %v7163_v7, %v931_v61  ;;  %v7168_v36 = vld [vmem:[#allocation61_spill] sm:$0xff]  ;;  %v2654_v12 = vld [vmem:[%s6500_s4] sm:$0xff]  ;;  %v5280_v61 = vpop.f32.mrb[49].mxu0 }
 0x1e0   :  { %7158 = vst [vmem:[#allocation39_spill] sm:$0xff] %v5251_v21  ;;  %7165 = vst [vmem:[#allocation195_spill] sm:$0xff] %v5266_v46  ;;  %v5269_v22 = vadd.f32 %v7166_v20, %v1058_v11  ;;  %v1061_v2 = vadd.f32 %v7168_v36, %v933_v28  ;;  %v7169_v13 = vld [vmem:[#allocation73_spill] sm:$0xff]  ;;  %v7173_v7 = vld [vmem:[#allocation84_spill] sm:$0xff]  ;;  %v1765_v28 = vmul.f32 0.125, %v4991_v29  ;;  %v5292_v36 = vpop.f32.mrb[49].mxu1 }
 0x1e1   :  { %v5276_v48 = vsub.f32 %v2654_v12, %v7169_v13  ;;  %7170 = vst [vmem:[#allocation196_spill] sm:$0xff] %v5278_v26  ;;  %7171 = vst [vmem:[#allocation199_spill] sm:$0xff] %v5280_v61  ;;  %v5286_v34 = vadd.f32 %v7173_v7, %v1060_v23  ;;  %v7175_v11 = vld [vmem:[#allocation62_spill] sm:$0xff]  ;;  %v5295_v13 = vmul.f32 3.0, %v5241_v55  ;;  %v5298_v12 = vmul.f32 3.0, %v5251_v21  ;;  %v7180_v46 = vld [vmem:[#allocation64_spill] sm:$0xff] }
 0x1e2   :  { %7167 = vst [vmem:[#allocation46_spill] sm:$0xff] %v5269_v22  ;;  %7172 = vst [vmem:[#allocation47_spill] sm:$0xff] %v5283_v17  ;;  %v5289_v20 = vadd.f32 %v7175_v11, %v1059_v9  ;;  %v5301_v31 = vadd.f32 %v7180_v46, %v1061_v2  ;;  %v2655_v23 = vld [vmem:[%s6500_s4 + $0x10] sm:$0xff]  ;;  %v7182_v7 = vld [vmem:[#allocation71_spill] sm:$0xff]  ;;  %v5310_v29 = vmul.f32 3.0, %v5269_v22  ;;  %v1767_v21 = vmul.f32 0.125, %v4999_v56 }
 0x1e3   :  { %7174 = vst [vmem:[#allocation51_spill] sm:$0xff] %v5286_v34  ;;  %7177 = vst [vmem:[#allocation202_spill] sm:$0xff] %v5292_v36  ;;  %v5307_v9 = vsub.f32 %v2655_v23, %v7182_v7  ;;  %v7184_v11 = vld [vmem:[#allocation118_spill] sm:$0xff]  ;;  %v7185_v55 = vld [vmem:[#allocation63_spill] sm:$0xff]  ;;  %v5318_v46 = vmul.f32 3.0, %v5286_v34 }
 0x1e4   :  { %7176 = vst [vmem:[#allocation16_spill] sm:$0xff] %v5289_v20  ;;  %7178 = vst [vmem:[#allocation52_spill] sm:$0xff] %v5295_v13  ;;  %v1913_v59 = vsub.f32 %v1765_v28, %v7184_v11  ;;  %v2041_v13 = vmul.f32 0.9, %v7185_v55  ;;  %v5321_v2 = vmul.f32 3.0, %v5289_v20  ;;  %v2656_v7 = vld [vmem:[%s6500_s4 + $0x8] sm:$0xff] }
 0x1e5   :  { %7179 = vst [vmem:[#allocation21_spill] sm:$0xff] %v5298_v12  ;;  %7181 = vst [vmem:[#allocation22_spill] sm:$0xff] %v5301_v31  ;;  %v5315_v12 = vpop.f32.mrb[50].mxu0  ;;  %v2169_v23 = vmul.f32 0.0001, %v5276_v48  ;;  %v7189_v22 = vld [vmem:[#allocation72_spill] sm:$0xff] }
 0x1e6   :  { %7183 = vst [vmem:[#allocation23_spill] sm:$0xff] %v5310_v29  ;;  %7186 = vst [vmem:[#allocation205_spill] sm:$0xff] %v5315_v12  ;;  %v5328_v28 = vsub.f32 %v2656_v7, %v7189_v22  ;;  %v5330_v55 = vpop.f32.mrb[50].mxu1  ;;  %v1977_v56 = vmul.f32 %v1913_v59, %v4221_v30  ;;  %v7191_v11 = vld [vmem:[#allocation121_spill] sm:$0xff]  ;;  %v7192_v34 = vld [vmem:[#allocation74_spill] sm:$0xff]  ;;  %v1766_v20 = vmul.f32 0.125, %v5001_v54 }
 0x1e7   :  { %7187 = vst [vmem:[#allocation207_spill] sm:$0xff] %v5318_v46  ;;  %7188 = vst [vmem:[#allocation208_spill] sm:$0xff] %v5321_v2  ;;  %v1915_v29 = vsub.f32 %v1767_v21, %v7191_v11  ;;  %v2043_v46 = vmul.f32 0.9, %v7192_v34  ;;  %v5336_v2 = vpop.f32.mrb[51].mxu0  ;;  %v5338_v17 = vpop.f32.mrb[51].mxu1 }
 0x1e8   :  { %7190 = vst [vmem:[#allocation28_spill] sm:$0xff] %v5330_v55  ;;  %7193 = vst [vmem:[#allocation211_spill] sm:$0xff] %v5336_v2  ;;  %v2171_v5 = vmul.f32 0.0001, %v5307_v9  ;;  %v7195_v45 = vld [vmem:[#allocation68_spill] sm:$0xff]  ;;  %v2657_v22 = vld [vmem:[%s6500_s4 + $0x18] sm:$0xff]  ;;  %v2105_v34 = vadd.f32 %v2041_v13, %v1977_v56 }
 0x1e9   :  { %7194 = vst [vmem:[#allocation213_spill] sm:$0xff] %v5338_v17  ;;  %v2042_v12 = vmul.f32 0.9, %v7195_v45  ;;  %v7196_v7 = vld [vmem:[#allocation75_spill] sm:$0xff]  ;;  %v1768_v21 = vmul.f32 0.125, %v5007_v63  ;;  %v1979_v54 = vmul.f32 %v1915_v29, %v4240_v53  ;;  %v7197_v11 = vld [vmem:[#allocation122_spill] sm:$0xff] }
 0x1ea   :  { %v5346_v59 = vsub.f32 %v2657_v22, %v7196_v7  ;;  %v1914_v2 = vsub.f32 %v1766_v20, %v7197_v11  ;;  %v2170_v17 = vmul.f32 0.0001, %v5328_v28  ;;  %v5352_v55 = vpop.f32.mrb[52].mxu0  ;;  %v7199_v36 = vld [vmem:[#allocation124_spill] sm:$0xff]  ;;  %v7200_v61 = vld [vmem:[#allocation69_spill] sm:$0xff]  ;;  %v2658_v22 = vld [vmem:[%s6500_s4 + $0x20] sm:$0xff]  ;;  %v2233_v20 = vadd.f32 %v2169_v23, %v2105_v34 }
 0x1eb   :  { %7198 = vst [vmem:[#allocation30_spill] sm:$0xff] %v5352_v55  ;;  %v1916_v45 = vsub.f32 %v1768_v21, %v7199_v36  ;;  %v2044_v26 = vmul.f32 0.9, %v7200_v61  ;;  %v7201_v7 = vld [vmem:[#allocation76_spill] sm:$0xff]  ;;  %v1769_v63 = vmul.f32 0.125, %v5017_v47  ;;  %v5363_v13 = vpop.f32.mrb[52].mxu1  ;;  %v2107_v29 = vadd.f32 %v2043_v46, %v1979_v54 }
 0x1ec   :  { %v5360_v6 = vsub.f32 %v2658_v22, %v7201_v7  ;;  %v1978_v56 = vmul.f32 %v1914_v2, %v4272_v41  ;;  %v2172_v11 = vmul.f32 0.0001, %v5346_v59  ;;  %v5367_v36 = vpop.f32.mrb[53].mxu0  ;;  %v5369_v61 = vpop.f32.mrb[53].mxu1  ;;  %v7203_v55 = vld [vmem:[#allocation125_spill] sm:$0xff]  ;;  %v7204_v22 = vld [vmem:[#allocation66_spill] sm:$0xff]  ;;  %2489 = vst [vmem:[%s6502_s7] sm:$0xff] %v2233_v20 }
 0x1ed   :  { %7202 = vst [vmem:[#allocation34_spill] sm:$0xff] %v5369_v61  ;;  %v1980_v21 = vmul.f32 %v1916_v45, %v4284_v19  ;;  %v1917_v14 = vsub.f32 %v1769_v63, %v7203_v55  ;;  %v2045_v7 = vmul.f32 0.9, %v7204_v22  ;;  %v1771_v47 = vmul.f32 0.125, %v5025_v40  ;;  %v2659_v23 = vld [vmem:[%s6500_s4 + $0x30] sm:$0xff]  ;;  %v5384_v54 = vpop.f32.mrb[54].mxu0 }
 0x1ee   :  { %v2297_v62 = vmul.f32 3.0, %v2233_v20  ;;  %v2235_v46 = vadd.f32 %v2171_v5, %v2107_v29  ;;  %v2106_v2 = vadd.f32 %v2042_v12, %v1978_v56  ;;  %v5382_v34 = vsub.f32 %v2659_v23, %v4632_v15  ;;  %v7205_v63 = vld [vmem:[#allocation126_spill] sm:$0xff]  ;;  %v5389_v61 = vpop.f32.mrb[54].mxu1  ;;  %v5391_v5 = vpop.f32.mrb[55].mxu0  ;;  %v7207_v23 = vld [vmem:[#allocation127_spill] sm:$0xff] }
 0x1ef   :  { %v2108_v55 = vadd.f32 %v2044_v26, %v1980_v21  ;;  %v1981_v45 = vmul.f32 %v1917_v14, %v4221_v30  ;;  %v2173_v40 = vmul.f32 0.0001, %v5360_v6  ;;  %v1919_v22 = vsub.f32 %v1771_v47, %v7205_v63  ;;  %v5398_v29 = vpop.f32.mrb[55].mxu1 }
 0x1f0   :  { %v2361_v12 = vsub.f32 %v5276_v48, %v2297_v62  ;;  %v2299_v20 = vmul.f32 3.0, %v2235_v46  ;;  %2491 = vst [vmem:[%s6502_s7 + $0x10] sm:$0xff] %v2235_v46  ;;  %v2234_v15 = vadd.f32 %v2170_v17, %v2106_v2  ;;  %v2047_v26 = vmul.f32 0.9, %v4592_v58 }
 0x1f1   :  { %v2236_v14 = vadd.f32 %v2172_v11, %v2108_v55  ;;  %v2109_v56 = vadd.f32 %v2045_v7, %v1981_v45  ;;  %v1983_v21 = vmul.f32 %v1919_v22, %v4240_v53  ;;  %v1770_v47 = vmul.f32 0.125, %v5027_v32  ;;  %v7206_v11 = vld [vmem:[#allocation87_spill] sm:$0xff]  ;;  %v5416_v32 = vpop.f32.mrb[56].mxu0  ;;  %v5422_v45 = vpop.f32.mrb[56].mxu1 }
 0x1f2   :  { %2425 = vst [vmem:[%s6503_s6] sm:$0xff] %v2361_v12  ;;  %v2363_v48 = vsub.f32 %v5307_v9, %v2299_v20  ;;  %v2298_v62 = vmul.f32 3.0, %v2234_v15  ;;  %2490 = vst [vmem:[%s6502_s7 + $0x8] sm:$0xff] %v2234_v15  ;;  %v2175_v58 = vmul.f32 0.0001, %v5382_v34  ;;  %v5424_v63 = vpop.f32.mrb[57].mxu0  ;;  %v7208_v12 = vld [vmem:[#allocation77_spill] sm:$0xff] }
 0x1f3   :  { %v2300_v46 = vmul.f32 3.0, %v2236_v14  ;;  %2492 = vst [vmem:[%s6502_s7 + $0x18] sm:$0xff] %v2236_v14  ;;  %v2237_v9 = vadd.f32 %v2173_v40, %v2109_v56  ;;  %v2111_v2 = vadd.f32 %v2047_v26, %v1983_v21  ;;  %v1918_v55 = vsub.f32 %v1770_v47, %v7207_v23  ;;  %v7209_v40 = vld [vmem:[#allocation86_spill] sm:$0xff]  ;;  %v5438_v56 = vpop.f32.mrb[57].mxu1 }
 0x1f4   :  { %v2362_v22 = vsub.f32 %v5328_v28, %v2298_v62  ;;  %v2046_v20 = vmul.f32 0.9, %v7208_v12  ;;  %v1772_v14 = vmul.f32 0.125, %v5037_v60  ;;  %v5446_v62 = vmul.f32 3.0, %v5301_v31 }
 0x1f5   :  { %v2364_v21 = vsub.f32 %v5346_v59, %v2300_v46  ;;  %v2301_v47 = vmul.f32 3.0, %v2237_v9  ;;  %2493 = vst [vmem:[%s6502_s7 + $0x20] sm:$0xff] %v2237_v9  ;;  %v2239_v28 = vadd.f32 %v2175_v58, %v2111_v2  ;;  %v1773_v59 = vmul.f32 0.125, %v5055_v33  ;;  %v5454_v46 = vpop.f32.mrb[58].mxu0 }
 0x1f6   :  { %7210 = vst [vmem:[#allocation53_spill] sm:$0xff] %v5446_v62  ;;  %v5471_v12 = vpop.f32.mrb[59].mxu0 }
 0x1f7   :  { %v2365_v58 = vsub.f32 %v5360_v6, %v2301_v47  ;;  %v2303_v9 = vmul.f32 3.0, %v2239_v28  ;;  %2495 = vst [vmem:[%s6502_s7 + $0x30] sm:$0xff] %v2239_v28  ;;  %7214 = vst [vmem:[#allocation55_spill] sm:$0xff] %v5471_v12  ;;  %v7215_v6 = vld [vmem:[#allocation80_spill] sm:$0xff]  ;;  %v7217_v47 = vld [vmem:[#allocation82_spill] sm:$0xff]  ;;  %v1776_v12 = vmul.f32 0.125, %v5077_v16 }
 0x1f9   :  { %v2660_v17 = vld [vmem:[%s6500_s4 + $0x28] sm:$0xff] }
 0x1fa   :  { %v5414_v7 = vsub.f32 %v2660_v17, %v7206_v11  ;;  %2427 = vst [vmem:[%s6503_s6 + $0x10] sm:$0xff] %v2363_v48  ;;  %v1982_v48 = vmul.f32 %v1918_v55, %v4272_v41  ;;  %v7211_v17 = vld [vmem:[#allocation128_spill] sm:$0xff]  ;;  %v7212_v55 = vld [vmem:[#allocation70_spill] sm:$0xff] }
 0x1fb   :  { %v1920_v11 = vsub.f32 %v1772_v14, %v7211_v17  ;;  %v7216_v14 = vld [vmem:[#allocation129_spill] sm:$0xff]  ;;  %v2367_v17 = vsub.f32 %v5382_v34, %v2303_v9 }
 0x1fc   :  { %v2174_v60 = vmul.f32 0.0001, %v5414_v7  ;;  %v2110_v2 = vadd.f32 %v2046_v20, %v1982_v48 }
 0x201   :  { %v2661_v15 = vld [vmem:[%s6500_s4 + $0x38] sm:$0xff] }
 0x202   :  { %v5435_v26 = vsub.f32 %v2661_v15, %v7209_v40  ;;  %2426 = vst [vmem:[%s6503_s6 + $0x8] sm:$0xff] %v2362_v22  ;;  %2428 = vst [vmem:[%s6503_s6 + $0x18] sm:$0xff] %v2364_v21  ;;  %v5469_v22 = vpop.f32.mrb[58].mxu1  ;;  %v1984_v15 = vmul.f32 %v1920_v11, %v4284_v19  ;;  %v2048_v40 = vmul.f32 0.9, %v7215_v6  ;;  %v1921_v21 = vsub.f32 %v1773_v59, %v7216_v14  ;;  %v7219_v14 = vld [vmem:[#allocation83_spill] sm:$0xff] }
 0x203   :  { %7213 = vst [vmem:[#allocation54_spill] sm:$0xff] %v5469_v22  ;;  %v5482_v48 = vpop.f32.mrb[59].mxu1  ;;  %v2238_v11 = vadd.f32 %v2174_v60, %v2110_v2  ;;  %v1775_v59 = vmul.f32 0.125, %v5065_v49  ;;  %v2049_v31 = vmul.f32 0.9, %v7219_v14  ;;  %v7222_v60 = vld [vmem:[#allocation131_spill] sm:$0xff] }
 0x204   :  { %7218 = vst [vmem:[#allocation56_spill] sm:$0xff] %v5482_v48  ;;  %v1985_v6 = vmul.f32 %v1921_v21, %v4221_v30  ;;  %v1774_v2 = vmul.f32 0.125, %v5067_v43  ;;  %v7223_v21 = vld [vmem:[#allocation81_spill] sm:$0xff]  ;;  %v7224_v48 = vld [vmem:[#allocation132_spill] sm:$0xff] }
 0x205   :  { %v2302_v34 = vmul.f32 3.0, %v2238_v11  ;;  %2494 = vst [vmem:[%s6502_s7 + $0x28] sm:$0xff] %v2238_v11  ;;  %v1923_v9 = vsub.f32 %v1775_v59, %v7222_v60  ;;  %v2051_v14 = vmul.f32 0.9, %v7223_v21  ;;  %v1777_v21 = vmul.f32 0.125, %v5095_v25 }
 0x206   :  { %v1922_v11 = vsub.f32 %v1774_v2, %v7224_v48  ;;  %v7226_v48 = vld [vmem:[#allocation89_spill] sm:$0xff] }
 0x209   :  { %v2662_v23 = vld [vmem:[%s6500_s4 + $0x40] sm:$0xff]  ;;  %v2663_v20 = vld [vmem:[%s6500_s4 + $0x50] sm:$0xff] }
 0x20a   :  { %v5467_v33 = vsub.f32 %v2662_v23, %v7212_v55  ;;  %v5480_v28 = vsub.f32 %v2663_v20, %v7217_v47  ;;  %2429 = vst [vmem:[%s6503_s6 + $0x20] sm:$0xff] %v2365_v58  ;;  %v2176_v23 = vmul.f32 0.0001, %v5435_v26  ;;  %v2112_v55 = vadd.f32 %v2048_v40, %v1984_v15  ;;  %v7220_v47 = vld [vmem:[#allocation91_spill] sm:$0xff]  ;;  %v5498_v58 = vpop.f32.mrb[60].mxu0 }
 0x20b   :  { %7221 = vst [vmem:[#allocation215_spill] sm:$0xff] %v5498_v58  ;;  %v2113_v40 = vadd.f32 %v2049_v31, %v1985_v6  ;;  %v1987_v58 = vmul.f32 %v1923_v9, %v4240_v53  ;;  %v7225_v31 = vld [vmem:[#allocation85_spill] sm:$0xff]  ;;  %v5533_v60 = vpop.f32.mrb[61].mxu0 }
 0x20c   :  { %v2177_v49 = vmul.f32 0.0001, %v5467_v33  ;;  %v2240_v15 = vadd.f32 %v2176_v23, %v2112_v55  ;;  %v2050_v23 = vmul.f32 0.9, %v7225_v31  ;;  %v1986_v55 = vmul.f32 %v1922_v11, %v4272_v41  ;;  %v7229_v11 = vld [vmem:[#allocation78_spill] sm:$0xff] }
 0x20d   :  { %v7230_v31 = vld [vmem:[#allocation134_spill] sm:$0xff] }
 0x20e   :  { %v2304_v22 = vmul.f32 3.0, %v2240_v15  ;;  %2496 = vst [vmem:[%s6502_s7 + $0x38] sm:$0xff] %v2240_v15  ;;  %v2241_v43 = vadd.f32 %v2177_v49, %v2113_v40  ;;  %v7228_v15 = vld [vmem:[#allocation92_spill] sm:$0xff] }
 0x210   :  { %v2368_v9 = vsub.f32 %v5435_v26, %v2304_v22  ;;  %v2305_v2 = vmul.f32 3.0, %v2241_v43  ;;  %2497 = vst [vmem:[%s6502_s7 + $0x40] sm:$0xff] %v2241_v43  ;;  %v2052_v26 = vmul.f32 0.9, %v7229_v11  ;;  %v2055_v11 = vmul.f32 0.9, %v4672_v52 }
 0x211   :  { %v2664_v20 = vld [vmem:[%s6500_s4 + $0x48] sm:$0xff] }
 0x212   :  { %v5496_v62 = vsub.f32 %v2664_v20, %v7220_v47  ;;  %2431 = vst [vmem:[%s6503_s6 + $0x30] sm:$0xff] %v2367_v17  ;;  %v2179_v20 = vmul.f32 0.0001, %v5480_v28  ;;  %v5511_v47 = vpop.f32.mrb[60].mxu1  ;;  %v2366_v17 = vsub.f32 %v5414_v7, %v2302_v34  ;;  %v2115_v7 = vadd.f32 %v2051_v14, %v1987_v58  ;;  %v7227_v34 = vld [vmem:[#allocation133_spill] sm:$0xff] }
 0x213   :  { %v1924_v49 = vsub.f32 %v1776_v12, %v7227_v34  ;;  %v2114_v12 = vadd.f32 %v2050_v23, %v1986_v55  ;;  %v5548_v22 = vpop.f32.mrb[61].mxu1  ;;  %v2369_v43 = vsub.f32 %v5467_v33, %v2305_v2  ;;  %v1779_v23 = vmul.f32 0.125, %v5103_v51  ;;  %v5566_v34 = vpop.f32.mrb[62].mxu0  ;;  %v7232_v2 = vld [vmem:[#allocation137_spill] sm:$0xff] }
 0x214   :  { %v2178_v59 = vmul.f32 0.0001, %v5496_v62  ;;  %2430 = vst [vmem:[%s6503_s6 + $0x28] sm:$0xff] %v2366_v17  ;;  %v2243_v14 = vadd.f32 %v2179_v20, %v2115_v7 }
 0x215   :  { %v1988_v17 = vmul.f32 %v1924_v49, %v4284_v19  ;;  %v7231_v49 = vld [vmem:[#allocation88_spill] sm:$0xff] }
 0x216   :  { %v2307_v7 = vmul.f32 3.0, %v2243_v14  ;;  %2499 = vst [vmem:[%s6502_s7 + $0x50] sm:$0xff] %v2243_v14  ;;  %v2242_v55 = vadd.f32 %v2178_v59, %v2114_v12  ;;  %v1778_v14 = vmul.f32 0.125, %v5105_v1 }
 0x218   :  { %v2306_v59 = vmul.f32 3.0, %v2242_v55  ;;  %2498 = vst [vmem:[%s6502_s7 + $0x48] sm:$0xff] %v2242_v55  ;;  %v2054_v55 = vmul.f32 0.9, %v4679_v4 }
 0x21b   :  { %v2665_v16 = vld [vmem:[%s6500_s4 + $0x58] sm:$0xff]  ;;  %v2666_v58 = vld [vmem:[%s6500_s4 + $0x60] sm:$0xff] }
 0x21c   :  { %v5530_v6 = vsub.f32 %v2665_v16, %v7226_v48  ;;  %v5543_v40 = vsub.f32 %v2666_v58, %v7228_v15  ;;  %2432 = vst [vmem:[%s6503_s6 + $0x38] sm:$0xff] %v2368_v9  ;;  %v1925_v16 = vsub.f32 %v1777_v21, %v7230_v31  ;;  %v2116_v48 = vadd.f32 %v2052_v26, %v1988_v17 }
 0x21d   :  { %v2053_v9 = vmul.f32 0.9, %v7231_v49  ;;  %v1927_v58 = vsub.f32 %v1779_v23, %v7232_v2  ;;  %v2371_v15 = vsub.f32 %v5480_v28, %v2307_v7  ;;  %v2370_v28 = vsub.f32 %v5496_v62, %v2306_v59  ;;  %v5599_v62 = vpop.f32.mrb[63].mxu0  ;;  %v7235_v59 = vld [vmem:[#allocation96_spill] sm:$0xff] }
 0x21e   :  { %v2180_v33 = vmul.f32 0.0001, %v5530_v6  ;;  %v2181_v51 = vmul.f32 0.0001, %v5543_v40 }
 0x21f   :  { %v1991_v17 = vmul.f32 %v1927_v58, %v4240_v53  ;;  %v1781_v58 = vmul.f32 0.125, %v5121_v42 }
 0x220   :  { %v2244_v21 = vadd.f32 %v2180_v33, %v2116_v48  ;;  %v1780_v48 = vmul.f32 0.125, %v5111_v35 }
 0x221   :  { %v2119_v7 = vadd.f32 %v2055_v11, %v1991_v17 }
 0x222   :  { %v2308_v31 = vmul.f32 3.0, %v2244_v21  ;;  %2500 = vst [vmem:[%s6502_s7 + $0x58] sm:$0xff] %v2244_v21  ;;  %v2056_v21 = vmul.f32 0.9, %v7235_v59 }
 0x223   :  { %v2667_v25 = vld [vmem:[%s6500_s4 + $0x70] sm:$0xff] }
 0x224   :  { %v5559_v20 = vsub.f32 %v2667_v25, %v4728_v27  ;;  %2433 = vst [vmem:[%s6503_s6 + $0x40] sm:$0xff] %v2369_v43  ;;  %v1989_v27 = vmul.f32 %v1925_v16, %v4221_v30  ;;  %v5583_v43 = vpop.f32.mrb[62].mxu1  ;;  %2435 = vst [vmem:[%s6503_s6 + $0x50] sm:$0xff] %v2371_v15  ;;  %v7233_v16 = vld [vmem:[#allocation138_spill] sm:$0xff]  ;;  %v2372_v33 = vsub.f32 %v5530_v6, %v2308_v31 }
 0x225   :  { %v1926_v25 = vsub.f32 %v1778_v14, %v7233_v16  ;;  %v7236_v14 = vld [vmem:[#allocation99_spill] sm:$0xff]  ;;  %v5633_v17 = vpop.f32.mrb[63].mxu1 }
 0x226   :  { %v2117_v12 = vadd.f32 %v2053_v9, %v1989_v27  ;;  %v2183_v26 = vmul.f32 0.0001, %v5559_v20 }
 0x227   :  { %v1990_v27 = vmul.f32 %v1926_v25, %v4272_v41  ;;  %v7238_v25 = vld [vmem:[#allocation90_spill] sm:$0xff] }
 0x228   :  { %v2245_v23 = vadd.f32 %v2181_v51, %v2117_v12  ;;  %v2247_v6 = vadd.f32 %v2183_v26, %v2119_v7  ;;  %v7234_v51 = vld [vmem:[#allocation140_spill] sm:$0xff]  ;;  %v1783_v7 = vmul.f32 0.125, %v5129_v38 }
 0x229   :  { %v1928_v2 = vsub.f32 %v1780_v48, %v7234_v51 }
 0x22a   :  { %v2309_v9 = vmul.f32 3.0, %v2245_v23  ;;  %2501 = vst [vmem:[%s6502_s7 + $0x60] sm:$0xff] %v2245_v23  ;;  %v2311_v42 = vmul.f32 3.0, %v2247_v6  ;;  %2503 = vst [vmem:[%s6502_s7 + $0x70] sm:$0xff] %v2247_v6  ;;  %v2057_v23 = vmul.f32 0.9, %v7238_v25 }
 0x22b   :  { %v2668_v1 = vld [vmem:[%s6500_s4 + $0x68] sm:$0xff]  ;;  %v1992_v26 = vmul.f32 %v1928_v2, %v4284_v19 }
 0x22c   :  { %v1267_v52 = vsub.f32 %v2668_v1, %v4736_v50  ;;  %2434 = vst [vmem:[%s6503_s6 + $0x48] sm:$0xff] %v2370_v28  ;;  %v2373_v11 = vsub.f32 %v5543_v40, %v2309_v9  ;;  %v7237_v28 = vld [vmem:[#allocation141_spill] sm:$0xff]  ;;  %v2375_v40 = vsub.f32 %v5559_v20, %v2311_v42  ;;  %v7240_v9 = vld [vmem:[#allocation100_spill] sm:$0xff]  ;;  %v1782_v20 = vmul.f32 0.125, %v5131_v18 }
 0x22d   :  { %v1929_v31 = vsub.f32 %v1781_v58, %v7237_v28  ;;  %v7241_v58 = vld [vmem:[#allocation93_spill] sm:$0xff] }
 0x22e   :  { %v2182_v15 = vmul.f32 0.0001, %v1267_v52 }
 0x22f   :  { %v1993_v48 = vmul.f32 %v1929_v31, %v4221_v30 }
 0x231   :  { %v2121_v2 = vadd.f32 %v2057_v23, %v1993_v48  ;;  %v7245_v23 = vld [vmem:[#allocation144_spill] sm:$0xff] }
 0x233   :  { %v2669_v50 = vld [vmem:[%s6500_s4 + $0x78] sm:$0xff]  ;;  %v2670_v4 = vld [vmem:[%s6500_s4 + $0x80] sm:$0xff] }
 0x234   :  { %v5610_v49 = vsub.f32 %v2669_v50, %v4739_v24  ;;  %v5616_v35 = vsub.f32 %v2670_v4, %v4746_v39  ;;  %2436 = vst [vmem:[%s6503_s6 + $0x58] sm:$0xff] %v2372_v33  ;;  %v2118_v24 = vadd.f32 %v2054_v55, %v1990_v27  ;;  %v2120_v55 = vadd.f32 %v2056_v21, %v1992_v26  ;;  %v7239_v50 = vld [vmem:[#allocation142_spill] sm:$0xff]  ;;  %v7243_v26 = vld [vmem:[#allocation95_spill] sm:$0xff] }
 0x235   :  { %v1931_v4 = vsub.f32 %v1783_v7, %v7239_v50  ;;  %v2058_v28 = vmul.f32 0.9, %v7243_v26  ;;  %v1785_v50 = vmul.f32 0.125, %v5159_v10  ;;  %v7251_v26 = vld [vmem:[#allocation147_spill] sm:$0xff] }
 0x236   :  { %v2246_v1 = vadd.f32 %v2182_v15, %v2118_v24  ;;  %v2184_v16 = vmul.f32 0.0001, %v5610_v49  ;;  %v2185_v33 = vmul.f32 0.0001, %v5616_v35  ;;  %v2059_v24 = vmul.f32 0.9, %v7241_v58 }
 0x237   :  { %v1995_v21 = vmul.f32 %v1931_v4, %v4240_v53  ;;  %v7248_v58 = vld [vmem:[#allocation145_spill] sm:$0xff] }
 0x238   :  { %v2310_v27 = vmul.f32 3.0, %v2246_v1  ;;  %2502 = vst [vmem:[%s6502_s7 + $0x68] sm:$0xff] %v2246_v1  ;;  %v2248_v51 = vadd.f32 %v2184_v16, %v2120_v55  ;;  %v2249_v18 = vadd.f32 %v2185_v33, %v2121_v2  ;;  %v7244_v1 = vld [vmem:[#allocation103_spill] sm:$0xff]  ;;  %v7246_v33 = vld [vmem:[#allocation109_spill] sm:$0xff] }
 0x23a   :  { %v2374_v59 = vsub.f32 %v1267_v52, %v2310_v27  ;;  %v2312_v42 = vmul.f32 3.0, %v2248_v51  ;;  %2504 = vst [vmem:[%s6502_s7 + $0x78] sm:$0xff] %v2248_v51  ;;  %v2313_v55 = vmul.f32 3.0, %v2249_v18  ;;  %2505 = vst [vmem:[%s6502_s7 + $0x80] sm:$0xff] %v2249_v18 }
 0x23b   :  { %v2671_v39 = vld [vmem:[%s6500_s4 + $0x90] sm:$0xff] }
 0x23c   :  { %v5631_v12 = vsub.f32 %v2671_v39, %v7236_v14  ;;  %2437 = vst [vmem:[%s6503_s6 + $0x60] sm:$0xff] %v2373_v11  ;;  %v7242_v39 = vld [vmem:[#allocation143_spill] sm:$0xff]  ;;  %v1784_v11 = vmul.f32 0.125, %v5141_v8  ;;  %v2123_v8 = vadd.f32 %v2059_v24, %v1995_v21  ;;  %v2377_v51 = vsub.f32 %v5616_v35, %v2313_v55 }
 0x23d   :  { %v1930_v14 = vsub.f32 %v1782_v20, %v7242_v39  ;;  %v7247_v20 = vld [vmem:[#allocation101_spill] sm:$0xff]  ;;  %v1933_v24 = vsub.f32 %v1785_v50, %v7248_v58  ;;  %v7249_v39 = vld [vmem:[#allocation94_spill] sm:$0xff]  ;;  %v1788_v58 = vmul.f32 0.125, %v5181_v0 }
 0x23e   :  { %v2187_v15 = vmul.f32 0.0001, %v5631_v12  ;;  %v1932_v7 = vsub.f32 %v1784_v11, %v7245_v23 }
 0x23f   :  { %v1994_v16 = vmul.f32 %v1930_v14, %v4272_v41  ;;  %v2061_v14 = vmul.f32 0.9, %v7249_v39  ;;  %v1997_v35 = vmul.f32 %v1933_v24, %v4221_v30 }
 0x240   :  { %v2251_v4 = vadd.f32 %v2187_v15, %v2123_v8 }
 0x242   :  { %v2315_v21 = vmul.f32 3.0, %v2251_v4  ;;  %2507 = vst [vmem:[%s6502_s7 + $0x90] sm:$0xff] %v2251_v4 }
 0x243   :  { %v2672_v38 = vld [vmem:[%s6500_s4 + $0x88] sm:$0xff] }
 0x244   :  { %v5658_v6 = vsub.f32 %v2672_v38, %v7240_v9  ;;  %2439 = vst [vmem:[%s6503_s6 + $0x70] sm:$0xff] %v2375_v40  ;;  %v2376_v40 = vsub.f32 %v5610_v49, %v2312_v42  ;;  %v2122_v38 = vadd.f32 %v2058_v28, %v1994_v16  ;;  %v1996_v9 = vmul.f32 %v1932_v7, %v4284_v19  ;;  %v7250_v42 = vld [vmem:[#allocation113_spill] sm:$0xff] }
 0x245   :  { %v2060_v49 = vmul.f32 0.9, %v7247_v20  ;;  %v1786_v16 = vmul.f32 0.125, %v5171_v3  ;;  %v7252_v7 = vld [vmem:[#allocation105_spill] sm:$0xff]  ;;  %v7254_v3 = vld [vmem:[#allocation148_spill] sm:$0xff] }
 0x246   :  { %v2186_v25 = vmul.f32 0.0001, %v5658_v6 }
 0x247   :  { %v2124_v15 = vadd.f32 %v2060_v49, %v1996_v9  ;;  %v1934_v4 = vsub.f32 %v1786_v16, %v7254_v3  ;;  %v7255_v9 = vld [vmem:[#allocation104_spill] sm:$0xff] }
 0x248   :  { %v2250_v10 = vadd.f32 %v2186_v25, %v2122_v38  ;;  %v2125_v25 = vadd.f32 %v2061_v14, %v1997_v35  ;;  %v7258_v35 = vld [vmem:[#allocation151_spill] sm:$0xff] }
 0x249   :  { %v1998_v24 = vmul.f32 %v1934_v4, %v4272_v41 }
 0x24a   :  { %2506 = vst [vmem:[%s6502_s7 + $0x88] sm:$0xff] %v2250_v10 }
 0x24b   :  { %v2673_v31 = vld [vmem:[%s6500_s4 + $0x98] sm:$0xff] }
 0x24c   :  { %v5677_v52 = vsub.f32 %v2673_v31, %v7244_v1  ;;  %2438 = vst [vmem:[%s6503_s6 + $0x68] sm:$0xff] %v2374_v59  ;;  %v1787_v59 = vmul.f32 0.125, %v5169_v37  ;;  %v2379_v31 = vsub.f32 %v5631_v12, %v2315_v21  ;;  %v2314_v1 = vmul.f32 3.0, %v2250_v10 }
 0x24e   :  { %v2188_v2 = vmul.f32 0.0001, %v5677_v52  ;;  %v1935_v28 = vsub.f32 %v1787_v59, %v7251_v26  ;;  %v2378_v12 = vsub.f32 %v5658_v6, %v2314_v1  ;;  %v7256_v59 = vld [vmem:[#allocation106_spill] sm:$0xff] }
 0x24f   :  { %v2062_v21 = vmul.f32 0.9, %v7256_v59 }
 0x250   :  { %v2252_v8 = vadd.f32 %v2188_v2, %v2124_v15  ;;  %v1999_v23 = vmul.f32 %v1935_v28, %v4240_v53  ;;  %v7257_v15 = vld [vmem:[#allocation120_spill] sm:$0xff]  ;;  %v7260_v28 = vld [vmem:[#allocation110_spill] sm:$0xff] }
 0x252   :  { %v2316_v50 = vmul.f32 3.0, %v2252_v8  ;;  %2508 = vst [vmem:[%s6502_s7 + $0x98] sm:$0xff] %v2252_v8 }
 0x253   :  { %v2674_v48 = vld [vmem:[%s6500_s4 + $0xa0] sm:$0xff] }
 0x254   :  { %v5693_v27 = vsub.f32 %v2674_v48, %v7246_v33  ;;  %2440 = vst [vmem:[%s6503_s6 + $0x78] sm:$0xff] %v2376_v40  ;;  %2441 = vst [vmem:[%s6503_s6 + $0x80] sm:$0xff] %v2377_v51  ;;  %v2063_v40 = vmul.f32 0.9, %v7252_v7  ;;  %v7253_v48 = vld [vmem:[#allocation98_spill] sm:$0xff]  ;;  %v2380_v6 = vsub.f32 %v5677_v52, %v2316_v50  ;;  %v7259_v52 = vld [vmem:[#allocation183_spill] sm:$0xff] }
 0x255   :  { %v7263_v50 = vld [vmem:[#allocation7_spill] sm:$0xff] }
 0x256   :  { %v2189_v11 = vmul.f32 0.0001, %v5693_v27  ;;  %v2127_v51 = vadd.f32 %v2063_v40, %v1999_v23  ;;  %v7261_v23 = vld [vmem:[#allocation152_spill] sm:$0xff]  ;;  %v1791_v3 = vmul.f32 0.125, %v7263_v50 }
 0x258   :  { %v2253_v49 = vadd.f32 %v2189_v11, %v2125_v25  ;;  %v1936_v11 = vsub.f32 %v1788_v58, %v7258_v35  ;;  %v7265_v58 = vld [vmem:[#allocation155_spill] sm:$0xff] }
 0x25a   :  { %v2317_v14 = vmul.f32 3.0, %v2253_v49  ;;  %2509 = vst [vmem:[%s6502_s7 + $0xa0] sm:$0xff] %v2253_v49  ;;  %v2000_v25 = vmul.f32 %v1936_v11, %v4284_v19  ;;  %v7264_v49 = vld [vmem:[#allocation112_spill] sm:$0xff] }
 0x25b   :  { %v2675_v37 = vld [vmem:[%s6500_s4 + $0xb0] sm:$0xff]  ;;  %v2676_v55 = vld [vmem:[%s6500_s4 + $0xa8] sm:$0xff] }
 0x25c   :  { %v1276_v18 = vsub.f32 %v2675_v37, %v7250_v42  ;;  %v5730_v33 = vsub.f32 %v2676_v55, %v7253_v48  ;;  %2443 = vst [vmem:[%s6503_s6 + $0x90] sm:$0xff] %v2379_v31  ;;  %v1789_v37 = vmul.f32 0.125, %v7259_v52  ;;  %v2126_v42 = vadd.f32 %v2062_v21, %v1998_v24  ;;  %v7262_v55 = vld [vmem:[#allocation97_spill] sm:$0xff]  ;;  %v7266_v24 = vld [vmem:[#allocation102_spill] sm:$0xff]  ;;  %v7269_v52 = vld [vmem:[#allocation116_spill] sm:$0xff] }
 0x25d   :  { %v2064_v31 = vmul.f32 0.9, %v7260_v28  ;;  %v2381_v8 = vsub.f32 %v5693_v27, %v2317_v14  ;;  %v2065_v48 = vmul.f32 0.9, %v7262_v55  ;;  %v2067_v59 = vmul.f32 0.9, %v7266_v24 }
 0x25e   :  { %v2191_v2 = vmul.f32 0.0001, %v1276_v18  ;;  %v2190_v26 = vmul.f32 0.0001, %v5730_v33  ;;  %v1937_v7 = vsub.f32 %v1789_v37, %v7261_v23  ;;  %v7270_v28 = vld [vmem:[#allocation156_spill] sm:$0xff]  ;;  %v7275_v24 = vld [vmem:[#allocation114_spill] sm:$0xff] }
 0x25f   :  { %v2128_v4 = vadd.f32 %v2064_v31, %v2000_v25 }
 0x260   :  { %v2255_v0 = vadd.f32 %v2191_v2, %v2127_v51  ;;  %v2254_v40 = vadd.f32 %v2190_v26, %v2126_v42 }
 0x262   :  { %v2319_v16 = vmul.f32 3.0, %v2255_v0  ;;  %2511 = vst [vmem:[%s6502_s7 + $0xb0] sm:$0xff] %v2255_v0  ;;  %v2318_v2 = vmul.f32 3.0, %v2254_v40  ;;  %2510 = vst [vmem:[%s6502_s7 + $0xa8] sm:$0xff] %v2254_v40  ;;  %v7268_v0 = vld [vmem:[#allocation115_spill] sm:$0xff] }
 0x263   :  { %v2677_v38 = vld [vmem:[%s6500_s4 + $0xb8] sm:$0xff] }
 0x264   :  { %v5744_v20 = vsub.f32 %v2677_v38, %v7255_v9  ;;  %2442 = vst [vmem:[%s6503_s6 + $0x88] sm:$0xff] %v2378_v12  ;;  %v2383_v27 = vsub.f32 %v1276_v18, %v2319_v16  ;;  %v2001_v38 = vmul.f32 %v1937_v7, %v4221_v30  ;;  %v7267_v18 = vld [vmem:[#allocation186_spill] sm:$0xff]  ;;  %v2382_v42 = vsub.f32 %v5730_v33, %v2318_v2  ;;  %v7272_v7 = vld [vmem:[#allocation107_spill] sm:$0xff] }
 0x265   :  { %v1790_v21 = vmul.f32 0.125, %v7267_v18  ;;  %v2066_v40 = vmul.f32 0.9, %v7272_v7  ;;  %v7276_v18 = vld [vmem:[#allocation164_spill] sm:$0xff] }
 0x266   :  { %v2192_v1 = vmul.f32 0.0001, %v5744_v20 }
 0x267   :  { %v1938_v31 = vsub.f32 %v1790_v21, %v7270_v28 }
 0x269   :  { %v2002_v55 = vmul.f32 %v1938_v31, %v4272_v41  ;;  %v7279_v31 = vld [vmem:[#allocation167_spill] sm:$0xff] }
 0x26b   :  { %v2678_v10 = vld [vmem:[%s6500_s4 + $0xc0] sm:$0xff] }
 0x26c   :  { %v5757_v39 = vsub.f32 %v2678_v10, %v7257_v15  ;;  %2444 = vst [vmem:[%s6503_s6 + $0x98] sm:$0xff] %v2380_v6  ;;  %2445 = vst [vmem:[%s6503_s6 + $0xa0] sm:$0xff] %v2381_v8  ;;  %v1939_v6 = vsub.f32 %v1791_v3, %v7265_v58  ;;  %v2256_v10 = vadd.f32 %v2192_v1, %v2128_v4  ;;  %v7271_v1 = vld [vmem:[#allocation187_spill] sm:$0xff] }
 0x26d   :  { %v2129_v15 = vadd.f32 %v2065_v48, %v2001_v38  ;;  %v1792_v8 = vmul.f32 0.125, %v7271_v1  ;;  %v7273_v48 = vld [vmem:[#allocation160_spill] sm:$0xff]  ;;  %v2130_v58 = vadd.f32 %v2066_v40, %v2002_v55 }
 0x26e   :  { %v2193_v12 = vmul.f32 0.0001, %v5757_v39  ;;  %v2003_v26 = vmul.f32 %v1939_v6, %v4240_v53  ;;  %v2320_v16 = vmul.f32 3.0, %v2256_v10  ;;  %2512 = vst [vmem:[%s6502_s7 + $0xb8] sm:$0xff] %v2256_v10  ;;  %v7281_v40 = vld [vmem:[#allocation8_spill] sm:$0xff] }
 0x26f   :  { %v1940_v50 = vsub.f32 %v1792_v8, %v7273_v48  ;;  %v7280_v8 = vld [vmem:[#allocation6_spill] sm:$0xff] }
 0x270   :  { %v2257_v25 = vadd.f32 %v2193_v12, %v2129_v15  ;;  %v2131_v33 = vadd.f32 %v2067_v59, %v2003_v26  ;;  %v2384_v12 = vsub.f32 %v5744_v20, %v2320_v16  ;;  %v2068_v59 = vmul.f32 0.9, %v7275_v24  ;;  %v7277_v15 = vld [vmem:[#allocation136_spill] sm:$0xff] }
 0x271   :  { %v2004_v6 = vmul.f32 %v1940_v50, %v4284_v19  ;;  %v7278_v26 = vld [vmem:[#allocation108_spill] sm:$0xff] }
 0x272   :  { %v2321_v38 = vmul.f32 3.0, %v2257_v25  ;;  %2513 = vst [vmem:[%s6502_s7 + $0xc0] sm:$0xff] %v2257_v25  ;;  %v2069_v28 = vmul.f32 0.9, %v7278_v26 }
 0x273   :  { %v2679_v9 = vld [vmem:[%s6500_s4 + $0xd0] sm:$0xff] }
 0x274   :  { %v5787_v51 = vsub.f32 %v2679_v9, %v7264_v49  ;;  %2447 = vst [vmem:[%s6503_s6 + $0xb0] sm:$0xff] %v2383_v27  ;;  %v7274_v27 = vld [vmem:[#allocation117_spill] sm:$0xff]  ;;  %v1793_v49 = vmul.f32 0.125, %v5225_v57  ;;  %v2385_v20 = vsub.f32 %v5757_v39, %v2321_v38  ;;  %v7283_v38 = vld [vmem:[#allocation168_spill] sm:$0xff] }
 0x276   :  { %v2195_v23 = vmul.f32 0.0001, %v5787_v51  ;;  %v1941_v21 = vsub.f32 %v1793_v49, %v7276_v18 }
 0x278   :  { %v2259_v2 = vadd.f32 %v2195_v23, %v2131_v33  ;;  %v1794_v33 = vmul.f32 0.125, %v7281_v40 }
 0x27a   :  { %2515 = vst [vmem:[%s6502_s7 + $0xd0] sm:$0xff] %v2259_v2 }
 0x27b   :  { %v2680_v14 = vld [vmem:[%s6500_s4 + $0xc8] sm:$0xff]  ;;  %v2681_v11 = vld [vmem:[%s6500_s4 + $0xd8] sm:$0xff] }
 0x27c   :  { %v5802_v35 = vsub.f32 %v2680_v14, %v7268_v0  ;;  %v5808_v37 = vsub.f32 %v2681_v11, %v7269_v52  ;;  %2446 = vst [vmem:[%s6503_s6 + $0xa8] sm:$0xff] %v2382_v42  ;;  %v1795_v14 = vmul.f32 0.125, %v5233_v44  ;;  %v2323_v0 = vmul.f32 3.0, %v2259_v2  ;;  %v7284_v2 = vld [vmem:[#allocation135_spill] sm:$0xff] }
 0x27d   :  { %v2132_v52 = vadd.f32 %v2068_v59, %v2004_v6  ;;  %v2005_v42 = vmul.f32 %v1941_v21, %v4221_v30 }
 0x27e   :  { %v2194_v9 = vmul.f32 0.0001, %v5802_v35  ;;  %v2196_v39 = vmul.f32 0.0001, %v5808_v37  ;;  %v1943_v1 = vsub.f32 %v1795_v14, %v7279_v31  ;;  %v2387_v25 = vsub.f32 %v5787_v51, %v2323_v0  ;;  %v7287_v0 = vld [vmem:[#allocation10_spill] sm:$0xff] }
 0x27f   :  { %v2133_v55 = vadd.f32 %v2069_v28, %v2005_v42  ;;  %v7288_v42 = vld [vmem:[#allocation171_spill] sm:$0xff] }
 0x280   :  { %v2258_v11 = vadd.f32 %v2194_v9, %v2130_v58  ;;  %v2260_v7 = vadd.f32 %v2196_v39, %v2132_v52  ;;  %v2007_v50 = vmul.f32 %v1943_v1, %v4240_v53  ;;  %v1942_v9 = vsub.f32 %v1794_v33, %v7283_v38  ;;  %v7294_v38 = vld [vmem:[#allocation196_spill] sm:$0xff] }
 0x282   :  { %v2322_v23 = vmul.f32 3.0, %v2258_v11  ;;  %2514 = vst [vmem:[%s6502_s7 + $0xc8] sm:$0xff] %v2258_v11  ;;  %2516 = vst [vmem:[%s6502_s7 + $0xd8] sm:$0xff] %v2260_v7  ;;  %v2006_v21 = vmul.f32 %v1942_v9, %v4272_v41  ;;  %v1799_v9 = vmul.f32 0.125, %v7294_v38 }
 0x283   :  { %v2682_v3 = vld [vmem:[%s6500_s4 + $0xe0] sm:$0xff] }
 0x284   :  { %v5828_v4 = vsub.f32 %v2682_v3, %v7274_v27  ;;  %2448 = vst [vmem:[%s6503_s6 + $0xb8] sm:$0xff] %v2384_v12  ;;  %v7282_v3 = vld [vmem:[#allocation111_spill] sm:$0xff]  ;;  %v2386_v51 = vsub.f32 %v5802_v35, %v2322_v23  ;;  %v2324_v12 = vmul.f32 3.0, %v2260_v7  ;;  %v7291_v23 = vld [vmem:[#allocation12_spill] sm:$0xff] }
 0x285   :  { %v2071_v27 = vmul.f32 0.9, %v7282_v3 }
 0x286   :  { %v2197_v48 = vmul.f32 0.0001, %v5828_v4  ;;  %v2388_v18 = vsub.f32 %v5808_v37, %v2324_v12  ;;  %v7289_v37 = vld [vmem:[#allocation45_spill] sm:$0xff] }
 0x287   :  { %v2135_v24 = vadd.f32 %v2071_v27, %v2007_v50  ;;  %v1797_v28 = vmul.f32 0.125, %v7289_v37 }
 0x288   :  { %v2261_v6 = vadd.f32 %v2197_v48, %v2133_v55  ;;  %v7292_v48 = vld [vmem:[#allocation172_spill] sm:$0xff] }
 0x289   :  { %v1945_v50 = vsub.f32 %v1797_v28, %v7292_v48 }
 0x28a   :  { %v2325_v52 = vmul.f32 3.0, %v2261_v6  ;;  %2517 = vst [vmem:[%s6502_s7 + $0xe0] sm:$0xff] %v2261_v6 }
 0x28b   :  { %v2683_v10 = vld [vmem:[%s6500_s4 + $0xf0] sm:$0xff] }
 0x28c   :  { %v5847_v57 = vsub.f32 %v2683_v10, %v7277_v15  ;;  %2449 = vst [vmem:[%s6503_s6 + $0xc0] sm:$0xff] %v2385_v20  ;;  %v7285_v20 = vld [vmem:[#allocation14_spill] sm:$0xff]  ;;  %v7286_v10 = vld [vmem:[#allocation119_spill] sm:$0xff]  ;;  %v2389_v40 = vsub.f32 %v5828_v4, %v2325_v52 }
 0x28d   :  { %v1796_v35 = vmul.f32 0.125, %v7285_v20  ;;  %v2070_v15 = vmul.f32 0.9, %v7286_v10 }
 0x28e   :  { %v2199_v59 = vmul.f32 0.0001, %v5847_v57 }
 0x28f   :  { %v1944_v26 = vsub.f32 %v1796_v35, %v7288_v42  ;;  %v2134_v31 = vadd.f32 %v2070_v15, %v2006_v21  ;;  %v7299_v42 = vld [vmem:[#allocation149_spill] sm:$0xff] }
 0x290   :  { %v2263_v39 = vadd.f32 %v2199_v59, %v2135_v24  ;;  %v7295_v24 = vld [vmem:[#allocation17_spill] sm:$0xff] }
 0x291   :  { %v2008_v55 = vmul.f32 %v1944_v26, %v4284_v19 }
 0x292   :  { %v2327_v33 = vmul.f32 3.0, %v2263_v39  ;;  %2519 = vst [vmem:[%s6502_s7 + $0xf0] sm:$0xff] %v2263_v39 }
 0x293   :  { %v2684_v44 = vld [vmem:[%s6500_s4 + $0xe8] sm:$0xff] }
 0x294   :  { %v5864_v16 = vsub.f32 %v2684_v44, %v7280_v8  ;;  %2451 = vst [vmem:[%s6503_s6 + $0xd0] sm:$0xff] %v2387_v25  ;;  %v7290_v44 = vld [vmem:[#allocation123_spill] sm:$0xff]  ;;  %v2391_v4 = vsub.f32 %v5847_v57, %v2327_v33  ;;  %v7302_v33 = vld [vmem:[#allocation4_spill] sm:$0xff] }
 0x295   :  { %v2072_v8 = vmul.f32 0.9, %v7290_v44  ;;  %v7297_v57 = vld [vmem:[#allocation199_spill] sm:$0xff]  ;;  %v7301_v44 = vld [vmem:[#allocation202_spill] sm:$0xff] }
 0x296   :  { %v2198_v1 = vmul.f32 0.0001, %v5864_v16  ;;  %v1798_v10 = vmul.f32 0.125, %v7297_v57 }
 0x298   :  { %v2262_v3 = vadd.f32 %v2198_v1, %v2134_v31  ;;  %v7300_v31 = vld [vmem:[#allocation176_spill] sm:$0xff] }
 0x299   :  { %v1946_v1 = vsub.f32 %v1798_v10, %v7300_v31  ;;  %v7310_v31 = vld [vmem:[#allocation139_spill] sm:$0xff] }
 0x29a   :  { %v2326_v20 = vmul.f32 3.0, %v2262_v3  ;;  %2518 = vst [vmem:[%s6502_s7 + $0xe8] sm:$0xff] %v2262_v3 }
 0x29b   :  { %v2685_v49 = vld [vmem:[%s6500_s4 + $0xf8] sm:$0xff]  ;;  %v2010_v48 = vmul.f32 %v1946_v1, %v4272_v41  ;;  %v2077_v1 = vmul.f32 0.9, %v7310_v31 }
 0x29c   :  { %v5886_v58 = vsub.f32 %v2685_v49, %v7284_v2  ;;  %2450 = vst [vmem:[%s6503_s6 + $0xc8] sm:$0xff] %v2386_v51  ;;  %v7293_v51 = vld [vmem:[#allocation130_spill] sm:$0xff]  ;;  %v2136_v49 = vadd.f32 %v2072_v8, %v2008_v55  ;;  %v2009_v2 = vmul.f32 %v1945_v50, %v4221_v30  ;;  %v2390_v37 = vsub.f32 %v5864_v16, %v2326_v20  ;;  %v7303_v50 = vld [vmem:[#allocation179_spill] sm:$0xff] }
 0x29d   :  { %v2073_v12 = vmul.f32 0.9, %v7293_v51  ;;  %v1800_v8 = vmul.f32 0.125, %v7301_v44  ;;  %v2074_v55 = vmul.f32 0.9, %v7302_v33  ;;  %v7304_v51 = vld [vmem:[#allocation18_spill] sm:$0xff] }
 0x29e   :  { %v2200_v27 = vmul.f32 0.0001, %v5886_v58  ;;  %v7311_v44 = vld [vmem:[#allocation185_spill] sm:$0xff] }
 0x29f   :  { %v1948_v3 = vsub.f32 %v1800_v8, %v7303_v50 }
 0x2a0   :  { %v2264_v15 = vadd.f32 %v2200_v27, %v2136_v49  ;;  %v7305_v49 = vld [vmem:[#allocation205_spill] sm:$0xff] }
 0x2a1   :  { %v2012_v20 = vmul.f32 %v1948_v3, %v4284_v19 }
 0x2a2   :  { %2520 = vst [vmem:[%s6502_s7 + $0xf8] sm:$0xff] %v2264_v15 }
 0x2a3   :  { %v2686_v14 = vld [vmem:[%s6500_s4 + $0x100] sm:$0xff] }
 0x2a4   :  { %v5900_v11 = vsub.f32 %v2686_v14, %v7287_v0  ;;  %2452 = vst [vmem:[%s6503_s6 + $0xd8] sm:$0xff] %v2388_v18  ;;  %v7296_v18 = vld [vmem:[#allocation175_spill] sm:$0xff]  ;;  %v2137_v14 = vadd.f32 %v2073_v12, %v2009_v2  ;;  %v7298_v0 = vld [vmem:[#allocation2_spill] sm:$0xff]  ;;  %v1801_v2 = vmul.f32 0.125, %v7305_v49 }
 0x2a5   :  { %v1947_v21 = vsub.f32 %v1799_v9, %v7296_v18  ;;  %v2075_v52 = vmul.f32 0.9, %v7298_v0  ;;  %v7309_v0 = vld [vmem:[#allocation28_spill] sm:$0xff]  ;;  %v7315_v49 = vld [vmem:[#allocation190_spill] sm:$0xff] }
 0x2a6   :  { %v2201_v35 = vmul.f32 0.0001, %v5900_v11 }
 0x2a7   :  { %v2011_v28 = vmul.f32 %v1947_v21, %v4240_v53  ;;  %v7307_v21 = vld [vmem:[#allocation182_spill] sm:$0xff] }
 0x2a8   :  { %v1949_v57 = vsub.f32 %v1801_v2, %v7307_v21  ;;  %v7317_v21 = vld [vmem:[#allocation213_spill] sm:$0xff] }
 0x2a9   :  { %v2139_v16 = vadd.f32 %v2075_v52, %v2011_v28  ;;  %v1803_v52 = vmul.f32 0.125, %v7309_v0 }
 0x2aa   :  { %v2013_v28 = vmul.f32 %v1949_v57, %v4221_v30 }
 0x2ab   :  { %v2687_v25 = vld [vmem:[%s6500_s4 + $0x110] sm:$0xff]  ;;  %v1951_v8 = vsub.f32 %v1803_v52, %v7311_v44 }
 0x2ac   :  { %v5916_v7 = vsub.f32 %v2687_v25, %v7291_v23  ;;  %2453 = vst [vmem:[%s6503_s6 + $0xe0] sm:$0xff] %v2389_v40  ;;  %v2328_v25 = vmul.f32 3.0, %v2264_v15  ;;  %v2265_v23 = vadd.f32 %v2201_v35, %v2137_v14  ;;  %v7306_v35 = vld [vmem:[#allocation5_spill] sm:$0xff]  ;;  %v7308_v15 = vld [vmem:[#allocation20_spill] sm:$0xff]  ;;  %v2141_v3 = vadd.f32 %v2077_v1, %v2013_v28  ;;  %v7320_v28 = vld [vmem:[#allocation191_spill] sm:$0xff] }
 0x2ad   :  { %v2076_v18 = vmul.f32 0.9, %v7306_v35 }
 0x2ae   :  { %v2203_v40 = vmul.f32 0.0001, %v5916_v7  ;;  %v2392_v38 = vsub.f32 %v5886_v58, %v2328_v25  ;;  %v2329_v9 = vmul.f32 3.0, %v2265_v23  ;;  %2521 = vst [vmem:[%s6502_s7 + $0x100] sm:$0xff] %v2265_v23  ;;  %v7312_v23 = vld [vmem:[#allocation159_spill] sm:$0xff] }
 0x2b0   :  { %v2393_v58 = vsub.f32 %v5900_v11, %v2329_v9 }
 0x2b3   :  { %v2688_v6 = vld [vmem:[%s6500_s4 + $0x108] sm:$0xff] }
 0x2b4   :  { %v5936_v59 = vsub.f32 %v2688_v6, %v7295_v24  ;;  %2455 = vst [vmem:[%s6503_s6 + $0xf0] sm:$0xff] %v2391_v4  ;;  %v2267_v6 = vadd.f32 %v2203_v40, %v2139_v16  ;;  %v2138_v24 = vadd.f32 %v2074_v55, %v2010_v48  ;;  %v7313_v48 = vld [vmem:[#allocation211_spill] sm:$0xff] }
 0x2b5   :  { %v1802_v50 = vmul.f32 0.125, %v7313_v48 }
 0x2b6   :  { %v2202_v4 = vmul.f32 0.0001, %v5936_v59  ;;  %2523 = vst [vmem:[%s6502_s7 + $0x110] sm:$0xff] %v2267_v6 }
 0x2b7   :  { %v1950_v2 = vsub.f32 %v1802_v50, %v7315_v49  ;;  %v1807_v49 = vmul.f32 0.125, %v5363_v13 }
 0x2bb   :  { %v2689_v39 = vld [vmem:[%s6500_s4 + $0x118] sm:$0xff] }
 0x2bc   :  { %v5952_v26 = vsub.f32 %v2689_v39, %v7299_v42  ;;  %2454 = vst [vmem:[%s6503_s6 + $0xe8] sm:$0xff] %v2390_v37  ;;  %v2331_v39 = vmul.f32 3.0, %v2267_v6  ;;  %v2266_v42 = vadd.f32 %v2202_v4, %v2138_v24  ;;  %v2140_v37 = vadd.f32 %v2076_v18, %v2012_v20  ;;  %v7316_v24 = vld [vmem:[#allocation24_spill] sm:$0xff] }
 0x2be   :  { %v2204_v11 = vmul.f32 0.0001, %v5952_v26  ;;  %v2395_v33 = vsub.f32 %v5916_v7, %v2331_v39  ;;  %v2330_v55 = vmul.f32 3.0, %v2266_v42  ;;  %2522 = vst [vmem:[%s6502_s7 + $0x108] sm:$0xff] %v2266_v42  ;;  %v7319_v39 = vld [vmem:[#allocation157_spill] sm:$0xff] }
 0x2c0   :  { %v2268_v16 = vadd.f32 %v2204_v11, %v2140_v37  ;;  %v2394_v7 = vsub.f32 %v5936_v59, %v2330_v55  ;;  %v1804_v59 = vmul.f32 0.125, %v7317_v21  ;;  %v7323_v55 = vld [vmem:[#allocation163_spill] sm:$0xff]  ;;  %v7327_v21 = vld [vmem:[#allocation193_spill] sm:$0xff] }
 0x2c2   :  { %v2332_v4 = vmul.f32 3.0, %v2268_v16  ;;  %2524 = vst [vmem:[%s6502_s7 + $0x118] sm:$0xff] %v2268_v16  ;;  %v1952_v31 = vsub.f32 %v1804_v59, %v7320_v28  ;;  %v1955_v59 = vsub.f32 %v1807_v49, %v7327_v21  ;;  %v7337_v21 = vld [vmem:[#allocation26_spill] sm:$0xff] }
 0x2c3   :  { %v2690_v27 = vld [vmem:[%s6500_s4 + $0x120] sm:$0xff] }
 0x2c4   :  { %v5972_v12 = vsub.f32 %v2690_v27, %v7304_v51  ;;  %2456 = vst [vmem:[%s6503_s6 + $0xf8] sm:$0xff] %v2392_v38  ;;  %v2015_v51 = vmul.f32 %v1951_v8, %v4240_v53  ;;  %v7314_v38 = vld [vmem:[#allocation146_spill] sm:$0xff]  ;;  %v2396_v57 = vsub.f32 %v5952_v26, %v2332_v4  ;;  %v2019_v28 = vmul.f32 %v1955_v59, %v4240_v53 }
 0x2c5   :  { %v2079_v9 = vmul.f32 0.9, %v7314_v38  ;;  %v7321_v26 = vld [vmem:[#allocation30_spill] sm:$0xff]  ;;  %v1811_v59 = vmul.f32 0.125, %v5389_v61 }
 0x2c6   :  { %v2205_v27 = vmul.f32 0.0001, %v5972_v12  ;;  %v1805_v1 = vmul.f32 0.125, %v7321_v26  ;;  %v7331_v26 = vld [vmem:[#allocation34_spill] sm:$0xff] }
 0x2c7   :  { %v2143_v18 = vadd.f32 %v2079_v9, %v2015_v51 }
 0x2c8   :  { %v2269_v35 = vadd.f32 %v2205_v27, %v2141_v3  ;;  %v2016_v3 = vmul.f32 %v1952_v31, %v4284_v19  ;;  %v7324_v27 = vld [vmem:[#allocation192_spill] sm:$0xff] }
 0x2c9   :  { %v1953_v51 = vsub.f32 %v1805_v1, %v7324_v27  ;;  %v1808_v1 = vmul.f32 0.125, %v7331_v26  ;;  %v7334_v27 = vld [vmem:[#allocation170_spill] sm:$0xff] }
 0x2ca   :  { %v2333_v37 = vmul.f32 3.0, %v2269_v35  ;;  %2525 = vst [vmem:[%s6502_s7 + $0x120] sm:$0xff] %v2269_v35  ;;  %v7326_v35 = vld [vmem:[#allocation169_spill] sm:$0xff] }
 0x2cb   :  { %v2691_v10 = vld [vmem:[%s6500_s4 + $0x130] sm:$0xff] }
 0x2cc   :  { %v5991_v14 = vsub.f32 %v2691_v10, %v7308_v15  ;;  %2457 = vst [vmem:[%s6503_s6 + $0x100] sm:$0xff] %v2393_v58  ;;  %v2014_v10 = vmul.f32 %v1950_v2, %v4272_v41  ;;  %v7318_v15 = vld [vmem:[#allocation11_spill] sm:$0xff]  ;;  %v2397_v48 = vsub.f32 %v5972_v12, %v2333_v37 }
 0x2cd   :  { %v2078_v0 = vmul.f32 0.9, %v7318_v15  ;;  %v7328_v15 = vld [vmem:[#allocation154_spill] sm:$0xff] }
 0x2ce   :  { %v2207_v58 = vmul.f32 0.0001, %v5991_v14 }
 0x2cf   :  { %v2142_v44 = vadd.f32 %v2078_v0, %v2014_v10  ;;  %v2083_v0 = vmul.f32 0.9, %v7328_v15 }
 0x2d0   :  { %v2271_v11 = vadd.f32 %v2207_v58, %v2143_v18 }
 0x2d2   :  { %v2335_v50 = vmul.f32 3.0, %v2271_v11  ;;  %2527 = vst [vmem:[%s6502_s7 + $0x130] sm:$0xff] %v2271_v11 }
 0x2d3   :  { %v2692_v25 = vld [vmem:[%s6500_s4 + $0x128] sm:$0xff] }
 0x2d4   :  { %v6008_v40 = vsub.f32 %v2692_v25, %v7312_v23  ;;  %2459 = vst [vmem:[%s6503_s6 + $0x110] sm:$0xff] %v2395_v33  ;;  %v7322_v25 = vld [vmem:[#allocation13_spill] sm:$0xff]  ;;  %v2399_v12 = vsub.f32 %v5991_v14, %v2335_v50  ;;  %v1806_v14 = vmul.f32 0.125, %v5367_v36  ;;  %v7330_v36 = vld [vmem:[#allocation194_spill] sm:$0xff] }
 0x2d5   :  { %v2080_v23 = vmul.f32 0.9, %v7322_v25 }
 0x2d6   :  { %v2206_v8 = vmul.f32 0.0001, %v6008_v40  ;;  %v1954_v31 = vsub.f32 %v1806_v14, %v7330_v36 }
 0x2d7   :  { %v2144_v2 = vadd.f32 %v2080_v23, %v2016_v3  ;;  %v7332_v23 = vld [vmem:[#allocation19_spill] sm:$0xff] }
 0x2d8   :  { %v2270_v38 = vadd.f32 %v2206_v8, %v2142_v44 }
 0x2da   :  { %v2334_v58 = vmul.f32 3.0, %v2270_v38  ;;  %2526 = vst [vmem:[%s6502_s7 + $0x128] sm:$0xff] %v2270_v38 }
 0x2db   :  { %v2693_v6 = vld [vmem:[%s6500_s4 + $0x138] sm:$0xff] }
 0x2dc   :  { %v6030_v20 = vsub.f32 %v2693_v6, %v7316_v24  ;;  %2458 = vst [vmem:[%s6503_s6 + $0x108] sm:$0xff] %v2394_v7  ;;  %v7325_v7 = vld [vmem:[#allocation150_spill] sm:$0xff]  ;;  %v2017_v6 = vmul.f32 %v1953_v51, %v4221_v30  ;;  %v2398_v11 = vsub.f32 %v6008_v40, %v2334_v58  ;;  %v2147_v40 = vadd.f32 %v2083_v0, %v2019_v28  ;;  %v7340_v28 = vld [vmem:[#allocation31_spill] sm:$0xff] }
 0x2dd   :  { %v2081_v4 = vmul.f32 0.9, %v7325_v7  ;;  %v7338_v0 = vld [vmem:[#allocation158_spill] sm:$0xff] }
 0x2de   :  { %v2208_v9 = vmul.f32 0.0001, %v6030_v20 }
 0x2df   :  { %v2145_v10 = vadd.f32 %v2081_v4, %v2017_v6  ;;  %v1809_v4 = vmul.f32 0.125, %v5384_v54  ;;  %v7335_v6 = vld [vmem:[#allocation153_spill] sm:$0xff] }
 0x2e3   :  { %v2694_v52 = vld [vmem:[%s6500_s4 + $0x140] sm:$0xff] }
 0x2e4   :  { %v6044_v42 = vsub.f32 %v2694_v52, %v7319_v39  ;;  %2460 = vst [vmem:[%s6503_s6 + $0x118] sm:$0xff] %v2396_v57  ;;  %v2272_v57 = vadd.f32 %v2208_v9, %v2144_v2  ;;  %v7329_v39 = vld [vmem:[#allocation166_spill] sm:$0xff] }
 0x2e6   :  { %v2209_v13 = vmul.f32 0.0001, %v6044_v42  ;;  %v2336_v44 = vmul.f32 3.0, %v2272_v57  ;;  %2528 = vst [vmem:[%s6502_s7 + $0x138] sm:$0xff] %v2272_v57 }
 0x2e8   :  { %v2273_v8 = vadd.f32 %v2209_v13, %v2145_v10  ;;  %v2400_v38 = vsub.f32 %v6030_v20, %v2336_v44  ;;  %v1810_v44 = vmul.f32 0.125, %v5391_v5 }
 0x2ea   :  { %v2337_v9 = vmul.f32 3.0, %v2273_v8  ;;  %2529 = vst [vmem:[%s6502_s7 + $0x140] sm:$0xff] %v2273_v8 }
 0x2eb   :  { %v2695_v33 = vld [vmem:[%s6500_s4 + $0x150] sm:$0xff] }
 0x2ec   :  { %v6060_v16 = vsub.f32 %v2695_v33, %v7323_v55  ;;  %2461 = vst [vmem:[%s6503_s6 + $0x120] sm:$0xff] %v2397_v48  ;;  %v2082_v33 = vmul.f32 0.9, %v7332_v23  ;;  %v2018_v55 = vmul.f32 %v1954_v31, %v4272_v41  ;;  %v7333_v48 = vld [vmem:[#allocation197_spill] sm:$0xff]  ;;  %v2401_v20 = vsub.f32 %v6044_v42, %v2337_v9 }
 0x2ed   :  { %v1956_v50 = vsub.f32 %v1808_v1, %v7333_v48  ;;  %v7342_v48 = vld [vmem:[#allocation201_spill] sm:$0xff] }
 0x2ee   :  { %v2211_v25 = vmul.f32 0.0001, %v6060_v16  ;;  %v1958_v5 = vsub.f32 %v1810_v44, %v7342_v48 }
 0x2ef   :  { %v2020_v2 = vmul.f32 %v1956_v50, %v4284_v19 }
 0x2f0   :  { %v2275_v49 = vadd.f32 %v2211_v25, %v2147_v40 }
 0x2f2   :  { %v2339_v14 = vmul.f32 3.0, %v2275_v49  ;;  %2531 = vst [vmem:[%s6502_s7 + $0x150] sm:$0xff] %v2275_v49  ;;  %v2022_v49 = vmul.f32 %v1958_v5, %v4272_v41 }
 0x2f3   :  { %v2696_v24 = vld [vmem:[%s6500_s4 + $0x148] sm:$0xff] }
 0x2f4   :  { %v6080_v18 = vsub.f32 %v2696_v24, %v7326_v35  ;;  %2463 = vst [vmem:[%s6503_s6 + $0x130] sm:$0xff] %v2399_v12  ;;  %v2146_v12 = vadd.f32 %v2082_v33, %v2018_v55  ;;  %v2084_v24 = vmul.f32 0.9, %v7335_v6  ;;  %v7336_v35 = vld [vmem:[#allocation198_spill] sm:$0xff]  ;;  %v2403_v31 = vsub.f32 %v6060_v16, %v2339_v14  ;;  %v7341_v33 = vld [vmem:[#allocation161_spill] sm:$0xff] }
 0x2f5   :  { %v1957_v58 = vsub.f32 %v1809_v4, %v7336_v35  ;;  %v2087_v40 = vmul.f32 0.9, %v7341_v33  ;;  %v7347_v14 = vld [vmem:[#allocation165_spill] sm:$0xff] }
 0x2f6   :  { %v2210_v7 = vmul.f32 0.0001, %v6080_v18  ;;  %v2148_v10 = vadd.f32 %v2084_v24, %v2020_v2  ;;  %v7345_v24 = vld [vmem:[#allocation32_spill] sm:$0xff] }
 0x2f7   :  { %v2021_v15 = vmul.f32 %v1957_v58, %v4221_v30  ;;  %v7346_v58 = vld [vmem:[#allocation203_spill] sm:$0xff] }
 0x2f8   :  { %v2274_v57 = vadd.f32 %v2210_v7, %v2146_v12  ;;  %v7344_v12 = vld [vmem:[#allocation162_spill] sm:$0xff] }
 0x2f9   :  { %v2086_v2 = vmul.f32 0.9, %v7344_v12  ;;  %v1816_v12 = vmul.f32 0.125, %v5438_v56 }
 0x2fa   :  { %v2338_v26 = vmul.f32 3.0, %v2274_v57  ;;  %2530 = vst [vmem:[%s6502_s7 + $0x148] sm:$0xff] %v2274_v57  ;;  %v2088_v57 = vmul.f32 0.9, %v7347_v14 }
 0x2fb   :  { %v2697_v52 = vld [vmem:[%s6500_s4 + $0x158] sm:$0xff] }
 0x2fc   :  { %v6096_v37 = vsub.f32 %v2697_v52, %v7329_v39  ;;  %2462 = vst [vmem:[%s6503_s6 + $0x128] sm:$0xff] %v2398_v11  ;;  %v2085_v52 = vmul.f32 0.9, %v7338_v0  ;;  %v7339_v39 = vld [vmem:[#allocation200_spill] sm:$0xff]  ;;  %v2402_v16 = vsub.f32 %v6080_v18, %v2338_v26  ;;  %v1812_v18 = vmul.f32 0.125, %v5398_v29 }
 0x2fd   :  { %v1959_v11 = vsub.f32 %v1811_v59, %v7339_v39  ;;  %v7349_v39 = vld [vmem:[#allocation204_spill] sm:$0xff] }
 0x2fe   :  { %v2212_v42 = vmul.f32 0.0001, %v6096_v37  ;;  %v2149_v8 = vadd.f32 %v2085_v52, %v2021_v15 }
 0x2ff   :  { %v2023_v23 = vmul.f32 %v1959_v11, %v4240_v53 }
 0x300   :  { %v2276_v1 = vadd.f32 %v2212_v42, %v2148_v10  ;;  %v7348_v42 = vld [vmem:[#allocation37_spill] sm:$0xff] }
 0x301   :  { %v2151_v9 = vadd.f32 %v2087_v40, %v2023_v23  ;;  %v7351_v23 = vld [vmem:[#allocation184_spill] sm:$0xff] }
 0x302   :  { %v2340_v55 = vmul.f32 3.0, %v2276_v1  ;;  %2532 = vst [vmem:[%s6502_s7 + $0x158] sm:$0xff] %v2276_v1  ;;  %v1815_v1 = vmul.f32 0.125, %v5422_v45 }
 0x303   :  { %v2698_v3 = vld [vmem:[%s6500_s4 + $0x160] sm:$0xff] }
 0x304   :  { %v6116_v51 = vsub.f32 %v2698_v3, %v7334_v27  ;;  %2464 = vst [vmem:[%s6503_s6 + $0x138] sm:$0xff] %v2400_v38  ;;  %v7343_v3 = vld [vmem:[#allocation177_spill] sm:$0xff]  ;;  %v2404_v4 = vsub.f32 %v6096_v37, %v2340_v55  ;;  %v1813_v37 = vmul.f32 0.125, %v5416_v32 }
 0x306   :  { %v2213_v25 = vmul.f32 0.0001, %v6116_v51  ;;  %v1961_v11 = vsub.f32 %v1813_v37, %v7349_v39  ;;  %v7359_v39 = vld [vmem:[#allocation27_spill] sm:$0xff] }
 0x308   :  { %v2277_v38 = vadd.f32 %v2213_v25, %v2149_v8  ;;  %v2025_v8 = vmul.f32 %v1961_v11, %v4221_v30  ;;  %v2092_v11 = vmul.f32 0.9, %v7359_v39 }
 0x30a   :  { %v2341_v35 = vmul.f32 3.0, %v2277_v38  ;;  %2533 = vst [vmem:[%s6502_s7 + $0x160] sm:$0xff] %v2277_v38 }
 0x30b   :  { %v2699_v13 = vld [vmem:[%s6500_s4 + $0x170] sm:$0xff] }
 0x30c   :  { %v6135_v54 = vsub.f32 %v2699_v13, %v7337_v21  ;;  %2465 = vst [vmem:[%s6503_s6 + $0x140] sm:$0xff] %v2401_v20  ;;  %v1960_v13 = vsub.f32 %v1812_v18, %v7346_v58  ;;  %v2150_v21 = vadd.f32 %v2086_v2, %v2022_v49  ;;  %v2405_v0 = vsub.f32 %v6116_v51, %v2341_v35  ;;  %v7356_v35 = vld [vmem:[#allocation25_spill] sm:$0xff] }
 0x30e   :  { %v2215_v7 = vmul.f32 0.0001, %v6135_v54  ;;  %v2024_v32 = vmul.f32 %v1960_v13, %v4284_v19  ;;  %v7357_v13 = vld [vmem:[#allocation210_spill] sm:$0xff] }
 0x30f   :  { %v1964_v37 = vsub.f32 %v1816_v12, %v7357_v13  ;;  %v7367_v12 = vld [vmem:[#allocation181_spill] sm:$0xff] }
 0x310   :  { %v2279_v29 = vadd.f32 %v2215_v7, %v2151_v9  ;;  %v2152_v44 = vadd.f32 %v2088_v57, %v2024_v32  ;;  %v7354_v9 = vld [vmem:[#allocation38_spill] sm:$0xff] }
 0x311   :  { %v2028_v32 = vmul.f32 %v1964_v37, %v4284_v19 }
 0x312   :  { %v2343_v52 = vmul.f32 3.0, %v2279_v29  ;;  %2535 = vst [vmem:[%s6502_s7 + $0x170] sm:$0xff] %v2279_v29  ;;  %v2090_v29 = vmul.f32 0.9, %v7356_v35 }
 0x313   :  { %v2700_v61 = vld [vmem:[%s6500_s4 + $0x168] sm:$0xff] }
 0x314   :  { %v6152_v36 = vsub.f32 %v2700_v61, %v7340_v28  ;;  %2467 = vst [vmem:[%s6503_s6 + $0x150] sm:$0xff] %v2403_v31  ;;  %v7350_v31 = vld [vmem:[#allocation173_spill] sm:$0xff]  ;;  %v2407_v51 = vsub.f32 %v6135_v54, %v2343_v52  ;;  %v1814_v54 = vmul.f32 0.125, %v5424_v63 }
 0x315   :  { %v2089_v26 = vmul.f32 0.9, %v7350_v31  ;;  %v7355_v63 = vld [vmem:[#allocation209_spill] sm:$0xff] }
 0x316   :  { %v2214_v59 = vmul.f32 0.0001, %v6152_v36  ;;  %v1962_v49 = vsub.f32 %v1814_v54, %v7355_v63 }
 0x317   :  { %v2153_v5 = vadd.f32 %v2089_v26, %v2025_v8  ;;  %v7361_v26 = vld [vmem:[#allocation15_spill] sm:$0xff] }
 0x318   :  { %v2278_v61 = vadd.f32 %v2214_v59, %v2150_v21  ;;  %v2026_v58 = vmul.f32 %v1962_v49, %v4272_v41  ;;  %v7358_v21 = vld [vmem:[#allocation3_spill] sm:$0xff] }
 0x31a   :  { %v2342_v40 = vmul.f32 3.0, %v2278_v61  ;;  %2534 = vst [vmem:[%s6502_s7 + $0x168] sm:$0xff] %v2278_v61  ;;  %v2154_v52 = vadd.f32 %v2090_v29, %v2026_v58  ;;  %v7360_v61 = vld [vmem:[#allocation212_spill] sm:$0xff] }
 0x31b   :  { %v2701_v50 = vld [vmem:[%s6500_s4 + $0x178] sm:$0xff] }
 0x31c   :  { %v6174_v27 = vsub.f32 %v2701_v50, %v7343_v3  ;;  %2466 = vst [vmem:[%s6503_s6 + $0x148] sm:$0xff] %v2402_v16  ;;  %v7352_v16 = vld [vmem:[#allocation206_spill] sm:$0xff]  ;;  %v2406_v18 = vsub.f32 %v6152_v36, %v2342_v40 }
 0x31d   :  { %v1963_v55 = vsub.f32 %v1815_v1, %v7352_v16  ;;  %v7353_v50 = vld [vmem:[#allocation174_spill] sm:$0xff]  ;;  %v7364_v16 = vld [vmem:[#allocation29_spill] sm:$0xff] }
 0x31e   :  { %v2216_v28 = vmul.f32 0.0001, %v6174_v27  ;;  %v2091_v3 = vmul.f32 0.9, %v7353_v50  ;;  %v7362_v1 = vld [vmem:[#allocation54_spill] sm:$0xff] }
 0x31f   :  { %v7363_v40 = vld [vmem:[#allocation178_spill] sm:$0xff] }
 0x320   :  { %v2280_v48 = vadd.f32 %v2216_v28, %v2152_v44 }
 0x322   :  { %v2344_v2 = vmul.f32 3.0, %v2280_v48  ;;  %2536 = vst [vmem:[%s6502_s7 + $0x178] sm:$0xff] %v2280_v48  ;;  %v7365_v48 = vld [vmem:[#allocation40_spill] sm:$0xff] }
 0x323   :  { %v2702_v6 = vld [vmem:[%s6500_s4 + $0x180] sm:$0xff] }
 0x324   :  { %v6188_v20 = vsub.f32 %v2702_v6, %v7345_v24  ;;  %2468 = vst [vmem:[%s6503_s6 + $0x158] sm:$0xff] %v2404_v4  ;;  %v2027_v4 = vmul.f32 %v1963_v55, %v4240_v53  ;;  %v2408_v14 = vsub.f32 %v6174_v27, %v2344_v2  ;;  %v2095_v2 = vmul.f32 0.9, %v7367_v12  ;;  %v7380_v12 = vld [vmem:[#allocation221_spill] sm:$0xff] }
 0x326   :  { %v2217_v45 = vmul.f32 0.0001, %v6188_v20  ;;  %v2155_v36 = vadd.f32 %v2091_v3, %v2027_v4 }
 0x328   :  { %v2281_v6 = vadd.f32 %v2217_v45, %v2153_v5  ;;  %v2093_v45 = vmul.f32 0.9, %v7363_v40 }
 0x32a   :  { %v2345_v57 = vmul.f32 3.0, %v2281_v6  ;;  %2537 = vst [vmem:[%s6502_s7 + $0x180] sm:$0xff] %v2281_v6 }
 0x32b   :  { %v2703_v10 = vld [vmem:[%s6500_s4 + $0x190] sm:$0xff] }
 0x32c   :  { %v6204_v15 = vsub.f32 %v2703_v10, %v7348_v42  ;;  %2469 = vst [vmem:[%s6503_s6 + $0x160] sm:$0xff] %v2405_v0  ;;  %v1817_v42 = vmul.f32 0.125, %v5454_v46  ;;  %v2409_v27 = vsub.f32 %v6188_v20, %v2345_v57 }
 0x32e   :  { %v2219_v24 = vmul.f32 0.0001, %v6204_v15  ;;  %v1965_v28 = vsub.f32 %v1817_v42, %v7360_v61 }
 0x330   :  { %v2283_v0 = vadd.f32 %v2219_v24, %v2155_v36  ;;  %v7368_v24 = vld [vmem:[#allocation214_spill] sm:$0xff]  ;;  %v7369_v36 = vld [vmem:[#allocation44_spill] sm:$0xff] }
 0x332   :  { %v2347_v44 = vmul.f32 3.0, %v2283_v0  ;;  %2539 = vst [vmem:[%s6502_s7 + $0x190] sm:$0xff] %v2283_v0 }
 0x333   :  { %v2704_v25 = vld [vmem:[%s6500_s4 + $0x188] sm:$0xff] }
 0x334   :  { %v6224_v33 = vsub.f32 %v2704_v25, %v7351_v23  ;;  %2471 = vst [vmem:[%s6503_s6 + $0x170] sm:$0xff] %v2407_v51  ;;  %v1819_v51 = vmul.f32 0.125, %v7362_v1  ;;  %v2156_v25 = vadd.f32 %v2092_v11, %v2028_v32  ;;  %v2029_v23 = vmul.f32 %v1965_v28, %v4221_v30  ;;  %v7375_v1 = vld [vmem:[#allocation180_spill] sm:$0xff] }
 0x335   :  { %v2411_v50 = vsub.f32 %v6204_v15, %v2347_v44 }
 0x336   :  { %v2218_v10 = vmul.f32 0.0001, %v6224_v33  ;;  %v1967_v55 = vsub.f32 %v1819_v51, %v7364_v16  ;;  %v2157_v4 = vadd.f32 %v2093_v45, %v2029_v23  ;;  %v2096_v51 = vmul.f32 0.9, %v7375_v1  ;;  %v7377_v45 = vld [vmem:[#allocation220_spill] sm:$0xff] }
 0x338   :  { %v2282_v8 = vadd.f32 %v2218_v10, %v2154_v52  ;;  %v2031_v49 = vmul.f32 %v1967_v55, %v4240_v53  ;;  %v7371_v10 = vld [vmem:[#allocation33_spill] sm:$0xff]  ;;  %v7372_v52 = vld [vmem:[#allocation195_spill] sm:$0xff] }
 0x339   :  { %v2094_v42 = vmul.f32 0.9, %v7371_v10 }
 0x33a   :  { %v2346_v3 = vmul.f32 3.0, %v2282_v8  ;;  %2538 = vst [vmem:[%s6502_s7 + $0x188] sm:$0xff] %v2282_v8  ;;  %v2159_v37 = vadd.f32 %v2095_v2, %v2031_v49  ;;  %v7376_v8 = vld [vmem:[#allocation47_spill] sm:$0xff] }
 0x33b   :  { %v2705_v38 = vld [vmem:[%s6500_s4 + $0x198] sm:$0xff] }
 0x33c   :  { %v6240_v7 = vsub.f32 %v2705_v38, %v7354_v9  ;;  %2470 = vst [vmem:[%s6503_s6 + $0x168] sm:$0xff] %v2406_v18  ;;  %v7366_v9 = vld [vmem:[#allocation55_spill] sm:$0xff]  ;;  %v2410_v15 = vsub.f32 %v6224_v33, %v2346_v3  ;;  %v1823_v3 = vmul.f32 0.125, %v5511_v47 }
 0x33d   :  { %v1818_v18 = vmul.f32 0.125, %v7366_v9 }
 0x33e   :  { %v2220_v20 = vmul.f32 0.0001, %v6240_v7  ;;  %v1971_v2 = vsub.f32 %v1823_v3, %v7380_v12 }
 0x33f   :  { %v1966_v35 = vsub.f32 %v1818_v18, %v7368_v24  ;;  %v7381_v24 = vld [vmem:[#allocation189_spill] sm:$0xff] }
 0x340   :  { %v2284_v38 = vadd.f32 %v2220_v20, %v2156_v25 }
 0x341   :  { %v2030_v57 = vmul.f32 %v1966_v35, %v4272_v41  ;;  %v2099_v35 = vmul.f32 0.9, %v7381_v24  ;;  %v7393_v24 = vld [vmem:[#allocation51_spill] sm:$0xff] }
 0x342   :  { %v2348_v6 = vmul.f32 3.0, %v2284_v38  ;;  %2540 = vst [vmem:[%s6502_s7 + $0x198] sm:$0xff] %v2284_v38 }
 0x343   :  { %v2706_v56 = vld [vmem:[%s6500_s4 + $0x1a0] sm:$0xff] }
 0x344   :  { %v6260_v59 = vsub.f32 %v2706_v56, %v7358_v21  ;;  %2472 = vst [vmem:[%s6503_s6 + $0x178] sm:$0xff] %v2408_v14  ;;  %v7370_v21 = vld [vmem:[#allocation56_spill] sm:$0xff]  ;;  %v2412_v14 = vsub.f32 %v6240_v7, %v2348_v6  ;;  %v7374_v7 = vld [vmem:[#allocation215_spill] sm:$0xff] }
 0x345   :  { %v1820_v33 = vmul.f32 0.125, %v7370_v21  ;;  %v1821_v28 = vmul.f32 0.125, %v7374_v7 }
 0x346   :  { %v2221_v63 = vmul.f32 0.0001, %v6260_v59 }
 0x347   :  { %v1969_v16 = vsub.f32 %v1821_v28, %v7377_v45 }
 0x348   :  { %v2285_v13 = vadd.f32 %v2221_v63, %v2157_v4  ;;  %v7379_v4 = vld [vmem:[#allocation52_spill] sm:$0xff] }
 0x349   :  { %v2033_v9 = vmul.f32 %v1969_v16, %v4221_v30  ;;  %v7389_v16 = vld [vmem:[#allocation207_spill] sm:$0xff] }
 0x34a   :  { %v2349_v39 = vmul.f32 3.0, %v2285_v13  ;;  %2541 = vst [vmem:[%s6502_s7 + $0x1a0] sm:$0xff] %v2285_v13 }
 0x34b   :  { %v2707_v31 = vld [vmem:[%s6500_s4 + $0x1b0] sm:$0xff] }
 0x34c   :  { %v6279_v46 = vsub.f32 %v2707_v31, %v7361_v26  ;;  %2473 = vst [vmem:[%s6503_s6 + $0x180] sm:$0xff] %v2409_v27  ;;  %v7373_v27 = vld [vmem:[#allocation217_spill] sm:$0xff]  ;;  %v2158_v31 = vadd.f32 %v2094_v42, %v2030_v57  ;;  %v2413_v20 = vsub.f32 %v6260_v59, %v2349_v39  ;;  %v7385_v39 = vld [vmem:[#allocation42_spill] sm:$0xff] }
 0x34d   :  { %v1968_v61 = vsub.f32 %v1820_v33, %v7373_v27  ;;  %v1824_v33 = vmul.f32 0.125, %v5548_v22  ;;  %v7384_v42 = vld [vmem:[#allocation9_spill] sm:$0xff]  ;;  %v7386_v27 = vld [vmem:[#allocation23_spill] sm:$0xff] }
 0x34e   :  { %v2223_v56 = vmul.f32 0.0001, %v6279_v46 }
 0x34f   :  { %v2032_v40 = vmul.f32 %v1968_v61, %v4284_v19 }
 0x350   :  { %v2287_v11 = vadd.f32 %v2223_v56, %v2159_v37  ;;  %v2035_v56 = vmul.f32 %v1971_v2, %v4240_v53 }
 0x351   :  { %v2160_v38 = vadd.f32 %v2096_v51, %v2032_v40 }
 0x352   :  { %v2351_v23 = vmul.f32 3.0, %v2287_v11  ;;  %2543 = vst [vmem:[%s6502_s7 + $0x1b0] sm:$0xff] %v2287_v11  ;;  %v1972_v11 = vsub.f32 %v1824_v33, %v7385_v39 }
 0x353   :  { %v2708_v54 = vld [vmem:[%s6500_s4 + $0x1a8] sm:$0xff] }
 0x354   :  { %v6296_v5 = vsub.f32 %v2708_v54, %v7365_v48  ;;  %2475 = vst [vmem:[%s6503_s6 + $0x190] sm:$0xff] %v2411_v50  ;;  %v7378_v48 = vld [vmem:[#allocation188_spill] sm:$0xff]  ;;  %v2415_v59 = vsub.f32 %v6279_v46, %v2351_v23  ;;  %v1822_v46 = vmul.f32 0.125, %v5533_v60  ;;  %v7383_v60 = vld [vmem:[#allocation222_spill] sm:$0xff]  ;;  %v7388_v23 = vld [vmem:[#allocation43_spill] sm:$0xff] }
 0x355   :  { %v2097_v50 = vmul.f32 0.9, %v7378_v48 }
 0x356   :  { %v2222_v26 = vmul.f32 0.0001, %v6296_v5  ;;  %v1970_v21 = vsub.f32 %v1822_v46, %v7383_v60 }
 0x357   :  { %v2161_v6 = vadd.f32 %v2097_v50, %v2033_v9  ;;  %v7391_v9 = vld [vmem:[#allocation48_spill] sm:$0xff] }
 0x358   :  { %v2286_v55 = vadd.f32 %v2222_v26, %v2158_v31  ;;  %v1825_v26 = vmul.f32 0.125, %v5566_v34 }
 0x35a   :  { %v2350_v49 = vmul.f32 3.0, %v2286_v55  ;;  %2542 = vst [vmem:[%s6502_s7 + $0x1a8] sm:$0xff] %v2286_v55  ;;  %v1973_v40 = vsub.f32 %v1825_v26, %v7388_v23  ;;  %v1827_v55 = vmul.f32 0.125, %v5583_v43 }
 0x35b   :  { %v2709_v29 = vld [vmem:[%s6500_s4 + $0x1b8] sm:$0xff] }
 0x35c   :  { %v6318_v58 = vsub.f32 %v2709_v29, %v7369_v36  ;;  %2474 = vst [vmem:[%s6503_s6 + $0x188] sm:$0xff] %v2410_v15  ;;  %v7382_v36 = vld [vmem:[#allocation21_spill] sm:$0xff]  ;;  %v2414_v37 = vsub.f32 %v6296_v5, %v2350_v49  ;;  %v2163_v5 = vadd.f32 %v2099_v35, %v2035_v56  ;;  %v2103_v35 = vmul.f32 0.9, %v7393_v24 }
 0x35e   :  { %v2224_v54 = vmul.f32 0.0001, %v6318_v58 }
 0x360   :  { %v2288_v15 = vadd.f32 %v2224_v54, %v2160_v38 }
 0x362   :  { %2544 = vst [vmem:[%s6502_s7 + $0x1b8] sm:$0xff] %v2288_v15 }
 0x363   :  { %v2710_v0 = vld [vmem:[%s6500_s4 + $0x1c0] sm:$0xff] }
 0x364   :  { %v6332_v32 = vsub.f32 %v2710_v0, %v7372_v52  ;;  %2476 = vst [vmem:[%s6503_s6 + $0x198] sm:$0xff] %v2412_v14  ;;  %v2352_v14 = vmul.f32 3.0, %v2288_v15  ;;  %v2098_v0 = vmul.f32 0.9, %v7384_v42  ;;  %v2034_v52 = vmul.f32 %v1970_v21, %v4272_v41 }
 0x366   :  { %v2225_v47 = vmul.f32 0.0001, %v6332_v32  ;;  %v2416_v7 = vsub.f32 %v6318_v58, %v2352_v14  ;;  %v2162_v51 = vadd.f32 %v2098_v0, %v2034_v52  ;;  %v1828_v14 = vmul.f32 0.125, %v5633_v17  ;;  %v7397_v52 = vld [vmem:[#allocation50_spill] sm:$0xff] }
 0x368   :  { %v2289_v57 = vadd.f32 %v2225_v47, %v2161_v6  ;;  %v1976_v39 = vsub.f32 %v1828_v14, %v7397_v52 }
 0x36a   :  { %v2353_v28 = vmul.f32 3.0, %v2289_v57  ;;  %2545 = vst [vmem:[%s6502_s7 + $0x1c0] sm:$0xff] %v2289_v57 }
 0x36b   :  { %v2711_v44 = vld [vmem:[%s6500_s4 + $0x1d0] sm:$0xff] }
 0x36c   :  { %v6348_v25 = vsub.f32 %v2711_v44, %v7376_v8  ;;  %2477 = vst [vmem:[%s6503_s6 + $0x1a0] sm:$0xff] %v2413_v20  ;;  %v2036_v44 = vmul.f32 %v1972_v11, %v4284_v19  ;;  %v7387_v8 = vld [vmem:[#allocation39_spill] sm:$0xff]  ;;  %v2417_v58 = vsub.f32 %v6332_v32, %v2353_v28  ;;  %v2037_v32 = vmul.f32 %v1973_v40, %v4221_v30 }
 0x36d   :  { %v2100_v20 = vmul.f32 0.9, %v7387_v8  ;;  %v1826_v30 = vmul.f32 0.125, %v5599_v62 }
 0x36e   :  { %v2227_v10 = vmul.f32 0.0001, %v6348_v25 }
 0x36f   :  { %v2164_v50 = vadd.f32 %v2100_v20, %v2036_v44 }
 0x370   :  { %v2291_v1 = vadd.f32 %v2227_v10, %v2163_v5  ;;  %v7396_v10 = vld [vmem:[#allocation16_spill] sm:$0xff] }
 0x371   :  { %v2102_v42 = vmul.f32 0.9, %v7396_v10 }
 0x372   :  { %v2355_v54 = vmul.f32 3.0, %v2291_v1  ;;  %2547 = vst [vmem:[%s6502_s7 + $0x1d0] sm:$0xff] %v2291_v1 }
 0x373   :  { %v2712_v18 = vld [vmem:[%s6500_s4 + $0x1c8] sm:$0xff] }
 0x374   :  { %v6368_v63 = vsub.f32 %v2712_v18, %v7379_v4  ;;  %2479 = vst [vmem:[%s6503_s6 + $0x1b0] sm:$0xff] %v2415_v59  ;;  %v7390_v59 = vld [vmem:[#allocation46_spill] sm:$0xff]  ;;  %v1975_v18 = vsub.f32 %v1827_v55, %v7391_v9  ;;  %v7392_v4 = vld [vmem:[#allocation208_spill] sm:$0xff]  ;;  %v2419_v47 = vsub.f32 %v6348_v25, %v2355_v54 }
 0x375   :  { %v2101_v38 = vmul.f32 0.9, %v7390_v59 }
 0x376   :  { %v2226_v31 = vmul.f32 0.0001, %v6368_v63  ;;  %v2039_v6 = vmul.f32 %v1975_v18, %v4240_v53  ;;  %v7395_v53 = vld [vmem:[#allocation53_spill] sm:$0xff] }
 0x377   :  { %v2165_v46 = vadd.f32 %v2101_v38, %v2037_v32 }
 0x378   :  { %v2290_v48 = vadd.f32 %v2226_v31, %v2162_v51  ;;  %v2167_v21 = vadd.f32 %v2103_v35, %v2039_v6 }
 0x37a   :  { %v2354_v12 = vmul.f32 3.0, %v2290_v48  ;;  %2546 = vst [vmem:[%s6502_s7 + $0x1c8] sm:$0xff] %v2290_v48 }
 0x37b   :  { %v2713_v29 = vld [vmem:[%s6500_s4 + $0x1d8] sm:$0xff] }
 0x37c   :  { %v6384_v13 = vsub.f32 %v2713_v29, %v7382_v36  ;;  %2478 = vst [vmem:[%s6503_s6 + $0x1a8] sm:$0xff] %v2414_v37  ;;  %v2418_v25 = vsub.f32 %v6368_v63, %v2354_v12  ;;  %v7394_v36 = vld [vmem:[#allocation49_spill] sm:$0xff] }
 0x37d   :  { %v1974_v62 = vsub.f32 %v1826_v30, %v7394_v36 }
 0x37e   :  { %v2228_v3 = vmul.f32 0.0001, %v6384_v13 }
 0x37f   :  { %v2038_v57 = vmul.f32 %v1974_v62, %v4272_v41  ;;  %v2040_v41 = vmul.f32 %v1976_v39, %v4284_v19 }
 0x380   :  { %v2292_v2 = vadd.f32 %v2228_v3, %v2164_v50 }
 0x381   :  { %v2166_v17 = vadd.f32 %v2102_v42, %v2038_v57 }
 0x382   :  { %v2356_v29 = vmul.f32 3.0, %v2292_v2  ;;  %2548 = vst [vmem:[%s6502_s7 + $0x1d8] sm:$0xff] %v2292_v2 }
 0x383   :  { %v2714_v22 = vld [vmem:[%s6500_s4 + $0x1e0] sm:$0xff] }
 0x384   :  { %v6404_v61 = vsub.f32 %v2714_v22, %v7386_v27  ;;  %2480 = vst [vmem:[%s6503_s6 + $0x1b8] sm:$0xff] %v2416_v7  ;;  %v2420_v63 = vsub.f32 %v6384_v13, %v2356_v29  ;;  %v7398_v27 = vld [vmem:[#allocation22_spill] sm:$0xff] }
 0x385   :  { %v2104_v7 = vmul.f32 0.9, %v7398_v27 }
 0x386   :  { %v2229_v15 = vmul.f32 0.0001, %v6404_v61 }
 0x387   :  { %v2168_v26 = vadd.f32 %v2104_v7, %v2040_v41 }
 0x388   :  { %v2293_v60 = vadd.f32 %v2229_v15, %v2165_v46 }
 0x38a   :  { %v2357_v0 = vmul.f32 3.0, %v2293_v60  ;;  %2549 = vst [vmem:[%s6502_s7 + $0x1e0] sm:$0xff] %v2293_v60 }
 0x38b   :  { %v2715_v45 = vld [vmem:[%s6500_s4 + $0x1f0] sm:$0xff] }
 0x38c   :  { %v1316_v34 = vsub.f32 %v2715_v45, %v7389_v16  ;;  %2481 = vst [vmem:[%s6503_s6 + $0x1c0] sm:$0xff] %v2417_v58  ;;  %v2421_v13 = vsub.f32 %v6404_v61, %v2357_v0 }
 0x38e   :  { %v2231_v33 = vmul.f32 0.0001, %v1316_v34 }
 0x390   :  { %v2295_v5 = vadd.f32 %v2231_v33, %v2167_v21 }
 0x392   :  { %v2359_v22 = vmul.f32 3.0, %v2295_v5  ;;  %2551 = vst [vmem:[%s6502_s7 + $0x1f0] sm:$0xff] %v2295_v5 }
 0x393   :  { %v2716_v43 = vld [vmem:[%s6500_s4 + $0x1e8] sm:$0xff] }
 0x394   :  { %v1315_v49 = vsub.f32 %v2716_v43, %v7392_v4  ;;  %2483 = vst [vmem:[%s6503_s6 + $0x1d0] sm:$0xff] %v2419_v47  ;;  %v2423_v31 = vsub.f32 %v1316_v34, %v2359_v22 }
 0x396   :  { %v2230_v11 = vmul.f32 0.0001, %v1315_v49 }
 0x398   :  { %v2294_v28 = vadd.f32 %v2230_v11, %v2166_v17 }
 0x39a   :  { %v2358_v51 = vmul.f32 3.0, %v2294_v28  ;;  %2550 = vst [vmem:[%s6502_s7 + $0x1e8] sm:$0xff] %v2294_v28 }
 0x39b   :  { %v2717_v37 = vld [vmem:[%s6500_s4 + $0x1f8] sm:$0xff] }
 0x39c   :  { %v1317_v56 = vsub.f32 %v2717_v37, %v7395_v53  ;;  %2482 = vst [vmem:[%s6503_s6 + $0x1c8] sm:$0xff] %v2418_v25  ;;  %2484 = vst [vmem:[%s6503_s6 + $0x1d8] sm:$0xff] %v2420_v63  ;;  %v2422_v61 = vsub.f32 %v1315_v49, %v2358_v51 }
 0x39d   :  { %2485 = vst [vmem:[%s6503_s6 + $0x1e0] sm:$0xff] %v2421_v13  ;;  %2487 = vst [vmem:[%s6503_s6 + $0x1f0] sm:$0xff] %v2423_v31 }
 0x39e   :  { %v2232_v1 = vmul.f32 0.0001, %v1317_v56  ;;  %2486 = vst [vmem:[%s6503_s6 + $0x1e8] sm:$0xff] %v2422_v61 }
 0x3a0   :  { %v2296_v19 = vadd.f32 %v2232_v1, %v2168_v26 }
 0x3a2   :  { %v2360_v44 = vmul.f32 3.0, %v2296_v19  ;;  %2552 = vst [vmem:[%s6502_s7 + $0x1f8] sm:$0xff] %v2296_v19 }
 0x3a4   :  { %v2424_v8 = vsub.f32 %v1317_v56, %v2360_v44 }
 0x3a6   :  { %2488 = vst [vmem:[%s6503_s6 + $0x1f8] sm:$0xff] %v2424_v8 }

// kernel: scd_net_forward.21
= control target key start
LH: loop header
LB: loop body
LE: loop exit
PB: predicated region body
PF: predicated region fallthrough
CT: control target
= control target key end

     0   :  { %v1528_v0 = vmov 1   ;;  %v1529_v2 = vmov 2   ;;  %v1530_v3 = vmov 0.0   ;;  %vm207_vm0 = vcmask 64512   ;;  %s3756_s2 = inlined_call_operand.vmem [shape: f32[8,128], index: 2, kind: input, shape index: {}]   ;;  %s3757_s1 = inlined_call_operand.vmem [shape: f32[8,512], index: 1, kind: input, shape index: {}]   ;;  %s3758_s3 = inlined_call_operand.vmem [shape: f32[1,512], index: 3, kind: input, shape index: {}]   ;;  %s3759_s0 = inlined_call_operand.vmem [shape: f32[128,8], index: 0, kind: input, shape index: {}]   ;;  %s3760_s4 = inlined_call_operand.vmem [shape: f32[128,512], index: 4, kind: input, shape index: {}, may-alias: {4,6}]   ;;  %s3761_s5 = inlined_call_operand.vmem [shape: f32[128,512], index: 5, kind: input, shape index: {}, may-alias: {5,7}]   ;;  %s3762_s7 = inlined_call_operand.vmem [shape: f32[128,512], index: 7, kind: output, shape index: {1}, may-alias: {5,7}]   ;;  %s3763_s6 = inlined_call_operand.vmem [shape: f32[128,512], index: 6, kind: output, shape index: {0}, may-alias: {4,6}]  }
   0x1   :  { %1484 = vset.pattern.permute.xlu0 %v1528_v0  ;;  %v173_v1 = vld [vmem:[%s3756_s2] sm:$0xff]  ;;  %320 = vmatprep.mubr.f32.mxu0 %v1530_v3  ;;  %v170_v4 = vld [vmem:[%s3757_s1 + $0x8] sm:$0xff]  ;;  %v172_v5 = vld [vmem:[%s3757_s1 + $0x18] sm:$0xff]  ;;  %v676_v45 = vlaneseq }
   0x2   :  { %184 = vperm.xlu0 %1484, %v173_v1   ;;  %481 = vmatprep.mubr.f32.mxu1 %v1530_v3  ;;  %v169_v6 = vld [vmem:[%s3757_s1] sm:$0xff]  ;;  %v171_v7 = vld [vmem:[%s3757_s1 + $0x10] sm:$0xff]  ;;  %v179_v8 = vmul.f32 33.333332, %v170_v4  ;;  %v181_v9 = vmul.f32 33.333332, %v172_v5 }
   0x3   :  { %v178_v10 = vmul.f32 33.333332, %v169_v6  ;;  %v180_v11 = vmul.f32 33.333332, %v171_v7  ;;  %v174_v24 = vld [vmem:[%s3758_s3] sm:$0xf] }
   0x4   :  { %v153_v31 = vld [vmem:[%s3759_s0] sm:$0xff]  ;;  %v175_v32 = vmax.f32 %v174_v24, 1e-24  ;;  %v154_v41 = vld [vmem:[%s3759_s0 + $0x8] sm:$0xff]  ;;  %v155_v51 = vld [vmem:[%s3759_s0 + $0x10] sm:$0xff]  ;;  %v1608_v54 = vshrl.u32 %v676_v45, 7 }
   0x5   :  { %v156_v60 = vld [vmem:[%s3759_s0 + $0x18] sm:$0xff]  ;;  %v1760_v45 = vld [vmem:[%s3760_s4 + $0x1b0] sm:$0xff] }
   0x6   :  { %1485 = vset.pattern.permute.xlu0 %v1529_v2  ;;  %3804 = vst [vmem:[#allocation2_spill] sm:$0xff] %v1608_v54  ;;  %v1618_v62 = vsub.s32 0, %v1608_v54  ;;  %v3765_v63 = vsub.s32 1, %v1608_v54 }
   0x7   :  { %200 = vperm.xlu0 %1485, %v173_v1  }
   0x8   :  { %3805 = vst [vmem:[#allocation3_spill] sm:$0xff] %v1618_v62 }
  0x81   :  { %v185_v12 = vpop.permute.xlu0 %184 }
  0x82   :  { %v188_v13 = vsub.f32 %v179_v8, %v185_v12  ;;  %v190_v14 = vsub.f32 %v181_v9, %v185_v12  ;;  %v187_v15 = vsub.f32 %v178_v10, %v185_v12  ;;  %v189_v16 = vsub.f32 %v180_v11, %v185_v12  ;;  %v157_v8 = vld [vmem:[%s3759_s0 + $0x20] sm:$0xff] }
  0x84   :  { %v193_v17 = vmul.f32 1.442695, %v188_v13  ;;  %v197_v18 = vmul.f32 1.442695, %v190_v14  ;;  %v191_v19 = vmul.f32 1.442695, %v187_v15 }
  0x85   :  { %v195_v20 = vmul.f32 1.442695, %v189_v16 }
  0x86   :  { %1486 = vpow2.f32 %v193_v17  ;;  %v201_v21 = vpop.permute.xlu0 %200  ;;  %v158_v17 = vld [vmem:[%s3759_s0 + $0x28] sm:$0xff] }
  0x87   :  { %1488 = vpow2.f32 %v197_v18 }
  0x88   :  { %1490 = vpow2.f32 %v191_v19 }
  0x89   :  { %1492 = vpow2.f32 %v195_v20 }
  0x8a   :  { %1494 = vrsqrt.f32 %v175_v32  ;;  %v1698_v32 = vld [vmem:[%s3760_s4 + $0x160] sm:$0xff] }
  0x90   :  { %v1487_v22 = vpop.eup %1486 }
  0x91   :  { %v1489_v23 = vpop.eup %1488  ;;  %v204_v25 = vmul.f32 %v1487_v22, %v201_v21  ;;  %v159_v22 = vld [vmem:[%s3759_s0 + $0x30] sm:$0xff] }
  0x92   :  { %v1491_v26 = vpop.eup %1490  ;;  %v206_v27 = vmul.f32 %v1489_v23, %v201_v21  ;;  %v160_v23 = vld [vmem:[%s3759_s0 + $0x38] sm:$0xff] }
  0x93   :  { %v1493_v28 = vpop.eup %1492  ;;  %256 = vmatprep.subr.mxu0 %v204_v25  ;;  %v579_v29 = vmul.f32 %v204_v25, %v170_v4  ;;  %v203_v30 = vmul.f32 %v1491_v26, %v201_v21 }
  0x94   :  { %417 = vmatprep.subr.mxu1 %v206_v27  ;;  %v581_v33 = vmul.f32 %v206_v27, %v172_v5  ;;  %v205_v34 = vmul.f32 %v1493_v28, %v201_v21  ;;  %v1621_v0 = vpop.eup %1494  ;;  %v3766_v5 = vsub.s32 2, %v1608_v54  ;;  %v1673_v27 = vld [vmem:[%s3760_s4 + $0x140] sm:$0xff]  ;;  %v1678_v28 = vld [vmem:[%s3760_s4 + $0x150] sm:$0xff] }
  0x95   :  { %v588_v35 = vrot.slane %v579_v29, 4  ;;  %257 = vmatpush1.msra.mxu0 %v203_v30  ;;  %v578_v36 = vmul.f32 %v203_v30, %v169_v6  ;;  %v683_v9 = vrot.slane %v1621_v0, %v3765_v63  ;;  %v679_v10 = vrot.slane %v1621_v0, %v1618_v62  ;;  %v1975_v63 = vld [vmem:[%s3760_s4 + $0x10] sm:$0xff] }
  0x96   :  { %v600_v37 = vrot.slane %v581_v33, 4  ;;  %418 = vmatpush1.msra.mxu1 %v205_v34  ;;  %v580_v38 = vmul.f32 %v205_v34, %v171_v7  ;;  %1449 = vmatmul.mubr.msk.f32.vlgmr.msra.gmra.mrb[0].mxu0 %vm207_vm0, %v153_v31  ;;  %v3764_v7 = vsub.s32 3, %v1608_v54  ;;  %v687_v14 = vrot.slane %v1621_v0, %v3766_v5  ;;  %v1709_v34 = vld [vmem:[%s3760_s4 + $0x168] sm:$0xff] }
  0x97   :  { %v589_v39 = vadd.f32 %v588_v35, %v579_v29  ;;  %v582_v40 = vrot.slane %v578_v36, 4  ;;  %1465 = vmatmul.mubr.msk.f32.vlgmr.msra.gmra.mrb[0].mxu1 %vm207_vm0, %v153_v31  ;;  %326 = vmatprep.mubr.f32.mxu0 %v1530_v3  ;;  %v1683_v29 = vld [vmem:[%s3760_s4 + $0x148] sm:$0xff]  ;;  %v1693_v31 = vld [vmem:[%s3760_s4 + $0x158] sm:$0xff] }
  0x98   :  { %v601_v42 = vadd.f32 %v600_v37, %v581_v33  ;;  %v594_v43 = vrot.slane %v580_v38, 4  ;;  %487 = vmatprep.mubr.f32.mxu1 %v1530_v3  ;;  %v691_v16 = vrot.slane %v1621_v0, %v3764_v7  ;;  %v1703_v33 = vld [vmem:[%s3760_s4 + $0x170] sm:$0xff]  ;;  %v1714_v35 = vld [vmem:[%s3760_s4 + $0x178] sm:$0xff]  ;;  %v161_v37 = vld [vmem:[%s3759_s0 + $0x40] sm:$0xff] }
  0x99   :  { %v590_v44 = vrot.slane %v589_v39, 2  ;;  %v583_v46 = vadd.f32 %v582_v40, %v578_v36  ;;  %v1719_v36 = vld [vmem:[%s3760_s4 + $0x180] sm:$0xff]  ;;  %v1737_v40 = vld [vmem:[%s3760_s4 + $0x198] sm:$0xff]  ;;  %v1980_v5 = vld [vmem:[%s3760_s4 + $0x8] sm:$0xff] }
  0x9a   :  { %v602_v47 = vrot.slane %v601_v42, 2  ;;  %v595_v48 = vadd.f32 %v594_v43, %v580_v38  ;;  %1450 = vmatmul.mubr.msk.f32.gmra.mrb[2].mxu0 %vm207_vm0, %v154_v41  ;;  %v1727_v38 = vld [vmem:[%s3760_s4 + $0x190] sm:$0xff]  ;;  %3843 = vst [vmem:[#allocation41_spill] sm:$0xff] %v1980_v5  ;;  %v118_v54 = vld [vmem:[%s3761_s5 + $0xe8] sm:$0xff] }
  0x9b   :  { %v591_v49 = vadd.f32 %v590_v44, %v589_v39  ;;  %v584_v50 = vrot.slane %v583_v46, 2  ;;  %1466 = vmatmul.mubr.msk.f32.gmra.mrb[2].mxu1 %vm207_vm0, %v154_v41  ;;  %332 = vmatprep.mubr.f32.mxu0 %v1530_v3  ;;  %v1732_v39 = vld [vmem:[%s3760_s4 + $0x188] sm:$0xff]  ;;  %v1755_v44 = vld [vmem:[%s3760_s4 + $0x1a0] sm:$0xff] }
  0x9c   :  { %v603_v52 = vadd.f32 %v602_v47, %v601_v42  ;;  %v596_v53 = vrot.slane %v595_v48, 2  ;;  %493 = vmatprep.mubr.f32.mxu1 %v1530_v3 }
  0x9d   :  { %v585_v55 = vadd.f32 %v584_v50, %v583_v46  ;;  %v592_v56 = vrot.slane %v591_v49, 1  ;;  %v1765_v46 = vld [vmem:[%s3760_s4 + $0x1a8] sm:$0xff]  ;;  %v1784_v50 = vld [vmem:[%s3760_s4 + $0x1b8] sm:$0xff] }
  0x9e   :  { %v597_v57 = vadd.f32 %v596_v53, %v595_v48  ;;  %1451 = vmatmul.mubr.msk.f32.gmra.mrb[4].mxu0 %vm207_vm0, %v155_v51  ;;  %v604_v58 = vrot.slane %v603_v52, 1  ;;  %3809 = vst [vmem:[#allocation7_spill] sm:$0xff] %v1765_v46  ;;  %3813 = vst [vmem:[#allocation11_spill] sm:$0xff] %v1784_v50 }
  0x9f   :  { %v586_v59 = vrot.slane %v585_v55, 1  ;;  %1467 = vmatmul.mubr.msk.f32.gmra.mrb[4].mxu1 %vm207_vm0, %v155_v51  ;;  %338 = vmatprep.mubr.f32.mxu0 %v1530_v3  ;;  %v593_v1 = vadd.f32 %v592_v56, %v591_v49  ;;  %v1789_v51 = vld [vmem:[%s3760_s4 + $0x1c0] sm:$0xff] }
  0xa0   :  { %v598_v61 = vrot.slane %v597_v57, 1  ;;  %499 = vmatprep.mubr.f32.mxu1 %v1530_v3  ;;  %v605_v6 = vadd.f32 %v604_v58, %v603_v52  ;;  %3814 = vst [vmem:[#allocation12_spill] sm:$0xff] %v1789_v51  ;;  %v1794_v52 = vld [vmem:[%s3760_s4 + $0x1d0] sm:$0xff]  ;;  %v1816_v58 = vld [vmem:[%s3760_s4 + $0x1c8] sm:$0xff] }
  0xa1   :  { %v587_v2 = vadd.f32 %v586_v59, %v585_v55  ;;  %v608_v11 = vmul.f32 0.125, %v593_v1  ;;  %3815 = vst [vmem:[#allocation13_spill] sm:$0xff] %v1794_v52  ;;  %3820 = vst [vmem:[#allocation18_spill] sm:$0xff] %v1816_v58  ;;  %v1821_v59 = vld [vmem:[%s3760_s4 + $0x1d8] sm:$0xff] }
  0xa2   :  { %v599_v4 = vadd.f32 %v598_v61, %v597_v57  ;;  %1452 = vmatmul.mubr.msk.f32.gmra.mrb[6].mxu0 %vm207_vm0, %v156_v60  ;;  %v610_v15 = vmul.f32 0.125, %v605_v6  ;;  %3821 = vst [vmem:[#allocation19_spill] sm:$0xff] %v1821_v59  ;;  %v1847_v6 = vld [vmem:[%s3760_s4 + $0x1f0] sm:$0xff] }
  0xa3   :  { %1468 = vmatmul.mubr.msk.f32.gmra.mrb[6].mxu1 %vm207_vm0, %v156_v60  ;;  %344 = vmatprep.mubr.f32.mxu0 %v1530_v3  ;;  %v607_v12 = vmul.f32 0.125, %v587_v2  ;;  %v697_v18 = vmul.f32 %v683_v9, %v608_v11  ;;  %v1826_v60 = vld [vmem:[%s3760_s4 + $0x1e0] sm:$0xff]  ;;  %3827 = vst [vmem:[#allocation25_spill] sm:$0xff] %v1847_v6  ;;  %v1857_v9 = vld [vmem:[%s3760_s4 + $0x1f8] sm:$0xff] }
  0xa4   :  { %505 = vmatprep.mubr.f32.mxu1 %v1530_v3  ;;  %v609_v13 = vmul.f32 0.125, %v599_v4  ;;  %v699_v21 = vmul.f32 %v691_v16, %v610_v15  ;;  %3822 = vst [vmem:[#allocation20_spill] sm:$0xff] %v1826_v60  ;;  %3829 = vst [vmem:[#allocation27_spill] sm:$0xff] %v1857_v9 }
  0xa5   :  { %v696_v19 = vmul.f32 %v679_v10, %v607_v12  ;;  %v1661_v24 = vrot.slane %v697_v18, %v1618_v62 }
  0xa6   :  { %1453 = vmatmul.mubr.msk.f32.gmra.mrb[8].mxu0 %vm207_vm0, %v157_v8  ;;  %v698_v20 = vmul.f32 %v687_v14, %v609_v13  ;;  %v1686_v30 = vrot.slane %v699_v21, %v1618_v62  ;;  %v162_v14 = vld [vmem:[%s3759_s0 + $0x48] sm:$0xff]  ;;  %v163_v21 = vld [vmem:[%s3759_s0 + $0x50] sm:$0xff] }
  0xa7   :  { %1469 = vmatmul.mubr.msk.f32.gmra.mrb[8].mxu1 %vm207_vm0, %v157_v8  ;;  %350 = vmatprep.mubr.f32.mxu0 %v1530_v3  ;;  %v1664_v25 = vrot.slane %v696_v19, %v1618_v62  ;;  %v1750_v43 = vmul.f32 %v1661_v24, %v1683_v29  ;;  %v1799_v53 = vmul.f32 %v1661_v24, %v1709_v34  ;;  %v1852_v8 = vld [vmem:[%s3760_s4 + $0x1e8] sm:$0xff] }
  0xa8   :  { %511 = vmatprep.mubr.f32.mxu1 %v1530_v3  ;;  %v1667_v26 = vrot.slane %v698_v20, %v1618_v62  ;;  %v1771_v47 = vmul.f32 %v1686_v30, %v1693_v31  ;;  %v1803_v55 = vmul.f32 %v1686_v30, %v1714_v35  ;;  %v1830_v61 = vmul.f32 %v1661_v24, %v1732_v39 }
  0xa9   :  { %v1742_v41 = vmul.f32 %v1664_v25, %v1673_v27  ;;  %3808 = vst [vmem:[#allocation6_spill] sm:$0xff] %v1750_v43  ;;  %v1775_v48 = vmul.f32 %v1664_v25, %v1698_v32  ;;  %3816 = vst [vmem:[#allocation14_spill] sm:$0xff] %v1799_v53  ;;  %v1807_v56 = vmul.f32 %v1664_v25, %v1719_v36  ;;  %v2079_v43 = vld [vmem:[%s3760_s4 + $0x50] sm:$0xff] }
  0xaa   :  { %1454 = vmatmul.mubr.msk.f32.gmra.mrb[10].mxu0 %vm207_vm0, %v158_v17  ;;  %v1746_v42 = vmul.f32 %v1667_v26, %v1678_v28  ;;  %3810 = vst [vmem:[#allocation8_spill] sm:$0xff] %v1771_v47  ;;  %v1779_v49 = vmul.f32 %v1667_v26, %v1703_v33  ;;  %3817 = vst [vmem:[#allocation15_spill] sm:$0xff] %v1803_v55  ;;  %v1811_v57 = vmul.f32 %v1667_v26, %v1727_v38 }
  0xab   :  { %1470 = vmatmul.mubr.msk.f32.gmra.mrb[10].mxu1 %vm207_vm0, %v158_v17  ;;  %356 = vmatprep.mubr.f32.mxu0 %v1530_v3  ;;  %3806 = vst [vmem:[#allocation4_spill] sm:$0xff] %v1742_v41  ;;  %3811 = vst [vmem:[#allocation9_spill] sm:$0xff] %v1775_v48  ;;  %v1834_v1 = vmul.f32 %v1686_v30, %v1737_v40  ;;  %v1838_v2 = vmul.f32 %v1664_v25, %v1755_v44  ;;  %v2089_v41 = vld [vmem:[%s3760_s4 + $0x58] sm:$0xff] }
  0xac   :  { %517 = vmatprep.mubr.f32.mxu1 %v1530_v3  ;;  %3807 = vst [vmem:[#allocation5_spill] sm:$0xff] %v1746_v42  ;;  %3812 = vst [vmem:[#allocation10_spill] sm:$0xff] %v1779_v49  ;;  %v1842_v4 = vmul.f32 %v1667_v26, %v1760_v45  ;;  %v1862_v10 = vmul.f32 %v1661_v24, %v1765_v46  ;;  %v1866_v11 = vmul.f32 %v1686_v30, %v1784_v50  ;;  %v2084_v42 = vld [vmem:[%s3760_s4 + $0x48] sm:$0xff] }
  0xad   :  { %3818 = vst [vmem:[#allocation16_spill] sm:$0xff] %v1807_v56  ;;  %3819 = vst [vmem:[#allocation17_spill] sm:$0xff] %v1811_v57  ;;  %v1870_v12 = vmul.f32 %v1664_v25, %v1789_v51  ;;  %v1874_v13 = vmul.f32 %v1667_v26, %v1794_v52  ;;  %v1883_v15 = vmul.f32 %v1661_v24, %v1816_v58  ;;  %v99_v56 = vld [vmem:[%s3761_s5 + $0x50] sm:$0xff]  ;;  %v2401_v52 = vld [vmem:[%s3760_s4 + $0x118] sm:$0xff] }
  0xae   :  { %1455 = vmatmul.mubr.msk.f32.gmra.mrb[12].mxu0 %vm207_vm0, %v159_v22  ;;  %3823 = vst [vmem:[#allocation21_spill] sm:$0xff] %v1830_v61  ;;  %3824 = vst [vmem:[#allocation22_spill] sm:$0xff] %v1834_v1  ;;  %v1887_v16 = vmul.f32 %v1686_v30, %v1821_v59  ;;  %v1891_v17 = vmul.f32 %v1664_v25, %v1826_v60  ;;  %v1896_v18 = vmul.f32 %v1667_v26, %v1847_v6  ;;  %v2039_v1 = vld [vmem:[%s3760_s4 + $0x38] sm:$0xff]  ;;  %v97_v61 = vld [vmem:[%s3761_s5 + $0x40] sm:$0xff] }
  0xaf   :  { %1471 = vmatmul.mubr.msk.f32.gmra.mrb[12].mxu1 %vm207_vm0, %v159_v22  ;;  %362 = vmatprep.mubr.f32.mxu0 %v1530_v3  ;;  %3825 = vst [vmem:[#allocation23_spill] sm:$0xff] %v1838_v2  ;;  %3826 = vst [vmem:[#allocation24_spill] sm:$0xff] %v1842_v4  ;;  %v1900_v19 = vmul.f32 %v1661_v24, %v1852_v8  ;;  %v1904_v20 = vmul.f32 %v1686_v30, %v1857_v9  ;;  %v164_v22 = vld [vmem:[%s3759_s0 + $0x58] sm:$0xff]  ;;  %v2034_v2 = vld [vmem:[%s3760_s4 + $0x28] sm:$0xff]  ;;  %v2072_v48 = vmul.f32 0.0001, %v2039_v1 }
  0xb0   :  { %523 = vmatprep.mubr.f32.mxu1 %v1530_v3  ;;  %3828 = vst [vmem:[#allocation26_spill] sm:$0xff] %v1852_v8  ;;  %3830 = vst [vmem:[#allocation28_spill] sm:$0xff] %v1862_v10  ;;  %v2069_v49 = vmul.f32 0.0001, %v2034_v2  ;;  %v2074_v47 = vmul.f32 0.9, %v97_v61  ;;  %v2416_v51 = vmul.f32 %v1661_v24, %v1980_v5 }
  0xb1   :  { %3831 = vst [vmem:[#allocation29_spill] sm:$0xff] %v1866_v11  ;;  %3832 = vst [vmem:[#allocation30_spill] sm:$0xff] %v1870_v12  ;;  %v2012_v12 = vmul.f32 0.0001, %v1980_v5  ;;  %v2094_v61 = vmul.f32 0.9, %v99_v56 }
  0xb2   :  { %1456 = vmatmul.mubr.msk.f32.gmra.mrb[14].mxu0 %vm207_vm0, %v160_v23  ;;  %3833 = vst [vmem:[#allocation31_spill] sm:$0xff] %v1874_v13  ;;  %3834 = vst [vmem:[#allocation32_spill] sm:$0xff] %v1883_v15  ;;  %v94_v15 = vld [vmem:[%s3761_s5 + $0x28] sm:$0xff]  ;;  %v2009_v13 = vmul.f32 0.0001, %v1975_v63  ;;  %v104_v56 = vld [vmem:[%s3761_s5 + $0x78] sm:$0xff] }
  0xb3   :  { %1472 = vmatmul.mubr.msk.f32.gmra.mrb[14].mxu1 %vm207_vm0, %v160_v23  ;;  %368 = vmatprep.mubr.f32.mxu0 %v1530_v3  ;;  %3835 = vst [vmem:[#allocation33_spill] sm:$0xff] %v1887_v16  ;;  %3836 = vst [vmem:[#allocation34_spill] sm:$0xff] %v1891_v17  ;;  %v165_v23 = vld [vmem:[%s3759_s0 + $0x60] sm:$0xff]  ;;  %v2044_v57 = vmul.f32 0.9, %v94_v15  ;;  %v98_v15 = vld [vmem:[%s3761_s5 + $0x48] sm:$0xff] }
  0xb4   :  { %529 = vmatprep.mubr.f32.mxu1 %v1530_v3  ;;  %3837 = vst [vmem:[#allocation35_spill] sm:$0xff] %v1896_v18  ;;  %3838 = vst [vmem:[#allocation36_spill] sm:$0xff] %v1900_v19  ;;  %v93_v19 = vld [vmem:[%s3761_s5 + $0x20] sm:$0xff]  ;;  %v95_v18 = vld [vmem:[%s3761_s5 + $0x30] sm:$0xff] }
  0xb5   :  { %3839 = vst [vmem:[#allocation37_spill] sm:$0xff] %v1904_v20  ;;  %v1985_v20 = vld [vmem:[%s3760_s4 + $0x18] sm:$0xff]  ;;  %3849 = vst [vmem:[#allocation47_spill] sm:$0xff] %v2009_v13  ;;  %v2027_v10 = vmul.f32 0.9, %v93_v19  ;;  %v2466_v5 = vld [vmem:[%s3760_s4 + $0x128] sm:$0xff] }
  0xb6   :  { %1457 = vmatmul.mubr.msk.f32.gmra.mrb[16].mxu0 %vm207_vm0, %v161_v37  ;;  %3844 = vst [vmem:[#allocation42_spill] sm:$0xff] %v1985_v20  ;;  %3850 = vst [vmem:[#allocation48_spill] sm:$0xff] %v2012_v12  ;;  %v2015_v11 = vmul.f32 0.0001, %v1985_v20  ;;  %v2029_v4 = vmul.f32 0.9, %v95_v18 }
  0xb7   :  { %1473 = vmatmul.mubr.msk.f32.gmra.mrb[16].mxu1 %vm207_vm0, %v161_v37  ;;  %374 = vmatprep.mubr.f32.mxu0 %v1530_v3  ;;  %v166_v37 = vld [vmem:[%s3759_s0 + $0x68] sm:$0xff]  ;;  %3853 = vst [vmem:[#allocation51_spill] sm:$0xff] %v2027_v10  ;;  %3855 = vst [vmem:[#allocation53_spill] sm:$0xff] %v2034_v2  ;;  %v2051_v18 = vld [vmem:[%s3760_s4 + $0x40] sm:$0xff] }
  0xb8   :  { %535 = vmatprep.mubr.f32.mxu1 %v1530_v3  ;;  %3851 = vst [vmem:[#allocation49_spill] sm:$0xff] %v2015_v11  ;;  %3854 = vst [vmem:[#allocation52_spill] sm:$0xff] %v2029_v4  ;;  %v2193_v12 = vld [vmem:[%s3760_s4 + $0x98] sm:$0xff] }
  0xb9   :  { %3856 = vst [vmem:[#allocation54_spill] sm:$0xff] %v2039_v1  ;;  %3857 = vst [vmem:[#allocation55_spill] sm:$0xff] %v2044_v57  ;;  %v2119_v57 = vmul.f32 0.0001, %v2089_v41  ;;  %v2297_v8 = vld [vmem:[%s3760_s4 + $0xd8] sm:$0xff] }
  0xba   :  { %1458 = vmatmul.mubr.msk.f32.gmra.mrb[18].mxu0 %vm207_vm0, %v162_v14  ;;  %3859 = vst [vmem:[#allocation57_spill] sm:$0xff] %v2051_v18  ;;  %3862 = vst [vmem:[#allocation60_spill] sm:$0xff] %v2069_v49  ;;  %v2092_v49 = vmul.f32 0.0001, %v2051_v18  ;;  %v2327_v59 = vmul.f32 0.0001, %v2297_v8 }
  0xbb   :  { %1474 = vmatmul.mubr.msk.f32.gmra.mrb[18].mxu1 %vm207_vm0, %v162_v14  ;;  %380 = vmatprep.mubr.f32.mxu0 %v1530_v3  ;;  %v167_v14 = vld [vmem:[%s3759_s0 + $0x70] sm:$0xff]  ;;  %3863 = vst [vmem:[#allocation61_spill] sm:$0xff] %v2072_v48  ;;  %3864 = vst [vmem:[#allocation62_spill] sm:$0xff] %v2074_v47  ;;  %v101_v47 = vld [vmem:[%s3761_s5 + $0x60] sm:$0xff] }
  0xbc   :  { %541 = vmatprep.mubr.f32.mxu1 %v1530_v3  ;;  %3865 = vst [vmem:[#allocation63_spill] sm:$0xff] %v2079_v43  ;;  %3866 = vst [vmem:[#allocation64_spill] sm:$0xff] %v2084_v42  ;;  %v103_v48 = vld [vmem:[%s3761_s5 + $0x70] sm:$0xff] }
  0xbd   :  { %3867 = vst [vmem:[#allocation65_spill] sm:$0xff] %v2089_v41  ;;  %3868 = vst [vmem:[#allocation66_spill] sm:$0xff] %v2092_v49  ;;  %v2113_v49 = vmul.f32 0.0001, %v2079_v43 }
  0xbe   :  { %1459 = vmatmul.mubr.msk.f32.gmra.mrb[20].mxu0 %vm207_vm0, %v163_v21  ;;  %3869 = vst [vmem:[#allocation67_spill] sm:$0xff] %v2094_v61  ;;  %v2116_v61 = vmul.f32 0.0001, %v2084_v42  ;;  %3874 = vst [vmem:[#allocation72_spill] sm:$0xff] %v2119_v57  ;;  %v2143_v57 = vld [vmem:[%s3760_s4 + $0x78] sm:$0xff] }
  0xbf   :  { %1475 = vmatmul.mubr.msk.f32.gmra.mrb[20].mxu1 %vm207_vm0, %v163_v21  ;;  %386 = vmatprep.mubr.f32.mxu0 %v1530_v3  ;;  %v168_v21 = vld [vmem:[%s3759_s0 + $0x78] sm:$0xff]  ;;  %3872 = vst [vmem:[#allocation70_spill] sm:$0xff] %v2113_v49  ;;  %v105_v49 = vld [vmem:[%s3761_s5 + $0x80] sm:$0xff]  ;;  %3886 = vst [vmem:[#allocation84_spill] sm:$0xff] %v2193_v12 }
  0xc0   :  { %547 = vmatprep.mubr.f32.mxu1 %v1530_v3  ;;  %3873 = vst [vmem:[#allocation71_spill] sm:$0xff] %v2116_v61  ;;  %v2138_v61 = vld [vmem:[%s3760_s4 + $0x68] sm:$0xff]  ;;  %v2178_v11 = vmul.f32 0.9, %v105_v49  ;;  %3907 = vst [vmem:[#allocation105_spill] sm:$0xff] %v2297_v8 }
  0xc1   :  { %3914 = vst [vmem:[#allocation112_spill] sm:$0xff] %v2327_v59  ;;  %v2351_v59 = vld [vmem:[%s3760_s4 + $0xf8] sm:$0xff] }
  0xc2   :  { %1460 = vmatmul.mubr.msk.f32.gmra.mrb[22].mxu0 %vm207_vm0, %v164_v22  ;;  %3885 = vst [vmem:[#allocation83_spill] sm:$0xff] %v2178_v11  ;;  %v109_v11 = vld [vmem:[%s3761_s5 + $0xa0] sm:$0xff]  ;;  %3920 = vst [vmem:[#allocation118_spill] sm:$0xff] %v2351_v59 }
  0xc3   :  { %1476 = vmatmul.mubr.msk.f32.gmra.mrb[22].mxu1 %vm207_vm0, %v164_v22  ;;  %392 = vmatprep.mubr.f32.mxu0 %v1530_v3  ;;  %v89_v22 = vld [vmem:[%s3761_s5] sm:$0xff] }
  0xc4   :  { %553 = vmatprep.mubr.f32.mxu1 %v1530_v3  ;;  %v1970_v7 = vmul.f32 0.9, %v89_v22 }
  0xc6   :  { %1461 = vmatmul.mubr.msk.f32.gmra.mrb[24].mxu0 %vm207_vm0, %v165_v23  ;;  %3842 = vst [vmem:[#allocation40_spill] sm:$0xff] %v1970_v7 }
  0xc7   :  { %1477 = vmatmul.mubr.msk.f32.gmra.mrb[24].mxu1 %vm207_vm0, %v165_v23  ;;  %398 = vmatprep.mubr.f32.mxu0 %v1530_v3  ;;  %v91_v23 = vld [vmem:[%s3761_s5 + $0x10] sm:$0xff] }
  0xc8   :  { %559 = vmatprep.mubr.f32.mxu1 %v1530_v3  ;;  %v1990_v22 = vmul.f32 0.9, %v91_v23  ;;  %v96_v23 = vld [vmem:[%s3761_s5 + $0x38] sm:$0xff] }
  0xc9   :  { %v2046_v19 = vmul.f32 0.9, %v96_v23  ;;  %v100_v23 = vld [vmem:[%s3761_s5 + $0x58] sm:$0xff] }
  0xca   :  { %1462 = vmatmul.mubr.msk.f32.gmra.mrb[26].mxu0 %vm207_vm0, %v166_v37  ;;  %3846 = vst [vmem:[#allocation44_spill] sm:$0xff] %v1990_v22 }
  0xcb   :  { %1478 = vmatmul.mubr.msk.f32.gmra.mrb[26].mxu1 %vm207_vm0, %v166_v37  ;;  %404 = vmatprep.mubr.f32.mxu0 %v1530_v3  ;;  %v1959_v37 = vld [vmem:[%s3760_s4] sm:$0xff]  ;;  %3858 = vst [vmem:[#allocation56_spill] sm:$0xff] %v2046_v19  ;;  %v2104_v19 = vmul.f32 0.9, %v100_v23  ;;  %v2129_v23 = vld [vmem:[%s3760_s4 + $0x70] sm:$0xff] }
  0xcc   :  { %565 = vmatprep.mubr.f32.mxu1 %v1530_v3  ;;  %3840 = vst [vmem:[#allocation38_spill] sm:$0xff] %v1959_v37  ;;  %3876 = vst [vmem:[#allocation74_spill] sm:$0xff] %v2129_v23  ;;  %v2164_v10 = vmul.f32 0.0001, %v2129_v23 }
  0xcd   :  { %3871 = vst [vmem:[#allocation69_spill] sm:$0xff] %v2104_v19  ;;  %v2131_v19 = vmul.f32 0.9, %v101_v47  ;;  %v2150_v47 = vmul.f32 0.9, %v104_v56  ;;  %v108_v56 = vld [vmem:[%s3761_s5 + $0x98] sm:$0xff] }
  0xce   :  { %1463 = vmatmul.mubr.msk.f32.gmra.mrb[28].mxu0 %vm207_vm0, %v167_v14  ;;  %3882 = vst [vmem:[#allocation80_spill] sm:$0xff] %v2164_v10  ;;  %v2183_v10 = vld [vmem:[%s3760_s4 + $0x90] sm:$0xff] }
  0xcf   :  { %1479 = vmatmul.mubr.msk.f32.gmra.mrb[28].mxu1 %vm207_vm0, %v167_v14  ;;  %410 = vmatprep.mubr.f32.mxu0 %v1530_v3  ;;  %v92_v14 = vld [vmem:[%s3761_s5 + $0x18] sm:$0xff]  ;;  %3877 = vst [vmem:[#allocation75_spill] sm:$0xff] %v2131_v19  ;;  %3880 = vst [vmem:[#allocation78_spill] sm:$0xff] %v2150_v47  ;;  %v2173_v47 = vmul.f32 0.0001, %v2138_v61 }
  0xd0   :  { %571 = vmatprep.mubr.f32.mxu1 %v1530_v3  ;;  %v90_v3 = vld [vmem:[%s3761_s5 + $0x8] sm:$0xff]  ;;  %v2000_v16 = vmul.f32 0.9, %v92_v14  ;;  %v2025_v14 = vld [vmem:[%s3760_s4 + $0x30] sm:$0xff] }
  0xd1   :  { %v1998_v17 = vmul.f32 0.9, %v90_v3  ;;  %v2020_v3 = vld [vmem:[%s3760_s4 + $0x20] sm:$0xff]  ;;  %v2060_v53 = vmul.f32 0.0001, %v2025_v14  ;;  %3883 = vst [vmem:[#allocation81_spill] sm:$0xff] %v2173_v47 }
  0xd2   :  { %1464 = vmatmul.mubr.msk.f32.gmra.mrb[30].mxu0 %vm207_vm0, %v168_v21  ;;  %3848 = vst [vmem:[#allocation46_spill] sm:$0xff] %v2000_v16  ;;  %3852 = vst [vmem:[#allocation50_spill] sm:$0xff] %v2020_v3  ;;  %v2057_v55 = vmul.f32 0.0001, %v2020_v3  ;;  %v2208_v16 = vmul.f32 0.9, %v108_v56 }
  0xd3   :  { %1480 = vmatmul.mubr.msk.f32.gmra.mrb[30].mxu1 %vm207_vm0, %v168_v21  ;;  %v1968_v21 = vmul.f32 -33.333332, %v1621_v0  ;;  %v1988_v0 = vmul.f32 0.0001, %v1959_v37  ;;  %3847 = vst [vmem:[#allocation45_spill] sm:$0xff] %v1998_v17  ;;  %3861 = vst [vmem:[#allocation59_spill] sm:$0xff] %v2060_v53 }
  0xd4   :  { %3860 = vst [vmem:[#allocation58_spill] sm:$0xff] %v2057_v55  ;;  %v2102_v53 = vmul.f32 0.9, %v98_v15  ;;  %v102_v55 = vld [vmem:[%s3761_s5 + $0x68] sm:$0xff]  ;;  %v2124_v15 = vld [vmem:[%s3760_s4 + $0x60] sm:$0xff]  ;;  %3890 = vst [vmem:[#allocation88_spill] sm:$0xff] %v2208_v16 }
  0xd5   :  { %3841 = vst [vmem:[#allocation39_spill] sm:$0xff] %v1968_v21  ;;  %3845 = vst [vmem:[#allocation43_spill] sm:$0xff] %v1988_v0  ;;  %v2148_v4 = vmul.f32 0.9, %v102_v55  ;;  %v2161_v19 = vmul.f32 0.0001, %v2124_v15 }
  0xd6   :  { %3870 = vst [vmem:[#allocation68_spill] sm:$0xff] %v2102_v53  ;;  %3875 = vst [vmem:[#allocation73_spill] sm:$0xff] %v2124_v15  ;;  %v2133_v53 = vmul.f32 0.9, %v103_v48  ;;  %v2155_v48 = vld [vmem:[%s3760_s4 + $0x80] sm:$0xff]  ;;  %v106_v55 = vld [vmem:[%s3761_s5 + $0x88] sm:$0xff] }
  0xd7   :  { %3879 = vst [vmem:[#allocation77_spill] sm:$0xff] %v2148_v4  ;;  %3881 = vst [vmem:[#allocation79_spill] sm:$0xff] %v2161_v19  ;;  %v2176_v4 = vmul.f32 0.0001, %v2143_v57  ;;  %v2188_v19 = vld [vmem:[%s3760_s4 + $0x88] sm:$0xff]  ;;  %v2233_v56 = vld [vmem:[%s3760_s4 + $0xb0] sm:$0xff] }
  0xd8   :  { %3878 = vst [vmem:[#allocation76_spill] sm:$0xff] %v2133_v53  ;;  %v107_v53 = vld [vmem:[%s3761_s5 + $0x90] sm:$0xff]  ;;  %v2196_v47 = vmul.f32 0.0001, %v2155_v48  ;;  %v2206_v13 = vmul.f32 0.9, %v106_v55 }
  0xd9   :  { %3884 = vst [vmem:[#allocation82_spill] sm:$0xff] %v2176_v4  ;;  %v2198_v49 = vmul.f32 0.9, %v107_v53  ;;  %v111_v4 = vld [vmem:[%s3761_s5 + $0xb0] sm:$0xff]  ;;  %v110_v0 = vld [vmem:[%s3761_s5 + $0xa8] sm:$0xff]  ;;  %v112_v53 = vld [vmem:[%s3761_s5 + $0xb8] sm:$0xff] }
  0xda   :  { %3887 = vst [vmem:[#allocation85_spill] sm:$0xff] %v2196_v47  ;;  %3889 = vst [vmem:[#allocation87_spill] sm:$0xff] %v2206_v13  ;;  %v2217_v47 = vmul.f32 0.0001, %v2183_v10  ;;  %v2223_v17 = vmul.f32 0.0001, %v2193_v12 }
  0xdb   :  { %3888 = vst [vmem:[#allocation86_spill] sm:$0xff] %v2198_v49  ;;  %v2220_v49 = vmul.f32 0.0001, %v2188_v19  ;;  %v2228_v55 = vld [vmem:[%s3760_s4 + $0xa0] sm:$0xff]  ;;  %v2235_v16 = vmul.f32 0.9, %v109_v11 }
  0xdc   :  { %3891 = vst [vmem:[#allocation89_spill] sm:$0xff] %v2217_v47  ;;  %3893 = vst [vmem:[#allocation91_spill] sm:$0xff] %v2223_v17  ;;  %v2237_v13 = vmul.f32 0.9, %v111_v4  ;;  %v2247_v17 = vld [vmem:[%s3760_s4 + $0xb8] sm:$0xff]  ;;  %v113_v47 = vld [vmem:[%s3761_s5 + $0xc0] sm:$0xff] }
  0xdd   :  { %3892 = vst [vmem:[#allocation90_spill] sm:$0xff] %v2220_v49  ;;  %3894 = vst [vmem:[#allocation92_spill] sm:$0xff] %v2228_v55  ;;  %v2242_v49 = vld [vmem:[%s3760_s4 + $0xa8] sm:$0xff]  ;;  %v2252_v22 = vmul.f32 0.9, %v110_v0  ;;  %v2259_v4 = vld [vmem:[%s3760_s4 + $0xc0] sm:$0xff] }
  0xde   :  { %3895 = vst [vmem:[#allocation93_spill] sm:$0xff] %v2235_v16  ;;  %3896 = vst [vmem:[#allocation94_spill] sm:$0xff] %v2237_v13  ;;  %v2254_v11 = vmul.f32 0.9, %v112_v53  ;;  %v115_v13 = vld [vmem:[%s3761_s5 + $0xd0] sm:$0xff]  ;;  %v114_v0 = vld [vmem:[%s3761_s5 + $0xc8] sm:$0xff] }
  0xdf   :  { %3897 = vst [vmem:[#allocation95_spill] sm:$0xff] %v2252_v22  ;;  %3899 = vst [vmem:[#allocation97_spill] sm:$0xff] %v2259_v4  ;;  %v2265_v16 = vmul.f32 0.0001, %v2228_v55  ;;  %v2268_v7 = vmul.f32 0.0001, %v2233_v56 }
  0xe0   :  { %3898 = vst [vmem:[#allocation96_spill] sm:$0xff] %v2254_v11  ;;  %v116_v53 = vld [vmem:[%s3761_s5 + $0xd8] sm:$0xff]  ;;  %v2277_v11 = vmul.f32 0.0001, %v2242_v49  ;;  %v2280_v22 = vmul.f32 0.0001, %v2247_v17 }
  0xe1   :  { %3900 = vst [vmem:[#allocation98_spill] sm:$0xff] %v2265_v16  ;;  %3901 = vst [vmem:[#allocation99_spill] sm:$0xff] %v2268_v7  ;;  %v2282_v9 = vmul.f32 0.9, %v113_v47  ;;  %v2287_v7 = vld [vmem:[%s3760_s4 + $0xd0] sm:$0xff]  ;;  %v2292_v16 = vld [vmem:[%s3760_s4 + $0xc8] sm:$0xff] }
  0xe2   :  { %3902 = vst [vmem:[#allocation100_spill] sm:$0xff] %v2277_v11  ;;  %3903 = vst [vmem:[#allocation101_spill] sm:$0xff] %v2280_v22  ;;  %v2300_v11 = vmul.f32 0.0001, %v2259_v4  ;;  %v2302_v47 = vmul.f32 0.9, %v115_v13 }
  0xe3   :  { %3904 = vst [vmem:[#allocation102_spill] sm:$0xff] %v2282_v9  ;;  %3905 = vst [vmem:[#allocation103_spill] sm:$0xff] %v2287_v7  ;;  %v117_v9 = vld [vmem:[%s3761_s5 + $0xe0] sm:$0xff]  ;;  %v119_v22 = vld [vmem:[%s3761_s5 + $0xf0] sm:$0xff]  ;;  %v2310_v6 = vmul.f32 0.9, %v114_v0 }
  0xe4   :  { %3906 = vst [vmem:[#allocation104_spill] sm:$0xff] %v2292_v16  ;;  %3908 = vst [vmem:[#allocation106_spill] sm:$0xff] %v2300_v11  ;;  %v2312_v60 = vmul.f32 0.9, %v116_v53  ;;  %v120_v13 = vld [vmem:[%s3761_s5 + $0xf8] sm:$0xff]  ;;  %v2332_v0 = vld [vmem:[%s3760_s4 + $0xe0] sm:$0xff] }
  0xe5   :  { %3909 = vst [vmem:[#allocation107_spill] sm:$0xff] %v2302_v47  ;;  %3910 = vst [vmem:[#allocation108_spill] sm:$0xff] %v2310_v6  ;;  %v2321_v11 = vmul.f32 0.0001, %v2287_v7  ;;  %v2324_v47 = vmul.f32 0.0001, %v2292_v16 }
  0xe6   :  { %3911 = vst [vmem:[#allocation109_spill] sm:$0xff] %v2312_v60  ;;  %3915 = vst [vmem:[#allocation113_spill] sm:$0xff] %v2332_v0  ;;  %v2337_v53 = vld [vmem:[%s3760_s4 + $0xf0] sm:$0xff]  ;;  %v2339_v60 = vmul.f32 0.9, %v117_v9 }
  0xe7   :  { %3912 = vst [vmem:[#allocation110_spill] sm:$0xff] %v2321_v11  ;;  %3913 = vst [vmem:[#allocation111_spill] sm:$0xff] %v2324_v47  ;;  %v2341_v6 = vmul.f32 0.9, %v119_v22  ;;  %v2346_v47 = vld [vmem:[%s3760_s4 + $0xe8] sm:$0xff]  ;;  %v121_v11 = vld [vmem:[%s3761_s5 + $0x100] sm:$0xff] }
  0xe8   :  { %3916 = vst [vmem:[#allocation114_spill] sm:$0xff] %v2337_v53  ;;  %3917 = vst [vmem:[#allocation115_spill] sm:$0xff] %v2339_v60  ;;  %v2356_v21 = vmul.f32 0.9, %v118_v54  ;;  %v2358_v9 = vmul.f32 0.9, %v120_v13 }
  0xe9   :  { %3918 = vst [vmem:[#allocation116_spill] sm:$0xff] %v2341_v6  ;;  %3919 = vst [vmem:[#allocation117_spill] sm:$0xff] %v2346_v47  ;;  %v2363_v22 = vld [vmem:[%s3760_s4 + $0x100] sm:$0xff]  ;;  %v123_v6 = vld [vmem:[%s3761_s5 + $0x110] sm:$0xff]  ;;  %v2369_v60 = vmul.f32 0.0001, %v2332_v0 }
  0xea   :  { %3921 = vst [vmem:[#allocation119_spill] sm:$0xff] %v2356_v21  ;;  %3922 = vst [vmem:[#allocation120_spill] sm:$0xff] %v2358_v9  ;;  %v2372_v62 = vmul.f32 0.0001, %v2337_v53  ;;  %v122_v54 = vld [vmem:[%s3761_s5 + $0x108] sm:$0xff]  ;;  %v124_v13 = vld [vmem:[%s3761_s5 + $0x118] sm:$0xff] }
  0xeb   :  { %3923 = vst [vmem:[#allocation121_spill] sm:$0xff] %v2363_v22  ;;  %3924 = vst [vmem:[#allocation122_spill] sm:$0xff] %v2369_v60  ;;  %v2381_v9 = vmul.f32 0.0001, %v2346_v47  ;;  %v2384_v21 = vmul.f32 0.0001, %v2351_v59 }
  0xec   :  { %3925 = vst [vmem:[#allocation123_spill] sm:$0xff] %v2372_v62  ;;  %v2386_v58 = vmul.f32 0.9, %v121_v11  ;;  %v2391_v62 = vld [vmem:[%s3760_s4 + $0x110] sm:$0xff]  ;;  %v2396_v60 = vld [vmem:[%s3760_s4 + $0x108] sm:$0xff] }
  0xed   :  { %3926 = vst [vmem:[#allocation124_spill] sm:$0xff] %v2381_v9  ;;  %3927 = vst [vmem:[#allocation125_spill] sm:$0xff] %v2384_v21  ;;  %v2404_v9 = vmul.f32 0.0001, %v2363_v22  ;;  %v2406_v11 = vmul.f32 0.9, %v123_v6 }
  0xee   :  { %3928 = vst [vmem:[#allocation126_spill] sm:$0xff] %v2386_v58  ;;  %v125_v58 = vld [vmem:[%s3761_s5 + $0x120] sm:$0xff]  ;;  %v127_v21 = vld [vmem:[%s3761_s5 + $0x130] sm:$0xff]  ;;  %v2418_v50 = vmul.f32 0.9, %v122_v54  ;;  %v126_v6 = vld [vmem:[%s3761_s5 + $0x128] sm:$0xff] }
  0xef   :  { %3929 = vst [vmem:[#allocation127_spill] sm:$0xff] %v2404_v9  ;;  %3930 = vst [vmem:[#allocation128_spill] sm:$0xff] %v2406_v11  ;;  %v2420_v46 = vmul.f32 0.9, %v124_v13  ;;  %v128_v9 = vld [vmem:[%s3761_s5 + $0x138] sm:$0xff]  ;;  %v2430_v11 = vmul.f32 %v1661_v24, %v2034_v2  ;;  %v2453_v2 = vmul.f32 %v1686_v30, %v1985_v20  ;;  %v2473_v20 = vmul.f32 %v1664_v25, %v1959_v37 }
  0xf0   :  { %3931 = vst [vmem:[#allocation129_spill] sm:$0xff] %v2418_v50  ;;  %v2433_v22 = vmul.f32 0.0001, %v2391_v62  ;;  %v2436_v54 = vmul.f32 0.0001, %v2396_v60  ;;  %v2449_v50 = vld [vmem:[%s3760_s4 + $0x130] sm:$0xff]  ;;  %v2493_v37 = vmul.f32 %v1664_v25, %v2020_v3  ;;  %v2529_v3 = vmul.f32 %v1667_v26, %v2025_v14 }
  0xf1   :  { %3932 = vst [vmem:[#allocation130_spill] sm:$0xff] %v2420_v46  ;;  %3933 = vst [vmem:[#allocation131_spill] sm:$0xff] %v2430_v11  ;;  %v2439_v13 = vmul.f32 0.0001, %v2401_v52  ;;  %v2444_v46 = vld [vmem:[%s3760_s4 + $0x120] sm:$0xff] }
  0xf2   :  { %3934 = vst [vmem:[#allocation132_spill] sm:$0xff] %v2433_v22  ;;  %3935 = vst [vmem:[#allocation133_spill] sm:$0xff] %v2436_v54  ;;  %v2457_v54 = vmul.f32 %v1686_v30, %v2039_v1  ;;  %v2459_v22 = vmul.f32 0.9, %v125_v58  ;;  %v129_v11 = vld [vmem:[%s3761_s5 + $0x140] sm:$0xff]  ;;  %v2477_v1 = vmul.f32 %v1661_v24, %v2084_v42  ;;  %v2497_v42 = vmul.f32 %v1664_v25, %v2051_v18 }
  0xf3   :  { %3936 = vst [vmem:[#allocation134_spill] sm:$0xff] %v2439_v13  ;;  %v2461_v13 = vmul.f32 0.9, %v127_v21  ;;  %v2479_v58 = vmul.f32 0.9, %v126_v6  ;;  %v2484_v21 = vld [vmem:[%s3760_s4 + $0x138] sm:$0xff] }
  0xf4   :  { %3937 = vst [vmem:[#allocation135_spill] sm:$0xff] %v2457_v54  ;;  %3938 = vst [vmem:[#allocation136_spill] sm:$0xff] %v2459_v22  ;;  %v131_v22 = vld [vmem:[%s3761_s5 + $0x150] sm:$0xff]  ;;  %v2500_v6 = vmul.f32 0.0001, %v2444_v46 }
  0xf5   :  { %3939 = vst [vmem:[#allocation137_spill] sm:$0xff] %v2461_v13  ;;  %3940 = vst [vmem:[#allocation138_spill] sm:$0xff] %v2477_v1  ;;  %v2486_v13 = vmul.f32 0.9, %v128_v9  ;;  %v130_v9 = vld [vmem:[%s3761_s5 + $0x148] sm:$0xff]  ;;  %v2513_v1 = vmul.f32 %v1686_v30, %v2089_v41 }
  0xf6   :  { %3941 = vst [vmem:[#allocation139_spill] sm:$0xff] %v2479_v58  ;;  %3943 = vst [vmem:[#allocation141_spill] sm:$0xff] %v2497_v42  ;;  %v2503_v58 = vmul.f32 0.0001, %v2449_v50  ;;  %v2516_v18 = vmul.f32 0.0001, %v2466_v5 }
  0xf7   :  { %3942 = vst [vmem:[#allocation140_spill] sm:$0xff] %v2486_v13  ;;  %3944 = vst [vmem:[#allocation142_spill] sm:$0xff] %v2500_v6  ;;  %v132_v13 = vld [vmem:[%s3761_s5 + $0x158] sm:$0xff]  ;;  %v2519_v6 = vmul.f32 0.0001, %v2484_v21 }
  0xf8   :  { %3945 = vst [vmem:[#allocation143_spill] sm:$0xff] %v2503_v58  ;;  %3946 = vst [vmem:[#allocation144_spill] sm:$0xff] %v2513_v1  ;;  %v2521_v42 = vmul.f32 0.9, %v129_v11  ;;  %v2525_v58 = vmul.f32 %v1667_v26, %v1975_v63  ;;  %v2532_v54 = vmul.f32 0.0001, %v1673_v27 }
  0xf9   :  { %3947 = vst [vmem:[#allocation145_spill] sm:$0xff] %v2516_v18  ;;  %3948 = vst [vmem:[#allocation146_spill] sm:$0xff] %v2519_v6  ;;  %v2534_v41 = vmul.f32 0.9, %v131_v22  ;;  %v133_v18 = vld [vmem:[%s3761_s5 + $0x160] sm:$0xff]  ;;  %v135_v11 = vld [vmem:[%s3761_s5 + $0x170] sm:$0xff]  ;;  %v2548_v6 = vmul.f32 %v1664_v25, %v2124_v15 }
  0xfa   :  { %3949 = vst [vmem:[#allocation147_spill] sm:$0xff] %v2521_v42  ;;  %3950 = vst [vmem:[#allocation148_spill] sm:$0xff] %v2532_v54  ;;  %v2544_v42 = vmul.f32 %v1667_v26, %v2079_v43  ;;  %v2550_v27 = vmul.f32 0.9, %v130_v9  ;;  %v2552_v22 = vmul.f32 0.9, %v132_v13  ;;  %v2562_v43 = vmul.f32 %v1667_v26, %v2129_v23 }
  0xfb   :  { %3951 = vst [vmem:[#allocation149_spill] sm:$0xff] %v2534_v41  ;;  %v134_v54 = vld [vmem:[%s3761_s5 + $0x168] sm:$0xff]  ;;  %v136_v41 = vld [vmem:[%s3761_s5 + $0x178] sm:$0xff]  ;;  %v2565_v1 = vmul.f32 0.0001, %v1678_v28  ;;  %v137_v28 = vld [vmem:[%s3761_s5 + $0x180] sm:$0xff] }
  0xfc   :  { %3952 = vst [vmem:[#allocation150_spill] sm:$0xff] %v2550_v27  ;;  %3953 = vst [vmem:[#allocation151_spill] sm:$0xff] %v2552_v22  ;;  %v2568_v9 = vmul.f32 0.0001, %v1683_v29  ;;  %v2571_v13 = vmul.f32 0.0001, %v1693_v31  ;;  %v2575_v22 = vmul.f32 %v1661_v24, %v2138_v61  ;;  %v2579_v27 = vmul.f32 %v1686_v30, %v2143_v57 }
  0xfd   :  { %3954 = vst [vmem:[#allocation152_spill] sm:$0xff] %v2565_v1  ;;  %v2581_v15 = vmul.f32 0.9, %v133_v18  ;;  %v2583_v23 = vmul.f32 0.9, %v135_v11  ;;  %v2590_v29 = vmul.f32 %v1664_v25, %v2155_v48  ;;  %v2594_v31 = vmul.f32 %v1667_v26, %v2183_v10  ;;  %v139_v18 = vld [vmem:[%s3761_s5 + $0x190] sm:$0xff] }
  0xfe   :  { %3955 = vst [vmem:[#allocation153_spill] sm:$0xff] %v2568_v9  ;;  %3956 = vst [vmem:[#allocation154_spill] sm:$0xff] %v2571_v13  ;;  %v2596_v13 = vmul.f32 0.9, %v134_v54  ;;  %v2598_v9 = vmul.f32 0.9, %v136_v41  ;;  %v2605_v11 = vmul.f32 %v1661_v24, %v2188_v19 }
  0xff   :  { %3957 = vst [vmem:[#allocation155_spill] sm:$0xff] %v2581_v15  ;;  %3958 = vst [vmem:[#allocation156_spill] sm:$0xff] %v2583_v23  ;;  %v2609_v23 = vmul.f32 %v1686_v30, %v2193_v12  ;;  %v2612_v15 = vmul.f32 0.0001, %v1698_v32  ;;  %v2615_v54 = vmul.f32 0.0001, %v1703_v33 }
 0x100   :  { %3959 = vst [vmem:[#allocation157_spill] sm:$0xff] %v2596_v13  ;;  %3960 = vst [vmem:[#allocation158_spill] sm:$0xff] %v2598_v9  ;;  %v138_v41 = vld [vmem:[%s3761_s5 + $0x188] sm:$0xff]  ;;  %v140_v9 = vld [vmem:[%s3761_s5 + $0x198] sm:$0xff]  ;;  %v2625_v13 = vmul.f32 %v1664_v25, %v2228_v55  ;;  %v2628_v1 = vmul.f32 0.0001, %v1709_v34 }
 0x101   :  { %3961 = vst [vmem:[#allocation159_spill] sm:$0xff] %v2612_v15  ;;  %3962 = vst [vmem:[#allocation160_spill] sm:$0xff] %v2615_v54  ;;  %v2631_v32 = vmul.f32 0.0001, %v1714_v35  ;;  %v2633_v33 = vmul.f32 0.9, %v137_v28  ;;  %v2637_v54 = vmul.f32 %v1667_v26, %v2233_v56  ;;  %v2641_v15 = vmul.f32 %v1661_v24, %v2242_v49 }
 0x102   :  { %3963 = vst [vmem:[#allocation161_spill] sm:$0xff] %v2628_v1  ;;  %v2644_v12 = vmul.f32 0.0001, %v1719_v36  ;;  %v2646_v55 = vmul.f32 0.9, %v139_v18  ;;  %v141_v34 = vld [vmem:[%s3761_s5 + $0x1a0] sm:$0xff]  ;;  %v2656_v28 = vmul.f32 %v1686_v30, %v2247_v17 }
 0x103   :  { %3964 = vst [vmem:[#allocation162_spill] sm:$0xff] %v2631_v32  ;;  %3965 = vst [vmem:[#allocation163_spill] sm:$0xff] %v2633_v33  ;;  %v143_v35 = vld [vmem:[%s3761_s5 + $0x1b0] sm:$0xff]  ;;  %v2660_v33 = vmul.f32 %v1664_v25, %v2259_v4  ;;  %v2662_v36 = vmul.f32 0.9, %v138_v41  ;;  %v2674_v32 = vmul.f32 %v1667_v26, %v2287_v7 }
 0x104   :  { %3966 = vst [vmem:[#allocation164_spill] sm:$0xff] %v2644_v12  ;;  %3967 = vst [vmem:[#allocation165_spill] sm:$0xff] %v2646_v55  ;;  %v2664_v18 = vmul.f32 0.9, %v140_v9  ;;  %v142_v12 = vld [vmem:[%s3761_s5 + $0x1a8] sm:$0xff]  ;;  %v144_v55 = vld [vmem:[%s3761_s5 + $0x1b8] sm:$0xff] }
 0x105   :  { %3968 = vst [vmem:[#allocation166_spill] sm:$0xff] %v2662_v36  ;;  %v2677_v1 = vmul.f32 0.0001, %v1727_v38  ;;  %v2680_v41 = vmul.f32 0.0001, %v1732_v39  ;;  %v2691_v36 = vmul.f32 %v1686_v30, %v2297_v8  ;;  %v145_v38 = vld [vmem:[%s3761_s5 + $0x1c0] sm:$0xff]  ;;  %v2702_v39 = vmul.f32 %v1664_v25, %v2332_v0 }
 0x106   :  { %3969 = vst [vmem:[#allocation167_spill] sm:$0xff] %v2664_v18  ;;  %v2683_v9 = vmul.f32 0.0001, %v1737_v40  ;;  %v2687_v18 = vmul.f32 %v1661_v24, %v2292_v16  ;;  %v2693_v4 = vmul.f32 0.9, %v141_v34  ;;  %v2706_v40 = vmul.f32 %v1667_v26, %v2337_v53  ;;  %v147_v34 = vld [vmem:[%s3761_s5 + $0x1d0] sm:$0xff] }
 0x107   :  { %3970 = vst [vmem:[#allocation168_spill] sm:$0xff] %v2677_v1  ;;  %3971 = vst [vmem:[#allocation169_spill] sm:$0xff] %v2680_v41  ;;  %v2695_v7 = vmul.f32 0.9, %v143_v35  ;;  %v2710_v41 = vmul.f32 0.9, %v144_v55  ;;  %v2717_v35 = vmul.f32 %v1661_v24, %v2346_v47  ;;  %v2753_v53 = vmul.f32 %v1661_v24, %v2396_v60 }
 0x108   :  { %3972 = vst [vmem:[#allocation170_spill] sm:$0xff] %v2683_v9  ;;  %3973 = vst [vmem:[#allocation171_spill] sm:$0xff] %v2693_v4  ;;  %v2708_v9 = vmul.f32 0.9, %v142_v12  ;;  %v2724_v4 = vmul.f32 0.0001, %v1755_v44 }
 0x109   :  { %3974 = vst [vmem:[#allocation172_spill] sm:$0xff] %v2695_v7  ;;  %3976 = vst [vmem:[#allocation174_spill] sm:$0xff] %v2710_v41  ;;  %v2721_v7 = vmul.f32 %v1686_v30, %v2351_v59  ;;  %v2727_v12 = vmul.f32 0.0001, %v1760_v45  ;;  %v146_v55 = vld [vmem:[%s3761_s5 + $0x1c8] sm:$0xff]  ;;  %v148_v41 = vld [vmem:[%s3761_s5 + $0x1d8] sm:$0xff] }
 0x10a   :  { %3975 = vst [vmem:[#allocation173_spill] sm:$0xff] %v2708_v9  ;;  %3977 = vst [vmem:[#allocation175_spill] sm:$0xff] %v2724_v4  ;;  %v3979_v9 = vld [vmem:[#allocation121_spill] sm:$0xff]  ;;  %v3981_v59 = vld [vmem:[#allocation7_spill] sm:$0xff]  ;;  %v2745_v45 = vmul.f32 0.9, %v145_v38  ;;  %v2765_v38 = vmul.f32 %v1686_v30, %v2401_v52  ;;  %v2784_v52 = vmul.f32 %v1661_v24, %v2466_v5 }
 0x10b   :  { %3978 = vst [vmem:[#allocation176_spill] sm:$0xff] %v2727_v12  ;;  %v2737_v1 = vmul.f32 %v1664_v25, %v3979_v9  ;;  %v2740_v47 = vmul.f32 0.0001, %v3981_v59  ;;  %v3983_v44 = vld [vmem:[#allocation11_spill] sm:$0xff]  ;;  %v2749_v12 = vmul.f32 %v1667_v26, %v2391_v62  ;;  %3987 = vst [vmem:[#allocation179_spill] sm:$0xff] %v2753_v53  ;;  %v3988_v0 = vld [vmem:[#allocation12_spill] sm:$0xff]  ;;  %v2769_v62 = vmul.f32 %v1664_v25, %v2444_v46 }
 0x10c   :  { %v2743_v4 = vmul.f32 0.0001, %v3983_v44  ;;  %3985 = vst [vmem:[#allocation177_spill] sm:$0xff] %v2745_v45  ;;  %v2756_v8 = vmul.f32 0.0001, %v3988_v0  ;;  %v149_v59 = vld [vmem:[%s3761_s5 + $0x1e0] sm:$0xff] }
 0x10d   :  { %3980 = vst [vmem:[#allocation121_spill] sm:$0xff] %v2737_v1  ;;  %3982 = vst [vmem:[#allocation7_spill] sm:$0xff] %v2740_v47  ;;  %v2758_v9 = vmul.f32 0.9, %v147_v34  ;;  %v2771_v44 = vmul.f32 0.9, %v146_v55  ;;  %v2780_v34 = vmul.f32 %v1667_v26, %v2449_v50  ;;  %v2801_v26 = vmul.f32 %v1686_v30, %v2484_v21 }
 0x10e   :  { %3984 = vst [vmem:[#allocation11_spill] sm:$0xff] %v2743_v4  ;;  %3986 = vst [vmem:[#allocation178_spill] sm:$0xff] %v2749_v12  ;;  %v2773_v60 = vmul.f32 0.9, %v148_v41  ;;  %v151_v0 = vld [vmem:[%s3761_s5 + $0x1f0] sm:$0xff]  ;;  %v3999_v25 = vld [vmem:[#allocation18_spill] sm:$0xff] }
 0x10f   :  { %3989 = vst [vmem:[#allocation12_spill] sm:$0xff] %v2756_v8  ;;  %3990 = vst [vmem:[#allocation180_spill] sm:$0xff] %v2758_v9  ;;  %v3997_v8 = vld [vmem:[#allocation13_spill] sm:$0xff]  ;;  %v2790_v46 = vmul.f32 0.0001, %v3999_v25  ;;  %v150_v41 = vld [vmem:[%s3761_s5 + $0x1e8] sm:$0xff] }
 0x110   :  { %3991 = vst [vmem:[#allocation181_spill] sm:$0xff] %v2765_v38  ;;  %3992 = vst [vmem:[#allocation182_spill] sm:$0xff] %v2769_v62  ;;  %v2787_v9 = vmul.f32 0.0001, %v3997_v8  ;;  %v4004_v5 = vld [vmem:[#allocation19_spill] sm:$0xff]  ;;  %v152_v8 = vld [vmem:[%s3761_s5 + $0x1f8] sm:$0xff] }
 0x111   :  { %3993 = vst [vmem:[#allocation183_spill] sm:$0xff] %v2771_v44  ;;  %3994 = vst [vmem:[#allocation184_spill] sm:$0xff] %v2773_v60  ;;  %v4001_v60 = vld [vmem:[#allocation3_spill] sm:$0xff]  ;;  %v2804_v24 = vmul.f32 0.0001, %v4004_v5  ;;  %v4013_v62 = vld [vmem:[#allocation20_spill] sm:$0xff] }
 0x112   :  { %3995 = vst [vmem:[#allocation185_spill] sm:$0xff] %v2780_v34  ;;  %3996 = vst [vmem:[#allocation186_spill] sm:$0xff] %v2784_v52  ;;  %v4002_v44 = vld [vmem:[#allocation39_spill] sm:$0xff]  ;;  %v2806_v50 = vmul.f32 0.9, %v149_v59 }
 0x113   :  { %3998 = vst [vmem:[#allocation13_spill] sm:$0xff] %v2787_v9  ;;  %4000 = vst [vmem:[#allocation18_spill] sm:$0xff] %v2790_v46  ;;  %v2797_v45 = vrot.slane %v4002_v44, %v4001_v60  ;;  %v4007_v9 = vld [vmem:[#allocation2_spill] sm:$0xff]  ;;  %v2821_v5 = vmul.f32 0.9, %v151_v0 }
 0x114   :  { %4003 = vst [vmem:[#allocation3_spill] sm:$0xff] %v2801_v26  ;;  %4005 = vst [vmem:[#allocation39_spill] sm:$0xff] %v2804_v24  ;;  %v4008_v4 = vsub.s32 2, %v4007_v9  ;;  %v4009_v30 = vsub.s32 1, %v4007_v9  ;;  %v4011_v26 = vsub.s32 3, %v4007_v9 }
 0x115   :  { %4006 = vst [vmem:[#allocation19_spill] sm:$0xff] %v2806_v50  ;;  %4010 = vst [vmem:[#allocation2_spill] sm:$0xff] %v2821_v5  ;;  %v2828_v52 = vmul.f32 0.9, %v150_v41  ;;  %v2832_v38 = vmul.f32 0.0001, %v4013_v62 }
 0x116   :  { %v2814_v60 = vrot.slane %v4002_v44, %v4008_v4  ;;  %v2819_v21 = vrot.slane %v4002_v44, %v4009_v30  ;;  %v2834_v30 = vmul.f32 0.9, %v152_v8  ;;  %v4016_v5 = vld [vmem:[#allocation25_spill] sm:$0xff]  ;;  %v4020_v8 = vld [vmem:[#allocation27_spill] sm:$0xff] }
 0x117   :  { %4012 = vst [vmem:[#allocation187_spill] sm:$0xff] %v2828_v52  ;;  %4014 = vst [vmem:[#allocation20_spill] sm:$0xff] %v2832_v38  ;;  %v2839_v9 = vmul.f32 0.0001, %v4016_v5  ;;  %v4024_v38 = vld [vmem:[#allocation45_spill] sm:$0xff] }
 0x118   :  { %4015 = vst [vmem:[#allocation188_spill] sm:$0xff] %v2834_v30  ;;  %v2847_v30 = vmul.f32 0.0001, %v4020_v8 }
 0x119   :  { %4017 = vst [vmem:[#allocation25_spill] sm:$0xff] %v2839_v9  ;;  %v4022_v9 = vld [vmem:[#allocation40_spill] sm:$0xff] }
 0x11a   :  { %4021 = vst [vmem:[#allocation27_spill] sm:$0xff] %v2847_v30  ;;  %v4025_v30 = vld [vmem:[#allocation131_spill] sm:$0xff] }
 0x169   :  { %v322_v55 = vpop.f32.mrb[0].mxu0 }
 0x16a   :  { %v611_v25 = vmul.f32 0.125, %v322_v55  ;;  %v483_v46 = vpop.f32.mrb[0].mxu1  ;;  %v324_v47 = vpop.f32.mrb[1].mxu0  ;;  %v2826_v55 = vrot.slane %v4002_v44, %v4011_v26  ;;  %v4018_v44 = vld [vmem:[#allocation26_spill] sm:$0xff] }
 0x16b   :  { %v613_v59 = vmul.f32 0.125, %v483_v46  ;;  %v612_v50 = vmul.f32 0.125, %v324_v47  ;;  %v485_v24 = vpop.f32.mrb[1].mxu1  ;;  %v2842_v26 = vmul.f32 0.0001, %v4018_v44 }
 0x16c   :  { %v780_v4 = vsub.f32 %v611_v25, %v2473_v20  ;;  %v614_v34 = vmul.f32 0.125, %v485_v24 }
 0x16d   :  { %v782_v0 = vsub.f32 %v613_v59, %v2525_v58  ;;  %v781_v47 = vsub.f32 %v612_v50, %v2416_v51  ;;  %v328_v46 = vpop.f32.mrb[2].mxu0  ;;  %4019 = vst [vmem:[#allocation26_spill] sm:$0xff] %v2842_v26 }
 0x16e   :  { %v865_v41 = vmul.f32 %v2797_v45, %v780_v4  ;;  %v783_v20 = vsub.f32 %v614_v34, %v2453_v2  ;;  %v615_v24 = vmul.f32 0.125, %v328_v46  ;;  %v489_v62 = vpop.f32.mrb[2].mxu1  ;;  %v330_v25 = vpop.f32.mrb[3].mxu0  ;;  %v4023_v34 = vld [vmem:[#allocation44_spill] sm:$0xff] }
 0x16f   :  { %v867_v58 = vmul.f32 %v2814_v60, %v782_v0  ;;  %v866_v51 = vmul.f32 %v2819_v21, %v781_v47  ;;  %v617_v50 = vmul.f32 0.125, %v489_v62  ;;  %v616_v5 = vmul.f32 0.125, %v330_v25  ;;  %v491_v59 = vpop.f32.mrb[3].mxu1  ;;  %v4026_v47 = vld [vmem:[#allocation43_spill] sm:$0xff]  ;;  %v4027_v25 = vld [vmem:[#allocation46_spill] sm:$0xff] }
 0x170   :  { %v993_v44 = vadd.f32 %v4022_v9, %v865_v41  ;;  %v868_v26 = vmul.f32 %v2826_v55, %v783_v20  ;;  %v784_v4 = vsub.f32 %v615_v24, %v2493_v37  ;;  %v618_v2 = vmul.f32 0.125, %v491_v59  ;;  %v4028_v41 = vld [vmem:[#allocation135_spill] sm:$0xff] }
 0x171   :  { %v995_v46 = vadd.f32 %v4023_v34, %v867_v58  ;;  %v994_v52 = vadd.f32 %v4024_v38, %v866_v51  ;;  %v786_v8 = vsub.f32 %v617_v50, %v2529_v3  ;;  %v785_v0 = vsub.f32 %v616_v5, %v4025_v30  ;;  %v334_v53 = vpop.f32.mrb[4].mxu0  ;;  %v4029_v24 = vld [vmem:[#allocation47_spill] sm:$0xff]  ;;  %v4030_v58 = vld [vmem:[#allocation48_spill] sm:$0xff] }
 0x172   :  { %v1121_v62 = vadd.f32 %v4026_v47, %v993_v44  ;;  %v996_v12 = vadd.f32 %v4027_v25, %v868_v26  ;;  %v869_v9 = vmul.f32 %v2797_v45, %v784_v4  ;;  %v787_v20 = vsub.f32 %v618_v2, %v4028_v41  ;;  %v495_v1 = vpop.f32.mrb[4].mxu1  ;;  %v336_v37 = vpop.f32.mrb[5].mxu0  ;;  %v4031_v26 = vld [vmem:[#allocation49_spill] sm:$0xff]  ;;  %v4032_v5 = vld [vmem:[#allocation51_spill] sm:$0xff]  ;;  %v4036_v41 = vld [vmem:[#allocation58_spill] sm:$0xff] }
 0x173   :  { %v1123_v59 = vadd.f32 %v4029_v24, %v995_v46  ;;  %v1122_v34 = vadd.f32 %v4030_v58, %v994_v52  ;;  %v871_v38 = vmul.f32 %v2814_v60, %v786_v8  ;;  %v870_v3 = vmul.f32 %v2819_v21, %v785_v0  ;;  %v497_v30 = vpop.f32.mrb[5].mxu1  ;;  %v4033_v46 = vld [vmem:[#allocation52_spill] sm:$0xff]  ;;  %v4034_v0 = vld [vmem:[#allocation55_spill] sm:$0xff] }
 0x174   :  { %v1185_v51 = vmul.f32 3.0, %v1121_v62  ;;  %1377 = vst [vmem:[%s3762_s7] sm:$0xff] %v1121_v62  ;;  %v1124_v50 = vadd.f32 %v4031_v26, %v996_v12  ;;  %v997_v44 = vadd.f32 %v4032_v5, %v869_v9  ;;  %v872_v4 = vmul.f32 %v2826_v55, %v787_v20  ;;  %v4035_v12 = vld [vmem:[#allocation38_spill] sm:$0xff]  ;;  %v4037_v24 = vld [vmem:[#allocation56_spill] sm:$0xff]  ;;  %v4038_v5 = vld [vmem:[#allocation41_spill] sm:$0xff] }
 0x175   :  { %v1187_v2 = vmul.f32 3.0, %v1123_v59  ;;  %1379 = vst [vmem:[%s3762_s7 + $0x10] sm:$0xff] %v1123_v59  ;;  %v1186_v52 = vmul.f32 3.0, %v1122_v34  ;;  %1378 = vst [vmem:[%s3762_s7 + $0x8] sm:$0xff] %v1122_v34  ;;  %v999_v8 = vadd.f32 %v4033_v46, %v871_v38  ;;  %v998_v47 = vadd.f32 %v4034_v0, %v870_v3  ;;  %v340_v62 = vpop.f32.mrb[6].mxu0  ;;  %v4039_v46 = vld [vmem:[#allocation59_spill] sm:$0xff] }
 0x176   :  { %v1249_v25 = vsub.f32 %v4035_v12, %v1185_v51  ;;  %v1188_v9 = vmul.f32 3.0, %v1124_v50  ;;  %1380 = vst [vmem:[%s3762_s7 + $0x18] sm:$0xff] %v1124_v50  ;;  %v1125_v20 = vadd.f32 %v4036_v41, %v997_v44  ;;  %v1000_v59 = vadd.f32 %v4037_v24, %v872_v4  ;;  %v501_v58 = vpop.f32.mrb[6].mxu1  ;;  %v342_v26 = vpop.f32.mrb[7].mxu0  ;;  %v4040_v0 = vld [vmem:[#allocation60_spill] sm:$0xff]  ;;  %v4041_v50 = vld [vmem:[#allocation42_spill] sm:$0xff] }
 0x177   :  { %v1251_v34 = vsub.f32 %v1975_v63, %v1187_v2  ;;  %v1250_v38 = vsub.f32 %v4038_v5, %v1186_v52  ;;  %v1127_v3 = vadd.f32 %v4039_v46, %v999_v8  ;;  %v1126_v16 = vadd.f32 %v4040_v0, %v998_v47  ;;  %v503_v51 = vpop.f32.mrb[7].mxu1  ;;  %v4042_v4 = vld [vmem:[#allocation61_spill] sm:$0xff] }
 0x178   :  { %1313 = vst [vmem:[%s3763_s6] sm:$0xff] %v1249_v25  ;;  %v1252_v12 = vsub.f32 %v4041_v50, %v1188_v9  ;;  %v1189_v44 = vmul.f32 3.0, %v1125_v20  ;;  %1381 = vst [vmem:[%s3762_s7 + $0x20] sm:$0xff] %v1125_v20  ;;  %v1128_v63 = vadd.f32 %v4042_v4, %v1000_v59  ;;  %v619_v2 = vmul.f32 0.125, %v334_v53  ;;  %v4043_v9 = vld [vmem:[#allocation50_spill] sm:$0xff]  ;;  %v4044_v24 = vld [vmem:[#allocation141_spill] sm:$0xff] }
 0x179   :  { %1315 = vst [vmem:[%s3763_s6 + $0x10] sm:$0xff] %v1251_v34  ;;  %1314 = vst [vmem:[%s3763_s6 + $0x8] sm:$0xff] %v1250_v38  ;;  %v1191_v52 = vmul.f32 3.0, %v1127_v3  ;;  %v1190_v8 = vmul.f32 3.0, %v1126_v16  ;;  %v621_v47 = vmul.f32 0.125, %v495_v1  ;;  %v620_v53 = vmul.f32 0.125, %v336_v37 }
 0x17a   :  { %1383 = vst [vmem:[%s3762_s7 + $0x30] sm:$0xff] %v1127_v3  ;;  %1382 = vst [vmem:[%s3762_s7 + $0x28] sm:$0xff] %v1126_v16  ;;  %v2910_v25 = vpop.f32.mrb[8].mxu0  ;;  %v1253_v41 = vsub.f32 %v4043_v9, %v1189_v44  ;;  %v1192_v20 = vmul.f32 3.0, %v1128_v63  ;;  %v788_v59 = vsub.f32 %v619_v2, %v4044_v24  ;;  %v622_v34 = vmul.f32 0.125, %v497_v30  ;;  %v2920_v5 = vpop.f32.mrb[8].mxu1 }
 0x17b   :  { %1316 = vst [vmem:[%s3763_s6 + $0x18] sm:$0xff] %v1252_v12  ;;  %1384 = vst [vmem:[%s3762_s7 + $0x38] sm:$0xff] %v1128_v63  ;;  %v2922_v1 = vpop.f32.mrb[9].mxu0  ;;  %v1255_v16 = vsub.f32 %v2025_v14, %v1191_v52  ;;  %v4045_v37 = vld [vmem:[#allocation53_spill] sm:$0xff]  ;;  %v790_v46 = vsub.f32 %v621_v47, %v2544_v42  ;;  %v4046_v3 = vld [vmem:[#allocation138_spill] sm:$0xff]  ;;  %v2928_v50 = vpop.f32.mrb[9].mxu1 }
 0x17c   :  { %v1254_v38 = vsub.f32 %v4045_v37, %v1190_v8  ;;  %v789_v0 = vsub.f32 %v620_v53, %v4046_v3  ;;  %1317 = vst [vmem:[%s3763_s6 + $0x20] sm:$0xff] %v1253_v41  ;;  %v4047_v12 = vld [vmem:[#allocation54_spill] sm:$0xff]  ;;  %v873_v44 = vmul.f32 %v2797_v45, %v788_v59  ;;  %v4048_v4 = vld [vmem:[#allocation144_spill] sm:$0xff]  ;;  %v623_v2 = vmul.f32 0.125, %v340_v62 }
 0x17d   :  { %v1256_v30 = vsub.f32 %v4047_v12, %v1192_v20  ;;  %v791_v63 = vsub.f32 %v622_v34, %v4048_v4  ;;  %1319 = vst [vmem:[%s3763_s6 + $0x30] sm:$0xff] %v1255_v16  ;;  %v875_v42 = vmul.f32 %v2814_v60, %v790_v46  ;;  %v625_v52 = vmul.f32 0.125, %v501_v58  ;;  %v2944_v47 = vpop.f32.mrb[10].mxu0  ;;  %v4049_v62 = vld [vmem:[#allocation62_spill] sm:$0xff]  ;;  %v4050_v34 = vld [vmem:[#allocation67_spill] sm:$0xff]  ;;  %v4053_v12 = vld [vmem:[#allocation69_spill] sm:$0xff] }
 0x17e   :  { %1318 = vst [vmem:[%s3763_s6 + $0x28] sm:$0xff] %v1254_v38  ;;  %v874_v14 = vmul.f32 %v2819_v21, %v789_v0  ;;  %v624_v8 = vmul.f32 0.125, %v342_v26  ;;  %v1001_v53 = vadd.f32 %v4049_v62, %v873_v44  ;;  %v792_v41 = vsub.f32 %v623_v2, %v2548_v6  ;;  %v2952_v24 = vpop.f32.mrb[10].mxu1  ;;  %v2954_v59 = vpop.f32.mrb[11].mxu0  ;;  %v4051_v26 = vld [vmem:[#allocation68_spill] sm:$0xff]  ;;  %v4052_v3 = vld [vmem:[#allocation66_spill] sm:$0xff] }
 0x17f   :  { %1320 = vst [vmem:[%s3763_s6 + $0x38] sm:$0xff] %v1256_v30  ;;  %v876_v9 = vmul.f32 %v2826_v55, %v791_v63  ;;  %v626_v20 = vmul.f32 0.125, %v503_v51  ;;  %v1003_v58 = vadd.f32 %v4050_v34, %v875_v42  ;;  %v794_v37 = vsub.f32 %v625_v52, %v2562_v43  ;;  %v2960_v46 = vpop.f32.mrb[11].mxu1  ;;  %v4054_v44 = vld [vmem:[#allocation70_spill] sm:$0xff]  ;;  %v4055_v63 = vld [vmem:[#allocation71_spill] sm:$0xff]  ;;  %v4056_v52 = vld [vmem:[#allocation72_spill] sm:$0xff] }
 0x180   :  { %v1002_v16 = vadd.f32 %v4051_v26, %v874_v14  ;;  %v793_v38 = vsub.f32 %v624_v8, %v2575_v22  ;;  %v1129_v0 = vadd.f32 %v4052_v3, %v1001_v53  ;;  %v877_v6 = vmul.f32 %v2797_v45, %v792_v41  ;;  %v4057_v62 = vld [vmem:[#allocation75_spill] sm:$0xff]  ;;  %v4060_v3 = vld [vmem:[#allocation57_spill] sm:$0xff] }
 0x181   :  { %v1004_v30 = vadd.f32 %v4053_v12, %v876_v9  ;;  %v795_v51 = vsub.f32 %v626_v20, %v2579_v27  ;;  %v1131_v4 = vadd.f32 %v4054_v44, %v1003_v58  ;;  %v879_v42 = vmul.f32 %v2814_v60, %v794_v37  ;;  %v2970_v14 = vpop.f32.mrb[12].mxu0  ;;  %v4058_v58 = vld [vmem:[#allocation76_spill] sm:$0xff] }
 0x182   :  { %v1130_v2 = vadd.f32 %v4055_v63, %v1002_v16  ;;  %v878_v43 = vmul.f32 %v2819_v21, %v793_v38  ;;  %v1193_v22 = vmul.f32 3.0, %v1129_v0  ;;  %1385 = vst [vmem:[%s3762_s7 + $0x40] sm:$0xff] %v1129_v0  ;;  %v1005_v53 = vadd.f32 %v4057_v62, %v877_v6  ;;  %v2978_v9 = vpop.f32.mrb[12].mxu1  ;;  %v2980_v41 = vpop.f32.mrb[13].mxu0  ;;  %v4059_v16 = vld [vmem:[#allocation77_spill] sm:$0xff] }
 0x183   :  { %v1132_v8 = vadd.f32 %v4056_v52, %v1004_v30  ;;  %v880_v27 = vmul.f32 %v2826_v55, %v795_v51  ;;  %v1195_v20 = vmul.f32 3.0, %v1131_v4  ;;  %1387 = vst [vmem:[%s3762_s7 + $0x50] sm:$0xff] %v1131_v4  ;;  %v1007_v26 = vadd.f32 %v4058_v58, %v879_v42  ;;  %v2990_v38 = vpop.f32.mrb[13].mxu1  ;;  %v4061_v30 = vld [vmem:[#allocation79_spill] sm:$0xff]  ;;  %v4062_v51 = vld [vmem:[#allocation78_spill] sm:$0xff]  ;;  %v4065_v42 = vld [vmem:[#allocation80_spill] sm:$0xff] }
 0x184   :  { %v1194_v34 = vmul.f32 3.0, %v1130_v2  ;;  %1386 = vst [vmem:[%s3762_s7 + $0x48] sm:$0xff] %v1130_v2  ;;  %v1006_v37 = vadd.f32 %v4059_v16, %v878_v43  ;;  %v1257_v0 = vsub.f32 %v4060_v3, %v1193_v22  ;;  %v1133_v6 = vadd.f32 %v4061_v30, %v1005_v53  ;;  %v4063_v4 = vld [vmem:[#allocation63_spill] sm:$0xff]  ;;  %v4064_v2 = vld [vmem:[#allocation64_spill] sm:$0xff]  ;;  %v4066_v43 = vld [vmem:[#allocation81_spill] sm:$0xff] }
 0x185   :  { %v1196_v12 = vmul.f32 3.0, %v1132_v8  ;;  %1388 = vst [vmem:[%s3762_s7 + $0x58] sm:$0xff] %v1132_v8  ;;  %v1008_v44 = vadd.f32 %v4062_v51, %v880_v27  ;;  %v1259_v63 = vsub.f32 %v4063_v4, %v1195_v20  ;;  %v1135_v62 = vadd.f32 %v4065_v42, %v1007_v26  ;;  %v3002_v16 = vpop.f32.mrb[14].mxu0  ;;  %v4067_v22 = vld [vmem:[#allocation65_spill] sm:$0xff]  ;;  %v4068_v53 = vld [vmem:[#allocation82_spill] sm:$0xff] }
 0x186   :  { %v1258_v52 = vsub.f32 %v4064_v2, %v1194_v34  ;;  %v1134_v58 = vadd.f32 %v4066_v43, %v1006_v37  ;;  %1321 = vst [vmem:[%s3763_s6 + $0x40] sm:$0xff] %v1257_v0  ;;  %v1197_v3 = vmul.f32 3.0, %v1133_v6  ;;  %1389 = vst [vmem:[%s3762_s7 + $0x60] sm:$0xff] %v1133_v6  ;;  %v627_v20 = vmul.f32 0.125, %v2910_v25  ;;  %v3013_v34 = vpop.f32.mrb[14].mxu1  ;;  %v3015_v26 = vpop.f32.mrb[15].mxu0 }
 0x187   :  { %v1260_v8 = vsub.f32 %v4067_v22, %v1196_v12  ;;  %v1136_v27 = vadd.f32 %v4068_v53, %v1008_v44  ;;  %1323 = vst [vmem:[%s3763_s6 + $0x50] sm:$0xff] %v1259_v63  ;;  %v1199_v37 = vmul.f32 3.0, %v1135_v62  ;;  %1391 = vst [vmem:[%s3762_s7 + $0x70] sm:$0xff] %v1135_v62  ;;  %v629_v25 = vmul.f32 0.125, %v2920_v5  ;;  %v3031_v30 = vpop.f32.mrb[15].mxu1  ;;  %v4069_v6 = vld [vmem:[#allocation73_spill] sm:$0xff] }
 0x188   :  { %1322 = vst [vmem:[%s3763_s6 + $0x48] sm:$0xff] %v1258_v52  ;;  %v1198_v0 = vmul.f32 3.0, %v1134_v58  ;;  %1390 = vst [vmem:[%s3762_s7 + $0x68] sm:$0xff] %v1134_v58  ;;  %v628_v12 = vmul.f32 0.125, %v2922_v1  ;;  %v1261_v51 = vsub.f32 %v4069_v6, %v1197_v3  ;;  %v796_v4 = vsub.f32 %v627_v20, %v2590_v29  ;;  %v4070_v5 = vld [vmem:[#allocation74_spill] sm:$0xff] }
 0x189   :  { %1324 = vst [vmem:[%s3763_s6 + $0x58] sm:$0xff] %v1260_v8  ;;  %v1200_v44 = vmul.f32 3.0, %v1136_v27  ;;  %1392 = vst [vmem:[%s3762_s7 + $0x78] sm:$0xff] %v1136_v27  ;;  %v630_v63 = vmul.f32 0.125, %v2928_v50  ;;  %v1263_v2 = vsub.f32 %v4070_v5, %v1199_v37  ;;  %v798_v52 = vsub.f32 %v629_v25, %v2594_v31  ;;  %v3046_v62 = vpop.f32.mrb[16].mxu0  ;;  %v4071_v8 = vld [vmem:[#allocation83_spill] sm:$0xff] }
 0x18a   :  { %v1262_v1 = vsub.f32 %v2138_v61, %v1198_v0  ;;  %v797_v42 = vsub.f32 %v628_v12, %v2605_v11  ;;  %1325 = vst [vmem:[%s3763_s6 + $0x60] sm:$0xff] %v1261_v51  ;;  %v881_v29 = vmul.f32 %v2797_v45, %v796_v4  ;;  %v631_v58 = vmul.f32 0.125, %v2944_v47  ;;  %v3055_v22 = vpop.f32.mrb[16].mxu1  ;;  %v3057_v61 = vpop.f32.mrb[17].mxu0  ;;  %v4072_v37 = vld [vmem:[#allocation86_spill] sm:$0xff]  ;;  %v4073_v25 = vld [vmem:[#allocation87_spill] sm:$0xff] }
 0x18b   :  { %v1264_v43 = vsub.f32 %v2143_v57, %v1200_v44  ;;  %v799_v50 = vsub.f32 %v630_v63, %v2609_v23  ;;  %1327 = vst [vmem:[%s3763_s6 + $0x70] sm:$0xff] %v1263_v2  ;;  %v883_v57 = vmul.f32 %v2814_v60, %v798_v52  ;;  %v633_v23 = vmul.f32 0.125, %v2952_v24  ;;  %v3069_v47 = vpop.f32.mrb[17].mxu1  ;;  %v4074_v51 = vld [vmem:[#allocation85_spill] sm:$0xff]  ;;  %v4075_v4 = vld [vmem:[#allocation88_spill] sm:$0xff] }
 0x18c   :  { %1326 = vst [vmem:[%s3763_s6 + $0x68] sm:$0xff] %v1262_v1  ;;  %v882_v31 = vmul.f32 %v2819_v21, %v797_v42  ;;  %v632_v11 = vmul.f32 0.125, %v2954_v59  ;;  %v1009_v3 = vadd.f32 %v4071_v8, %v881_v29  ;;  %v800_v27 = vsub.f32 %v631_v58, %v2625_v13  ;;  %v4076_v1 = vld [vmem:[#allocation89_spill] sm:$0xff]  ;;  %v4077_v42 = vld [vmem:[#allocation90_spill] sm:$0xff] }
 0x18d   :  { %1328 = vst [vmem:[%s3763_s6 + $0x78] sm:$0xff] %v1264_v43  ;;  %v884_v53 = vmul.f32 %v2826_v55, %v799_v50  ;;  %v634_v20 = vmul.f32 0.125, %v2960_v46  ;;  %v1011_v0 = vadd.f32 %v4072_v37, %v883_v57  ;;  %v802_v59 = vsub.f32 %v633_v23, %v2637_v54  ;;  %v3082_v6 = vpop.f32.mrb[18].mxu0  ;;  %v4079_v57 = vld [vmem:[#allocation93_spill] sm:$0xff] }
 0x18e   :  { %v1010_v24 = vadd.f32 %v4073_v25, %v882_v31  ;;  %v801_v12 = vsub.f32 %v632_v11, %v2641_v15  ;;  %v1137_v44 = vadd.f32 %v4074_v51, %v1009_v3  ;;  %v885_v5 = vmul.f32 %v2797_v45, %v800_v27  ;;  %v3088_v2 = vpop.f32.mrb[18].mxu1  ;;  %v3090_v46 = vpop.f32.mrb[19].mxu0  ;;  %v4080_v3 = vld [vmem:[#allocation94_spill] sm:$0xff]  ;;  %v4081_v27 = vld [vmem:[#allocation95_spill] sm:$0xff] }
 0x18f   :  { %v1012_v63 = vadd.f32 %v4075_v4, %v884_v53  ;;  %v803_v13 = vsub.f32 %v634_v20, %v2656_v28  ;;  %v1139_v52 = vadd.f32 %v4076_v1, %v1011_v0  ;;  %v887_v15 = vmul.f32 %v2814_v60, %v802_v59  ;;  %v3096_v29 = vpop.f32.mrb[19].mxu1  ;;  %v4078_v28 = vld [vmem:[#allocation91_spill] sm:$0xff] }
 0x190   :  { %v1138_v54 = vadd.f32 %v4077_v42, %v1010_v24  ;;  %v886_v43 = vmul.f32 %v2819_v21, %v801_v12  ;;  %v1201_v50 = vmul.f32 3.0, %v1137_v44  ;;  %1393 = vst [vmem:[%s3762_s7 + $0x80] sm:$0xff] %v1137_v44  ;;  %v1013_v31 = vadd.f32 %v4079_v57, %v885_v5  ;;  %v4082_v24 = vld [vmem:[#allocation98_spill] sm:$0xff]  ;;  %v4083_v12 = vld [vmem:[#allocation96_spill] sm:$0xff] }
 0x191   :  { %v1140_v58 = vadd.f32 %v4078_v28, %v1012_v63  ;;  %v888_v23 = vmul.f32 %v2826_v55, %v803_v13  ;;  %v1203_v11 = vmul.f32 3.0, %v1139_v52  ;;  %1395 = vst [vmem:[%s3762_s7 + $0x90] sm:$0xff] %v1139_v52  ;;  %v1015_v53 = vadd.f32 %v4080_v3, %v887_v15  ;;  %v3112_v37 = vpop.f32.mrb[20].mxu0  ;;  %v4084_v13 = vld [vmem:[#allocation99_spill] sm:$0xff] }
 0x192   :  { %v1202_v8 = vmul.f32 3.0, %v1138_v54  ;;  %1394 = vst [vmem:[%s3762_s7 + $0x88] sm:$0xff] %v1138_v54  ;;  %v1014_v20 = vadd.f32 %v4081_v27, %v886_v43  ;;  %v1265_v0 = vsub.f32 %v2155_v48, %v1201_v50  ;;  %v1141_v59 = vadd.f32 %v4082_v24, %v1013_v31  ;;  %v3120_v44 = vpop.f32.mrb[20].mxu1  ;;  %v3122_v4 = vpop.f32.mrb[21].mxu0  ;;  %v4085_v48 = vld [vmem:[#allocation100_spill] sm:$0xff] }
 0x193   :  { %v1204_v25 = vmul.f32 3.0, %v1140_v58  ;;  %1396 = vst [vmem:[%s3762_s7 + $0x98] sm:$0xff] %v1140_v58  ;;  %v1016_v51 = vadd.f32 %v4083_v12, %v888_v23  ;;  %v1267_v63 = vsub.f32 %v2183_v10, %v1203_v11  ;;  %v1143_v1 = vadd.f32 %v4084_v13, %v1015_v53  ;;  %v3128_v42 = vpop.f32.mrb[21].mxu1  ;;  %v4086_v54 = vld [vmem:[#allocation84_spill] sm:$0xff]  ;;  %v4087_v10 = vld [vmem:[#allocation101_spill] sm:$0xff] }
 0x194   :  { %v1266_v5 = vsub.f32 %v2188_v19, %v1202_v8  ;;  %v1142_v52 = vadd.f32 %v4085_v48, %v1014_v20  ;;  %1329 = vst [vmem:[%s3763_s6 + $0x80] sm:$0xff] %v1265_v0  ;;  %v1205_v43 = vmul.f32 3.0, %v1141_v59  ;;  %1397 = vst [vmem:[%s3762_s7 + $0xa0] sm:$0xff] %v1141_v59  ;;  %v635_v19 = vmul.f32 0.125, %v2970_v14  ;;  %v4088_v23 = vld [vmem:[#allocation92_spill] sm:$0xff] }
 0x195   :  { %v1268_v15 = vsub.f32 %v4086_v54, %v1204_v25  ;;  %v1144_v50 = vadd.f32 %v4087_v10, %v1016_v51  ;;  %1331 = vst [vmem:[%s3763_s6 + $0x90] sm:$0xff] %v1267_v63  ;;  %v1207_v28 = vmul.f32 3.0, %v1143_v1  ;;  %1399 = vst [vmem:[%s3762_s7 + $0xb0] sm:$0xff] %v1143_v1  ;;  %v637_v14 = vmul.f32 0.125, %v2978_v9  ;;  %v3153_v31 = vpop.f32.mrb[22].mxu0  ;;  %v4091_v48 = vld [vmem:[#allocation108_spill] sm:$0xff] }
 0x196   :  { %1330 = vst [vmem:[%s3763_s6 + $0x88] sm:$0xff] %v1266_v5  ;;  %v1206_v58 = vmul.f32 3.0, %v1142_v52  ;;  %1398 = vst [vmem:[%s3762_s7 + $0xa8] sm:$0xff] %v1142_v52  ;;  %v636_v57 = vmul.f32 0.125, %v2980_v41  ;;  %v1269_v11 = vsub.f32 %v4088_v23, %v1205_v43  ;;  %v804_v3 = vsub.f32 %v635_v19, %v2660_v33  ;;  %v3164_v9 = vpop.f32.mrb[22].mxu1  ;;  %v3166_v41 = vpop.f32.mrb[23].mxu0 }
 0x197   :  { %1332 = vst [vmem:[%s3763_s6 + $0x98] sm:$0xff] %v1268_v15  ;;  %v1208_v8 = vmul.f32 3.0, %v1144_v50  ;;  %1400 = vst [vmem:[%s3762_s7 + $0xb8] sm:$0xff] %v1144_v50  ;;  %v638_v53 = vmul.f32 0.125, %v2990_v38  ;;  %v1271_v27 = vsub.f32 %v2233_v56, %v1207_v28  ;;  %v806_v0 = vsub.f32 %v637_v14, %v2674_v32  ;;  %v3172_v24 = vpop.f32.mrb[23].mxu1  ;;  %v4092_v10 = vld [vmem:[#allocation106_spill] sm:$0xff] }
 0x198   :  { %v1270_v20 = vsub.f32 %v2242_v49, %v1206_v58  ;;  %v805_v25 = vsub.f32 %v636_v57, %v2687_v18  ;;  %1333 = vst [vmem:[%s3763_s6 + $0xa0] sm:$0xff] %v1269_v11  ;;  %v889_v38 = vmul.f32 %v2797_v45, %v804_v3  ;;  %v639_v56 = vmul.f32 0.125, %v3002_v16  ;;  %v4093_v19 = vld [vmem:[#allocation109_spill] sm:$0xff]  ;;  %v4094_v58 = vld [vmem:[#allocation110_spill] sm:$0xff]  ;;  %v4095_v57 = vld [vmem:[#allocation111_spill] sm:$0xff] }
 0x199   :  { %v1272_v33 = vsub.f32 %v2247_v17, %v1208_v8  ;;  %v807_v59 = vsub.f32 %v638_v53, %v2691_v36  ;;  %1335 = vst [vmem:[%s3763_s6 + $0xb0] sm:$0xff] %v1271_v27  ;;  %v891_v49 = vmul.f32 %v2814_v60, %v806_v0  ;;  %v641_v17 = vmul.f32 0.125, %v3013_v34  ;;  %v3191_v12 = vpop.f32.mrb[24].mxu0  ;;  %v4089_v36 = vld [vmem:[#allocation102_spill] sm:$0xff]  ;;  %v4090_v34 = vld [vmem:[#allocation107_spill] sm:$0xff]  ;;  %v4096_v3 = vld [vmem:[#allocation112_spill] sm:$0xff] }
 0x19a   :  { %1334 = vst [vmem:[%s3763_s6 + $0xa8] sm:$0xff] %v1270_v20  ;;  %v890_v32 = vmul.f32 %v2819_v21, %v805_v25  ;;  %v640_v18 = vmul.f32 0.125, %v3015_v26  ;;  %v1017_v16 = vadd.f32 %v4089_v36, %v889_v38  ;;  %v808_v63 = vsub.f32 %v639_v56, %v2702_v39  ;;  %v3200_v13 = vpop.f32.mrb[24].mxu1  ;;  %v3202_v1 = vpop.f32.mrb[25].mxu0  ;;  %v4097_v27 = vld [vmem:[#allocation115_spill] sm:$0xff] }
 0x19b   :  { %1336 = vst [vmem:[%s3763_s6 + $0xb8] sm:$0xff] %v1272_v33  ;;  %v892_v51 = vmul.f32 %v2826_v55, %v807_v59  ;;  %v642_v5 = vmul.f32 0.125, %v3031_v30  ;;  %v1019_v26 = vadd.f32 %v4090_v34, %v891_v49  ;;  %v810_v54 = vsub.f32 %v641_v17, %v2706_v40  ;;  %v3208_v43 = vpop.f32.mrb[25].mxu1  ;;  %v4098_v59 = vld [vmem:[#allocation116_spill] sm:$0xff]  ;;  %v4099_v49 = vld [vmem:[#allocation119_spill] sm:$0xff] }
 0x19c   :  { %v1018_v52 = vadd.f32 %v4091_v48, %v890_v32  ;;  %v809_v15 = vsub.f32 %v640_v18, %v2717_v35  ;;  %v1145_v50 = vadd.f32 %v4092_v10, %v1017_v16  ;;  %v893_v30 = vmul.f32 %v2797_v45, %v808_v63  ;;  %v4100_v18 = vld [vmem:[#allocation97_spill] sm:$0xff] }
 0x19d   :  { %v1020_v39 = vadd.f32 %v4093_v19, %v892_v51  ;;  %v811_v28 = vsub.f32 %v642_v5, %v2721_v7  ;;  %v1147_v14 = vadd.f32 %v4094_v58, %v1019_v26  ;;  %v895_v11 = vmul.f32 %v2814_v60, %v810_v54  ;;  %v3218_v8 = vpop.f32.mrb[26].mxu0  ;;  %v4101_v51 = vld [vmem:[#allocation122_spill] sm:$0xff]  ;;  %v4102_v5 = vld [vmem:[#allocation120_spill] sm:$0xff]  ;;  %v4103_v26 = vld [vmem:[#allocation103_spill] sm:$0xff] }
 0x19e   :  { %v1146_v23 = vadd.f32 %v4095_v57, %v1018_v52  ;;  %v894_v40 = vmul.f32 %v2819_v21, %v809_v15  ;;  %v1209_v35 = vmul.f32 3.0, %v1145_v50  ;;  %1401 = vst [vmem:[%s3762_s7 + $0xc0] sm:$0xff] %v1145_v50  ;;  %v1021_v20 = vadd.f32 %v4097_v27, %v893_v30  ;;  %v3226_v0 = vpop.f32.mrb[26].mxu1  ;;  %v3228_v25 = vpop.f32.mrb[27].mxu0  ;;  %v4104_v52 = vld [vmem:[#allocation104_spill] sm:$0xff]  ;;  %v4105_v15 = vld [vmem:[#allocation123_spill] sm:$0xff] }
 0x19f   :  { %v1148_v53 = vadd.f32 %v4096_v3, %v1020_v39  ;;  %v896_v7 = vmul.f32 %v2826_v55, %v811_v28  ;;  %v1211_v33 = vmul.f32 3.0, %v1147_v14  ;;  %1403 = vst [vmem:[%s3762_s7 + $0xd0] sm:$0xff] %v1147_v14  ;;  %v1023_v56 = vadd.f32 %v4098_v59, %v895_v11  ;;  %v3238_v17 = vpop.f32.mrb[27].mxu1  ;;  %v4106_v50 = vld [vmem:[#allocation124_spill] sm:$0xff]  ;;  %v4107_v30 = vld [vmem:[#allocation105_spill] sm:$0xff] }
 0x1a0   :  { %v1210_v38 = vmul.f32 3.0, %v1146_v23  ;;  %1402 = vst [vmem:[%s3762_s7 + $0xc8] sm:$0xff] %v1146_v23  ;;  %v1022_v32 = vadd.f32 %v4099_v49, %v894_v40  ;;  %v1273_v36 = vsub.f32 %v4100_v18, %v1209_v35  ;;  %v1149_v63 = vadd.f32 %v4101_v51, %v1021_v20  ;;  %v4108_v14 = vld [vmem:[#allocation125_spill] sm:$0xff]  ;;  %v4113_v18 = vld [vmem:[#allocation178_spill] sm:$0xff] }
 0x1a1   :  { %v1212_v16 = vmul.f32 3.0, %v1148_v53  ;;  %1404 = vst [vmem:[%s3762_s7 + $0xd8] sm:$0xff] %v1148_v53  ;;  %v1024_v34 = vadd.f32 %v4102_v5, %v896_v7  ;;  %v1275_v48 = vsub.f32 %v4103_v26, %v1211_v33  ;;  %v1151_v10 = vadd.f32 %v4105_v15, %v1023_v56  ;;  %v3250_v39 = vpop.f32.mrb[28].mxu0  ;;  %v4109_v20 = vld [vmem:[#allocation113_spill] sm:$0xff]  ;;  %v4115_v5 = vld [vmem:[#allocation118_spill] sm:$0xff] }
 0x1a2   :  { %v1274_v54 = vsub.f32 %v4104_v52, %v1210_v38  ;;  %v1150_v19 = vadd.f32 %v4106_v50, %v1022_v32  ;;  %1337 = vst [vmem:[%s3763_s6 + $0xc0] sm:$0xff] %v1273_v36  ;;  %v1213_v58 = vmul.f32 3.0, %v1149_v63  ;;  %1405 = vst [vmem:[%s3762_s7 + $0xe0] sm:$0xff] %v1149_v63  ;;  %v643_v23 = vmul.f32 0.125, %v3046_v62  ;;  %v3261_v11 = vpop.f32.mrb[28].mxu1  ;;  %v3263_v40 = vpop.f32.mrb[29].mxu0 }
 0x1a3   :  { %v1276_v28 = vsub.f32 %v4107_v30, %v1212_v16  ;;  %v1152_v57 = vadd.f32 %v4108_v14, %v1024_v34  ;;  %1339 = vst [vmem:[%s3763_s6 + $0xd0] sm:$0xff] %v1275_v48  ;;  %v1215_v35 = vmul.f32 3.0, %v1151_v10  ;;  %1407 = vst [vmem:[%s3762_s7 + $0xf0] sm:$0xff] %v1151_v10  ;;  %v645_v62 = vmul.f32 0.125, %v3055_v22  ;;  %v3279_v27 = vpop.f32.mrb[29].mxu1  ;;  %v4110_v38 = vld [vmem:[#allocation121_spill] sm:$0xff] }
 0x1a4   :  { %1338 = vst [vmem:[%s3763_s6 + $0xc8] sm:$0xff] %v1274_v54  ;;  %v1214_v3 = vmul.f32 3.0, %v1150_v19  ;;  %1406 = vst [vmem:[%s3762_s7 + $0xe8] sm:$0xff] %v1150_v19  ;;  %v644_v53 = vmul.f32 0.125, %v3057_v61  ;;  %v1277_v7 = vsub.f32 %v4109_v20, %v1213_v58  ;;  %v812_v59 = vsub.f32 %v643_v23, %v4110_v38  ;;  %v4111_v22 = vld [vmem:[#allocation114_spill] sm:$0xff]  ;;  %v4112_v61 = vld [vmem:[#allocation117_spill] sm:$0xff] }
 0x1a5   :  { %1340 = vst [vmem:[%s3763_s6 + $0xd8] sm:$0xff] %v1276_v28  ;;  %v1216_v33 = vmul.f32 3.0, %v1152_v57  ;;  %1408 = vst [vmem:[%s3762_s7 + $0xf8] sm:$0xff] %v1152_v57  ;;  %v646_v56 = vmul.f32 0.125, %v3069_v47  ;;  %v1279_v49 = vsub.f32 %v4111_v22, %v1215_v35  ;;  %v814_v36 = vsub.f32 %v645_v62, %v4113_v18  ;;  %v4114_v16 = vld [vmem:[#allocation179_spill] sm:$0xff]  ;;  %v3294_v63 = vpop.f32.mrb[30].mxu0 }
 0x1a6   :  { %v1278_v32 = vsub.f32 %v4112_v61, %v1214_v3  ;;  %v813_v51 = vsub.f32 %v644_v53, %v4114_v16  ;;  %1341 = vst [vmem:[%s3763_s6 + $0xe0] sm:$0xff] %v1277_v7  ;;  %v897_v26 = vmul.f32 %v2797_v45, %v812_v59  ;;  %v4116_v48 = vld [vmem:[#allocation181_spill] sm:$0xff]  ;;  %v647_v52 = vmul.f32 0.125, %v3082_v6  ;;  %v3303_v54 = vpop.f32.mrb[30].mxu1  ;;  %v3305_v15 = vpop.f32.mrb[31].mxu0  ;;  %v4117_v28 = vld [vmem:[#allocation126_spill] sm:$0xff] }
 0x1a7   :  { %v1280_v34 = vsub.f32 %v4115_v5, %v1216_v33  ;;  %v815_v47 = vsub.f32 %v646_v56, %v4116_v48  ;;  %1343 = vst [vmem:[%s3763_s6 + $0xf0] sm:$0xff] %v1279_v49  ;;  %v899_v10 = vmul.f32 %v2814_v60, %v814_v36  ;;  %v649_v19 = vmul.f32 0.125, %v3088_v2  ;;  %v3317_v30 = vpop.f32.mrb[31].mxu1  ;;  %v4118_v57 = vld [vmem:[#allocation182_spill] sm:$0xff]  ;;  %v4119_v3 = vld [vmem:[#allocation128_spill] sm:$0xff]  ;;  %v4120_v53 = vld [vmem:[#allocation129_spill] sm:$0xff] }
 0x1a8   :  { %1342 = vst [vmem:[%s3763_s6 + $0xe8] sm:$0xff] %v1278_v32  ;;  %v898_v50 = vmul.f32 %v2819_v21, %v813_v51  ;;  %v648_v6 = vmul.f32 0.125, %v3090_v46  ;;  %v1025_v58 = vadd.f32 %v4117_v28, %v897_v26  ;;  %v816_v23 = vsub.f32 %v647_v52, %v4118_v57  ;;  %v4121_v20 = vld [vmem:[#allocation185_spill] sm:$0xff]  ;;  %v4122_v7 = vld [vmem:[#allocation186_spill] sm:$0xff]  ;;  %v4123_v38 = vld [vmem:[#allocation127_spill] sm:$0xff] }
 0x1a9   :  { %1344 = vst [vmem:[%s3763_s6 + $0xf8] sm:$0xff] %v1280_v34  ;;  %v900_v14 = vmul.f32 %v2826_v55, %v815_v47  ;;  %v650_v35 = vmul.f32 0.125, %v3096_v29  ;;  %v1027_v62 = vadd.f32 %v4119_v3, %v899_v10  ;;  %v818_v46 = vsub.f32 %v649_v19, %v4121_v20  ;;  %v4124_v56 = vld [vmem:[#allocation130_spill] sm:$0xff]  ;;  %v4125_v61 = vld [vmem:[#allocation3_spill] sm:$0xff]  ;;  %v4126_v18 = vld [vmem:[#allocation132_spill] sm:$0xff] }
 0x1aa   :  { %v1026_v2 = vadd.f32 %v4120_v53, %v898_v50  ;;  %v817_v33 = vsub.f32 %v648_v6, %v4122_v7  ;;  %v1153_v59 = vadd.f32 %v4123_v38, %v1025_v58  ;;  %v901_v49 = vmul.f32 %v2797_v45, %v816_v23  ;;  %v4127_v16 = vld [vmem:[#allocation133_spill] sm:$0xff]  ;;  %v4128_v26 = vld [vmem:[#allocation134_spill] sm:$0xff]  ;;  %v4129_v47 = vld [vmem:[#allocation136_spill] sm:$0xff] }
 0x1ab   :  { %v1028_v22 = vadd.f32 %v4124_v56, %v900_v14  ;;  %v819_v32 = vsub.f32 %v650_v35, %v4125_v61  ;;  %v1155_v36 = vadd.f32 %v4126_v18, %v1027_v62  ;;  %v903_v51 = vmul.f32 %v2814_v60, %v818_v46  ;;  %v4130_v6 = vld [vmem:[#allocation137_spill] sm:$0xff]  ;;  %v4131_v58 = vld [vmem:[#allocation139_spill] sm:$0xff]  ;;  %v4132_v3 = vld [vmem:[#allocation142_spill] sm:$0xff] }
 0x1ac   :  { %v1154_v29 = vadd.f32 %v4127_v16, %v1026_v2  ;;  %v902_v5 = vmul.f32 %v2819_v21, %v817_v33  ;;  %v1217_v34 = vmul.f32 3.0, %v1153_v59  ;;  %1409 = vst [vmem:[%s3762_s7 + $0x100] sm:$0xff] %v1153_v59  ;;  %v1029_v52 = vadd.f32 %v4129_v47, %v901_v49  ;;  %v4133_v53 = vld [vmem:[#allocation140_spill] sm:$0xff]  ;;  %v4134_v38 = vld [vmem:[#allocation143_spill] sm:$0xff]  ;;  %v4135_v56 = vld [vmem:[#allocation145_spill] sm:$0xff] }
 0x1ad   :  { %v1156_v48 = vadd.f32 %v4128_v26, %v1028_v22  ;;  %v904_v10 = vmul.f32 %v2826_v55, %v819_v32  ;;  %v1219_v50 = vmul.f32 3.0, %v1155_v36  ;;  %1411 = vst [vmem:[%s3762_s7 + $0x110] sm:$0xff] %v1155_v36  ;;  %v1031_v28 = vadd.f32 %v4130_v6, %v903_v51  ;;  %v4136_v18 = vld [vmem:[#allocation146_spill] sm:$0xff]  ;;  %v4137_v47 = vld [vmem:[#allocation4_spill] sm:$0xff]  ;;  %v4138_v6 = vld [vmem:[#allocation5_spill] sm:$0xff] }
 0x1ae   :  { %v1218_v19 = vmul.f32 3.0, %v1154_v29  ;;  %1410 = vst [vmem:[%s3762_s7 + $0x108] sm:$0xff] %v1154_v29  ;;  %v1030_v14 = vadd.f32 %v4131_v58, %v902_v5  ;;  %v1157_v62 = vadd.f32 %v4132_v3, %v1029_v52  ;;  %v651_v16 = vmul.f32 0.125, %v3112_v37  ;;  %v4139_v58 = vld [vmem:[#allocation6_spill] sm:$0xff] }
 0x1af   :  { %v1220_v35 = vmul.f32 3.0, %v1156_v48  ;;  %1412 = vst [vmem:[%s3762_s7 + $0x118] sm:$0xff] %v1156_v48  ;;  %v1032_v2 = vadd.f32 %v4133_v53, %v904_v10  ;;  %v1159_v59 = vadd.f32 %v4134_v38, %v1031_v28  ;;  %v653_v37 = vmul.f32 0.125, %v3120_v44  ;;  %v4142_v38 = vld [vmem:[#allocation9_spill] sm:$0xff] }
 0x1b0   :  { %v1496_v57 = vld [vmem:[%s3760_s4 + $0x100] sm:$0xff]  ;;  %v1497_v20 = vld [vmem:[%s3760_s4 + $0x110] sm:$0xff]  ;;  %v1498_v7 = vld [vmem:[%s3760_s4 + $0x108] sm:$0xff]  ;;  %v1158_v22 = vadd.f32 %v4135_v56, %v1030_v14  ;;  %v1221_v32 = vmul.f32 3.0, %v1157_v62  ;;  %1413 = vst [vmem:[%s3762_s7 + $0x120] sm:$0xff] %v1157_v62  ;;  %v652_v5 = vmul.f32 0.125, %v3122_v4  ;;  %v820_v52 = vsub.f32 %v651_v16, %v4137_v47 }
 0x1b1   :  { %v1281_v23 = vsub.f32 %v1496_v57, %v1217_v34  ;;  %v1283_v46 = vsub.f32 %v1497_v20, %v1219_v50  ;;  %v1282_v33 = vsub.f32 %v1498_v7, %v1218_v19  ;;  %v1160_v36 = vadd.f32 %v4136_v18, %v1032_v2  ;;  %1415 = vst [vmem:[%s3762_s7 + $0x130] sm:$0xff] %v1159_v59  ;;  %v4145_v18 = vld [vmem:[#allocation10_spill] sm:$0xff]  ;;  %v4147_v16 = vld [vmem:[#allocation148_spill] sm:$0xff] }
 0x1b2   :  { %v1223_v29 = vmul.f32 3.0, %v1159_v59  ;;  %v1222_v51 = vmul.f32 3.0, %v1158_v22  ;;  %1414 = vst [vmem:[%s3762_s7 + $0x128] sm:$0xff] %v1158_v22  ;;  %v654_v44 = vmul.f32 0.125, %v3128_v42  ;;  %v822_v28 = vsub.f32 %v653_v37, %v4138_v6  ;;  %v4143_v22 = vld [vmem:[#allocation149_spill] sm:$0xff]  ;;  %v4153_v6 = vld [vmem:[#allocation155_spill] sm:$0xff] }
 0x1b3   :  { %1345 = vst [vmem:[%s3763_s6 + $0x100] sm:$0xff] %v1281_v23  ;;  %v1224_v48 = vmul.f32 3.0, %v1160_v36  ;;  %1416 = vst [vmem:[%s3762_s7 + $0x138] sm:$0xff] %v1160_v36  ;;  %v821_v14 = vsub.f32 %v652_v5, %v4139_v58  ;;  %v905_v23 = vmul.f32 %v2797_v45, %v820_v52  ;;  %v655_v62 = vmul.f32 0.125, %v3153_v31  ;;  %v4141_v31 = vld [vmem:[#allocation147_spill] sm:$0xff]  ;;  %v4146_v36 = vld [vmem:[#allocation14_spill] sm:$0xff] }
 0x1b4   :  { %v907_v53 = vmul.f32 %v2814_v60, %v822_v28  ;;  %v657_v20 = vmul.f32 0.125, %v3164_v9  ;;  %v658_v56 = vmul.f32 0.125, %v3172_v24  ;;  %v4151_v52 = vld [vmem:[#allocation153_spill] sm:$0xff] }
 0x1b5   :  { %v906_v2 = vmul.f32 %v2819_v21, %v821_v14  ;;  %v1033_v7 = vadd.f32 %v4141_v31, %v905_v23  ;;  %v824_v59 = vsub.f32 %v655_v62, %v4142_v38  ;;  %v4157_v31 = vld [vmem:[#allocation158_spill] sm:$0xff] }
 0x1b6   :  { %v826_v9 = vsub.f32 %v657_v20, %v4145_v18  ;;  %v4156_v20 = vld [vmem:[#allocation159_spill] sm:$0xff] }
 0x1b7   :  { %v909_v5 = vmul.f32 %v2797_v45, %v824_v59 }
 0x1b9   :  { %v1037_v28 = vadd.f32 %v4153_v6, %v909_v5  ;;  %v660_v5 = vmul.f32 0.125, %v3202_v1 }
 0x1ba   :  { %v1499_v49 = vld [vmem:[%s3760_s4 + $0x118] sm:$0xff] }
 0x1bb   :  { %v1284_v61 = vsub.f32 %v1499_v49, %v1220_v35  ;;  %1347 = vst [vmem:[%s3763_s6 + $0x110] sm:$0xff] %v1283_v46  ;;  %1346 = vst [vmem:[%s3763_s6 + $0x108] sm:$0xff] %v1282_v33  ;;  %v4140_v35 = vld [vmem:[#allocation8_spill] sm:$0xff]  ;;  %v656_v46 = vmul.f32 0.125, %v3166_v41  ;;  %v1035_v49 = vadd.f32 %v4143_v22, %v907_v53 }
 0x1bc   :  { %v823_v3 = vsub.f32 %v654_v44, %v4140_v35  ;;  %v911_v44 = vmul.f32 %v2814_v60, %v826_v9  ;;  %v4155_v35 = vld [vmem:[#allocation157_spill] sm:$0xff]  ;;  %v4158_v22 = vld [vmem:[#allocation160_spill] sm:$0xff] }
 0x1bd   :  { %1348 = vst [vmem:[%s3763_s6 + $0x118] sm:$0xff] %v1284_v61  ;;  %v4144_v61 = vld [vmem:[#allocation150_spill] sm:$0xff]  ;;  %v825_v41 = vsub.f32 %v656_v46, %v4146_v36  ;;  %v1165_v46 = vadd.f32 %v4156_v20, %v1037_v28  ;;  %v4166_v20 = vld [vmem:[#allocation23_spill] sm:$0xff] }
 0x1be   :  { %v908_v33 = vmul.f32 %v2826_v55, %v823_v3 }
 0x1bf   :  { %v1229_v36 = vmul.f32 3.0, %v1165_v46  ;;  %1421 = vst [vmem:[%s3762_s7 + $0x160] sm:$0xff] %v1165_v46 }
 0x1c4   :  { %v1500_v34 = vld [vmem:[%s3760_s4 + $0x120] sm:$0xff]  ;;  %v1501_v4 = vld [vmem:[%s3760_s4 + $0x130] sm:$0xff]  ;;  %v1502_v50 = vld [vmem:[%s3760_s4 + $0x128] sm:$0xff] }
 0x1c5   :  { %v1285_v26 = vsub.f32 %v1500_v34, %v1221_v32  ;;  %v1287_v10 = vsub.f32 %v1501_v4, %v1223_v29  ;;  %v1286_v19 = vsub.f32 %v1502_v50, %v1222_v51  ;;  %v1034_v32 = vadd.f32 %v4144_v61, %v906_v2  ;;  %v4148_v51 = vld [vmem:[#allocation151_spill] sm:$0xff]  ;;  %v4152_v50 = vld [vmem:[#allocation154_spill] sm:$0xff]  ;;  %v4159_v61 = vld [vmem:[#allocation161_spill] sm:$0xff] }
 0x1c6   :  { %v1161_v29 = vadd.f32 %v4147_v16, %v1033_v7  ;;  %v1036_v37 = vadd.f32 %v4148_v51, %v908_v33  ;;  %v4149_v34 = vld [vmem:[#allocation15_spill] sm:$0xff]  ;;  %v910_v4 = vmul.f32 %v2819_v21, %v825_v41  ;;  %v4160_v41 = vld [vmem:[#allocation162_spill] sm:$0xff] }
 0x1c7   :  { %1349 = vst [vmem:[%s3763_s6 + $0x120] sm:$0xff] %v1285_v26  ;;  %v827_v26 = vsub.f32 %v658_v56, %v4149_v34  ;;  %v1162_v24 = vadd.f32 %v4151_v52, %v1034_v32 }
 0x1c8   :  { %1417 = vst [vmem:[%s3762_s7 + $0x140] sm:$0xff] %v1161_v29  ;;  %v1038_v3 = vadd.f32 %v4155_v35, %v910_v4 }
 0x1c9   :  { %v912_v58 = vmul.f32 %v2826_v55, %v827_v26  ;;  %1418 = vst [vmem:[%s3762_s7 + $0x148] sm:$0xff] %v1162_v24 }
 0x1ca   :  { %v1166_v32 = vadd.f32 %v4159_v61, %v1038_v3  ;;  %v665_v3 = vmul.f32 0.125, %v3226_v0 }
 0x1cb   :  { %v1040_v7 = vadd.f32 %v4157_v31, %v912_v58  ;;  %v666_v31 = vmul.f32 0.125, %v3238_v17 }
 0x1cc   :  { %1422 = vst [vmem:[%s3762_s7 + $0x168] sm:$0xff] %v1166_v32 }
 0x1cd   :  { %v1168_v16 = vadd.f32 %v4160_v41, %v1040_v7  ;;  %v4167_v7 = vld [vmem:[#allocation165_spill] sm:$0xff] }
 0x1ce   :  { %v1503_v42 = vld [vmem:[%s3760_s4 + $0x138] sm:$0xff] }
 0x1cf   :  { %v1288_v57 = vsub.f32 %v1503_v42, %v1224_v48  ;;  %1351 = vst [vmem:[%s3763_s6 + $0x130] sm:$0xff] %v1287_v10  ;;  %1350 = vst [vmem:[%s3763_s6 + $0x128] sm:$0xff] %v1286_v19  ;;  %v4150_v48 = vld [vmem:[#allocation152_spill] sm:$0xff]  ;;  %v1225_v10 = vmul.f32 3.0, %v1161_v29  ;;  %v1164_v19 = vadd.f32 %v4152_v50, %v1036_v37  ;;  %v1226_v42 = vmul.f32 3.0, %v1162_v24 }
 0x1d0   :  { %v1163_v47 = vadd.f32 %v4150_v48, %v1035_v49  ;;  %v659_v29 = vmul.f32 0.125, %v3191_v12  ;;  %v1230_v37 = vmul.f32 3.0, %v1166_v32  ;;  %v661_v12 = vmul.f32 0.125, %v3200_v13  ;;  %1424 = vst [vmem:[%s3762_s7 + $0x178] sm:$0xff] %v1168_v16  ;;  %v4172_v32 = vld [vmem:[#allocation167_spill] sm:$0xff] }
 0x1d1   :  { %1352 = vst [vmem:[%s3763_s6 + $0x138] sm:$0xff] %v1288_v57  ;;  %v4154_v57 = vld [vmem:[#allocation156_spill] sm:$0xff]  ;;  %v1228_v2 = vmul.f32 3.0, %v1164_v19  ;;  %1420 = vst [vmem:[%s3762_s7 + $0x158] sm:$0xff] %v1164_v19  ;;  %v1232_v48 = vmul.f32 3.0, %v1168_v16  ;;  %v662_v13 = vmul.f32 0.125, %v3208_v43 }
 0x1d2   :  { %v1227_v14 = vmul.f32 3.0, %v1163_v47  ;;  %1419 = vst [vmem:[%s3762_s7 + $0x150] sm:$0xff] %v1163_v47  ;;  %v1039_v23 = vadd.f32 %v4154_v57, %v911_v44  ;;  %v4161_v47 = vld [vmem:[#allocation16_spill] sm:$0xff]  ;;  %v4163_v19 = vld [vmem:[#allocation21_spill] sm:$0xff]  ;;  %v663_v57 = vmul.f32 0.125, %v3218_v8  ;;  %v4165_v8 = vld [vmem:[#allocation163_spill] sm:$0xff] }
 0x1d3   :  { %v828_v52 = vsub.f32 %v659_v29, %v4161_v47  ;;  %v829_v6 = vsub.f32 %v660_v5, %v4163_v19  ;;  %v4174_v16 = vld [vmem:[#allocation168_spill] sm:$0xff] }
 0x1d4   :  { %v1167_v49 = vadd.f32 %v4158_v22, %v1039_v23  ;;  %v832_v46 = vsub.f32 %v663_v57, %v4166_v20  ;;  %v4170_v22 = vld [vmem:[#allocation28_spill] sm:$0xff] }
 0x1d5   :  { %v913_v58 = vmul.f32 %v2797_v45, %v828_v52  ;;  %v914_v35 = vmul.f32 %v2819_v21, %v829_v6 }
 0x1d6   :  { %v1231_v51 = vmul.f32 3.0, %v1167_v49  ;;  %1423 = vst [vmem:[%s3762_s7 + $0x170] sm:$0xff] %v1167_v49  ;;  %v4171_v49 = vld [vmem:[#allocation164_spill] sm:$0xff] }
 0x1d8   :  { %v1504_v62 = vld [vmem:[%s3760_s4 + $0x140] sm:$0xff]  ;;  %v1505_v33 = vld [vmem:[%s3760_s4 + $0x150] sm:$0xff]  ;;  %v1506_v59 = vld [vmem:[%s3760_s4 + $0x148] sm:$0xff] }
 0x1d9   :  { %v1289_v53 = vsub.f32 %v1504_v62, %v1225_v10  ;;  %v1291_v38 = vsub.f32 %v1505_v33, %v1227_v14  ;;  %v1290_v56 = vsub.f32 %v1506_v59, %v1226_v42  ;;  %v4162_v10 = vld [vmem:[#allocation17_spill] sm:$0xff]  ;;  %v4164_v14 = vld [vmem:[#allocation22_spill] sm:$0xff]  ;;  %v664_v62 = vmul.f32 0.125, %v3228_v25 }
 0x1da   :  { %v830_v50 = vsub.f32 %v661_v12, %v4162_v10  ;;  %v831_v42 = vsub.f32 %v662_v13, %v4164_v14 }
 0x1db   :  { %1353 = vst [vmem:[%s3763_s6 + $0x140] sm:$0xff] %v1289_v53  ;;  %v1041_v53 = vadd.f32 %v4165_v8, %v913_v58  ;;  %v833_v25 = vsub.f32 %v664_v62, %v4170_v22  ;;  %v4181_v58 = vld [vmem:[#allocation174_spill] sm:$0xff]  ;;  %v4183_v8 = vld [vmem:[#allocation7_spill] sm:$0xff] }
 0x1dc   :  { %v915_v23 = vmul.f32 %v2814_v60, %v830_v50 }
 0x1dd   :  { %v1169_v61 = vadd.f32 %v4171_v49, %v1041_v53  ;;  %v918_v12 = vmul.f32 %v2819_v21, %v833_v25  ;;  %v4185_v49 = vld [vmem:[#allocation30_spill] sm:$0xff] }
 0x1de   :  { %v1043_v33 = vadd.f32 %v4167_v7, %v915_v23 }
 0x1df   :  { %v1233_v5 = vmul.f32 3.0, %v1169_v61  ;;  %1425 = vst [vmem:[%s3762_s7 + $0x180] sm:$0xff] %v1169_v61 }
 0x1e0   :  { %v1171_v29 = vadd.f32 %v4174_v16, %v1043_v33  ;;  %v667_v33 = vmul.f32 0.125, %v3250_v39  ;;  %v669_v39 = vmul.f32 0.125, %v3261_v11  ;;  %v670_v11 = vmul.f32 0.125, %v3279_v27  ;;  %v4187_v16 = vld [vmem:[#allocation32_spill] sm:$0xff] }
 0x1e2   :  { %v1507_v18 = vld [vmem:[%s3760_s4 + $0x158] sm:$0xff]  ;;  %v1235_v13 = vmul.f32 3.0, %v1171_v29  ;;  %1427 = vst [vmem:[%s3762_s7 + $0x190] sm:$0xff] %v1171_v29  ;;  %v836_v61 = vsub.f32 %v667_v33, %v4185_v49 }
 0x1e3   :  { %v1292_v9 = vsub.f32 %v1507_v18, %v1228_v2  ;;  %1355 = vst [vmem:[%s3763_s6 + $0x150] sm:$0xff] %v1291_v38  ;;  %1354 = vst [vmem:[%s3763_s6 + $0x148] sm:$0xff] %v1290_v56  ;;  %v916_v2 = vmul.f32 %v2826_v55, %v831_v42  ;;  %v4168_v38 = vld [vmem:[#allocation166_spill] sm:$0xff]  ;;  %v4169_v56 = vld [vmem:[#allocation24_spill] sm:$0xff] }
 0x1e4   :  { %v1042_v59 = vadd.f32 %v4168_v38, %v914_v35  ;;  %v834_v0 = vsub.f32 %v665_v3, %v4169_v56  ;;  %v4182_v3 = vld [vmem:[#allocation176_spill] sm:$0xff]  ;;  %v668_v56 = vmul.f32 0.125, %v3263_v40 }
 0x1e5   :  { %1356 = vst [vmem:[%s3763_s6 + $0x158] sm:$0xff] %v1292_v9  ;;  %v1044_v18 = vadd.f32 %v4172_v32, %v916_v2  ;;  %v917_v9 = vmul.f32 %v2797_v45, %v832_v46 }
 0x1e6   :  { %v837_v29 = vsub.f32 %v668_v56, %v4187_v16  ;;  %v4207_v16 = vld [vmem:[#allocation26_spill] sm:$0xff] }
 0x1ec   :  { %v1508_v34 = vld [vmem:[%s3760_s4 + $0x160] sm:$0xff]  ;;  %v1509_v1 = vld [vmem:[%s3760_s4 + $0x170] sm:$0xff]  ;;  %v1510_v44 = vld [vmem:[%s3760_s4 + $0x168] sm:$0xff] }
 0x1ed   :  { %v1293_v26 = vsub.f32 %v1508_v34, %v1229_v36  ;;  %v1295_v24 = vsub.f32 %v1509_v1, %v1231_v51  ;;  %v1294_v4 = vsub.f32 %v1510_v44, %v1230_v37  ;;  %v4173_v36 = vld [vmem:[#allocation29_spill] sm:$0xff]  ;;  %v919_v37 = vmul.f32 %v2814_v60, %v834_v0  ;;  %v4176_v34 = vld [vmem:[#allocation170_spill] sm:$0xff] }
 0x1ee   :  { %v835_v41 = vsub.f32 %v666_v31, %v4173_v36  ;;  %v4175_v51 = vld [vmem:[#allocation169_spill] sm:$0xff]  ;;  %v4184_v31 = vld [vmem:[#allocation11_spill] sm:$0xff] }
 0x1ef   :  { %1357 = vst [vmem:[%s3763_s6 + $0x160] sm:$0xff] %v1293_v26  ;;  %v1170_v17 = vadd.f32 %v4175_v51, %v1042_v59  ;;  %v1172_v26 = vadd.f32 %v4176_v34, %v1044_v18  ;;  %v4186_v36 = vld [vmem:[#allocation31_spill] sm:$0xff] }
 0x1f0   :  { %v920_v52 = vmul.f32 %v2826_v55, %v835_v41  ;;  %v838_v41 = vsub.f32 %v669_v39, %v4186_v36  ;;  %v4203_v39 = vld [vmem:[#allocation187_spill] sm:$0xff]  ;;  %v4206_v36 = vld [vmem:[#allocation25_spill] sm:$0xff] }
 0x1f1   :  { %v1234_v1 = vmul.f32 3.0, %v1170_v17  ;;  %1426 = vst [vmem:[%s3762_s7 + $0x188] sm:$0xff] %v1170_v17  ;;  %v1236_v6 = vmul.f32 3.0, %v1172_v26  ;;  %1428 = vst [vmem:[%s3762_s7 + $0x198] sm:$0xff] %v1172_v26  ;;  %v921_v17 = vmul.f32 %v2797_v45, %v836_v61  ;;  %v922_v26 = vmul.f32 %v2819_v21, %v837_v29  ;;  %v4205_v61 = vld [vmem:[#allocation188_spill] sm:$0xff] }
 0x1f2   :  { %v1048_v14 = vadd.f32 %v4181_v58, %v920_v52  ;;  %v923_v34 = vmul.f32 %v2814_v60, %v838_v41 }
 0x1f4   :  { %v1176_v7 = vadd.f32 %v4184_v31, %v1048_v14  ;;  %v4196_v14 = vld [vmem:[#allocation184_spill] sm:$0xff] }
 0x1f6   :  { %v1511_v43 = vld [vmem:[%s3760_s4 + $0x178] sm:$0xff]  ;;  %v1240_v25 = vmul.f32 3.0, %v1176_v7  ;;  %1432 = vst [vmem:[%s3762_s7 + $0x1b8] sm:$0xff] %v1176_v7  ;;  %v4201_v7 = vld [vmem:[#allocation19_spill] sm:$0xff] }
 0x1f7   :  { %v1296_v28 = vsub.f32 %v1511_v43, %v1232_v48  ;;  %1359 = vst [vmem:[%s3763_s6 + $0x170] sm:$0xff] %v1295_v24  ;;  %1358 = vst [vmem:[%s3763_s6 + $0x168] sm:$0xff] %v1294_v4  ;;  %v4177_v48 = vld [vmem:[#allocation171_spill] sm:$0xff]  ;;  %v4178_v24 = vld [vmem:[#allocation172_spill] sm:$0xff] }
 0x1f8   :  { %v1045_v47 = vadd.f32 %v4177_v48, %v917_v9  ;;  %v1047_v44 = vadd.f32 %v4178_v24, %v919_v37  ;;  %v4179_v4 = vld [vmem:[#allocation173_spill] sm:$0xff]  ;;  %v4180_v43 = vld [vmem:[#allocation175_spill] sm:$0xff]  ;;  %v673_v48 = vmul.f32 0.125, %v3303_v54 }
 0x1f9   :  { %1360 = vst [vmem:[%s3763_s6 + $0x178] sm:$0xff] %v1296_v28  ;;  %v1046_v10 = vadd.f32 %v4179_v4, %v918_v12  ;;  %v4188_v37 = vld [vmem:[#allocation33_spill] sm:$0xff]  ;;  %v4191_v4 = vld [vmem:[#allocation180_spill] sm:$0xff] }
 0x1fa   :  { %v1173_v28 = vadd.f32 %v4180_v43, %v1045_v47  ;;  %v1175_v62 = vadd.f32 %v4182_v3, %v1047_v44  ;;  %v839_v12 = vsub.f32 %v670_v11, %v4188_v37  ;;  %v672_v47 = vmul.f32 0.125, %v3305_v15  ;;  %v4194_v43 = vld [vmem:[#allocation36_spill] sm:$0xff]  ;;  %v4198_v3 = vld [vmem:[#allocation13_spill] sm:$0xff]  ;;  %v4208_v37 = vld [vmem:[#allocation27_spill] sm:$0xff] }
 0x1fb   :  { %v1174_v53 = vadd.f32 %v4183_v8, %v1046_v10  ;;  %v674_v44 = vmul.f32 0.125, %v3317_v30  ;;  %v1051_v10 = vadd.f32 %v4191_v4, %v923_v34  ;;  %v4199_v8 = vld [vmem:[#allocation18_spill] sm:$0xff] }
 0x1fc   :  { %v1237_v46 = vmul.f32 3.0, %v1173_v28  ;;  %1429 = vst [vmem:[%s3762_s7 + $0x1a0] sm:$0xff] %v1173_v28  ;;  %v1239_v38 = vmul.f32 3.0, %v1175_v62  ;;  %1431 = vst [vmem:[%s3762_s7 + $0x1b0] sm:$0xff] %v1175_v62  ;;  %v841_v15 = vsub.f32 %v672_v47, %v4194_v43  ;;  %v4195_v28 = vld [vmem:[#allocation12_spill] sm:$0xff] }
 0x1fd   :  { %v1238_v59 = vmul.f32 3.0, %v1174_v53  ;;  %1430 = vst [vmem:[%s3762_s7 + $0x1a8] sm:$0xff] %v1174_v53  ;;  %v1179_v62 = vadd.f32 %v4198_v3, %v1051_v10 }
 0x1ff   :  { %1435 = vst [vmem:[%s3762_s7 + $0x1d0] sm:$0xff] %v1179_v62 }
 0x200   :  { %v1512_v50 = vld [vmem:[%s3760_s4 + $0x180] sm:$0xff]  ;;  %v1513_v42 = vld [vmem:[%s3760_s4 + $0x190] sm:$0xff]  ;;  %v1514_v23 = vld [vmem:[%s3760_s4 + $0x188] sm:$0xff] }
 0x201   :  { %v1297_v19 = vsub.f32 %v1512_v50, %v1233_v5  ;;  %v1299_v57 = vsub.f32 %v1513_v42, %v1235_v13  ;;  %v1298_v35 = vsub.f32 %v1514_v23, %v1234_v1  ;;  %v671_v5 = vmul.f32 0.125, %v3294_v63  ;;  %v4189_v63 = vld [vmem:[#allocation177_spill] sm:$0xff]  ;;  %v4190_v1 = vld [vmem:[#allocation34_spill] sm:$0xff]  ;;  %v4192_v50 = vld [vmem:[#allocation183_spill] sm:$0xff] }
 0x202   :  { %v1049_v52 = vadd.f32 %v4189_v63, %v921_v17  ;;  %v924_v13 = vmul.f32 %v2826_v55, %v839_v12  ;;  %v4197_v23 = vld [vmem:[#allocation37_spill] sm:$0xff] }
 0x203   :  { %1361 = vst [vmem:[%s3763_s6 + $0x180] sm:$0xff] %v1297_v19  ;;  %v840_v24 = vsub.f32 %v671_v5, %v4190_v1  ;;  %v1050_v19 = vadd.f32 %v4192_v50, %v922_v26 }
 0x204   :  { %v1177_v58 = vadd.f32 %v4195_v28, %v1049_v52  ;;  %v1052_v42 = vadd.f32 %v4196_v14, %v924_v13 }
 0x205   :  { %v1178_v30 = vadd.f32 %v4199_v8, %v1050_v19 }
 0x206   :  { %1433 = vst [vmem:[%s3762_s7 + $0x1c0] sm:$0xff] %v1177_v58 }
 0x207   :  { %1434 = vst [vmem:[%s3762_s7 + $0x1c8] sm:$0xff] %v1178_v30 }
 0x20a   :  { %v1515_v2 = vld [vmem:[%s3760_s4 + $0x198] sm:$0xff] }
 0x20b   :  { %v1300_v20 = vsub.f32 %v1515_v2, %v1236_v6  ;;  %1363 = vst [vmem:[%s3763_s6 + $0x190] sm:$0xff] %v1299_v57  ;;  %1362 = vst [vmem:[%s3763_s6 + $0x188] sm:$0xff] %v1298_v35  ;;  %v4193_v6 = vld [vmem:[#allocation35_spill] sm:$0xff]  ;;  %v925_v57 = vmul.f32 %v2797_v45, %v840_v24  ;;  %v843_v35 = vsub.f32 %v674_v44, %v4197_v23 }
 0x20c   :  { %v842_v54 = vsub.f32 %v673_v48, %v4193_v6  ;;  %v926_v2 = vmul.f32 %v2819_v21, %v841_v15 }
 0x20d   :  { %1364 = vst [vmem:[%s3763_s6 + $0x198] sm:$0xff] %v1300_v20  ;;  %v1241_v20 = vmul.f32 3.0, %v1177_v58  ;;  %v1053_v33 = vadd.f32 %v4201_v7, %v925_v57  ;;  %v928_v45 = vmul.f32 %v2826_v55, %v843_v35 }
 0x20e   :  { %v927_v53 = vmul.f32 %v2814_v60, %v842_v54  ;;  %v4202_v60 = vld [vmem:[#allocation2_spill] sm:$0xff]  ;;  %v1054_v56 = vadd.f32 %v4203_v39, %v926_v2 }
 0x20f   :  { %v1056_v11 = vadd.f32 %v4205_v61, %v928_v45 }
 0x210   :  { %v1055_v21 = vadd.f32 %v4202_v60, %v927_v53  ;;  %v1182_v29 = vadd.f32 %v4207_v16, %v1054_v56 }
 0x211   :  { %v1184_v12 = vadd.f32 %v4208_v37, %v1056_v11 }
 0x212   :  { %v1183_v41 = vadd.f32 %v4206_v36, %v1055_v21  ;;  %v1246_v34 = vmul.f32 3.0, %v1182_v29  ;;  %1438 = vst [vmem:[%s3762_s7 + $0x1e8] sm:$0xff] %v1182_v29 }
 0x213   :  { %v1248_v47 = vmul.f32 3.0, %v1184_v12  ;;  %1440 = vst [vmem:[%s3762_s7 + $0x1f8] sm:$0xff] %v1184_v12 }
 0x214   :  { %v1516_v0 = vld [vmem:[%s3760_s4 + $0x1a0] sm:$0xff]  ;;  %v1517_v40 = vld [vmem:[%s3760_s4 + $0x1b0] sm:$0xff]  ;;  %v1518_v18 = vld [vmem:[%s3760_s4 + $0x1a8] sm:$0xff]  ;;  %v1247_v5 = vmul.f32 3.0, %v1183_v41  ;;  %1439 = vst [vmem:[%s3762_s7 + $0x1f0] sm:$0xff] %v1183_v41 }
 0x215   :  { %v1301_v22 = vsub.f32 %v1516_v0, %v1237_v46  ;;  %v1303_v32 = vsub.f32 %v1517_v40, %v1239_v38  ;;  %v1302_v9 = vsub.f32 %v1518_v18, %v1238_v59  ;;  %v4200_v46 = vld [vmem:[#allocation39_spill] sm:$0xff]  ;;  %v1243_v38 = vmul.f32 3.0, %v1179_v62 }
 0x216   :  { %v1180_v31 = vadd.f32 %v4200_v46, %v1052_v42  ;;  %v1242_v59 = vmul.f32 3.0, %v1178_v30 }
 0x217   :  { %1365 = vst [vmem:[%s3763_s6 + $0x1a0] sm:$0xff] %v1301_v22 }
 0x218   :  { %v1244_v55 = vmul.f32 3.0, %v1180_v31  ;;  %1436 = vst [vmem:[%s3762_s7 + $0x1d8] sm:$0xff] %v1180_v31 }
 0x21e   :  { %v1519_v27 = vld [vmem:[%s3760_s4 + $0x1b8] sm:$0xff] }
 0x21f   :  { %v1304_v51 = vsub.f32 %v1519_v27, %v1240_v25  ;;  %1367 = vst [vmem:[%s3763_s6 + $0x1b0] sm:$0xff] %v1303_v32  ;;  %1366 = vst [vmem:[%s3763_s6 + $0x1a8] sm:$0xff] %v1302_v9  ;;  %v4204_v25 = vld [vmem:[#allocation20_spill] sm:$0xff] }
 0x220   :  { %v1181_v49 = vadd.f32 %v4204_v25, %v1053_v33 }
 0x221   :  { %1368 = vst [vmem:[%s3763_s6 + $0x1b8] sm:$0xff] %v1304_v51 }
 0x222   :  { %v1245_v17 = vmul.f32 3.0, %v1181_v49  ;;  %1437 = vst [vmem:[%s3762_s7 + $0x1e0] sm:$0xff] %v1181_v49 }
 0x228   :  { %v1520_v0 = vld [vmem:[%s3760_s4 + $0x1c0] sm:$0xff]  ;;  %v1521_v40 = vld [vmem:[%s3760_s4 + $0x1d0] sm:$0xff]  ;;  %v1522_v18 = vld [vmem:[%s3760_s4 + $0x1c8] sm:$0xff] }
 0x229   :  { %v1305_v22 = vsub.f32 %v1520_v0, %v1241_v20  ;;  %v1307_v32 = vsub.f32 %v1521_v40, %v1243_v38  ;;  %v1306_v9 = vsub.f32 %v1522_v18, %v1242_v59 }
 0x22b   :  { %1369 = vst [vmem:[%s3763_s6 + $0x1c0] sm:$0xff] %v1305_v22 }
 0x232   :  { %v1523_v27 = vld [vmem:[%s3760_s4 + $0x1d8] sm:$0xff] }
 0x233   :  { %v1308_v51 = vsub.f32 %v1523_v27, %v1244_v55  ;;  %1371 = vst [vmem:[%s3763_s6 + $0x1d0] sm:$0xff] %v1307_v32  ;;  %1370 = vst [vmem:[%s3763_s6 + $0x1c8] sm:$0xff] %v1306_v9 }
 0x235   :  { %1372 = vst [vmem:[%s3763_s6 + $0x1d8] sm:$0xff] %v1308_v51 }
 0x23c   :  { %v1524_v26 = vld [vmem:[%s3760_s4 + $0x1e0] sm:$0xff]  ;;  %v1525_v63 = vld [vmem:[%s3760_s4 + $0x1f0] sm:$0xff]  ;;  %v1526_v13 = vld [vmem:[%s3760_s4 + $0x1e8] sm:$0xff] }
 0x23d   :  { %v1309_v48 = vsub.f32 %v1524_v26, %v1245_v17  ;;  %v1311_v52 = vsub.f32 %v1525_v63, %v1247_v5  ;;  %v1310_v1 = vsub.f32 %v1526_v13, %v1246_v34 }
 0x23f   :  { %1373 = vst [vmem:[%s3763_s6 + $0x1e0] sm:$0xff] %v1309_v48 }
 0x246   :  { %v1527_v24 = vld [vmem:[%s3760_s4 + $0x1f8] sm:$0xff] }
 0x247   :  { %v1312_v44 = vsub.f32 %v1527_v24, %v1248_v47  ;;  %1375 = vst [vmem:[%s3763_s6 + $0x1f0] sm:$0xff] %v1311_v52  ;;  %1374 = vst [vmem:[%s3763_s6 + $0x1e8] sm:$0xff] %v1310_v1 }
 0x249   :  { %1376 = vst [vmem:[%s3763_s6 + $0x1f8] sm:$0xff] %v1312_v44 }

</bundles_post_ra>
